<compile_context>
chip_gen: v6e
topology: v6e:2x2x1
jax: 0.10.0
libtpu: 0.0.40
codegen_flags: <defaults>
</compile_context>

<pallas_src>
import numpy as np
import jax
import jax.numpy as jnp
from jax import lax
from jax.experimental import pallas as pl
from jax.experimental.pallas import tpu as pltpu

EPS = 1e-5

# Network config (matches the PyTorch module; input must be [B, 1, 32, 32] so
# that conv4 yields 1x1x128 = 128 features for fc1).
CONVS = [(3, 1, 16), (3, 16, 32), (3, 32, 64), (2, 64, 128)]   # (k, Cin, Cout)
FCS = [(128, 64), (64, 32), (32, 16), (16, 8), (8, 2)]          # (din, dout)


def _ceil_to(x, m):
    return -(-x // m) * m


def spatial_plan(H0, W0):
    plan, H, W = [], H0, W0
    for li, (k, cin, cout) in enumerate(CONVS):
        Ho, Wo = H - k + 1, W - k + 1
        pool = li < len(CONVS) - 1
        Hp, Wp = Ho // 2, Wo // 2
        Hop = _ceil_to(Ho, 8)                     # per-image row slot (8-aligned)
        if pool:
            WpD = Wp * cout
            Pe = _ceil_to(WpD, 128)               # even-column block, lane aligned
            Np = Pe + WpD + (Wo - 2 * Wp) * cout  # [even | pad | odd | leftover]
        else:
            Pe, Np = 0, Wo * cout
        plan.append(dict(k=k, cin=cin, cout=cout, H=H, W=W, Ho=Ho, Wo=Wo,
                         Hp=Hp, Wp=Wp, Hop=Hop, Pe=Pe, Np=Np, pool=pool,
                         direct=not pool))
        H, W = (Hp, Wp) if pool else (Ho, Wo)
    return plan


# ---------------------------------------------------------------------------
# One-time parameter pre-transforms (numpy, outside the jitted forward path)
# ---------------------------------------------------------------------------

def _col_offsets(cfg):
    """Lane offset of each conv output column jo in the (permuted) layout."""
    D, Wo = cfg["cout"], cfg["Wo"]
    if not cfg["pool"]:
        return [jo * D for jo in range(Wo)]
    Wp, Pe = cfg["Wp"], cfg["Pe"]
    off = [0] * Wo
    for jp in range(Wp):
        off[2 * jp] = jp * D                      # even columns -> block E
        off[2 * jp + 1] = Pe + jp * D             # odd columns  -> block O
    for r, jo in enumerate(range(2 * Wp, Wo)):
        off[jo] = Pe + Wp * D + r * D             # leftover (BN stats only)
    return off


def _toeplitz_weight(w, cfg):
    """Conv weight [k,k,C,D] -> block-Toeplitz [k*W*C, Np] with even/odd output
    columns routed to disjoint lane blocks (pad lanes are exactly zero)."""
    k, _, C, D = w.shape
    W, Wo, Np = cfg["W"], cfg["Wo"], cfg["Np"]
    off = _col_offsets(cfg)
    M = np.zeros((k * W * C, Np), np.float32)
    for jo in range(Wo):
        o = off[jo]
        for di in range(k):
            for dj in range(k):
                r0 = di * W * C + (jo + dj) * C
                M[r0:r0 + C, o:o + D] = w[di, dj]
    return M


def _group_mats(cfg):
    """0/1 matrices mapping the [.., Np] lane layout <-> per-channel [.., D]."""
    D, Wo, Np = cfg["cout"], cfg["Wo"], cfg["Np"]
    off = _col_offsets(cfg)
    eye = np.eye(D, dtype=np.float32)
    G = np.zeros((Np, D), np.float32)
    for jo in range(Wo):
        G[off[jo]:off[jo] + D, :] = eye
    return G, np.ascontiguousarray(G.T)


def _row_pool_mats(cfg, B):
    """Block-diagonal even/odd row selectors over the row-padded batch layout."""
    Ho, Hp, Hop = cfg["Ho"], cfg["Hp"], cfg["Hop"]
    Re = np.zeros((B * Hp, B * Hop), np.float32)
    Ro = np.zeros((B * Hp, B * Hop), np.float32)
    for b in range(B):
        for ip in range(Hp):
            Re[b * Hp + ip, b * Hop + 2 * ip] = 1.0
            Ro[b * Hp + ip, b * Hop + 2 * ip + 1] = 1.0
    return Re, Ro


def _direct_select(cfg, B):
    """Selects the real rows of the final (un-pooled) layer: [B*Ho, B*Hop]."""
    Ho, Hop = cfg["Ho"], cfg["Hop"]
    S = np.zeros((B * Ho, B * Hop), np.float32)
    for b in range(B):
        for io in range(Ho):
            S[b * Ho + io, b * Hop + io] = 1.0
    return S


def _collapsed_fc(fc_p, pad_to=128):
    """fc1..fc5 have no nonlinearity in between -> one affine map, lane-padded."""
    Wc = np.asarray(fc_p[0][0], np.float32)
    bc = np.asarray(fc_p[0][1], np.float32).reshape(1, -1)
    for w, b in fc_p[1:]:
        w = np.asarray(w, np.float32)
        bc = bc @ w + np.asarray(b, np.float32).reshape(1, -1)
        Wc = Wc @ w
    dout = Wc.shape[1]
    Wc_p = np.zeros((Wc.shape[0], pad_to), np.float32)
    Wc_p[:, :dout] = Wc
    bc_p = np.zeros((1, pad_to), np.float32)
    bc_p[:, :dout] = bc
    return Wc_p, bc_p


def prepare_fused(conv_p, fc_p, plan, B):
    """Build every array the fused kernel needs (canonical ordering).

    Returns (big, small): `big` = per-layer block-Toeplitz conv weights (left
    in HBM, manually prefetched); `small` = everything else (VMEM inputs).
    The conv bias is dropped: BatchNorm with batch statistics follows every
    conv, so a per-channel constant shift cancels exactly.
    """
    big, small = [], []
    for (w, _bias, gamma, beta), cfg in zip(conv_p, plan):
        if not cfg["pool"]:
            assert cfg["Ho"] == 1 and cfg["Wo"] == 1, "final conv must be 1x1 spatial"
        D = cfg["cout"]
        big.append(_toeplitz_weight(np.asarray(w, np.float32), cfg))
        small.append(np.asarray(gamma, np.float32).reshape(1, D))
        small.append(np.asarray(beta, np.float32).reshape(1, D))
        if cfg["direct"]:
            small.append(_direct_select(cfg, B))
        else:
            small.extend(_group_mats(cfg))
        if cfg["pool"]:
            small.extend(_row_pool_mats(cfg, B))
    small.extend(_collapsed_fc(fc_p, pad_to=128))
    return [jnp.asarray(a) for a in big], [jnp.asarray(a) for a in small]


# ---------------------------------------------------------------------------
# The fused Pallas kernel
# ---------------------------------------------------------------------------

def make_fused_kernel(plan, B):
    nL = len(plan)

    def kernel(*refs):
        idx = 0
        x_ref = refs[idx]; idx += 1
        whbm = refs[idx:idx + nL]; idx += nL                 # HBM conv weights
        layer_small = []
        for cfg in plan:
            n = 2 + (1 if cfg["direct"] else 2) + (2 if cfg["pool"] else 0)
            layer_small.append(refs[idx:idx + n]); idx += n
        wc_ref, bc_ref = refs[idx], refs[idx + 1]; idx += 2
        o_ref = refs[idx]; idx += 1
        wbuf = refs[idx:idx + nL]; idx += nL                 # VMEM weight buffers
        xsbuf = refs[idx:idx + nL]; idx += nL                # conv operand buffers
        sbuf = refs[idx]; idx += 1                           # BN stat stacking buf
        dsem = refs[idx]                                     # DMA semaphores

        # Manual HBM->VMEM prefetch of the block-Toeplitz conv weights,
        # depth-2 pipelined: layer i+1's copy streams while layer i computes.
        copies = [pltpu.make_async_copy(whbm[li], wbuf[li], dsem.at[li])
                  for li in range(nL)]
        copies[0].start()
        if nL > 1:
            copies[1].start()

        X = x_ref[...]                                       # [B*H0, W0*C0]

        for li, cfg in enumerate(plan):
            k, H, W, C, D = cfg["k"], cfg["H"], cfg["W"], cfg["cin"], cfg["cout"]
            Ho, Wo, Hop, Np = cfg["Ho"], cfg["Wo"], cfg["Hop"], cfg["Np"]
            WC = W * C
            sm = list(layer_small[li])
            gam = sm.pop(0)[...]                             # [1, D]
            bet = sm.pop(0)[...]                             # [1, D]
            if cfg["direct"]:
                sel_ref = sm.pop(0)
            else:
                G_ref, Gt_ref = sm.pop(0), sm.pop(0)
            if cfg["pool"]:
                re_ref, ro_ref = sm.pop(0), sm.pop(0)

            # ---- stage the batched conv operand: per (shift, image) block at an
            #      8-aligned row slot; padding rows are zeroed so they add exactly
            #      nothing to the BN sums and never create NaNs in the matmuls.
            xs = xsbuf[li]
            xs[...] = jnp.zeros_like(xs)
            for di in range(k):
                for b in range(B):
                    r0 = (di * B + b) * Hop
                    xs[r0:r0 + Ho, :] = X[b * H + di:b * H + di + Ho, :]

            copies[li].wait()                                # this layer's weights
            if li + 2 < nL:
                copies[li + 2].start()                       # keep prefetch depth 2

            # ---- conv: one batched [B*Hop, W*C] x [W*C, Np] MXU matmul per
            #      kernel row-shift (k <= 3), accumulated on the VPU.
            y = None
            for di in range(k):
                c = jnp.dot(xs[di * B * Hop:(di + 1) * B * Hop, :],
                            wbuf[li][di * WC:(di + 1) * WC, :],
                            preferred_element_type=jnp.float32)
                y = c if y is None else y + c                # [B*Hop, Np]

            N = float(B * Ho * Wo)
            if cfg["direct"]:
                # Final layer: gather real rows, exact two-pass stats (tiny N).
                yv = jnp.dot(sel_ref[...], y, preferred_element_type=jnp.float32)
                mean = jnp.sum(yv, axis=0, keepdims=True) / N
                d = yv - mean
                var = jnp.sum(d * d, axis=0, keepdims=True) / N
                s = gam * lax.rsqrt(var + EPS)
                t = bet - mean * s
                X = jnp.maximum(yv * s + t, 0.0)             # [B, D]
            else:
                # One-pass batch statistics; the two per-channel reductions and
                # the two lane-broadcasts are each stacked into a single matmul.
                rowsum = jnp.sum(y, axis=0, keepdims=True)   # [1, Np]
                sqsum = jnp.sum(y * y, axis=0, keepdims=True)
                sbuf[0:1, :Np] = rowsum
                sbuf[1:2, :Np] = sqsum
                stats = jnp.dot(sbuf[0:2, :Np], G_ref[...],
                                preferred_element_type=jnp.float32) / N   # [2, D]
                mean = stats[0:1, :]
                var = stats[1:2, :] - mean * mean
                s = gam * lax.rsqrt(var + EPS)
                t = bet - mean * s
                sbuf[0:1, :D] = s
                sbuf[1:2, :D] = t
                st_l = jnp.dot(sbuf[0:2, :D], Gt_ref[...],
                               preferred_element_type=jnp.float32)        # [2, Np]
                z = jnp.maximum(y * st_l[0:1, :] + st_l[1:2, :], 0.0)

                if cfg["pool"]:
                    # 2x2/2 max pool: even/odd output columns already live in
                    # disjoint lane blocks -> column-pair max is elementwise;
                    # row-pair max/select is two tiny block-diagonal matmuls.
                    WpD, Pe = cfg["Wp"] * D, cfg["Pe"]
                    cm = jnp.maximum(z[:, :WpD], z[:, Pe:Pe + WpD])
                    X = jnp.maximum(
                        jnp.dot(re_ref[...], cm, preferred_element_type=jnp.float32),
                        jnp.dot(ro_ref[...], cm, preferred_element_type=jnp.float32))
                else:
                    X = z

        # ---- collapsed fc1..fc5 (single affine map), lane-dense 128-wide store.
        o_ref[...] = (jnp.dot(X, wc_ref[...], preferred_element_type=jnp.float32)
                      + bc_ref[...])

    return kernel


def fused_forward(x_nchw, plan, big_ws, small_args):
    B, C0, H0, W0 = x_nchw.shape
    assert (C0, H0, W0) == (plan[0]["cin"], plan[0]["H"], plan[0]["W"])
    # NCHW -> lane-dense per-image [H, W*C] layout, stacked over batch rows.
    x2d = jnp.transpose(x_nchw, (0, 2, 3, 1)).reshape(B * H0, W0 * C0)
    nL = len(plan)
    vmem = pl.BlockSpec(memory_space=pltpu.MemorySpace.VMEM)
    hbm = pl.BlockSpec(memory_space=pl.ANY)
    max_np = max(cfg["Np"] for cfg in plan)
    scratch = (
        [pltpu.VMEM(tuple(w.shape), jnp.float32) for w in big_ws]        # weights
        + [pltpu.VMEM((cfg["k"] * B * cfg["Hop"], cfg["W"] * cfg["cin"]),
                      jnp.float32) for cfg in plan]                       # operands
        + [pltpu.VMEM((8, max_np), jnp.float32),                          # BN stacks
           pltpu.SemaphoreType.DMA((nL,))]
    )
    out = pl.pallas_call(
        make_fused_kernel(plan, B),
        out_shape=jax.ShapeDtypeStruct((B, 128), jnp.float32),
        in_specs=[vmem] + [hbm] * nL + [vmem] * len(small_args),
        out_specs=vmem,
        scratch_shapes=scratch,
        compiler_params=pltpu.CompilerParams(vmem_limit_bytes=32 * 1024 * 1024),
    )(x2d, *big_ws, *small_args)
    return out[:, :FCS[-1][1]]


# ---------------------------------------------------------------------------
# Parameter init + pure-JAX reference (for a correctness check)
# ---------------------------------------------------------------------------

def init_params(key):
    keys = list(jax.random.split(key, 4 * len(CONVS) + 2 * len(FCS)))
    it = iter(keys)
    conv_p = []
    for k, cin, cout in CONVS:
        w = 0.1 * jax.random.normal(next(it), (k, k, cin, cout), jnp.float32)
        b = 0.1 * jax.random.normal(next(it), (cout,), jnp.float32)
        g = 1.0 + 0.1 * jax.random.normal(next(it), (cout,), jnp.float32)
        be = 0.1 * jax.random.normal(next(it), (cout,), jnp.float32)
        conv_p.append((w, b, g, be))
    fc_p = []
    for din, dout in FCS:
        w = 0.1 * jax.random.normal(next(it), (din, dout), jnp.float32)
        b = 0.1 * jax.random.normal(next(it), (dout,), jnp.float32)
        fc_p.append((w, b))
    return conv_p, fc_p


def forward_ref(x_nchw, conv_p, fc_p):
    x = jnp.transpose(x_nchw, (0, 2, 3, 1))       # NHWC
    for li, (w, bias, gamma, beta) in enumerate(conv_p):
        k = w.shape[0]
        B, H, W, C = x.shape
        Ho, Wo = H - k + 1, W - k + 1
        cols = [x[:, i:i + Ho, j:j + Wo, :] for i in range(k) for j in range(k)]
        p = jnp.stack(cols, axis=3).reshape(B * Ho * Wo, k * k * C)
        y = p @ w.reshape(k * k * C, -1) + bias
        mu = y.mean(0, keepdims=True)
        var = ((y - mu) ** 2).mean(0, keepdims=True)
        y = jnp.maximum((y - mu) * lax.rsqrt(var + EPS) * gamma + beta, 0.0)
        y = y.reshape(B, Ho, Wo, -1)
        if li < len(conv_p) - 1:
            D = y.shape[-1]
            y = y[:, :Ho // 2 * 2, :Wo // 2 * 2, :]
            y = y.reshape(B, Ho // 2, 2, Wo // 2, 2, D).max(axis=(2, 4))
        x = y
    h = x.reshape(x.shape[0], -1)
    for w, b in fc_p:
        h = h @ w + b
    return h


if __name__ == "__main__":
    key = jax.random.PRNGKey(0)
    k_x, k_p = jax.random.split(key)
    B = 2
    # fc1 expects 128 features => input spatial must be 32x32 with 1 channel.
    x = jax.random.normal(k_x, (B, 1, 32, 32), jnp.float32)
    conv_p, fc_p = init_params(k_p)

    plan = spatial_plan(32, 32)
    big_ws, small_args = prepare_fused(conv_p, fc_p, plan, B)   # one-time, no jit

    fwd = jax.jit(lambda xx, bw, sa: fused_forward(xx, plan, bw, sa))
    out = jax.block_until_ready(fwd(x, big_ws, small_args))

    ref = jax.block_until_ready(forward_ref(x, conv_p, fc_p))
    assert out.shape == (B, FCS[-1][1]), out.shape
    max_err = float(np.max(np.abs(np.asarray(out) - np.asarray(ref))))
    assert np.allclose(np.asarray(out), np.asarray(ref),
                       atol=1e-3, rtol=1e-3), max_err
    print("KERNEL_OK")
</pallas_src>

<mosaic_0001>
module attributes {stable_mosaic.version = 11 : i64} {
  func.func @kernel(%arg0: memref<64x32xf32, #tpu.memory_space<vmem>>, %arg1: memref<96x496xf32, #tpu.memory_space<any>>, %arg2: memref<720x480xf32, #tpu.memory_space<any>>, %arg3: memref<576x256xf32, #tpu.memory_space<any>>, %arg4: memref<256x128xf32, #tpu.memory_space<any>>, %arg5: memref<1x16xf32, #tpu.memory_space<vmem>>, %arg6: memref<1x16xf32, #tpu.memory_space<vmem>>, %arg7: memref<496x16xf32, #tpu.memory_space<vmem>>, %arg8: memref<16x496xf32, #tpu.memory_space<vmem>>, %arg9: memref<30x64xf32, #tpu.memory_space<vmem>>, %arg10: memref<30x64xf32, #tpu.memory_space<vmem>>, %arg11: memref<1x32xf32, #tpu.memory_space<vmem>>, %arg12: memref<1x32xf32, #tpu.memory_space<vmem>>, %arg13: memref<480x32xf32, #tpu.memory_space<vmem>>, %arg14: memref<32x480xf32, #tpu.memory_space<vmem>>, %arg15: memref<12x32xf32, #tpu.memory_space<vmem>>, %arg16: memref<12x32xf32, #tpu.memory_space<vmem>>, %arg17: memref<1x64xf32, #tpu.memory_space<vmem>>, %arg18: memref<1x64xf32, #tpu.memory_space<vmem>>, %arg19: memref<256x64xf32, #tpu.memory_space<vmem>>, %arg20: memref<64x256xf32, #tpu.memory_space<vmem>>, %arg21: memref<4x16xf32, #tpu.memory_space<vmem>>, %arg22: memref<4x16xf32, #tpu.memory_space<vmem>>, %arg23: memref<1x128xf32, #tpu.memory_space<vmem>>, %arg24: memref<1x128xf32, #tpu.memory_space<vmem>>, %arg25: memref<2x16xf32, #tpu.memory_space<vmem>>, %arg26: memref<128x128xf32, #tpu.memory_space<vmem>>, %arg27: memref<1x128xf32, #tpu.memory_space<vmem>>, %arg28: memref<2x128xf32, #tpu.memory_space<vmem>>, %arg29: memref<96x496xf32, #tpu.memory_space<vmem>>, %arg30: memref<720x480xf32, #tpu.memory_space<vmem>>, %arg31: memref<576x256xf32, #tpu.memory_space<vmem>>, %arg32: memref<256x128xf32, #tpu.memory_space<vmem>>, %arg33: memref<192x32xf32, #tpu.memory_space<vmem>>, %arg34: memref<96x240xf32, #tpu.memory_space<vmem>>, %arg35: memref<48x192xf32, #tpu.memory_space<vmem>>, %arg36: memref<32x128xf32, #tpu.memory_space<vmem>>, %arg37: memref<8x496xf32, #tpu.memory_space<vmem>>, %arg38: memref<4x!tpu.dma_semaphore, #tpu.memory_space<semaphore_mem>>) attributes {dimension_semantics = [], scalar_prefetch = 0 : i64, scratch_operands = 10 : i64, tpu.core_type = #tpu.core_type<tc>} {
    %c0_i32 = arith.constant 0 : i32
    %0 = tpu.memref_slice %arg38[%c0_i32] : memref<4x!tpu.dma_semaphore, #tpu.memory_space<semaphore_mem>> -> memref<1x!tpu.dma_semaphore, #tpu.memory_space<semaphore_mem>>
    %1 = tpu.memref_squeeze %0 : memref<1x!tpu.dma_semaphore, #tpu.memory_space<semaphore_mem>> -> memref<!tpu.dma_semaphore, #tpu.memory_space<semaphore_mem>>
    tpu.enqueue_dma source(%arg1 : memref<96x496xf32, #tpu.memory_space<any>>) target(%arg29 : memref<96x496xf32, #tpu.memory_space<vmem>>) target_semaphore(%1 : memref<!tpu.dma_semaphore, #tpu.memory_space<semaphore_mem>>)
    %c1_i32 = arith.constant 1 : i32
    %2 = tpu.memref_slice %arg38[%c1_i32] : memref<4x!tpu.dma_semaphore, #tpu.memory_space<semaphore_mem>> -> memref<1x!tpu.dma_semaphore, #tpu.memory_space<semaphore_mem>>
    %3 = tpu.memref_squeeze %2 : memref<1x!tpu.dma_semaphore, #tpu.memory_space<semaphore_mem>> -> memref<!tpu.dma_semaphore, #tpu.memory_space<semaphore_mem>>
    tpu.enqueue_dma source(%arg2 : memref<720x480xf32, #tpu.memory_space<any>>) target(%arg30 : memref<720x480xf32, #tpu.memory_space<vmem>>) target_semaphore(%3 : memref<!tpu.dma_semaphore, #tpu.memory_space<semaphore_mem>>)
    %c0 = arith.constant 0 : index
    %c0_0 = arith.constant 0 : index
    %4 = vector.load %arg0[%c0, %c0_0] : memref<64x32xf32, #tpu.memory_space<vmem>>, vector<64x32xf32>
    %c0_1 = arith.constant 0 : index
    %c0_2 = arith.constant 0 : index
    %5 = vector.load %arg5[%c0_1, %c0_2] : memref<1x16xf32, #tpu.memory_space<vmem>>, vector<1x16xf32>
    %c0_3 = arith.constant 0 : index
    %c0_4 = arith.constant 0 : index
    %6 = vector.load %arg6[%c0_3, %c0_4] : memref<1x16xf32, #tpu.memory_space<vmem>>, vector<1x16xf32>
    %cst = arith.constant 0.000000e+00 : f32
    %7 = vector.broadcast %cst : f32 to vector<192x32xf32>
    %c0_5 = arith.constant 0 : index
    %c0_6 = arith.constant 0 : index
    %8 = vector.load %arg33[%c0_5, %c0_6] : memref<192x32xf32, #tpu.memory_space<vmem>>, vector<192x32xf32>
    tpu.vector_store %arg33[%c0_5, %c0_6], %7 {strides = array<i32>} : memref<192x32xf32, #tpu.memory_space<vmem>>, vector<192x32xf32>,
    %9 = vector.extract_strided_slice %4 {offsets = [0, 0], sizes = [30, 32], strides = [1, 1]} : vector<64x32xf32> to vector<30x32xf32>
    %c0_7 = arith.constant 0 : index
    %c0_8 = arith.constant 0 : index
    %10 = vector.load %arg33[%c0_7, %c0_8] : memref<192x32xf32, #tpu.memory_space<vmem>>, vector<30x32xf32>
    tpu.vector_store %arg33[%c0_7, %c0_8], %9 {strides = array<i32>} : memref<192x32xf32, #tpu.memory_space<vmem>>, vector<30x32xf32>,
    %11 = vector.extract_strided_slice %4 {offsets = [32, 0], sizes = [30, 32], strides = [1, 1]} : vector<64x32xf32> to vector<30x32xf32>
    %c32 = arith.constant 32 : index
    %c0_9 = arith.constant 0 : index
    %12 = vector.load %arg33[%c32, %c0_9] : memref<192x32xf32, #tpu.memory_space<vmem>>, vector<30x32xf32>
    tpu.vector_store %arg33[%c32, %c0_9], %11 {strides = array<i32>} : memref<192x32xf32, #tpu.memory_space<vmem>>, vector<30x32xf32>,
    %13 = vector.extract_strided_slice %4 {offsets = [1, 0], sizes = [30, 32], strides = [1, 1]} : vector<64x32xf32> to vector<30x32xf32>
    %c64 = arith.constant 64 : index
    %c0_10 = arith.constant 0 : index
    %14 = vector.load %arg33[%c64, %c0_10] : memref<192x32xf32, #tpu.memory_space<vmem>>, vector<30x32xf32>
    tpu.vector_store %arg33[%c64, %c0_10], %13 {strides = array<i32>} : memref<192x32xf32, #tpu.memory_space<vmem>>, vector<30x32xf32>,
    %15 = vector.extract_strided_slice %4 {offsets = [33, 0], sizes = [30, 32], strides = [1, 1]} : vector<64x32xf32> to vector<30x32xf32>
    %c96 = arith.constant 96 : index
    %c0_11 = arith.constant 0 : index
    %16 = vector.load %arg33[%c96, %c0_11] : memref<192x32xf32, #tpu.memory_space<vmem>>, vector<30x32xf32>
    tpu.vector_store %arg33[%c96, %c0_11], %15 {strides = array<i32>} : memref<192x32xf32, #tpu.memory_space<vmem>>, vector<30x32xf32>,
    %17 = vector.extract_strided_slice %4 {offsets = [2, 0], sizes = [30, 32], strides = [1, 1]} : vector<64x32xf32> to vector<30x32xf32>
    %c128 = arith.constant 128 : index
    %c0_12 = arith.constant 0 : index
    %18 = vector.load %arg33[%c128, %c0_12] : memref<192x32xf32, #tpu.memory_space<vmem>>, vector<30x32xf32>
    tpu.vector_store %arg33[%c128, %c0_12], %17 {strides = array<i32>} : memref<192x32xf32, #tpu.memory_space<vmem>>, vector<30x32xf32>,
    %19 = vector.extract_strided_slice %4 {offsets = [34, 0], sizes = [30, 32], strides = [1, 1]} : vector<64x32xf32> to vector<30x32xf32>
    %c160 = arith.constant 160 : index
    %c0_13 = arith.constant 0 : index
    %20 = vector.load %arg33[%c160, %c0_13] : memref<192x32xf32, #tpu.memory_space<vmem>>, vector<30x32xf32>
    tpu.vector_store %arg33[%c160, %c0_13], %19 {strides = array<i32>} : memref<192x32xf32, #tpu.memory_space<vmem>>, vector<30x32xf32>,
    %c0_i32_14 = arith.constant 0 : i32
    %21 = tpu.memref_slice %arg38[%c0_i32_14] : memref<4x!tpu.dma_semaphore, #tpu.memory_space<semaphore_mem>> -> memref<1x!tpu.dma_semaphore, #tpu.memory_space<semaphore_mem>>
    %22 = tpu.memref_squeeze %21 : memref<1x!tpu.dma_semaphore, #tpu.memory_space<semaphore_mem>> -> memref<!tpu.dma_semaphore, #tpu.memory_space<semaphore_mem>>
    tpu.wait_dma2 semaphore(%22 : memref<!tpu.dma_semaphore, #tpu.memory_space<semaphore_mem>>) src(%arg1 : memref<96x496xf32, #tpu.memory_space<any>>) dst(%arg29 : memref<96x496xf32, #tpu.memory_space<vmem>>)
    %c2_i32 = arith.constant 2 : i32
    %23 = tpu.memref_slice %arg38[%c2_i32] : memref<4x!tpu.dma_semaphore, #tpu.memory_space<semaphore_mem>> -> memref<1x!tpu.dma_semaphore, #tpu.memory_space<semaphore_mem>>
    %24 = tpu.memref_squeeze %23 : memref<1x!tpu.dma_semaphore, #tpu.memory_space<semaphore_mem>> -> memref<!tpu.dma_semaphore, #tpu.memory_space<semaphore_mem>>
    tpu.enqueue_dma source(%arg3 : memref<576x256xf32, #tpu.memory_space<any>>) target(%arg31 : memref<576x256xf32, #tpu.memory_space<vmem>>) target_semaphore(%24 : memref<!tpu.dma_semaphore, #tpu.memory_space<semaphore_mem>>)
    %c0_15 = arith.constant 0 : index
    %c0_16 = arith.constant 0 : index
    %25 = vector.load %arg33[%c0_15, %c0_16] : memref<192x32xf32, #tpu.memory_space<vmem>>, vector<64x32xf32>
    %c0_17 = arith.constant 0 : index
    %c0_18 = arith.constant 0 : index
    %26 = vector.load %arg29[%c0_17, %c0_18] : memref<96x496xf32, #tpu.memory_space<vmem>>, vector<32x496xf32>
    %cst_19 = arith.constant dense<0.000000e+00> : vector<64x496xf32>
    %27 = tpu.matmul %25, %26, %cst_19 {dimension_numbers = #tpu.dot_dimension_numbers<[1], [0], [0], [1], [0, 0, 1, 1], [], []>} : vector<64x32xf32>, vector<32x496xf32>, vector<64x496xf32> -> vector<64x496xf32>
    %c64_20 = arith.constant 64 : index
    %c0_21 = arith.constant 0 : index
    %28 = vector.load %arg33[%c64_20, %c0_21] : memref<192x32xf32, #tpu.memory_space<vmem>>, vector<64x32xf32>
    %c32_22 = arith.constant 32 : index
    %c0_23 = arith.constant 0 : index
    %29 = vector.load %arg29[%c32_22, %c0_23] : memref<96x496xf32, #tpu.memory_space<vmem>>, vector<32x496xf32>
    %cst_24 = arith.constant dense<0.000000e+00> : vector<64x496xf32>
    %30 = tpu.matmul %28, %29, %cst_24 {dimension_numbers = #tpu.dot_dimension_numbers<[1], [0], [0], [1], [0, 0, 1, 1], [], []>} : vector<64x32xf32>, vector<32x496xf32>, vector<64x496xf32> -> vector<64x496xf32>
    %31 = arith.addf %27, %30 : vector<64x496xf32>
    %c128_25 = arith.constant 128 : index
    %c0_26 = arith.constant 0 : index
    %32 = vector.load %arg33[%c128_25, %c0_26] : memref<192x32xf32, #tpu.memory_space<vmem>>, vector<64x32xf32>
    %c64_27 = arith.constant 64 : index
    %c0_28 = arith.constant 0 : index
    %33 = vector.load %arg29[%c64_27, %c0_28] : memref<96x496xf32, #tpu.memory_space<vmem>>, vector<32x496xf32>
    %cst_29 = arith.constant dense<0.000000e+00> : vector<64x496xf32>
    %34 = tpu.matmul %32, %33, %cst_29 {dimension_numbers = #tpu.dot_dimension_numbers<[1], [0], [0], [1], [0, 0, 1, 1], [], []>} : vector<64x32xf32>, vector<32x496xf32>, vector<64x496xf32> -> vector<64x496xf32>
    %35 = arith.addf %31, %34 : vector<64x496xf32>
    %cst_30 = arith.constant dense<0.000000e+00> : vector<496xf32>
    %36 = vector.multi_reduction <add>, %35, %cst_30 [0] : vector<64x496xf32> to vector<496xf32>
    %37 = vector.shape_cast %36 : vector<496xf32> to vector<1x496xf32>
    %38 = arith.mulf %35, %35 : vector<64x496xf32>
    %cst_31 = arith.constant dense<0.000000e+00> : vector<496xf32>
    %39 = vector.multi_reduction <add>, %38, %cst_31 [0] : vector<64x496xf32> to vector<496xf32>
    %40 = vector.shape_cast %39 : vector<496xf32> to vector<1x496xf32>
    %c0_32 = arith.constant 0 : index
    %c0_33 = arith.constant 0 : index
    %41 = vector.load %arg37[%c0_32, %c0_33] : memref<8x496xf32, #tpu.memory_space<vmem>>, vector<1x496xf32>
    tpu.vector_store %arg37[%c0_32, %c0_33], %37 {strides = array<i32>} : memref<8x496xf32, #tpu.memory_space<vmem>>, vector<1x496xf32>,
    %c1 = arith.constant 1 : index
    %c0_34 = arith.constant 0 : index
    %42 = vector.load %arg37[%c1, %c0_34] : memref<8x496xf32, #tpu.memory_space<vmem>>, vector<1x496xf32>
    tpu.vector_store %arg37[%c1, %c0_34], %40 {strides = array<i32>} : memref<8x496xf32, #tpu.memory_space<vmem>>, vector<1x496xf32>,
    %c0_35 = arith.constant 0 : index
    %c0_36 = arith.constant 0 : index
    %43 = vector.load %arg37[%c0_35, %c0_36] : memref<8x496xf32, #tpu.memory_space<vmem>>, vector<2x496xf32>
    %c0_37 = arith.constant 0 : index
    %c0_38 = arith.constant 0 : index
    %44 = vector.load %arg7[%c0_37, %c0_38] : memref<496x16xf32, #tpu.memory_space<vmem>>, vector<496x16xf32>
    %cst_39 = arith.constant dense<0.000000e+00> : vector<2x16xf32>
    %45 = tpu.matmul %43, %44, %cst_39 {dimension_numbers = #tpu.dot_dimension_numbers<[1], [0], [0], [1], [0, 0, 1, 1], [], []>} : vector<2x496xf32>, vector<496x16xf32>, vector<2x16xf32> -> vector<2x16xf32>
    %cst_40 = arith.constant 1.800000e+03 : f32
    %46 = vector.broadcast %cst_40 : f32 to vector<2x16xf32>
    %47 = arith.divf %45, %46 : vector<2x16xf32>
    %48 = vector.extract_strided_slice %47 {offsets = [0, 0], sizes = [1, 16], strides = [1, 1]} : vector<2x16xf32> to vector<1x16xf32>
    %49 = vector.extract_strided_slice %47 {offsets = [1, 0], sizes = [1, 16], strides = [1, 1]} : vector<2x16xf32> to vector<1x16xf32>
    %50 = arith.mulf %48, %48 : vector<1x16xf32>
    %51 = arith.subf %49, %50 : vector<1x16xf32>
    %cst_41 = arith.constant 9.99999974E-6 : f32
    %52 = vector.broadcast %cst_41 : f32 to vector<1x16xf32>
    %53 = arith.addf %51, %52 : vector<1x16xf32>
    %54 = math.rsqrt %53 : vector<1x16xf32>
    %55 = arith.mulf %5, %54 : vector<1x16xf32>
    %56 = arith.mulf %48, %55 : vector<1x16xf32>
    %57 = arith.subf %6, %56 : vector<1x16xf32>
    %c0_42 = arith.constant 0 : index
    %c0_43 = arith.constant 0 : index
    %58 = vector.load %arg37[%c0_42, %c0_43] : memref<8x496xf32, #tpu.memory_space<vmem>>, vector<1x16xf32>
    tpu.vector_store %arg37[%c0_42, %c0_43], %55 {strides = array<i32>} : memref<8x496xf32, #tpu.memory_space<vmem>>, vector<1x16xf32>,
    %c1_44 = arith.constant 1 : index
    %c0_45 = arith.constant 0 : index
    %59 = vector.load %arg37[%c1_44, %c0_45] : memref<8x496xf32, #tpu.memory_space<vmem>>, vector<1x16xf32>
    tpu.vector_store %arg37[%c1_44, %c0_45], %57 {strides = array<i32>} : memref<8x496xf32, #tpu.memory_space<vmem>>, vector<1x16xf32>,
    %c0_46 = arith.constant 0 : index
    %c0_47 = arith.constant 0 : index
    %60 = vector.load %arg37[%c0_46, %c0_47] : memref<8x496xf32, #tpu.memory_space<vmem>>, vector<2x16xf32>
    %c0_48 = arith.constant 0 : index
    %c0_49 = arith.constant 0 : index
    %61 = vector.load %arg8[%c0_48, %c0_49] : memref<16x496xf32, #tpu.memory_space<vmem>>, vector<16x496xf32>
    %cst_50 = arith.constant dense<0.000000e+00> : vector<2x496xf32>
    %62 = tpu.matmul %60, %61, %cst_50 {dimension_numbers = #tpu.dot_dimension_numbers<[1], [0], [0], [1], [0, 0, 1, 1], [], []>} : vector<2x16xf32>, vector<16x496xf32>, vector<2x496xf32> -> vector<2x496xf32>
    %63 = vector.extract_strided_slice %62 {offsets = [0, 0], sizes = [1, 496], strides = [1, 1]} : vector<2x496xf32> to vector<1x496xf32>
    %64 = vector.broadcast %63 : vector<1x496xf32> to vector<64x496xf32>
    %65 = arith.mulf %35, %64 : vector<64x496xf32>
    %66 = vector.extract_strided_slice %62 {offsets = [1, 0], sizes = [1, 496], strides = [1, 1]} : vector<2x496xf32> to vector<1x496xf32>
    %67 = vector.broadcast %66 : vector<1x496xf32> to vector<64x496xf32>
    %68 = arith.addf %65, %67 : vector<64x496xf32>
    %cst_51 = arith.constant 0.000000e+00 : f32
    %69 = vector.broadcast %cst_51 : f32 to vector<64x496xf32>
    %70 = arith.maximumf %68, %69 : vector<64x496xf32>
    %71 = vector.extract_strided_slice %70 {offsets = [0, 0], sizes = [64, 240], strides = [1, 1]} : vector<64x496xf32> to vector<64x240xf32>
    %72 = vector.extract_strided_slice %70 {offsets = [0, 256], sizes = [64, 240], strides = [1, 1]} : vector<64x496xf32> to vector<64x240xf32>
    %73 = arith.maximumf %71, %72 : vector<64x240xf32>
    %c0_52 = arith.constant 0 : index
    %c0_53 = arith.constant 0 : index
    %74 = vector.load %arg9[%c0_52, %c0_53] : memref<30x64xf32, #tpu.memory_space<vmem>>, vector<30x64xf32>
    %cst_54 = arith.constant dense<0.000000e+00> : vector<30x240xf32>
    %75 = tpu.matmul %74, %73, %cst_54 {dimension_numbers = #tpu.dot_dimension_numbers<[1], [0], [0], [1], [0, 0, 1, 1], [], []>} : vector<30x64xf32>, vector<64x240xf32>, vector<30x240xf32> -> vector<30x240xf32>
    %c0_55 = arith.constant 0 : index
    %c0_56 = arith.constant 0 : index
    %76 = vector.load %arg10[%c0_55, %c0_56] : memref<30x64xf32, #tpu.memory_space<vmem>>, vector<30x64xf32>
    %cst_57 = arith.constant dense<0.000000e+00> : vector<30x240xf32>
    %77 = tpu.matmul %76, %73, %cst_57 {dimension_numbers = #tpu.dot_dimension_numbers<[1], [0], [0], [1], [0, 0, 1, 1], [], []>} : vector<30x64xf32>, vector<64x240xf32>, vector<30x240xf32> -> vector<30x240xf32>
    %78 = arith.maximumf %75, %77 : vector<30x240xf32>
    %c0_58 = arith.constant 0 : index
    %c0_59 = arith.constant 0 : index
    %79 = vector.load %arg11[%c0_58, %c0_59] : memref<1x32xf32, #tpu.memory_space<vmem>>, vector<1x32xf32>
    %c0_60 = arith.constant 0 : index
    %c0_61 = arith.constant 0 : index
    %80 = vector.load %arg12[%c0_60, %c0_61] : memref<1x32xf32, #tpu.memory_space<vmem>>, vector<1x32xf32>
    %cst_62 = arith.constant 0.000000e+00 : f32
    %81 = vector.broadcast %cst_62 : f32 to vector<96x240xf32>
    %c0_63 = arith.constant 0 : index
    %c0_64 = arith.constant 0 : index
    %82 = vector.load %arg34[%c0_63, %c0_64] : memref<96x240xf32, #tpu.memory_space<vmem>>, vector<96x240xf32>
    tpu.vector_store %arg34[%c0_63, %c0_64], %81 {strides = array<i32>} : memref<96x240xf32, #tpu.memory_space<vmem>>, vector<96x240xf32>,
    %83 = vector.extract_strided_slice %78 {offsets = [0, 0], sizes = [13, 240], strides = [1, 1]} : vector<30x240xf32> to vector<13x240xf32>
    %c0_65 = arith.constant 0 : index
    %c0_66 = arith.constant 0 : index
    %84 = vector.load %arg34[%c0_65, %c0_66] : memref<96x240xf32, #tpu.memory_space<vmem>>, vector<13x240xf32>
    tpu.vector_store %arg34[%c0_65, %c0_66], %83 {strides = array<i32>} : memref<96x240xf32, #tpu.memory_space<vmem>>, vector<13x240xf32>,
    %85 = vector.extract_strided_slice %78 {offsets = [15, 0], sizes = [13, 240], strides = [1, 1]} : vector<30x240xf32> to vector<13x240xf32>
    %c16 = arith.constant 16 : index
    %c0_67 = arith.constant 0 : index
    %86 = vector.load %arg34[%c16, %c0_67] : memref<96x240xf32, #tpu.memory_space<vmem>>, vector<13x240xf32>
    tpu.vector_store %arg34[%c16, %c0_67], %85 {strides = array<i32>} : memref<96x240xf32, #tpu.memory_space<vmem>>, vector<13x240xf32>,
    %87 = vector.extract_strided_slice %78 {offsets = [1, 0], sizes = [13, 240], strides = [1, 1]} : vector<30x240xf32> to vector<13x240xf32>
    %c32_68 = arith.constant 32 : index
    %c0_69 = arith.constant 0 : index
    %88 = vector.load %arg34[%c32_68, %c0_69] : memref<96x240xf32, #tpu.memory_space<vmem>>, vector<13x240xf32>
    tpu.vector_store %arg34[%c32_68, %c0_69], %87 {strides = array<i32>} : memref<96x240xf32, #tpu.memory_space<vmem>>, vector<13x240xf32>,
    %89 = vector.extract_strided_slice %78 {offsets = [16, 0], sizes = [13, 240], strides = [1, 1]} : vector<30x240xf32> to vector<13x240xf32>
    %c48 = arith.constant 48 : index
    %c0_70 = arith.constant 0 : index
    %90 = vector.load %arg34[%c48, %c0_70] : memref<96x240xf32, #tpu.memory_space<vmem>>, vector<13x240xf32>
    tpu.vector_store %arg34[%c48, %c0_70], %89 {strides = array<i32>} : memref<96x240xf32, #tpu.memory_space<vmem>>, vector<13x240xf32>,
    %91 = vector.extract_strided_slice %78 {offsets = [2, 0], sizes = [13, 240], strides = [1, 1]} : vector<30x240xf32> to vector<13x240xf32>
    %c64_71 = arith.constant 64 : index
    %c0_72 = arith.constant 0 : index
    %92 = vector.load %arg34[%c64_71, %c0_72] : memref<96x240xf32, #tpu.memory_space<vmem>>, vector<13x240xf32>
    tpu.vector_store %arg34[%c64_71, %c0_72], %91 {strides = array<i32>} : memref<96x240xf32, #tpu.memory_space<vmem>>, vector<13x240xf32>,
    %93 = vector.extract_strided_slice %78 {offsets = [17, 0], sizes = [13, 240], strides = [1, 1]} : vector<30x240xf32> to vector<13x240xf32>
    %c80 = arith.constant 80 : index
    %c0_73 = arith.constant 0 : index
    %94 = vector.load %arg34[%c80, %c0_73] : memref<96x240xf32, #tpu.memory_space<vmem>>, vector<13x240xf32>
    tpu.vector_store %arg34[%c80, %c0_73], %93 {strides = array<i32>} : memref<96x240xf32, #tpu.memory_space<vmem>>, vector<13x240xf32>,
    %c1_i32_74 = arith.constant 1 : i32
    %95 = tpu.memref_slice %arg38[%c1_i32_74] : memref<4x!tpu.dma_semaphore, #tpu.memory_space<semaphore_mem>> -> memref<1x!tpu.dma_semaphore, #tpu.memory_space<semaphore_mem>>
    %96 = tpu.memref_squeeze %95 : memref<1x!tpu.dma_semaphore, #tpu.memory_space<semaphore_mem>> -> memref<!tpu.dma_semaphore, #tpu.memory_space<semaphore_mem>>
    tpu.wait_dma2 semaphore(%96 : memref<!tpu.dma_semaphore, #tpu.memory_space<semaphore_mem>>) src(%arg2 : memref<720x480xf32, #tpu.memory_space<any>>) dst(%arg30 : memref<720x480xf32, #tpu.memory_space<vmem>>)
    %c3_i32 = arith.constant 3 : i32
    %97 = tpu.memref_slice %arg38[%c3_i32] : memref<4x!tpu.dma_semaphore, #tpu.memory_space<semaphore_mem>> -> memref<1x!tpu.dma_semaphore, #tpu.memory_space<semaphore_mem>>
    %98 = tpu.memref_squeeze %97 : memref<1x!tpu.dma_semaphore, #tpu.memory_space<semaphore_mem>> -> memref<!tpu.dma_semaphore, #tpu.memory_space<semaphore_mem>>
    tpu.enqueue_dma source(%arg4 : memref<256x128xf32, #tpu.memory_space<any>>) target(%arg32 : memref<256x128xf32, #tpu.memory_space<vmem>>) target_semaphore(%98 : memref<!tpu.dma_semaphore, #tpu.memory_space<semaphore_mem>>)
    %c0_75 = arith.constant 0 : index
    %c0_76 = arith.constant 0 : index
    %99 = vector.load %arg34[%c0_75, %c0_76] : memref<96x240xf32, #tpu.memory_space<vmem>>, vector<32x240xf32>
    %c0_77 = arith.constant 0 : index
    %c0_78 = arith.constant 0 : index
    %100 = vector.load %arg30[%c0_77, %c0_78] : memref<720x480xf32, #tpu.memory_space<vmem>>, vector<240x480xf32>
    %cst_79 = arith.constant dense<0.000000e+00> : vector<32x480xf32>
    %101 = tpu.matmul %99, %100, %cst_79 {dimension_numbers = #tpu.dot_dimension_numbers<[1], [0], [0], [1], [0, 0, 1, 1], [], []>} : vector<32x240xf32>, vector<240x480xf32>, vector<32x480xf32> -> vector<32x480xf32>
    %c32_80 = arith.constant 32 : index
    %c0_81 = arith.constant 0 : index
    %102 = vector.load %arg34[%c32_80, %c0_81] : memref<96x240xf32, #tpu.memory_space<vmem>>, vector<32x240xf32>
    %c240 = arith.constant 240 : index
    %c0_82 = arith.constant 0 : index
    %103 = vector.load %arg30[%c240, %c0_82] : memref<720x480xf32, #tpu.memory_space<vmem>>, vector<240x480xf32>
    %cst_83 = arith.constant dense<0.000000e+00> : vector<32x480xf32>
    %104 = tpu.matmul %102, %103, %cst_83 {dimension_numbers = #tpu.dot_dimension_numbers<[1], [0], [0], [1], [0, 0, 1, 1], [], []>} : vector<32x240xf32>, vector<240x480xf32>, vector<32x480xf32> -> vector<32x480xf32>
    %105 = arith.addf %101, %104 : vector<32x480xf32>
    %c64_84 = arith.constant 64 : index
    %c0_85 = arith.constant 0 : index
    %106 = vector.load %arg34[%c64_84, %c0_85] : memref<96x240xf32, #tpu.memory_space<vmem>>, vector<32x240xf32>
    %c480 = arith.constant 480 : index
    %c0_86 = arith.constant 0 : index
    %107 = vector.load %arg30[%c480, %c0_86] : memref<720x480xf32, #tpu.memory_space<vmem>>, vector<240x480xf32>
    %cst_87 = arith.constant dense<0.000000e+00> : vector<32x480xf32>
    %108 = tpu.matmul %106, %107, %cst_87 {dimension_numbers = #tpu.dot_dimension_numbers<[1], [0], [0], [1], [0, 0, 1, 1], [], []>} : vector<32x240xf32>, vector<240x480xf32>, vector<32x480xf32> -> vector<32x480xf32>
    %109 = arith.addf %105, %108 : vector<32x480xf32>
    %cst_88 = arith.constant dense<0.000000e+00> : vector<480xf32>
    %110 = vector.multi_reduction <add>, %109, %cst_88 [0] : vector<32x480xf32> to vector<480xf32>
    %111 = vector.shape_cast %110 : vector<480xf32> to vector<1x480xf32>
    %112 = arith.mulf %109, %109 : vector<32x480xf32>
    %cst_89 = arith.constant dense<0.000000e+00> : vector<480xf32>
    %113 = vector.multi_reduction <add>, %112, %cst_89 [0] : vector<32x480xf32> to vector<480xf32>
    %114 = vector.shape_cast %113 : vector<480xf32> to vector<1x480xf32>
    %c0_90 = arith.constant 0 : index
    %c0_91 = arith.constant 0 : index
    %115 = vector.load %arg37[%c0_90, %c0_91] : memref<8x496xf32, #tpu.memory_space<vmem>>, vector<1x480xf32>
    tpu.vector_store %arg37[%c0_90, %c0_91], %111 {strides = array<i32>} : memref<8x496xf32, #tpu.memory_space<vmem>>, vector<1x480xf32>,
    %c1_92 = arith.constant 1 : index
    %c0_93 = arith.constant 0 : index
    %116 = vector.load %arg37[%c1_92, %c0_93] : memref<8x496xf32, #tpu.memory_space<vmem>>, vector<1x480xf32>
    tpu.vector_store %arg37[%c1_92, %c0_93], %114 {strides = array<i32>} : memref<8x496xf32, #tpu.memory_space<vmem>>, vector<1x480xf32>,
    %c0_94 = arith.constant 0 : index
    %c0_95 = arith.constant 0 : index
    %117 = vector.load %arg37[%c0_94, %c0_95] : memref<8x496xf32, #tpu.memory_space<vmem>>, vector<2x480xf32>
    %c0_96 = arith.constant 0 : index
    %c0_97 = arith.constant 0 : index
    %118 = vector.load %arg13[%c0_96, %c0_97] : memref<480x32xf32, #tpu.memory_space<vmem>>, vector<480x32xf32>
    %cst_98 = arith.constant dense<0.000000e+00> : vector<2x32xf32>
    %119 = tpu.matmul %117, %118, %cst_98 {dimension_numbers = #tpu.dot_dimension_numbers<[1], [0], [0], [1], [0, 0, 1, 1], [], []>} : vector<2x480xf32>, vector<480x32xf32>, vector<2x32xf32> -> vector<2x32xf32>
    %cst_99 = arith.constant 3.380000e+02 : f32
    %120 = vector.broadcast %cst_99 : f32 to vector<2x32xf32>
    %121 = arith.divf %119, %120 : vector<2x32xf32>
    %122 = vector.extract_strided_slice %121 {offsets = [0, 0], sizes = [1, 32], strides = [1, 1]} : vector<2x32xf32> to vector<1x32xf32>
    %123 = vector.extract_strided_slice %121 {offsets = [1, 0], sizes = [1, 32], strides = [1, 1]} : vector<2x32xf32> to vector<1x32xf32>
    %124 = arith.mulf %122, %122 : vector<1x32xf32>
    %125 = arith.subf %123, %124 : vector<1x32xf32>
    %cst_100 = arith.constant 9.99999974E-6 : f32
    %126 = vector.broadcast %cst_100 : f32 to vector<1x32xf32>
    %127 = arith.addf %125, %126 : vector<1x32xf32>
    %128 = math.rsqrt %127 : vector<1x32xf32>
    %129 = arith.mulf %79, %128 : vector<1x32xf32>
    %130 = arith.mulf %122, %129 : vector<1x32xf32>
    %131 = arith.subf %80, %130 : vector<1x32xf32>
    %c0_101 = arith.constant 0 : index
    %c0_102 = arith.constant 0 : index
    %132 = vector.load %arg37[%c0_101, %c0_102] : memref<8x496xf32, #tpu.memory_space<vmem>>, vector<1x32xf32>
    tpu.vector_store %arg37[%c0_101, %c0_102], %129 {strides = array<i32>} : memref<8x496xf32, #tpu.memory_space<vmem>>, vector<1x32xf32>,
    %c1_103 = arith.constant 1 : index
    %c0_104 = arith.constant 0 : index
    %133 = vector.load %arg37[%c1_103, %c0_104] : memref<8x496xf32, #tpu.memory_space<vmem>>, vector<1x32xf32>
    tpu.vector_store %arg37[%c1_103, %c0_104], %131 {strides = array<i32>} : memref<8x496xf32, #tpu.memory_space<vmem>>, vector<1x32xf32>,
    %c0_105 = arith.constant 0 : index
    %c0_106 = arith.constant 0 : index
    %134 = vector.load %arg37[%c0_105, %c0_106] : memref<8x496xf32, #tpu.memory_space<vmem>>, vector<2x32xf32>
    %c0_107 = arith.constant 0 : index
    %c0_108 = arith.constant 0 : index
    %135 = vector.load %arg14[%c0_107, %c0_108] : memref<32x480xf32, #tpu.memory_space<vmem>>, vector<32x480xf32>
    %cst_109 = arith.constant dense<0.000000e+00> : vector<2x480xf32>
    %136 = tpu.matmul %134, %135, %cst_109 {dimension_numbers = #tpu.dot_dimension_numbers<[1], [0], [0], [1], [0, 0, 1, 1], [], []>} : vector<2x32xf32>, vector<32x480xf32>, vector<2x480xf32> -> vector<2x480xf32>
    %137 = vector.extract_strided_slice %136 {offsets = [0, 0], sizes = [1, 480], strides = [1, 1]} : vector<2x480xf32> to vector<1x480xf32>
    %138 = vector.broadcast %137 : vector<1x480xf32> to vector<32x480xf32>
    %139 = arith.mulf %109, %138 : vector<32x480xf32>
    %140 = vector.extract_strided_slice %136 {offsets = [1, 0], sizes = [1, 480], strides = [1, 1]} : vector<2x480xf32> to vector<1x480xf32>
    %141 = vector.broadcast %140 : vector<1x480xf32> to vector<32x480xf32>
    %142 = arith.addf %139, %141 : vector<32x480xf32>
    %cst_110 = arith.constant 0.000000e+00 : f32
    %143 = vector.broadcast %cst_110 : f32 to vector<32x480xf32>
    %144 = arith.maximumf %142, %143 : vector<32x480xf32>
    %145 = vector.extract_strided_slice %144 {offsets = [0, 0], sizes = [32, 192], strides = [1, 1]} : vector<32x480xf32> to vector<32x192xf32>
    %146 = vector.extract_strided_slice %144 {offsets = [0, 256], sizes = [32, 192], strides = [1, 1]} : vector<32x480xf32> to vector<32x192xf32>
    %147 = arith.maximumf %145, %146 : vector<32x192xf32>
    %c0_111 = arith.constant 0 : index
    %c0_112 = arith.constant 0 : index
    %148 = vector.load %arg15[%c0_111, %c0_112] : memref<12x32xf32, #tpu.memory_space<vmem>>, vector<12x32xf32>
    %cst_113 = arith.constant dense<0.000000e+00> : vector<12x192xf32>
    %149 = tpu.matmul %148, %147, %cst_113 {dimension_numbers = #tpu.dot_dimension_numbers<[1], [0], [0], [1], [0, 0, 1, 1], [], []>} : vector<12x32xf32>, vector<32x192xf32>, vector<12x192xf32> -> vector<12x192xf32>
    %c0_114 = arith.constant 0 : index
    %c0_115 = arith.constant 0 : index
    %150 = vector.load %arg16[%c0_114, %c0_115] : memref<12x32xf32, #tpu.memory_space<vmem>>, vector<12x32xf32>
    %cst_116 = arith.constant dense<0.000000e+00> : vector<12x192xf32>
    %151 = tpu.matmul %150, %147, %cst_116 {dimension_numbers = #tpu.dot_dimension_numbers<[1], [0], [0], [1], [0, 0, 1, 1], [], []>} : vector<12x32xf32>, vector<32x192xf32>, vector<12x192xf32> -> vector<12x192xf32>
    %152 = arith.maximumf %149, %151 : vector<12x192xf32>
    %c0_117 = arith.constant 0 : index
    %c0_118 = arith.constant 0 : index
    %153 = vector.load %arg17[%c0_117, %c0_118] : memref<1x64xf32, #tpu.memory_space<vmem>>, vector<1x64xf32>
    %c0_119 = arith.constant 0 : index
    %c0_120 = arith.constant 0 : index
    %154 = vector.load %arg18[%c0_119, %c0_120] : memref<1x64xf32, #tpu.memory_space<vmem>>, vector<1x64xf32>
    %cst_121 = arith.constant 0.000000e+00 : f32
    %155 = vector.broadcast %cst_121 : f32 to vector<48x192xf32>
    %c0_122 = arith.constant 0 : index
    %c0_123 = arith.constant 0 : index
    %156 = vector.load %arg35[%c0_122, %c0_123] : memref<48x192xf32, #tpu.memory_space<vmem>>, vector<48x192xf32>
    tpu.vector_store %arg35[%c0_122, %c0_123], %155 {strides = array<i32>} : memref<48x192xf32, #tpu.memory_space<vmem>>, vector<48x192xf32>,
    %157 = vector.extract_strided_slice %152 {offsets = [0, 0], sizes = [4, 192], strides = [1, 1]} : vector<12x192xf32> to vector<4x192xf32>
    %c0_124 = arith.constant 0 : index
    %c0_125 = arith.constant 0 : index
    %158 = vector.load %arg35[%c0_124, %c0_125] : memref<48x192xf32, #tpu.memory_space<vmem>>, vector<4x192xf32>
    tpu.vector_store %arg35[%c0_124, %c0_125], %157 {strides = array<i32>} : memref<48x192xf32, #tpu.memory_space<vmem>>, vector<4x192xf32>,
    %159 = vector.extract_strided_slice %152 {offsets = [6, 0], sizes = [4, 192], strides = [1, 1]} : vector<12x192xf32> to vector<4x192xf32>
    %c8 = arith.constant 8 : index
    %c0_126 = arith.constant 0 : index
    %160 = vector.load %arg35[%c8, %c0_126] : memref<48x192xf32, #tpu.memory_space<vmem>>, vector<4x192xf32>
    tpu.vector_store %arg35[%c8, %c0_126], %159 {strides = array<i32>} : memref<48x192xf32, #tpu.memory_space<vmem>>, vector<4x192xf32>,
    %161 = vector.extract_strided_slice %152 {offsets = [1, 0], sizes = [4, 192], strides = [1, 1]} : vector<12x192xf32> to vector<4x192xf32>
    %c16_127 = arith.constant 16 : index
    %c0_128 = arith.constant 0 : index
    %162 = vector.load %arg35[%c16_127, %c0_128] : memref<48x192xf32, #tpu.memory_space<vmem>>, vector<4x192xf32>
    tpu.vector_store %arg35[%c16_127, %c0_128], %161 {strides = array<i32>} : memref<48x192xf32, #tpu.memory_space<vmem>>, vector<4x192xf32>,
    %163 = vector.extract_strided_slice %152 {offsets = [7, 0], sizes = [4, 192], strides = [1, 1]} : vector<12x192xf32> to vector<4x192xf32>
    %c24 = arith.constant 24 : index
    %c0_129 = arith.constant 0 : index
    %164 = vector.load %arg35[%c24, %c0_129] : memref<48x192xf32, #tpu.memory_space<vmem>>, vector<4x192xf32>
    tpu.vector_store %arg35[%c24, %c0_129], %163 {strides = array<i32>} : memref<48x192xf32, #tpu.memory_space<vmem>>, vector<4x192xf32>,
    %165 = vector.extract_strided_slice %152 {offsets = [2, 0], sizes = [4, 192], strides = [1, 1]} : vector<12x192xf32> to vector<4x192xf32>
    %c32_130 = arith.constant 32 : index
    %c0_131 = arith.constant 0 : index
    %166 = vector.load %arg35[%c32_130, %c0_131] : memref<48x192xf32, #tpu.memory_space<vmem>>, vector<4x192xf32>
    tpu.vector_store %arg35[%c32_130, %c0_131], %165 {strides = array<i32>} : memref<48x192xf32, #tpu.memory_space<vmem>>, vector<4x192xf32>,
    %167 = vector.extract_strided_slice %152 {offsets = [8, 0], sizes = [4, 192], strides = [1, 1]} : vector<12x192xf32> to vector<4x192xf32>
    %c40 = arith.constant 40 : index
    %c0_132 = arith.constant 0 : index
    %168 = vector.load %arg35[%c40, %c0_132] : memref<48x192xf32, #tpu.memory_space<vmem>>, vector<4x192xf32>
    tpu.vector_store %arg35[%c40, %c0_132], %167 {strides = array<i32>} : memref<48x192xf32, #tpu.memory_space<vmem>>, vector<4x192xf32>,
    %c2_i32_133 = arith.constant 2 : i32
    %169 = tpu.memref_slice %arg38[%c2_i32_133] : memref<4x!tpu.dma_semaphore, #tpu.memory_space<semaphore_mem>> -> memref<1x!tpu.dma_semaphore, #tpu.memory_space<semaphore_mem>>
    %170 = tpu.memref_squeeze %169 : memref<1x!tpu.dma_semaphore, #tpu.memory_space<semaphore_mem>> -> memref<!tpu.dma_semaphore, #tpu.memory_space<semaphore_mem>>
    tpu.wait_dma2 semaphore(%170 : memref<!tpu.dma_semaphore, #tpu.memory_space<semaphore_mem>>) src(%arg3 : memref<576x256xf32, #tpu.memory_space<any>>) dst(%arg31 : memref<576x256xf32, #tpu.memory_space<vmem>>)
    %c0_134 = arith.constant 0 : index
    %c0_135 = arith.constant 0 : index
    %171 = vector.load %arg35[%c0_134, %c0_135] : memref<48x192xf32, #tpu.memory_space<vmem>>, vector<16x192xf32>
    %c0_136 = arith.constant 0 : index
    %c0_137 = arith.constant 0 : index
    %172 = vector.load %arg31[%c0_136, %c0_137] : memref<576x256xf32, #tpu.memory_space<vmem>>, vector<192x256xf32>
    %cst_138 = arith.constant dense<0.000000e+00> : vector<16x256xf32>
    %173 = tpu.matmul %171, %172, %cst_138 {dimension_numbers = #tpu.dot_dimension_numbers<[1], [0], [0], [1], [0, 0, 1, 1], [], []>} : vector<16x192xf32>, vector<192x256xf32>, vector<16x256xf32> -> vector<16x256xf32>
    %c16_139 = arith.constant 16 : index
    %c0_140 = arith.constant 0 : index
    %174 = vector.load %arg35[%c16_139, %c0_140] : memref<48x192xf32, #tpu.memory_space<vmem>>, vector<16x192xf32>
    %c192 = arith.constant 192 : index
    %c0_141 = arith.constant 0 : index
    %175 = vector.load %arg31[%c192, %c0_141] : memref<576x256xf32, #tpu.memory_space<vmem>>, vector<192x256xf32>
    %cst_142 = arith.constant dense<0.000000e+00> : vector<16x256xf32>
    %176 = tpu.matmul %174, %175, %cst_142 {dimension_numbers = #tpu.dot_dimension_numbers<[1], [0], [0], [1], [0, 0, 1, 1], [], []>} : vector<16x192xf32>, vector<192x256xf32>, vector<16x256xf32> -> vector<16x256xf32>
    %177 = arith.addf %173, %176 : vector<16x256xf32>
    %c32_143 = arith.constant 32 : index
    %c0_144 = arith.constant 0 : index
    %178 = vector.load %arg35[%c32_143, %c0_144] : memref<48x192xf32, #tpu.memory_space<vmem>>, vector<16x192xf32>
    %c384 = arith.constant 384 : index
    %c0_145 = arith.constant 0 : index
    %179 = vector.load %arg31[%c384, %c0_145] : memref<576x256xf32, #tpu.memory_space<vmem>>, vector<192x256xf32>
    %cst_146 = arith.constant dense<0.000000e+00> : vector<16x256xf32>
    %180 = tpu.matmul %178, %179, %cst_146 {dimension_numbers = #tpu.dot_dimension_numbers<[1], [0], [0], [1], [0, 0, 1, 1], [], []>} : vector<16x192xf32>, vector<192x256xf32>, vector<16x256xf32> -> vector<16x256xf32>
    %181 = arith.addf %177, %180 : vector<16x256xf32>
    %cst_147 = arith.constant dense<0.000000e+00> : vector<256xf32>
    %182 = vector.multi_reduction <add>, %181, %cst_147 [0] : vector<16x256xf32> to vector<256xf32>
    %183 = vector.shape_cast %182 : vector<256xf32> to vector<1x256xf32>
    %184 = arith.mulf %181, %181 : vector<16x256xf32>
    %cst_148 = arith.constant dense<0.000000e+00> : vector<256xf32>
    %185 = vector.multi_reduction <add>, %184, %cst_148 [0] : vector<16x256xf32> to vector<256xf32>
    %186 = vector.shape_cast %185 : vector<256xf32> to vector<1x256xf32>
    %c0_149 = arith.constant 0 : index
    %c0_150 = arith.constant 0 : index
    %187 = vector.load %arg37[%c0_149, %c0_150] : memref<8x496xf32, #tpu.memory_space<vmem>>, vector<1x256xf32>
    tpu.vector_store %arg37[%c0_149, %c0_150], %183 {strides = array<i32>} : memref<8x496xf32, #tpu.memory_space<vmem>>, vector<1x256xf32>,
    %c1_151 = arith.constant 1 : index
    %c0_152 = arith.constant 0 : index
    %188 = vector.load %arg37[%c1_151, %c0_152] : memref<8x496xf32, #tpu.memory_space<vmem>>, vector<1x256xf32>
    tpu.vector_store %arg37[%c1_151, %c0_152], %186 {strides = array<i32>} : memref<8x496xf32, #tpu.memory_space<vmem>>, vector<1x256xf32>,
    %c0_153 = arith.constant 0 : index
    %c0_154 = arith.constant 0 : index
    %189 = vector.load %arg37[%c0_153, %c0_154] : memref<8x496xf32, #tpu.memory_space<vmem>>, vector<2x256xf32>
    %c0_155 = arith.constant 0 : index
    %c0_156 = arith.constant 0 : index
    %190 = vector.load %arg19[%c0_155, %c0_156] : memref<256x64xf32, #tpu.memory_space<vmem>>, vector<256x64xf32>
    %cst_157 = arith.constant dense<0.000000e+00> : vector<2x64xf32>
    %191 = tpu.matmul %189, %190, %cst_157 {dimension_numbers = #tpu.dot_dimension_numbers<[1], [0], [0], [1], [0, 0, 1, 1], [], []>} : vector<2x256xf32>, vector<256x64xf32>, vector<2x64xf32> -> vector<2x64xf32>
    %cst_158 = arith.constant 3.200000e+01 : f32
    %192 = vector.broadcast %cst_158 : f32 to vector<2x64xf32>
    %193 = arith.divf %191, %192 : vector<2x64xf32>
    %194 = vector.extract_strided_slice %193 {offsets = [0, 0], sizes = [1, 64], strides = [1, 1]} : vector<2x64xf32> to vector<1x64xf32>
    %195 = vector.extract_strided_slice %193 {offsets = [1, 0], sizes = [1, 64], strides = [1, 1]} : vector<2x64xf32> to vector<1x64xf32>
    %196 = arith.mulf %194, %194 : vector<1x64xf32>
    %197 = arith.subf %195, %196 : vector<1x64xf32>
    %cst_159 = arith.constant 9.99999974E-6 : f32
    %198 = vector.broadcast %cst_159 : f32 to vector<1x64xf32>
    %199 = arith.addf %197, %198 : vector<1x64xf32>
    %200 = math.rsqrt %199 : vector<1x64xf32>
    %201 = arith.mulf %153, %200 : vector<1x64xf32>
    %202 = arith.mulf %194, %201 : vector<1x64xf32>
    %203 = arith.subf %154, %202 : vector<1x64xf32>
    %c0_160 = arith.constant 0 : index
    %c0_161 = arith.constant 0 : index
    %204 = vector.load %arg37[%c0_160, %c0_161] : memref<8x496xf32, #tpu.memory_space<vmem>>, vector<1x64xf32>
    tpu.vector_store %arg37[%c0_160, %c0_161], %201 {strides = array<i32>} : memref<8x496xf32, #tpu.memory_space<vmem>>, vector<1x64xf32>,
    %c1_162 = arith.constant 1 : index
    %c0_163 = arith.constant 0 : index
    %205 = vector.load %arg37[%c1_162, %c0_163] : memref<8x496xf32, #tpu.memory_space<vmem>>, vector<1x64xf32>
    tpu.vector_store %arg37[%c1_162, %c0_163], %203 {strides = array<i32>} : memref<8x496xf32, #tpu.memory_space<vmem>>, vector<1x64xf32>,
    %c0_164 = arith.constant 0 : index
    %c0_165 = arith.constant 0 : index
    %206 = vector.load %arg37[%c0_164, %c0_165] : memref<8x496xf32, #tpu.memory_space<vmem>>, vector<2x64xf32>
    %c0_166 = arith.constant 0 : index
    %c0_167 = arith.constant 0 : index
    %207 = vector.load %arg20[%c0_166, %c0_167] : memref<64x256xf32, #tpu.memory_space<vmem>>, vector<64x256xf32>
    %cst_168 = arith.constant dense<0.000000e+00> : vector<2x256xf32>
    %208 = tpu.matmul %206, %207, %cst_168 {dimension_numbers = #tpu.dot_dimension_numbers<[1], [0], [0], [1], [0, 0, 1, 1], [], []>} : vector<2x64xf32>, vector<64x256xf32>, vector<2x256xf32> -> vector<2x256xf32>
    %209 = vector.extract_strided_slice %208 {offsets = [0, 0], sizes = [1, 256], strides = [1, 1]} : vector<2x256xf32> to vector<1x256xf32>
    %210 = vector.broadcast %209 : vector<1x256xf32> to vector<16x256xf32>
    %211 = arith.mulf %181, %210 : vector<16x256xf32>
    %212 = vector.extract_strided_slice %208 {offsets = [1, 0], sizes = [1, 256], strides = [1, 1]} : vector<2x256xf32> to vector<1x256xf32>
    %213 = vector.broadcast %212 : vector<1x256xf32> to vector<16x256xf32>
    %214 = arith.addf %211, %213 : vector<16x256xf32>
    %cst_169 = arith.constant 0.000000e+00 : f32
    %215 = vector.broadcast %cst_169 : f32 to vector<16x256xf32>
    %216 = arith.maximumf %214, %215 : vector<16x256xf32>
    %217 = vector.extract_strided_slice %216 {offsets = [0, 0], sizes = [16, 128], strides = [1, 1]} : vector<16x256xf32> to vector<16x128xf32>
    %218 = vector.extract_strided_slice %216 {offsets = [0, 128], sizes = [16, 128], strides = [1, 1]} : vector<16x256xf32> to vector<16x128xf32>
    %219 = arith.maximumf %217, %218 : vector<16x128xf32>
    %c0_170 = arith.constant 0 : index
    %c0_171 = arith.constant 0 : index
    %220 = vector.load %arg21[%c0_170, %c0_171] : memref<4x16xf32, #tpu.memory_space<vmem>>, vector<4x16xf32>
    %cst_172 = arith.constant dense<0.000000e+00> : vector<4x128xf32>
    %221 = tpu.matmul %220, %219, %cst_172 {dimension_numbers = #tpu.dot_dimension_numbers<[1], [0], [0], [1], [0, 0, 1, 1], [], []>} : vector<4x16xf32>, vector<16x128xf32>, vector<4x128xf32> -> vector<4x128xf32>
    %c0_173 = arith.constant 0 : index
    %c0_174 = arith.constant 0 : index
    %222 = vector.load %arg22[%c0_173, %c0_174] : memref<4x16xf32, #tpu.memory_space<vmem>>, vector<4x16xf32>
    %cst_175 = arith.constant dense<0.000000e+00> : vector<4x128xf32>
    %223 = tpu.matmul %222, %219, %cst_175 {dimension_numbers = #tpu.dot_dimension_numbers<[1], [0], [0], [1], [0, 0, 1, 1], [], []>} : vector<4x16xf32>, vector<16x128xf32>, vector<4x128xf32> -> vector<4x128xf32>
    %224 = arith.maximumf %221, %223 : vector<4x128xf32>
    %c0_176 = arith.constant 0 : index
    %c0_177 = arith.constant 0 : index
    %225 = vector.load %arg23[%c0_176, %c0_177] : memref<1x128xf32, #tpu.memory_space<vmem>>, vector<1x128xf32>
    %c0_178 = arith.constant 0 : index
    %c0_179 = arith.constant 0 : index
    %226 = vector.load %arg24[%c0_178, %c0_179] : memref<1x128xf32, #tpu.memory_space<vmem>>, vector<1x128xf32>
    %cst_180 = arith.constant 0.000000e+00 : f32
    %227 = vector.broadcast %cst_180 : f32 to vector<32x128xf32>
    %c0_181 = arith.constant 0 : index
    %c0_182 = arith.constant 0 : index
    %228 = vector.load %arg36[%c0_181, %c0_182] : memref<32x128xf32, #tpu.memory_space<vmem>>, vector<32x128xf32>
    tpu.vector_store %arg36[%c0_181, %c0_182], %227 {strides = array<i32>} : memref<32x128xf32, #tpu.memory_space<vmem>>, vector<32x128xf32>,
    %229 = vector.extract_strided_slice %224 {offsets = [0, 0], sizes = [1, 128], strides = [1, 1]} : vector<4x128xf32> to vector<1x128xf32>
    %c0_183 = arith.constant 0 : index
    %c0_184 = arith.constant 0 : index
    %230 = vector.load %arg36[%c0_183, %c0_184] : memref<32x128xf32, #tpu.memory_space<vmem>>, vector<1x128xf32>
    tpu.vector_store %arg36[%c0_183, %c0_184], %229 {strides = array<i32>} : memref<32x128xf32, #tpu.memory_space<vmem>>, vector<1x128xf32>,
    %231 = vector.extract_strided_slice %224 {offsets = [2, 0], sizes = [1, 128], strides = [1, 1]} : vector<4x128xf32> to vector<1x128xf32>
    %c8_185 = arith.constant 8 : index
    %c0_186 = arith.constant 0 : index
    %232 = vector.load %arg36[%c8_185, %c0_186] : memref<32x128xf32, #tpu.memory_space<vmem>>, vector<1x128xf32>
    tpu.vector_store %arg36[%c8_185, %c0_186], %231 {strides = array<i32>} : memref<32x128xf32, #tpu.memory_space<vmem>>, vector<1x128xf32>,
    %233 = vector.extract_strided_slice %224 {offsets = [1, 0], sizes = [1, 128], strides = [1, 1]} : vector<4x128xf32> to vector<1x128xf32>
    %c16_187 = arith.constant 16 : index
    %c0_188 = arith.constant 0 : index
    %234 = vector.load %arg36[%c16_187, %c0_188] : memref<32x128xf32, #tpu.memory_space<vmem>>, vector<1x128xf32>
    tpu.vector_store %arg36[%c16_187, %c0_188], %233 {strides = array<i32>} : memref<32x128xf32, #tpu.memory_space<vmem>>, vector<1x128xf32>,
    %235 = vector.extract_strided_slice %224 {offsets = [3, 0], sizes = [1, 128], strides = [1, 1]} : vector<4x128xf32> to vector<1x128xf32>
    %c24_189 = arith.constant 24 : index
    %c0_190 = arith.constant 0 : index
    %236 = vector.load %arg36[%c24_189, %c0_190] : memref<32x128xf32, #tpu.memory_space<vmem>>, vector<1x128xf32>
    tpu.vector_store %arg36[%c24_189, %c0_190], %235 {strides = array<i32>} : memref<32x128xf32, #tpu.memory_space<vmem>>, vector<1x128xf32>,
    %c3_i32_191 = arith.constant 3 : i32
    %237 = tpu.memref_slice %arg38[%c3_i32_191] : memref<4x!tpu.dma_semaphore, #tpu.memory_space<semaphore_mem>> -> memref<1x!tpu.dma_semaphore, #tpu.memory_space<semaphore_mem>>
    %238 = tpu.memref_squeeze %237 : memref<1x!tpu.dma_semaphore, #tpu.memory_space<semaphore_mem>> -> memref<!tpu.dma_semaphore, #tpu.memory_space<semaphore_mem>>
    tpu.wait_dma2 semaphore(%238 : memref<!tpu.dma_semaphore, #tpu.memory_space<semaphore_mem>>) src(%arg4 : memref<256x128xf32, #tpu.memory_space<any>>) dst(%arg32 : memref<256x128xf32, #tpu.memory_space<vmem>>)
    %c0_192 = arith.constant 0 : index
    %c0_193 = arith.constant 0 : index
    %239 = vector.load %arg36[%c0_192, %c0_193] : memref<32x128xf32, #tpu.memory_space<vmem>>, vector<16x128xf32>
    %c0_194 = arith.constant 0 : index
    %c0_195 = arith.constant 0 : index
    %240 = vector.load %arg32[%c0_194, %c0_195] : memref<256x128xf32, #tpu.memory_space<vmem>>, vector<128x128xf32>
    %cst_196 = arith.constant dense<0.000000e+00> : vector<16x128xf32>
    %241 = tpu.matmul %239, %240, %cst_196 {dimension_numbers = #tpu.dot_dimension_numbers<[1], [0], [0], [1], [0, 0, 1, 1], [], []>} : vector<16x128xf32>, vector<128x128xf32>, vector<16x128xf32> -> vector<16x128xf32>
    %c16_197 = arith.constant 16 : index
    %c0_198 = arith.constant 0 : index
    %242 = vector.load %arg36[%c16_197, %c0_198] : memref<32x128xf32, #tpu.memory_space<vmem>>, vector<16x128xf32>
    %c128_199 = arith.constant 128 : index
    %c0_200 = arith.constant 0 : index
    %243 = vector.load %arg32[%c128_199, %c0_200] : memref<256x128xf32, #tpu.memory_space<vmem>>, vector<128x128xf32>
    %cst_201 = arith.constant dense<0.000000e+00> : vector<16x128xf32>
    %244 = tpu.matmul %242, %243, %cst_201 {dimension_numbers = #tpu.dot_dimension_numbers<[1], [0], [0], [1], [0, 0, 1, 1], [], []>} : vector<16x128xf32>, vector<128x128xf32>, vector<16x128xf32> -> vector<16x128xf32>
    %245 = arith.addf %241, %244 : vector<16x128xf32>
    %c0_202 = arith.constant 0 : index
    %c0_203 = arith.constant 0 : index
    %246 = vector.load %arg25[%c0_202, %c0_203] : memref<2x16xf32, #tpu.memory_space<vmem>>, vector<2x16xf32>
    %cst_204 = arith.constant dense<0.000000e+00> : vector<2x128xf32>
    %247 = tpu.matmul %246, %245, %cst_204 {dimension_numbers = #tpu.dot_dimension_numbers<[1], [0], [0], [1], [0, 0, 1, 1], [], []>} : vector<2x16xf32>, vector<16x128xf32>, vector<2x128xf32> -> vector<2x128xf32>
    %cst_205 = arith.constant dense<0.000000e+00> : vector<128xf32>
    %248 = vector.multi_reduction <add>, %247, %cst_205 [0] : vector<2x128xf32> to vector<128xf32>
    %249 = vector.shape_cast %248 : vector<128xf32> to vector<1x128xf32>
    %cst_206 = arith.constant 2.000000e+00 : f32
    %250 = vector.broadcast %cst_206 : f32 to vector<1x128xf32>
    %251 = arith.divf %249, %250 : vector<1x128xf32>
    %252 = vector.broadcast %251 : vector<1x128xf32> to vector<2x128xf32>
    %253 = arith.subf %247, %252 : vector<2x128xf32>
    %254 = arith.mulf %253, %253 : vector<2x128xf32>
    %cst_207 = arith.constant dense<0.000000e+00> : vector<128xf32>
    %255 = vector.multi_reduction <add>, %254, %cst_207 [0] : vector<2x128xf32> to vector<128xf32>
    %256 = vector.shape_cast %255 : vector<128xf32> to vector<1x128xf32>
    %cst_208 = arith.constant 2.000000e+00 : f32
    %257 = vector.broadcast %cst_208 : f32 to vector<1x128xf32>
    %258 = arith.divf %256, %257 : vector<1x128xf32>
    %cst_209 = arith.constant 9.99999974E-6 : f32
    %259 = vector.broadcast %cst_209 : f32 to vector<1x128xf32>
    %260 = arith.addf %258, %259 : vector<1x128xf32>
    %261 = math.rsqrt %260 : vector<1x128xf32>
    %262 = arith.mulf %225, %261 : vector<1x128xf32>
    %263 = arith.mulf %251, %262 : vector<1x128xf32>
    %264 = arith.subf %226, %263 : vector<1x128xf32>
    %265 = vector.broadcast %262 : vector<1x128xf32> to vector<2x128xf32>
    %266 = arith.mulf %247, %265 : vector<2x128xf32>
    %267 = vector.broadcast %264 : vector<1x128xf32> to vector<2x128xf32>
    %268 = arith.addf %266, %267 : vector<2x128xf32>
    %cst_210 = arith.constant 0.000000e+00 : f32
    %269 = vector.broadcast %cst_210 : f32 to vector<2x128xf32>
    %270 = arith.maximumf %268, %269 : vector<2x128xf32>
    %c0_211 = arith.constant 0 : index
    %c0_212 = arith.constant 0 : index
    %271 = vector.load %arg26[%c0_211, %c0_212] : memref<128x128xf32, #tpu.memory_space<vmem>>, vector<128x128xf32>
    %cst_213 = arith.constant dense<0.000000e+00> : vector<2x128xf32>
    %272 = tpu.matmul %270, %271, %cst_213 {dimension_numbers = #tpu.dot_dimension_numbers<[1], [0], [0], [1], [0, 0, 1, 1], [], []>} : vector<2x128xf32>, vector<128x128xf32>, vector<2x128xf32> -> vector<2x128xf32>
    %c0_214 = arith.constant 0 : index
    %c0_215 = arith.constant 0 : index
    %273 = vector.load %arg27[%c0_214, %c0_215] : memref<1x128xf32, #tpu.memory_space<vmem>>, vector<1x128xf32>
    %274 = vector.broadcast %273 : vector<1x128xf32> to vector<2x128xf32>
    %275 = arith.addf %272, %274 : vector<2x128xf32>
    %c0_216 = arith.constant 0 : index
    %c0_217 = arith.constant 0 : index
    %276 = vector.load %arg28[%c0_216, %c0_217] : memref<2x128xf32, #tpu.memory_space<vmem>>, vector<2x128xf32>
    tpu.vector_store %arg28[%c0_216, %c0_217], %275 {strides = array<i32>} : memref<2x128xf32, #tpu.memory_space<vmem>>, vector<2x128xf32>,
    return
  }
}

</mosaic_0001>

<bundles_post_ra>
// kernel: _lambda_.1
= control target key start
LH: loop header
LB: loop body
LE: loop exit
PB: predicated region body
PF: predicated region fallthrough
CT: control target
= control target key end

     0   :  { %s8475_s0 = inlined_call_operand.hbm [shape: f32[64,32], index: 0, kind: input, shape index: {}]   ;;  %s8476_s1 = inlined_call_operand.hbm [shape: f32[96,496], index: 1, kind: input, shape index: {}]   ;;  %s8477_s2 = inlined_call_operand.hbm [shape: f32[720,480], index: 2, kind: input, shape index: {}]   ;;  %s8478_s3 = inlined_call_operand.hbm [shape: f32[576,256], index: 3, kind: input, shape index: {}]   ;;  %s8479_s4 = inlined_call_operand.hbm [shape: f32[256,128], index: 4, kind: input, shape index: {}]   ;;  %s8480_s5 = inlined_call_operand.hbm [shape: f32[1,16], index: 5, kind: input, shape index: {}]   ;;  %s8481_s6 = inlined_call_operand.hbm [shape: f32[1,16], index: 6, kind: input, shape index: {}]   ;;  %s8482_s7 = inlined_call_operand.vmem [shape: f32[496,16], index: 7, kind: input, shape index: {}]   ;;  %s8483_s8 = inlined_call_operand.hbm [shape: f32[16,496], index: 8, kind: input, shape index: {}]   ;;  %s8484_s9 = inlined_call_operand.hbm [shape: f32[30,64], index: 9, kind: input, shape index: {}]   ;;  %s8485_s10 = inlined_call_operand.hbm [shape: f32[30,64], index: 10, kind: input, shape index: {}]   ;;  %s8486_s11 = inlined_call_operand.hbm [shape: f32[1,32], index: 11, kind: input, shape index: {}]   ;;  %s8487_s12 = inlined_call_operand.hbm [shape: f32[1,32], index: 12, kind: input, shape index: {}]   ;;  %s8488_s13 = inlined_call_operand.vmem [shape: f32[480,32], index: 13, kind: input, shape index: {}]   ;;  %s8489_s14 = inlined_call_operand.hbm [shape: f32[32,480], index: 14, kind: input, shape index: {}]   ;;  %s8490_s15 = inlined_call_operand.hbm [shape: f32[12,32], index: 15, kind: input, shape index: {}]   ;;  %s8491_s16 = inlined_call_operand.hbm [shape: f32[12,32], index: 16, kind: input, shape index: {}]   ;;  %s8492_s17 = inlined_call_operand.hbm [shape: f32[1,64], index: 17, kind: input, shape index: {}]   ;;  %s8493_s18 = inlined_call_operand.hbm [shape: f32[1,64], index: 18, kind: input, shape index: {}]   ;;  %s8494_s19 = inlined_call_operand.vmem [shape: f32[256,64], index: 19, kind: input, shape index: {}]   ;;  %s8495_s20 = inlined_call_operand.hbm [shape: f32[64,256], index: 20, kind: input, shape index: {}]   ;;  %s8496_s21 = inlined_call_operand.hbm [shape: f32[4,16], index: 21, kind: input, shape index: {}]   ;;  %s8497_s22 = inlined_call_operand.hbm [shape: f32[4,16], index: 22, kind: input, shape index: {}]   ;;  %s8498_s23 = inlined_call_operand.hbm [shape: f32[1,128], index: 23, kind: input, shape index: {}]   ;;  %s8499_s24 = inlined_call_operand.hbm [shape: f32[1,128], index: 24, kind: input, shape index: {}]   ;;  %s8500_s25 = inlined_call_operand.hbm [shape: f32[2,16], index: 25, kind: input, shape index: {}]   ;;  %s8501_s26 = inlined_call_operand.hbm [shape: f32[128,128], index: 26, kind: input, shape index: {}]   ;;  %s8502_s27 = inlined_call_operand.hbm [shape: f32[1,128], index: 27, kind: input, shape index: {}]   ;;  %s8503_s28 = inlined_call_operand.hbm [shape: f32[2,128], index: 28, kind: output, shape index: {}]  }
   0x1   :  { %8513 = sst [smem:[#allocation90_spill]] %s8475_s0 }
   0x2   :  { %8514 = sst [smem:[#allocation91_spill]] %s8476_s1 }
   0x3   :  { %8515 = sst [smem:[#allocation92_spill]] %s8477_s2 }
   0x4   :  { %8516 = sst [smem:[#allocation93_spill]] %s8478_s3 }
   0x5   :  { %8517 = sst [smem:[#allocation94_spill]] %s8479_s4 }
   0x6   :  { %8518 = sst [smem:[#allocation95_spill]] %s8480_s5 }
   0x7   :  { %8519 = sst [smem:[#allocation96_spill]] %s8481_s6 }
   0x8   :  { %8520 = sst [smem:[#allocation97_spill]] %s8482_s7 }
   0x9   :  { %8521 = sst [smem:[#allocation98_spill]] %s8483_s8 }
   0xa   :  { %8522 = sst [smem:[#allocation99_spill]] %s8484_s9 }
   0xb   :  { %8523 = sst [smem:[#allocation100_spill]] %s8485_s10 }
   0xc   :  { %8524 = sst [smem:[#allocation101_spill]] %s8486_s11 }
   0xd   :  { %8525 = sst [smem:[#allocation102_spill]] %s8487_s12 }
   0xe   :  { %8526 = sst [smem:[#allocation103_spill]] %s8503_s28 }
   0xf   :  { %33 = vsyncpa [#allocation13], 0 }
  0x10   :  { %34 = vsyncpa [#allocation16], 0 }
  0x11   :  { %35 = vsyncpa [#allocation19], 0 }
  0x12   :  { %36 = vsyncpa [#allocation22], 0 }
  0x13   :  { %37 = vsyncpa [#allocation25], 0 }
  0x14   :  { %38 = vsyncpa [#allocation28], 0 }
  0x15   :  { %39 = vsyncpa [#allocation31], 0 }
  0x16   :  { %40 = vsyncpa [#allocation34], 0 }
  0x17   :  { %41 = vsyncpa [#allocation37], 0 }
  0x18   :  { %42 = vsyncpa [#allocation40], 0 }
  0x19   :  { %43 = vsyncpa [#allocation43], 0 }
  0x1a   :  { %44 = vsyncpa [#allocation14], 0  ;;  %s6605_s8 = smov [#allocation15]   ;;  %s6606_s9 = smov [#allocation18]  }
  0x1b   :  { %s63_s5 = sshll.u32 %s6605_s8, 4  ;;  %s84_s30 = sshll.u32 %s6606_s9, 4  ;;  %s64_s5 = int_to_ptr.vmem [resolvable:$true] %s63_s5  ;;  %s85_s30 = int_to_ptr.vmem [resolvable:$true] %s84_s30 }
  0x1c   :  { %s6061_s3 = scalar_lea.vmem %s64_s5, 16  ;;  %s6065_s6 = scalar_lea.vmem %s64_s5, 32 }
  0x1d   :  { %p6062_p0 = scmp.ne.s32.totalorder %s64_s5, %s6061_s3  ;;  %p6066_p1 = scmp.lt.s32.totalorder %s64_s5, %s64_s5 }
  0x1e   :  { %p6067_p2 = scmp.lt.s32.totalorder %s6065_s6, %s6061_s3 }
  0x20   :  { %p6068_p3 = por %p6067_p2, %p6066_p1 }
  0x22   :  { %p6069_p4 = pnand %p6068_p3, %p6062_p0 }
  0x24   :  { %6072 = shalt.err (!%p6069_p4)
}
  0x25   :  { %s8527_s11 = sld [smem:[#allocation95_spill]]  ;;  %s6081_s29 = scalar_lea.vmem %s85_s30, 1024 }
  0x26   :  { %p6082_p5 = scmp.ne.s32.totalorder %s85_s30, %s6081_s29  ;;  %p6086_p6 = scmp.lt.s32.totalorder %s85_s30, %s85_s30 }
  0x27   :  { %p6087_p7 = scmp.lt.s32.totalorder %s6081_s29, %s6081_s29 }
  0x29   :  { %p6088_p8 = por %p6087_p7, %p6086_p6 }
  0x2b   :  { %66 = dma.hbm_to_vmem [thread:$0]  %s8527_s11, 16, %s64_s5, [#allocation16]  }
  0x2c   :  { %p6089_p9 = pnand %p6088_p8, %p6082_p5 }
  0x2e   :  { %6092 = shalt.err (!%p6089_p9)
}
  0x2f   :  { %s8505_s2 = smov 512   ;;  %s8506_s7 = smov 32  }
  0x30   :  { %s8528_s4 = sld [smem:[#allocation98_spill]]  ;;  %s6609_s8 = smov [#allocation21]  }
  0x31   :  { %s108_s9 = sshll.u32 %s6609_s8, 4  ;;  %s6610_s3 = smov [#allocation24]   ;;  %s109_s9 = int_to_ptr.vmem [resolvable:$true] %s108_s9 }
  0x32   :  { %s131_s5 = sshll.u32 %s6610_s3, 4  ;;  %s6101_s6 = scalar_lea.vmem %s109_s9, 512  ;;  %s132_s5 = int_to_ptr.vmem [resolvable:$true] %s131_s5 }
  0x33   :  { %p6102_p10 = scmp.ne.s32.totalorder %s109_s9, %s6101_s6  ;;  %p6106_p11 = scmp.lt.s32.totalorder %s109_s9, %s109_s9 }
  0x34   :  { %p6107_p12 = scmp.lt.s32.totalorder %s6101_s6, %s6101_s6 }
  0x36   :  { %90 = dma.hbm_to_vmem [thread:$0]  %s8528_s4, 1024, %s85_s30, [#allocation19], %s8505_s2, %s8505_s2, %s8506_s7  }
  0x37   :  { %p6108_p13 = por %p6107_p12, %p6106_p11 }
  0x39   :  { %p6109_p0 = pnand %p6108_p13, %p6102_p10 }
  0x3b   :  { %6112 = shalt.err (!%p6109_p0)
}
  0x3c   :  { %s6611_s10 = smov 128   ;;  %s6612_s0 = smov 8  }
  0x3d   :  { %s8529_s29 = sld [smem:[#allocation100_spill]]  ;;  %s6121_s12 = scalar_lea.vmem %s132_s5, 16 }
  0x3e   :  { %p6122_p1 = scmp.ne.s32.totalorder %s132_s5, %s6121_s12  ;;  %s6125_s1 = scalar_lea.vmem %s132_s5, 32 }
  0x3f   :  { %p6126_p2 = scmp.lt.s32.totalorder %s132_s5, %s132_s5  ;;  %p6127_p3 = scmp.lt.s32.totalorder %s6125_s1, %s6121_s12 }
  0x41   :  { %p6128_p4 = por %p6127_p3, %p6126_p2 }
  0x43   :  { %114 = dma.hbm_to_vmem [thread:$0]  %s8529_s29, 512, %s109_s9, [#allocation22], %s6611_s10, %s6611_s10, %s6612_s0  }
  0x44   :  { %p6129_p5 = pnand %p6128_p4, %p6122_p1 }
  0x46   :  { %6132 = shalt.err (!%p6129_p5)
}
  0x47   :  { %s8530_s3 = sld [smem:[#allocation102_spill]]  ;;  %s6613_s6 = smov [#allocation27]  }
  0x48   :  { %s154_s2 = sshll.u32 %s6613_s6, 4  ;;  %s6614_s7 = smov [#allocation30]   ;;  %s155_s2 = int_to_ptr.vmem [resolvable:$true] %s154_s2 }
  0x49   :  { %s179_s28 = sshll.u32 %s6614_s7, 4  ;;  %s6141_s11 = scalar_lea.vmem %s155_s2, 256  ;;  %s180_s28 = int_to_ptr.vmem [resolvable:$true] %s179_s28 }
  0x4a   :  { %p6142_p6 = scmp.ne.s32.totalorder %s155_s2, %s6141_s11  ;;  %p6146_p7 = scmp.lt.s32.totalorder %s155_s2, %s155_s2 }
  0x4b   :  { %p6147_p8 = scmp.lt.s32.totalorder %s6141_s11, %s6141_s11 }
  0x4d   :  { %134 = dma.hbm_to_vmem [thread:$0]  %s8530_s3, 16, %s132_s5, [#allocation25]  }
  0x4e   :  { %p6148_p9 = por %p6147_p8, %p6146_p7 }
  0x50   :  { %p6149_p10 = pnand %p6148_p9, %p6142_p6 }
  0x52   :  { %6152 = shalt.err (!%p6149_p10)
}
  0x53   :  { %160 = dma.hbm_to_vmem [thread:$0]  %s8490_s15, 256, %s155_s2, [#allocation28], %s6611_s10, %s6611_s10, %s6612_s0  }
  0x54   :  { %s6161_s5 = scalar_lea.vmem %s180_s28, 16  ;;  %s6165_s29 = scalar_lea.vmem %s180_s28, 32 }
  0x55   :  { %p6162_p11 = scmp.ne.s32.totalorder %s180_s28, %s6161_s5  ;;  %p6166_p12 = scmp.lt.s32.totalorder %s180_s28, %s180_s28 }
  0x56   :  { %p6167_p13 = scmp.lt.s32.totalorder %s6165_s29, %s6161_s5 }
  0x58   :  { %p6168_p0 = por %p6167_p13, %p6166_p12 }
  0x5a   :  { %p6169_p1 = pnand %p6168_p0, %p6162_p11 }
  0x5c   :  { %6172 = shalt.err (!%p6169_p1)
}
  0x5d   :  { %182 = dma.hbm_to_vmem [thread:$0]  %s8492_s17, 16, %s180_s28, [#allocation31]  }
  0x5e   :  { %s6615_s1 = smov [#allocation33]  }
  0x5f   :  { %s200_s4 = sshll.u32 %s6615_s1, 4  ;;  %s201_s4 = int_to_ptr.vmem [resolvable:$true] %s200_s4 }
  0x60   :  { %s6181_s8 = scalar_lea.vmem %s201_s4, 2048  ;;  %p6186_p3 = scmp.lt.s32.totalorder %s201_s4, %s201_s4 }
  0x61   :  { %p6182_p2 = scmp.ne.s32.totalorder %s201_s4, %s6181_s8  ;;  %p6187_p4 = scmp.lt.s32.totalorder %s6181_s8, %s6181_s8 }
  0x63   :  { %p6188_p5 = por %p6187_p4, %p6186_p3 }
  0x65   :  { %p6189_p6 = pnand %p6188_p5, %p6182_p2 }
  0x67   :  { %6192 = shalt.err (!%p6189_p6)
}
  0x68   :  { %s6616_s15 = smov 256   ;;  %s6617_s2 = smov 16  }
  0x69   :  { %206 = dma.hbm_to_vmem [thread:$0]  %s8495_s20, 2048, %s201_s4, [#allocation34], %s6616_s15, %s6616_s15, %s6617_s2  }
  0x6a   :  { %s6618_s11 = smov [#allocation36]   ;;  %s6619_s17 = smov [#allocation39]  }
  0x6b   :  { %s223_s9 = sshll.u32 %s6618_s11, 4  ;;  %s243_s28 = sshll.u32 %s6619_s17, 4  ;;  %s224_s9 = int_to_ptr.vmem [resolvable:$true] %s223_s9  ;;  %s244_s28 = int_to_ptr.vmem [resolvable:$true] %s243_s28 }
  0x6c   :  { %s6201_s30 = scalar_lea.vmem %s224_s9, 64  ;;  %p6206_p8 = scmp.lt.s32.totalorder %s224_s9, %s224_s9 }
  0x6d   :  { %p6202_p7 = scmp.ne.s32.totalorder %s224_s9, %s6201_s30  ;;  %p6207_p9 = scmp.lt.s32.totalorder %s6201_s30, %s6201_s30 }
  0x6f   :  { %p6208_p10 = por %p6207_p9, %p6206_p8 }
  0x71   :  { %p6209_p11 = pnand %p6208_p10, %p6202_p7 }
  0x73   :  { %6212 = shalt.err (!%p6209_p11)
}
  0x74   :  { %226 = dma.hbm_to_vmem [thread:$0]  %s8497_s22, 64, %s224_s9, [#allocation37]  }
  0x75   :  { %s6221_s7 = scalar_lea.vmem %s244_s28, 16  ;;  %s6225_s20 = scalar_lea.vmem %s244_s28, 32 }
  0x76   :  { %p6222_p12 = scmp.ne.s32.totalorder %s244_s28, %s6221_s7  ;;  %p6226_p13 = scmp.lt.s32.totalorder %s244_s28, %s244_s28 }
  0x77   :  { %p6227_p0 = scmp.lt.s32.totalorder %s6225_s20, %s6221_s7 }
  0x79   :  { %p6228_p1 = por %p6227_p0, %p6226_p13 }
  0x7b   :  { %p6229_p2 = pnand %p6228_p1, %p6222_p12 }
  0x7d   :  { %6232 = shalt.err (!%p6229_p2)
}
  0x7e   :  { %246 = dma.hbm_to_vmem [thread:$0]  %s8499_s24, 16, %s244_s28, [#allocation40]  }
  0x7f   :  { %s6620_s4 = smov [#allocation42]   ;;  %s6621_s15 = smov [#allocation12]  }
  0x80   :  { %s262_s8 = sshll.u32 %s6620_s4, 4  ;;  %s50_s2 = sshll.u32 %s6621_s15, 4  ;;  %s263_s8 = int_to_ptr.vmem [resolvable:$true] %s262_s8  ;;  %s51_s2 = int_to_ptr.vmem [resolvable:$true] %s50_s2 }
  0x81   :  { %s6241_s3 = scalar_lea.vmem %s263_s8, 2048  ;;  %p6246_p4 = scmp.lt.s32.totalorder %s263_s8, %s263_s8 }
  0x82   :  { %p6242_p3 = scmp.ne.s32.totalorder %s263_s8, %s6241_s3  ;;  %p6247_p5 = scmp.lt.s32.totalorder %s6241_s3, %s6241_s3 }
  0x84   :  { %p6248_p6 = por %p6247_p5, %p6246_p4 }
  0x86   :  { %p6249_p7 = pnand %p6248_p6, %p6242_p3 }
  0x88   :  { %6252 = shalt.err (!%p6249_p7)
}
  0x89   :  { %268 = dma.hbm_to_vmem [thread:$0]  %s8501_s26, 2048, %s263_s8, [#allocation43], %s6611_s10, %s6611_s10, %s6612_s0  }
  0x8a   :  { %s6261_s24 = scalar_lea.vmem %s51_s2, 1024  ;;  %p6266_p9 = scmp.lt.s32.totalorder %s51_s2, %s51_s2 }
  0x8b   :  { %p6262_p8 = scmp.ne.s32.totalorder %s51_s2, %s6261_s24  ;;  %p6267_p10 = scmp.lt.s32.totalorder %s6261_s24, %s6261_s24 }
  0x8d   :  { %p6268_p11 = por %p6267_p10, %p6266_p9 }
  0x8f   :  { %p6269_p12 = pnand %p6268_p11, %p6262_p8 }
  0x91   :  { %6272 = shalt.err (!%p6269_p12)
}
  0x92   :  { %s8531_s17 = sld [smem:[#allocation90_spill]]  ;;  %s6622_s28 = smov [#allocation17]  }
  0x93   :  { %s73_s30 = sshll.u32 %s6622_s28, 4  ;;  %s6623_s5 = smov [#allocation20]   ;;  %s74_s30 = int_to_ptr.vmem [resolvable:$true] %s73_s30 }
  0x94   :  { %s96_s26 = sshll.u32 %s6623_s5, 4  ;;  %s6281_s29 = scalar_lea.vmem %s74_s30, 16  ;;  %s97_s26 = int_to_ptr.vmem [resolvable:$true] %s96_s26 }
  0x95   :  { %p6282_p13 = scmp.ne.s32.totalorder %s74_s30, %s6281_s29  ;;  %s6285_s7 = scalar_lea.vmem %s74_s30, 32 }
  0x96   :  { %p6286_p0 = scmp.lt.s32.totalorder %s74_s30, %s74_s30  ;;  %p6287_p1 = scmp.lt.s32.totalorder %s6285_s7, %s6281_s29 }
  0x98   :  { %56 = dma.hbm_to_vmem [thread:$0]  %s8531_s17, 1024, %s51_s2, [#allocation13], %s6611_s10, %s6611_s10, %s6612_s0  }
  0x99   :  { %p6288_p2 = por %p6287_p1, %p6286_p0 }
  0x9b   :  { %p6289_p3 = pnand %p6288_p2, %p6282_p13 }
  0x9d   :  { %6292 = shalt.err (!%p6289_p3)
}
  0x9e   :  { %s8532_s1 = sld [smem:[#allocation96_spill]]  ;;  %s6301_s4 = scalar_lea.vmem %s97_s26, 512 }
  0x9f   :  { %p6302_p4 = scmp.ne.s32.totalorder %s97_s26, %s6301_s4  ;;  %p6306_p5 = scmp.lt.s32.totalorder %s97_s26, %s97_s26 }
  0xa0   :  { %p6307_p6 = scmp.lt.s32.totalorder %s6301_s4, %s6301_s4 }
  0xa2   :  { %p6308_p7 = por %p6307_p6, %p6306_p5 }
  0xa4   :  { %76 = dma.hbm_to_vmem [thread:$0]  %s8532_s1, 16, %s74_s30, [#allocation16]  }
  0xa5   :  { %p6309_p8 = pnand %p6308_p7, %p6302_p4 }
  0xa7   :  { %6312 = shalt.err (!%p6309_p8)
}
  0xa8   :  { %s8533_s2 = sld [smem:[#allocation99_spill]]  ;;  %s6624_s3 = smov [#allocation23]  }
  0xa9   :  { %s121_s22 = sshll.u32 %s6624_s3, 4  ;;  %s6625_s6 = smov [#allocation26]   ;;  %s122_s22 = int_to_ptr.vmem [resolvable:$true] %s121_s22 }
  0xaa   :  { %s142_s24 = sshll.u32 %s6625_s6, 4  ;;  %s6321_s11 = scalar_lea.vmem %s122_s22, 16  ;;  %s143_s24 = int_to_ptr.vmem [resolvable:$true] %s142_s24 }
  0xab   :  { %p6322_p9 = scmp.ne.s32.totalorder %s122_s22, %s6321_s11  ;;  %s6325_s9 = scalar_lea.vmem %s122_s22, 32 }
  0xac   :  { %p6326_p10 = scmp.lt.s32.totalorder %s122_s22, %s122_s22  ;;  %p6327_p11 = scmp.lt.s32.totalorder %s6325_s9, %s6321_s11 }
  0xae   :  { %102 = dma.hbm_to_vmem [thread:$0]  %s8533_s2, 512, %s97_s26, [#allocation19], %s6611_s10, %s6611_s10, %s6612_s0  }
  0xaf   :  { %p6328_p12 = por %p6327_p11, %p6326_p10 }
  0xb1   :  { %p6329_p13 = pnand %p6328_p12, %p6322_p9 }
  0xb3   :  { %6332 = shalt.err (!%p6329_p13)
}
  0xb4   :  { %s8534_s30 = sld [smem:[#allocation101_spill]]  ;;  %s6341_s5 = scalar_lea.vmem %s143_s24, 2048 }
  0xb5   :  { %p6342_p0 = scmp.ne.s32.totalorder %s143_s24, %s6341_s5  ;;  %p6346_p1 = scmp.lt.s32.totalorder %s143_s24, %s143_s24 }
  0xb6   :  { %p6347_p2 = scmp.lt.s32.totalorder %s6341_s5, %s6341_s5 }
  0xb8   :  { %p6348_p3 = por %p6347_p2, %p6346_p1 }
  0xba   :  { %124 = dma.hbm_to_vmem [thread:$0]  %s8534_s30, 16, %s122_s22, [#allocation22]  }
  0xbb   :  { %p6349_p4 = pnand %p6348_p3, %p6342_p0 }
  0xbd   :  { %6352 = shalt.err (!%p6349_p4)
}
  0xbe   :  { %s8535_s26 = smov 32   ;;  %s8536_s29 = smov 512  }
  0xbf   :  { %148 = dma.hbm_to_vmem [thread:$0]  %s8489_s14, 2048, %s143_s24, [#allocation25], %s8536_s29, %s8536_s29, %s8535_s26  }
  0xc0   :  { %s6626_s12 = smov [#allocation29]   ;;  %s6627_s4 = smov [#allocation32]  }
  0xc1   :  { %s166_s1 = sshll.u32 %s6626_s12, 4  ;;  %s189_s8 = sshll.u32 %s6627_s4, 4  ;;  %s167_s1 = int_to_ptr.vmem [resolvable:$true] %s166_s1  ;;  %s190_s8 = int_to_ptr.vmem [resolvable:$true] %s189_s8 }
  0xc2   :  { %s6361_s15 = scalar_lea.vmem %s167_s1, 256  ;;  %p6366_p6 = scmp.lt.s32.totalorder %s167_s1, %s167_s1 }
  0xc3   :  { %p6362_p5 = scmp.ne.s32.totalorder %s167_s1, %s6361_s15  ;;  %p6367_p7 = scmp.lt.s32.totalorder %s6361_s15, %s6361_s15 }
  0xc5   :  { %p6368_p8 = por %p6367_p7, %p6366_p6 }
  0xc7   :  { %p6369_p9 = pnand %p6368_p8, %p6362_p5 }
  0xc9   :  { %6372 = shalt.err (!%p6369_p9)
}
  0xca   :  { %172 = dma.hbm_to_vmem [thread:$0]  %s8491_s16, 256, %s167_s1, [#allocation28], %s6611_s10, %s6611_s10, %s6612_s0  }
  0xcb   :  { %s6381_s14 = scalar_lea.vmem %s190_s8, 16  ;;  %s6385_s22 = scalar_lea.vmem %s190_s8, 32 }
  0xcc   :  { %p6382_p10 = scmp.ne.s32.totalorder %s190_s8, %s6381_s14  ;;  %p6386_p11 = scmp.lt.s32.totalorder %s190_s8, %s190_s8 }
  0xcd   :  { %p6387_p12 = scmp.lt.s32.totalorder %s6385_s22, %s6381_s14 }
  0xcf   :  { %p6388_p13 = por %p6387_p12, %p6386_p11 }
  0xd1   :  { %p6389_p0 = pnand %p6388_p13, %p6382_p10 }
  0xd3   :  { %6392 = shalt.err (!%p6389_p0)
}
  0xd4   :  { %192 = dma.hbm_to_vmem [thread:$0]  %s8493_s18, 16, %s190_s8, [#allocation31]  }
  0xd5   :  { %s6628_s11 = smov [#allocation35]   ;;  %s6629_s17 = smov [#allocation38]  }
  0xd6   :  { %s213_s9 = sshll.u32 %s6628_s11, 4  ;;  %s233_s28 = sshll.u32 %s6629_s17, 4  ;;  %s214_s9 = int_to_ptr.vmem [resolvable:$true] %s213_s9  ;;  %s234_s28 = int_to_ptr.vmem [resolvable:$true] %s233_s28 }
  0xd7   :  { %s6401_s30 = scalar_lea.vmem %s214_s9, 64  ;;  %p6406_p2 = scmp.lt.s32.totalorder %s214_s9, %s214_s9 }
  0xd8   :  { %p6402_p1 = scmp.ne.s32.totalorder %s214_s9, %s6401_s30  ;;  %p6407_p3 = scmp.lt.s32.totalorder %s6401_s30, %s6401_s30 }
  0xda   :  { %p6408_p4 = por %p6407_p3, %p6406_p2 }
  0xdc   :  { %p6409_p5 = pnand %p6408_p4, %p6402_p1 }
  0xde   :  { %6412 = shalt.err (!%p6409_p5)
}
  0xdf   :  { %216 = dma.hbm_to_vmem [thread:$0]  %s8496_s21, 64, %s214_s9, [#allocation34]  }
  0xe0   :  { %s6421_s0 = scalar_lea.vmem %s234_s28, 16  ;;  %s6425_s18 = scalar_lea.vmem %s234_s28, 32 }
  0xe1   :  { %p6422_p6 = scmp.ne.s32.totalorder %s234_s28, %s6421_s0  ;;  %p6426_p7 = scmp.lt.s32.totalorder %s234_s28, %s234_s28 }
  0xe2   :  { %p6427_p8 = scmp.lt.s32.totalorder %s6425_s18, %s6421_s0 }
  0xe4   :  { %p6428_p9 = por %p6427_p8, %p6426_p7 }
  0xe6   :  { %p6429_p10 = pnand %p6428_p9, %p6422_p6 }
  0xe8   :  { %6432 = shalt.err (!%p6429_p10)
}
  0xe9   :  { %236 = dma.hbm_to_vmem [thread:$0]  %s8498_s23, 16, %s234_s28, [#allocation37]  }
  0xea   :  { %s6630_s29 = smov [#allocation41]   ;;  %s6631_s20 = smov [#allocation44]  }
  0xeb   :  { %s253_s7 = sshll.u32 %s6630_s29, 4  ;;  %s275_s12 = sshll.u32 %s6631_s20, 4  ;;  %s254_s7 = int_to_ptr.vmem [resolvable:$true] %s253_s7  ;;  %s276_s12 = int_to_ptr.vmem [resolvable:$true] %s275_s12 }
  0xec   :  { %s6441_s1 = scalar_lea.vmem %s254_s7, 32  ;;  %p6446_p12 = scmp.lt.s32.totalorder %s254_s7, %s254_s7 }
  0xed   :  { %p6442_p11 = scmp.ne.s32.totalorder %s254_s7, %s6441_s1  ;;  %p6447_p13 = scmp.lt.s32.totalorder %s6441_s1, %s6441_s1 }
  0xef   :  { %p6448_p0 = por %p6447_p13, %p6446_p12 }
  0xf1   :  { %p6449_p1 = pnand %p6448_p0, %p6442_p11 }
  0xf3   :  { %6452 = shalt.err (!%p6449_p1)
}
  0xf4   :  { %256 = dma.hbm_to_vmem [thread:$0]  %s8500_s25, 32, %s254_s7, [#allocation40]  }
  0xf5   :  { %s6461_s8 = scalar_lea.vmem %s276_s12, 16  ;;  %s6465_s23 = scalar_lea.vmem %s276_s12, 32 }
  0xf6   :  { %p6462_p2 = scmp.ne.s32.totalorder %s276_s12, %s6461_s8  ;;  %p6466_p3 = scmp.lt.s32.totalorder %s276_s12, %s276_s12 }
  0xf7   :  { %p6467_p4 = scmp.lt.s32.totalorder %s6465_s23, %s6461_s8 }
  0xf9   :  { %p6468_p5 = por %p6467_p4, %p6466_p3 }
  0xfb   :  { %p6469_p6 = pnand %p6468_p5, %p6462_p2 }
  0xfd   :  { %6472 = shalt.err (!%p6469_p6)
}
  0xfe   :  { %278 = dma.hbm_to_vmem [thread:$0]  %s8502_s27, 16, %s276_s12, [#allocation43]  }
  0xff   :  { %6573 = dma.done.wait [#allocation13], 1024  }
 0x100   :  { %6574 = vsyncadd [#allocation13], 4294966272 }
 0x101   :  { %6575 = dma.done.wait [#allocation16], 32  }
 0x102   :  { %6576 = vsyncadd [#allocation16], 4294967264 }
 0x103   :  { %6577 = dma.done.wait [#allocation19], 1536  }
 0x104   :  { %6578 = vsyncadd [#allocation19], 4294965760 }
 0x105   :  { %6579 = dma.done.wait [#allocation22], 528  }
 0x106   :  { %6580 = vsyncadd [#allocation22], 4294966768 }
 0x107   :  { %6581 = dma.done.wait [#allocation25], 2064  }
 0x108   :  { %6582 = vsyncadd [#allocation25], 4294965232 }
 0x109   :  { %6583 = dma.done.wait [#allocation28], 512  }
 0x10a   :  { %6584 = vsyncadd [#allocation28], 4294966784 }
 0x10b   :  { %6585 = dma.done.wait [#allocation31], 32  }
 0x10c   :  { %6586 = vsyncadd [#allocation31], 4294967264 }
 0x10d   :  { %6587 = dma.done.wait [#allocation34], 2112  }
 0x10e   :  { %6588 = vsyncadd [#allocation34], 4294965184 }
 0x10f   :  { %6589 = dma.done.wait [#allocation37], 80  }
 0x110   :  { %6590 = vsyncadd [#allocation37], 4294967216 }
 0x111   :  { %6591 = dma.done.wait [#allocation40], 48  }
 0x112   :  { %6592 = vsyncadd [#allocation40], 4294967248 }
 0x113   :  { %6593 = dma.done.wait [#allocation43], 2064  }
 0x114   :  { %6594 = vsyncadd [#allocation43], 4294965232  ;;  %vm375_vm0 = vcmask 261120   ;;  %s6632_s25 = smov [#allocation2]   ;;  %v8507_v0 = vmov 0.0   ;;  %s6634_s3 = smov [#allocation3]  }
 0x115   :  { %s349_s27 = sshll.u32 %s6632_s25, 4  ;;  %376 = vst.msk [vmem:[#allocation6] sm:$0xff] %vm375_vm0, %v8507_v0  ;;  %377 = vst.msk [vmem:[#allocation6 + $0x8] sm:$0xff] %vm375_vm0, %v8507_v0  ;;  %s361_s14 = sshll.u32 %s6634_s3, 4  ;;  %s350_s27 = int_to_ptr.vmem [resolvable:$true] %s349_s27  ;;  %s362_s14 = int_to_ptr.vmem [resolvable:$true] %s361_s14 }
 0x116   :  { %378 = vst.msk [vmem:[#allocation6 + $0x10] sm:$0xff] %vm375_vm0, %v8507_v0  ;;  %379 = vst.msk [vmem:[#allocation6 + $0x18] sm:$0xff] %vm375_vm0, %v8507_v0  ;;  %s6481_s22 = scalar_lea.vmem %s350_s27, 6144  ;;  %p6486_p8 = scmp.lt.s32.totalorder %s350_s27, %s350_s27 }
 0x117   :  { %380 = vst.msk [vmem:[#allocation6 + $0x20] sm:$0xff] %vm375_vm0, %v8507_v0  ;;  %381 = vst.msk [vmem:[#allocation6 + $0x28] sm:$0xff] %vm375_vm0, %v8507_v0  ;;  %p6482_p7 = scmp.ne.s32.totalorder %s350_s27, %s6481_s22  ;;  %p6487_p9 = scmp.lt.s32.totalorder %s6481_s22, %s6481_s22 }
 0x118   :  { %382 = vst.msk [vmem:[#allocation6 + $0x30] sm:$0xff] %vm375_vm0, %v8507_v0  ;;  %383 = vst.msk [vmem:[#allocation6 + $0x38] sm:$0xff] %vm375_vm0, %v8507_v0 }
 0x119   :  { %384 = vst.msk [vmem:[#allocation6 + $0x40] sm:$0xff] %vm375_vm0, %v8507_v0  ;;  %385 = vst.msk [vmem:[#allocation6 + $0x48] sm:$0xff] %vm375_vm0, %v8507_v0  ;;  %p6488_p10 = por %p6487_p9, %p6486_p8 }
 0x11a   :  { %386 = vst.msk [vmem:[#allocation6 + $0x50] sm:$0xff] %vm375_vm0, %v8507_v0  ;;  %387 = vst.msk [vmem:[#allocation6 + $0x58] sm:$0xff] %vm375_vm0, %v8507_v0 }
 0x11b   :  { %388 = vst.msk [vmem:[#allocation6 + $0x60] sm:$0xff] %vm375_vm0, %v8507_v0  ;;  %389 = vst.msk [vmem:[#allocation6 + $0x68] sm:$0xff] %vm375_vm0, %v8507_v0  ;;  %p6489_p11 = pnand %p6488_p10, %p6482_p7 }
 0x11c   :  { %390 = vst.msk [vmem:[#allocation6 + $0x70] sm:$0xff] %vm375_vm0, %v8507_v0  ;;  %391 = vst.msk [vmem:[#allocation6 + $0x78] sm:$0xff] %vm375_vm0, %v8507_v0 }
 0x11d   :  { %392 = vst.msk [vmem:[#allocation6 + $0x80] sm:$0xff] %vm375_vm0, %v8507_v0  ;;  %393 = vst.msk [vmem:[#allocation6 + $0x88] sm:$0xff] %vm375_vm0, %v8507_v0 }
 0x11e   :  { %394 = vst.msk [vmem:[#allocation6 + $0x90] sm:$0xff] %vm375_vm0, %v8507_v0  ;;  %395 = vst.msk [vmem:[#allocation6 + $0x98] sm:$0xff] %vm375_vm0, %v8507_v0 }
 0x11f   :  { %396 = vst.msk [vmem:[#allocation6 + $0xa0] sm:$0xff] %vm375_vm0, %v8507_v0  ;;  %397 = vst.msk [vmem:[#allocation6 + $0xa8] sm:$0xff] %vm375_vm0, %v8507_v0 }
 0x120   :  { %398 = vst.msk [vmem:[#allocation6 + $0xb0] sm:$0xff] %vm375_vm0, %v8507_v0  ;;  %399 = vst.msk [vmem:[#allocation6 + $0xb8] sm:$0xff] %vm375_vm0, %v8507_v0 }
 0x121   :  { %6492 = shalt.err (!%p6489_p11)  }
 0x122   :  { %s8537_s11 = sld [smem:[#allocation91_spill]]  ;;  %s6501_s9 = scalar_lea.vmem %s362_s14, 46080 }
 0x123   :  { %p6502_p12 = scmp.ne.s32.totalorder %s362_s14, %s6501_s9  ;;  %p6506_p13 = scmp.lt.s32.totalorder %s362_s14, %s362_s14 }
 0x124   :  { %p6507_p0 = scmp.lt.s32.totalorder %s6501_s9, %s6501_s9 }
 0x126   :  { %p6508_p1 = por %p6507_p0, %p6506_p13 }
 0x128   :  { %352 = dma.hbm_to_vmem [thread:$0]  %s8537_s11, 6144, %s350_s27, [#allocation11] }
 0x129   :  { %p6509_p2 = pnand %p6508_p1, %p6502_p12 }
 0x12b   :  { %6512 = shalt.err (!%p6509_p2)  }
 0x12c   :  { %s8538_s30 = sld [smem:[#allocation92_spill]]  ;;  %vm409_vm1 = vcmask 261121   ;;  %vm419_vm2 = vcmask 261122   ;;  %vm403_vm3 = vcmask 259072   ;;  %vm413_vm4 = vcmask 260096   ;;  %v365_v3 = vld [vmem:[#allocation12] sm:$0xff] }
 0x12d   :  { %v6926_v1 = vld [vmem:[#allocation15] sm:$0x1]  ;;  %v6928_v2 = vld [vmem:[#allocation17] sm:$0x1]  ;;  %400 = vst.msk [vmem:[#allocation6] sm:$0xff] %vm375_vm0, %v365_v3  ;;  %v366_v4 = vld [vmem:[#allocation12 + $0x8] sm:$0xff] }
 0x12e   :  { %8539 = vst [vmem:[#allocation72_spill] sm:$0xff] %v6926_v1  ;;  %8540 = vst [vmem:[#allocation73_spill] sm:$0xff] %v6928_v2  ;;  %v367_v5 = vld [vmem:[#allocation12 + $0x10] sm:$0xff]  ;;  %v368_v6 = vld [vmem:[#allocation12 + $0x18] sm:$0xff] }
 0x12f   :  { %410 = vst.msk [vmem:[#allocation6 + $0x3f] sm:$0xfe] %vm409_vm1, %v365_v3  ;;  %v369_v7 = vld [vmem:[#allocation12 + $0x20] sm:$0xff]  ;;  %v370_v8 = vld [vmem:[#allocation12 + $0x28] sm:$0xff]  ;;  %v371_v9 = vld [vmem:[#allocation12 + $0x30] sm:$0xff] }
 0x130   :  { %420 = vst.msk [vmem:[#allocation6 + $0x7e] sm:$0xfc] %vm419_vm2, %v365_v3  ;;  %v372_v10 = vld [vmem:[#allocation12 + $0x38] sm:$0xff]  ;;  %424 = vst.msk [vmem:[#allocation6 + $0x9e] sm:$0xfc] %vm419_vm2, %v369_v7 }
 0x131   :  { %401 = vst.msk [vmem:[#allocation6 + $0x8] sm:$0xff] %vm375_vm0, %v366_v4  ;;  %411 = vst.msk [vmem:[#allocation6 + $0x47] sm:$0xff] %vm375_vm0, %v366_v4 }
 0x132   :  { %364 = dma.hbm_to_vmem [thread:$0]  %s8538_s30, 46080, %s362_s14, [#allocation11 + $0x1]  ;;  %421 = vst.msk [vmem:[#allocation6 + $0x86] sm:$0xff] %vm375_vm0, %v366_v4  ;;  %402 = vst.msk [vmem:[#allocation6 + $0x10] sm:$0xff] %vm375_vm0, %v367_v5 }
 0x133   :  { %412 = vst.msk [vmem:[#allocation6 + $0x4f] sm:$0xff] %vm375_vm0, %v367_v5  ;;  %422 = vst.msk [vmem:[#allocation6 + $0x8e] sm:$0xff] %vm375_vm0, %v367_v5 }
 0x134   :  { %404 = vst.msk [vmem:[#allocation6 + $0x18] sm:$0x3f] %vm403_vm3, %v368_v6  ;;  %408 = vst.msk [vmem:[#allocation6 + $0x38] sm:$0x3f] %vm403_vm3, %v372_v10 }
 0x135   :  { %423 = vst.msk [vmem:[#allocation6 + $0x96] sm:$0xff] %vm375_vm0, %v368_v6  ;;  %405 = vst.msk [vmem:[#allocation6 + $0x20] sm:$0xff] %vm375_vm0, %v369_v7 }
 0x136   :  { %414 = vst.msk [vmem:[#allocation6 + $0x57] sm:$0x7f] %vm413_vm4, %v368_v6  ;;  %418 = vst.msk [vmem:[#allocation6 + $0x77] sm:$0x7f] %vm413_vm4, %v372_v10 }
 0x137   :  { %406 = vst.msk [vmem:[#allocation6 + $0x28] sm:$0xff] %vm375_vm0, %v370_v8  ;;  %416 = vst.msk [vmem:[#allocation6 + $0x67] sm:$0xff] %vm375_vm0, %v370_v8 }
 0x138   :  { %425 = vst.msk [vmem:[#allocation6 + $0xa6] sm:$0xff] %vm375_vm0, %v370_v8  ;;  %407 = vst.msk [vmem:[#allocation6 + $0x30] sm:$0xff] %vm375_vm0, %v371_v9 }
 0x139   :  { %417 = vst.msk [vmem:[#allocation6 + $0x6f] sm:$0xff] %vm375_vm0, %v371_v9  ;;  %426 = vst.msk [vmem:[#allocation6 + $0xae] sm:$0xff] %vm375_vm0, %v371_v9 }
 0x13a   :  { %415 = vst.msk [vmem:[#allocation6 + $0x5f] sm:$0xfe] %vm409_vm1, %v369_v7 }
 0x13b   :  { %427 = vst.msk [vmem:[#allocation6 + $0xb6] sm:$0xff] %vm375_vm0, %v372_v10 }
 0x13c   :  { %6595 = dma.done.wait [#allocation11], 6144 }
 0x13d   :  { %6596 = vsyncadd [#allocation11], 4294961152  ;;  %580 = vmatprep.mubr.f32.mxu0 %v8507_v0  ;;  %711 = vmatprep.mubr.f32.mxu1 %v8507_v0  ;;  %2281 = vst [vmem:[#allocation7 + $0x10] sm:$0xff] %v8507_v0  ;;  %v6962_v11 = vld [vmem:[#allocation23] sm:$0x1]  ;;  %v489_v13 = vld [vmem:[#allocation2 + $0xe8] sm:$0xff] }
 0x13e   :  { %2285 = vst [vmem:[#allocation7 + $0x30] sm:$0xff] %v8507_v0  ;;  %2289 = vst [vmem:[#allocation7 + $0x50] sm:$0xff] %v8507_v0  ;;  %v6964_v12 = vld [vmem:[#allocation24] sm:$0x1]  ;;  %540 = vmatprep.subr.mxu0 %v489_v13  ;;  %v491_v14 = vld [vmem:[#allocation2 + $0xf8] sm:$0xff]  ;;  %vm1337_vm5 = vcmask 916480  }
 0x13f   :  { %2293 = vst [vmem:[#allocation7 + $0x70] sm:$0xff] %v8507_v0  ;;  %2297 = vst [vmem:[#allocation7 + $0x90] sm:$0xff] %v8507_v0  ;;  %v488_v15 = vld [vmem:[#allocation2 + $0xe0] sm:$0xff]  ;;  %v490_v16 = vld [vmem:[#allocation2 + $0xf0] sm:$0xff]  ;;  %5998 = vmatprep.subr.mxu1 %v491_v14  ;;  %s8543_s0 = sld [smem:[#allocation97_spill]]  ;;  %vm1756_vm7 = vcmask 122880  }
 0x140   :  { %2301 = vst [vmem:[#allocation7 + $0xb0] sm:$0xff] %v8507_v0  ;;  %8541 = vst [vmem:[#allocation74_spill] sm:$0xff] %v6962_v11  ;;  %541 = vmatpush1.msra.mxu0 %v488_v15  ;;  %v485_v17 = vld [vmem:[#allocation2 + $0xc8] sm:$0xff]  ;;  %v487_v18 = vld [vmem:[#allocation2 + $0xd8] sm:$0xff]  ;;  %6002 = vmatpush1.msra.mxu1 %v490_v16  ;;  %vm1768_vm8 = vcmask 130048   ;;  %vm2062_vm9 = vcmask 523264  }
 0x141   :  { %8542 = vst [vmem:[#allocation75_spill] sm:$0xff] %v6964_v12  ;;  %v484_v19 = vld [vmem:[#allocation2 + $0xc0] sm:$0xff]  ;;  %542 = vmatprep.subr.mxu0 %v485_v17  ;;  %v486_v20 = vld [vmem:[#allocation2 + $0xd0] sm:$0xff]  ;;  %v481_v21 = vld [vmem:[#allocation2 + $0xa8] sm:$0xff]  ;;  %5999 = vmatprep.subr.mxu1 %v487_v18 }
 0x142   :  { %v483_v22 = vld [vmem:[#allocation2 + $0xb8] sm:$0xff]  ;;  %543 = vmatpush1.msra.mxu0 %v484_v19  ;;  %v480_v23 = vld [vmem:[#allocation2 + $0xa0] sm:$0xff]  ;;  %v482_v24 = vld [vmem:[#allocation2 + $0xb0] sm:$0xff]  ;;  %6003 = vmatpush1.msra.mxu1 %v486_v20  ;;  %2280 = vst.msk [vmem:[#allocation7 + $0x8] sm:$0xff] %vm1337_vm5, %v8507_v0 }
 0x143   :  { %v477_v25 = vld [vmem:[#allocation2 + $0x88] sm:$0xff]  ;;  %544 = vmatprep.subr.mxu0 %v481_v21  ;;  %v479_v26 = vld [vmem:[#allocation2 + $0x98] sm:$0xff]  ;;  %v476_v27 = vld [vmem:[#allocation2 + $0x80] sm:$0xff]  ;;  %6000 = vmatprep.subr.mxu1 %v483_v22  ;;  %2282 = vst.msk [vmem:[#allocation7 + $0x18] sm:$0xff] %vm1337_vm5, %v8507_v0 }
 0x144   :  { %545 = vmatpush1.msra.mxu0 %v480_v23  ;;  %v478_v28 = vld [vmem:[#allocation2 + $0x90] sm:$0xff]  ;;  %v6966_v29 = vld [vmem:[#allocation6 + $0x40] sm:$0xff]  ;;  %6004 = vmatpush1.msra.mxu1 %v482_v24  ;;  %v471_v30 = vld [vmem:[#allocation6 + $0x58] sm:$0xff]  ;;  %2284 = vst.msk [vmem:[#allocation7 + $0x28] sm:$0xff] %vm1337_vm5, %v8507_v0 }
 0x145   :  { %546 = vmatprep.subr.mxu0 %v477_v25  ;;  %6001 = vmatprep.subr.mxu1 %v479_v26  ;;  %v6971_v31 = vld [vmem:[#allocation6 + $0x48] sm:$0xff]  ;;  %v467_v32 = vld [vmem:[#allocation2 + $0x78] sm:$0xff]  ;;  %v472_v33 = vld [vmem:[#allocation6 + $0x60] sm:$0xff]  ;;  %2286 = vst.msk [vmem:[#allocation7 + $0x38] sm:$0xff] %vm1337_vm5, %v8507_v0 }
 0x146   :  { %547 = vmatpush1.msra.mxu0 %v476_v27  ;;  %6005 = vmatpush1.msra.mxu1 %v478_v28  ;;  %v466_v34 = vld [vmem:[#allocation2 + $0x70] sm:$0xff]  ;;  %v463_v36 = vld [vmem:[#allocation2 + $0x58] sm:$0xff]  ;;  %v473_v37 = vld [vmem:[#allocation6 + $0x68] sm:$0xff]  ;;  %2288 = vst.msk [vmem:[#allocation7 + $0x48] sm:$0xff] %vm1337_vm5, %v8507_v0 }
 0x147   :  { %5600 = vmatmul.mubr.msk.f32.vlgmr.msra.gmra.mxu0 %vm375_vm0, %v6966_v29  ;;  %653 = vmatprep.subr.mxu0 %v491_v14  ;;  %v6979_v35 = vld [vmem:[#allocation6 + $0x50] sm:$0xff]  ;;  %v459_v39 = vld [vmem:[#allocation2 + $0x38] sm:$0xff]  ;;  %v465_v46 = vld [vmem:[#allocation2 + $0x68] sm:$0xff]  ;;  %2290 = vst.msk [vmem:[#allocation7 + $0x58] sm:$0xff] %vm1337_vm5, %v8507_v0 }
 0x148   :  { %5611 = vmatmul.mubr.msk.f32.vlgmr.msra.gmra.mxu1 %vm375_vm0, %v471_v30  ;;  %654 = vmatpush1.msra.mxu0 %v490_v16  ;;  %v462_v38 = vld [vmem:[#allocation2 + $0x50] sm:$0xff]  ;;  %v455_v42 = vld [vmem:[#allocation2 + $0x18] sm:$0xff]  ;;  %v6995_v47 = vld [vmem:[#allocation6] sm:$0xff]  ;;  %2292 = vst.msk [vmem:[#allocation7 + $0x68] sm:$0xff] %vm1337_vm5, %v8507_v0 }
 0x149   :  { %586 = vmatprep.mubr.f32.mxu0 %v8507_v0  ;;  %717 = vmatprep.mubr.f32.mxu1 %v8507_v0  ;;  %v458_v40 = vld [vmem:[#allocation2 + $0x30] sm:$0xff]  ;;  %v1015_v44 = vld [vmem:[#allocation2 + $0x178] sm:$0xff]  ;;  %v7002_v51 = vld [vmem:[#allocation6 + $0x8] sm:$0xff]  ;;  %2294 = vst.msk [vmem:[#allocation7 + $0x78] sm:$0xff] %vm1337_vm5, %v8507_v0 }
 0x14a   :  { %655 = vmatprep.subr.mxu0 %v487_v18  ;;  %903 = vmatprep.subr.mxu1 %v467_v32  ;;  %v474_v41 = vld [vmem:[#allocation6 + $0x70] sm:$0xff]  ;;  %v475_v45 = vld [vmem:[#allocation6 + $0x78] sm:$0xff]  ;;  %v464_v58 = vld [vmem:[#allocation2 + $0x60] sm:$0xff]  ;;  %2296 = vst.msk [vmem:[#allocation7 + $0x88] sm:$0xff] %vm1337_vm5, %v8507_v0 }
 0x14b   :  { %5601 = vmatmul.mubr.msk.f32.gmra.mxu0 %vm375_vm0, %v6971_v31  ;;  %904 = vmatpush1.msra.mxu1 %v466_v34  ;;  %v454_v43 = vld [vmem:[#allocation2 + $0x10] sm:$0xff]  ;;  %v1011_v49 = vld [vmem:[#allocation2 + $0x158] sm:$0xff]  ;;  %v461_v59 = vld [vmem:[#allocation2 + $0x48] sm:$0xff]  ;;  %2298 = vst.msk [vmem:[#allocation7 + $0x98] sm:$0xff] %vm1337_vm5, %v8507_v0 }
 0x14c   :  { %5612 = vmatmul.mubr.msk.f32.gmra.mxu1 %vm375_vm0, %v472_v33  ;;  %592 = vmatprep.mubr.f32.mxu0 %v8507_v0  ;;  %v1014_v48 = vld [vmem:[#allocation2 + $0x170] sm:$0xff]  ;;  %v1007_v52 = vld [vmem:[#allocation2 + $0x138] sm:$0xff]  ;;  %v460_v60 = vld [vmem:[#allocation2 + $0x40] sm:$0xff]  ;;  %2300 = vst.msk [vmem:[#allocation7 + $0xa8] sm:$0xff] %vm1337_vm5, %v8507_v0 }
 0x14d   :  { %723 = vmatprep.mubr.f32.mxu1 %v8507_v0  ;;  %656 = vmatpush1.msra.mxu0 %v486_v20  ;;  %v1010_v50 = vld [vmem:[#allocation2 + $0x150] sm:$0xff]  ;;  %v1003_v54 = vld [vmem:[#allocation2 + $0x118] sm:$0xff]  ;;  %v457_v61 = vld [vmem:[#allocation2 + $0x28] sm:$0xff]  ;;  %2302 = vst.msk [vmem:[#allocation7 + $0xb8] sm:$0xff] %vm1337_vm5, %v8507_v0 }
 0x14e   :  { %657 = vmatprep.subr.mxu0 %v483_v22  ;;  %905 = vmatprep.subr.mxu1 %v463_v36  ;;  %v1006_v53 = vld [vmem:[#allocation2 + $0x130] sm:$0xff]  ;;  %v447_v57 = vld [vmem:[#allocation6 + $0x18] sm:$0xff]  ;;  %v448_v62 = vld [vmem:[#allocation6 + $0x20] sm:$0xff] }
 0x14f   :  { %5602 = vmatmul.mubr.msk.f32.gmra.mxu0 %vm375_vm0, %v6979_v35  ;;  %906 = vmatpush1.msra.mxu1 %v462_v38  ;;  %v446_v55 = vld [vmem:[#allocation6 + $0x10] sm:$0xff]  ;;  %v456_v63 = vld [vmem:[#allocation2 + $0x20] sm:$0xff]  ;;  %v453_v3 = vld [vmem:[#allocation2 + $0x8] sm:$0xff] }
 0x150   :  { %5613 = vmatmul.mubr.msk.f32.gmra.mxu1 %vm375_vm0, %v473_v37  ;;  %598 = vmatprep.mubr.f32.mxu0 %v8507_v0  ;;  %v1002_v56 = vld [vmem:[#allocation2 + $0x110] sm:$0xff]  ;;  %v449_v4 = vld [vmem:[#allocation6 + $0x28] sm:$0xff]  ;;  %v452_v5 = vld [vmem:[#allocation2] sm:$0xff] }
 0x151   :  { %729 = vmatprep.mubr.f32.mxu1 %v8507_v0  ;;  %907 = vmatprep.subr.mxu1 %v459_v39  ;;  %v1013_v6 = vld [vmem:[#allocation2 + $0x168] sm:$0xff]  ;;  %v450_v7 = vld [vmem:[#allocation6 + $0x30] sm:$0xff]  ;;  %v1012_v8 = vld [vmem:[#allocation2 + $0x160] sm:$0xff] }
 0x152   :  { %658 = vmatpush1.msra.mxu0 %v482_v24  ;;  %908 = vmatpush1.msra.mxu1 %v458_v40  ;;  %v1009_v9 = vld [vmem:[#allocation2 + $0x148] sm:$0xff]  ;;  %v451_v10 = vld [vmem:[#allocation6 + $0x38] sm:$0xff]  ;;  %v1008_v13 = vld [vmem:[#allocation2 + $0x140] sm:$0xff] }
 0x153   :  { %5603 = vmatmul.mubr.msk.f32.gmra.mxu0 %vm375_vm0, %v471_v30  ;;  %909 = vmatprep.subr.mxu1 %v455_v42  ;;  %v1005_v14 = vld [vmem:[#allocation2 + $0x128] sm:$0xff]  ;;  %v992_v15 = vld [vmem:[#allocation6 + $0x80] sm:$0xff]  ;;  %v994_v20 = vld [vmem:[#allocation6 + $0x90] sm:$0xff] }
 0x154   :  { %5614 = vmatmul.mubr.msk.f32.gmra.mxu1 %vm375_vm0, %v474_v41  ;;  %604 = vmatprep.mubr.f32.mxu0 %v8507_v0  ;;  %v1004_v16 = vld [vmem:[#allocation2 + $0x120] sm:$0xff]  ;;  %v1001_v17 = vld [vmem:[#allocation2 + $0x108] sm:$0xff]  ;;  %v995_v21 = vld [vmem:[#allocation6 + $0x98] sm:$0xff] }
 0x155   :  { %735 = vmatprep.mubr.f32.mxu1 %v8507_v0  ;;  %910 = vmatpush1.msra.mxu1 %v454_v43  ;;  %v993_v18 = vld [vmem:[#allocation6 + $0x88] sm:$0xff]  ;;  %v1000_v19 = vld [vmem:[#allocation2 + $0x100] sm:$0xff]  ;;  %v998_v24 = vld [vmem:[#allocation6 + $0xb0] sm:$0xff] }
 0x156   :  { %659 = vmatprep.subr.mxu0 %v479_v26  ;;  %1177 = vmatprep.subr.mxu1 %v1015_v44  ;;  %v996_v22 = vld [vmem:[#allocation6 + $0xa0] sm:$0xff]  ;;  %v997_v23 = vld [vmem:[#allocation6 + $0xa8] sm:$0xff]  ;;  %v999_v25 = vld [vmem:[#allocation6 + $0xb8] sm:$0xff] }
 0x157   :  { %5604 = vmatmul.mubr.msk.f32.gmra.mxu0 %vm375_vm0, %v472_v33  ;;  %v1569_v26 = vld [vmem:[%s8543_s0 + $0x178] sm:$0xff]  ;;  %v1568_v27 = vld [vmem:[%s8543_s0 + $0x170] sm:$0xff]  ;;  %v1563_v32 = vld [vmem:[%s8543_s0 + $0x148] sm:$0xff] }
 0x158   :  { %5615 = vmatmul.mubr.msk.f32.gmra.mxu1 %vm375_vm0, %v475_v45  ;;  %610 = vmatprep.mubr.f32.mxu0 %v8507_v0  ;;  %v1565_v30 = vld [vmem:[%s8543_s0 + $0x158] sm:$0xff]  ;;  %v1562_v33 = vld [vmem:[%s8543_s0 + $0x140] sm:$0xff]  ;;  %v1559_v36 = vld [vmem:[%s8543_s0 + $0x128] sm:$0xff] }
 0x159   :  { %943 = vmatprep.mubr.f32.mxu1 %v8507_v0  ;;  %660 = vmatpush1.msra.mxu0 %v478_v28  ;;  %v1567_v28 = vld [vmem:[%s8543_s0 + $0x168] sm:$0xff]  ;;  %v1561_v34 = vld [vmem:[%s8543_s0 + $0x138] sm:$0xff]  ;;  %v1556_v39 = vld [vmem:[%s8543_s0 + $0x110] sm:$0xff] }
 0x15a   :  { %790 = vmatprep.subr.mxu0 %v465_v46  ;;  %v1557_v38 = vld [vmem:[%s8543_s0 + $0x118] sm:$0xff]  ;;  %v1555_v42 = vld [vmem:[%s8543_s0 + $0x108] sm:$0xff]  ;;  %v1552_v43 = vld [vmem:[%s8543_s0 + $0xf0] sm:$0xff] }
 0x15b   :  { %5605 = vmatmul.mubr.msk.f32.gmra.mxu0 %vm375_vm0, %v473_v37  ;;  %v1558_v37 = vld [vmem:[%s8543_s0 + $0x120] sm:$0xff]  ;;  %v1553_v40 = vld [vmem:[%s8543_s0 + $0xf8] sm:$0xff]  ;;  %v1536_v44 = vld [vmem:[%s8543_s0 + $0x70] sm:$0xff] }
 0x15c   :  { %5624 = vmatmul.mubr.msk.f32.vlgmr.msra.gmra.mxu1 %vm375_vm0, %v6995_v47  ;;  %616 = vmatprep.mubr.f32.mxu0 %v8507_v0  ;;  %v1551_v46 = vld [vmem:[%s8543_s0 + $0xe8] sm:$0xff] }
 0x15d   :  { %949 = vmatprep.mubr.f32.mxu1 %v8507_v0  ;;  %1178 = vmatpush1.msra.mxu1 %v1014_v48  ;;  %v1583_v48 = vld [vmem:[%s8543_s0 + $0x1e8] sm:$0xff] }
 0x15e   :  { %1179 = vmatprep.subr.mxu1 %v1011_v49  ;;  %v1550_v49 = vld [vmem:[%s8543_s0 + $0xe0] sm:$0xff] }
 0x15f   :  { %5606 = vmatmul.mubr.msk.f32.gmra.mxu0 %vm375_vm0, %v474_v41  ;;  %1180 = vmatpush1.msra.mxu1 %v1010_v50  ;;  %v1537_v41 = vld [vmem:[%s8543_s0 + $0x78] sm:$0xff]  ;;  %v1534_v50 = vld [vmem:[%s8543_s0 + $0x60] sm:$0xff] }
 0x160   :  { %5625 = vmatmul.mubr.msk.f32.gmra.mxu1 %vm375_vm0, %v7002_v51  ;;  %622 = vmatprep.mubr.f32.mxu0 %v8507_v0 }
 0x161   :  { %955 = vmatprep.mubr.f32.mxu1 %v8507_v0  ;;  %1181 = vmatprep.subr.mxu1 %v1007_v52  ;;  %v1549_v52 = vld [vmem:[%s8543_s0 + $0xd8] sm:$0xff] }
 0x162   :  { %1182 = vmatpush1.msra.mxu1 %v1006_v53  ;;  %v1533_v53 = vld [vmem:[%s8543_s0 + $0x58] sm:$0xff] }
 0x163   :  { %5607 = vmatmul.mubr.msk.f32.gmra.mxu0 %vm375_vm0, %v475_v45  ;;  %1183 = vmatprep.subr.mxu1 %v1003_v54  ;;  %v1554_v45 = vld [vmem:[%s8543_s0 + $0x100] sm:$0xff]  ;;  %v1581_v54 = vld [vmem:[%s8543_s0 + $0x1d8] sm:$0xff] }
 0x164   :  { %5626 = vmatmul.mubr.msk.f32.gmra.mxu1 %vm375_vm0, %v446_v55  ;;  %693 = vmatprep.mubr.f32.mxu0 %v8507_v0 }
 0x165   :  { %961 = vmatprep.mubr.f32.mxu1 %v8507_v0  ;;  %1184 = vmatpush1.msra.mxu1 %v1002_v56  ;;  %v1532_v56 = vld [vmem:[%s8543_s0 + $0x50] sm:$0xff] }
 0x166   :  { %1657 = vmatprep.subr.mxu1 %v8507_v0 }
 0x167   :  { %5608 = vmatmul.mubr.msk.f32.vlgmr.msra.gmra.mxu0 %vm375_vm0, %v6966_v29  ;;  %v1566_v29 = vld [vmem:[%s8543_s0 + $0x160] sm:$0xff] }
 0x168   :  { %5627 = vmatmul.mubr.msk.f32.gmra.mxu1 %vm375_vm0, %v447_v57  ;;  %791 = vmatpush1.msra.mxu0 %v464_v58  ;;  %v1547_v58 = vld [vmem:[%s8543_s0 + $0xc8] sm:$0xff] }
 0x169   :  { %699 = vmatprep.mubr.f32.mxu0 %v8507_v0  ;;  %792 = vmatprep.subr.mxu0 %v461_v59  ;;  %v1531_v59 = vld [vmem:[%s8543_s0 + $0x48] sm:$0xff] }
 0x16a   :  { %967 = vmatprep.mubr.f32.mxu1 %v8507_v0  ;;  %793 = vmatpush1.msra.mxu0 %v460_v60  ;;  %v1579_v60 = vld [vmem:[%s8543_s0 + $0x1c8] sm:$0xff] }
 0x16b   :  { %5609 = vmatmul.mubr.msk.f32.gmra.mxu0 %vm375_vm0, %v6971_v31  ;;  %794 = vmatprep.subr.mxu0 %v457_v61  ;;  %v1564_v31 = vld [vmem:[%s8543_s0 + $0x150] sm:$0xff]  ;;  %v1546_v61 = vld [vmem:[%s8543_s0 + $0xc0] sm:$0xff] }
 0x16c   :  { %5628 = vmatmul.mubr.msk.f32.gmra.mxu1 %vm375_vm0, %v448_v62  ;;  %705 = vmatprep.mubr.f32.mxu0 %v8507_v0 }
 0x16d   :  { %795 = vmatpush1.msra.mxu0 %v456_v63  ;;  %973 = vmatprep.mubr.f32.mxu1 %v8507_v0  ;;  %v1578_v63 = vld [vmem:[%s8543_s0 + $0x1c0] sm:$0xff] }
 0x16e   :  { %796 = vmatprep.subr.mxu0 %v453_v3  ;;  %v1545_v3 = vld [vmem:[%s8543_s0 + $0xb8] sm:$0xff] }
 0x16f   :  { %5610 = vmatmul.mubr.msk.f32.gmra.mxu0 %vm375_vm0, %v6979_v35  ;;  %v1560_v35 = vld [vmem:[%s8543_s0 + $0x130] sm:$0xff] }
 0x170   :  { %5629 = vmatmul.mubr.msk.f32.gmra.mxu1 %vm375_vm0, %v449_v4  ;;  %797 = vmatpush1.msra.mxu0 %v452_v5  ;;  %v1529_v5 = vld [vmem:[%s8543_s0 + $0x38] sm:$0xff] }
 0x171   :  { %830 = vmatprep.mubr.f32.mxu0 %v8507_v0  ;;  %979 = vmatprep.mubr.f32.mxu1 %v8507_v0 }
 0x172   :  { %1064 = vmatprep.subr.mxu0 %v1013_v6  ;;  %v1577_v6 = vld [vmem:[%s8543_s0 + $0x1b8] sm:$0xff] }
 0x173   :  { %5616 = vmatmul.mubr.msk.f32.vlgmr.msra.gmra.mxu0 %vm375_vm0, %v6995_v47  ;;  %v1535_v47 = vld [vmem:[%s8543_s0 + $0x68] sm:$0xff] }
 0x174   :  { %5630 = vmatmul.mubr.msk.f32.gmra.mxu1 %vm375_vm0, %v450_v7  ;;  %1065 = vmatpush1.msra.mxu0 %v1012_v8  ;;  %v1544_v8 = vld [vmem:[%s8543_s0 + $0xb0] sm:$0xff] }
 0x175   :  { %836 = vmatprep.mubr.f32.mxu0 %v8507_v0  ;;  %985 = vmatprep.mubr.f32.mxu1 %v8507_v0 }
 0x176   :  { %1066 = vmatprep.subr.mxu0 %v1009_v9 }
 0x177   :  { %5617 = vmatmul.mubr.msk.f32.gmra.mxu0 %vm375_vm0, %v7002_v51  ;;  %v1582_v51 = vld [vmem:[%s8543_s0 + $0x1e0] sm:$0xff] }
 0x178   :  { %5631 = vmatmul.mubr.msk.f32.gmra.mxu1 %vm375_vm0, %v451_v10  ;;  %842 = vmatprep.mubr.f32.mxu0 %v8507_v0 }
 0x179   :  { %1217 = vmatprep.mubr.f32.mxu1 %v8507_v0  ;;  %1067 = vmatpush1.msra.mxu0 %v1008_v13  ;;  %v1576_v13 = vld [vmem:[%s8543_s0 + $0x1b0] sm:$0xff] }
 0x17a   :  { %1068 = vmatprep.subr.mxu0 %v1005_v14 }
 0x17b   :  { %5618 = vmatmul.mubr.msk.f32.gmra.mxu0 %vm375_vm0, %v446_v55  ;;  %v1548_v55 = vld [vmem:[%s8543_s0 + $0xd0] sm:$0xff] }
 0x17c   :  { %5640 = vmatmul.mubr.msk.f32.vlgmr.msra.gmra.mxu1 %vm375_vm0, %v992_v15  ;;  %848 = vmatprep.mubr.f32.mxu0 %v8507_v0 }
 0x17d   :  { %1223 = vmatprep.mubr.f32.mxu1 %v8507_v0  ;;  %1069 = vmatpush1.msra.mxu0 %v1004_v16 }
 0x17e   :  { %1070 = vmatprep.subr.mxu0 %v1001_v17  ;;  %1658 = vmatpush1.msra.mxu1 %v1569_v26  ;;  %v1527_v17 = vld [vmem:[%s8543_s0 + $0x28] sm:$0xff]  ;;  %v1573_v26 = vld [vmem:[%s8543_s0 + $0x198] sm:$0xff] }
 0x17f   :  { %5619 = vmatmul.mubr.msk.f32.gmra.mxu0 %vm375_vm0, %v447_v57  ;;  %1659 = vmatprep.subr.mxu1 %v8507_v0  ;;  %v1580_v57 = vld [vmem:[%s8543_s0 + $0x1d0] sm:$0xff] }
 0x180   :  { %5641 = vmatmul.mubr.msk.f32.gmra.mxu1 %vm375_vm0, %v993_v18  ;;  %854 = vmatprep.mubr.f32.mxu0 %v8507_v0 }
 0x181   :  { %1229 = vmatprep.mubr.f32.mxu1 %v8507_v0  ;;  %1071 = vmatpush1.msra.mxu0 %v1000_v19 }
 0x182   :  { %1660 = vmatpush1.msra.mxu1 %v1568_v27  ;;  %5705 = vmatprep.subr.mxu0 %v1553_v40  ;;  %v1522_v40 = vld [vmem:[%s8543_s0] sm:$0xff] }
 0x183   :  { %5620 = vmatmul.mubr.msk.f32.gmra.mxu0 %vm375_vm0, %v448_v62  ;;  %1661 = vmatprep.subr.mxu1 %v8507_v0  ;;  %v1530_v62 = vld [vmem:[%s8543_s0 + $0x40] sm:$0xff] }
 0x184   :  { %5642 = vmatmul.mubr.msk.f32.gmra.mxu1 %vm375_vm0, %v994_v20  ;;  %860 = vmatprep.mubr.f32.mxu0 %v8507_v0 }
 0x185   :  { %1235 = vmatprep.mubr.f32.mxu1 %v8507_v0  ;;  %1662 = vmatpush1.msra.mxu1 %v1567_v28  ;;  %v1540_v28 = vld [vmem:[%s8543_s0 + $0x90] sm:$0xff] }
 0x186   :  { %1663 = vmatprep.subr.mxu1 %v8507_v0 }
 0x187   :  { %5621 = vmatmul.mubr.msk.f32.gmra.mxu0 %vm375_vm0, %v449_v4  ;;  %1664 = vmatpush1.msra.mxu1 %v1566_v29 }
 0x188   :  { %5643 = vmatmul.mubr.msk.f32.gmra.mxu1 %vm375_vm0, %v995_v21  ;;  %866 = vmatprep.mubr.f32.mxu0 %v8507_v0 }
 0x189   :  { %1241 = vmatprep.mubr.f32.mxu1 %v8507_v0  ;;  %1665 = vmatprep.subr.mxu1 %v8507_v0 }
 0x18a   :  { %1666 = vmatpush1.msra.mxu1 %v1565_v30  ;;  %v1524_v30 = vld [vmem:[%s8543_s0 + $0x10] sm:$0xff] }
 0x18b   :  { %5622 = vmatmul.mubr.msk.f32.gmra.mxu0 %vm375_vm0, %v450_v7  ;;  %1667 = vmatprep.subr.mxu1 %v8507_v0 }
 0x18c   :  { %5644 = vmatmul.mubr.msk.f32.gmra.mxu1 %vm375_vm0, %v996_v22  ;;  %872 = vmatprep.mubr.f32.mxu0 %v8507_v0 }
 0x18d   :  { %1247 = vmatprep.mubr.f32.mxu1 %v8507_v0  ;;  %1668 = vmatpush1.msra.mxu1 %v1564_v31  ;;  %v1572_v31 = vld [vmem:[%s8543_s0 + $0x190] sm:$0xff] }
 0x18e   :  { %1669 = vmatprep.subr.mxu1 %v8507_v0 }
 0x18f   :  { %5623 = vmatmul.mubr.msk.f32.gmra.mxu0 %vm375_vm0, %v451_v10  ;;  %1670 = vmatpush1.msra.mxu1 %v1563_v32  ;;  %v1528_v10 = vld [vmem:[%s8543_s0 + $0x30] sm:$0xff] }
 0x190   :  { %5645 = vmatmul.mubr.msk.f32.gmra.mxu1 %vm375_vm0, %v997_v23  ;;  %1104 = vmatprep.mubr.f32.mxu0 %v8507_v0 }
 0x191   :  { %1253 = vmatprep.mubr.f32.mxu1 %v8507_v0  ;;  %1671 = vmatprep.subr.mxu1 %v8507_v0 }
 0x192   :  { %1672 = vmatpush1.msra.mxu1 %v1562_v33  ;;  %v1539_v33 = vld [vmem:[%s8543_s0 + $0x88] sm:$0xff] }
 0x193   :  { %5632 = vmatmul.mubr.msk.f32.vlgmr.msra.gmra.mxu0 %vm375_vm0, %v992_v15  ;;  %1673 = vmatprep.subr.mxu1 %v8507_v0  ;;  %v1543_v15 = vld [vmem:[%s8543_s0 + $0xa8] sm:$0xff] }
 0x194   :  { %5646 = vmatmul.mubr.msk.f32.gmra.mxu1 %vm375_vm0, %v998_v24  ;;  %1110 = vmatprep.mubr.f32.mxu0 %v8507_v0 }
 0x195   :  { %1259 = vmatprep.mubr.f32.mxu1 %v8507_v0  ;;  %1674 = vmatpush1.msra.mxu1 %v1561_v34 }
 0x196   :  { %1675 = vmatprep.subr.mxu1 %v8507_v0  ;;  %5706 = vmatpush3.msra.mxu0 %v1537_v41 }
 0x197   :  { %5633 = vmatmul.mubr.msk.f32.gmra.mxu0 %vm375_vm0, %v993_v18  ;;  %1676 = vmatpush1.msra.mxu1 %v1560_v35  ;;  %v1575_v18 = vld [vmem:[%s8543_s0 + $0x1a8] sm:$0xff] }
 0x198   :  { %5647 = vmatmul.mubr.msk.f32.gmra.mxu1 %vm375_vm0, %v999_v25  ;;  %1116 = vmatprep.mubr.f32.mxu0 %v8507_v0  ;;  %v1523_v35 = vld [vmem:[%s8543_s0 + $0x8] sm:$0xff] }
 0x199   :  { %1677 = vmatprep.subr.mxu1 %v8507_v0  ;;  %5707 = vmatprep.subr.mxu0 %v1552_v43 }
 0x19a   :  { %1678 = vmatpush1.msra.mxu1 %v1559_v36  ;;  %5708 = vmatpush3.msra.mxu0 %v1536_v44  ;;  %v1571_v36 = vld [vmem:[%s8543_s0 + $0x188] sm:$0xff] }
 0x19b   :  { %5634 = vmatmul.mubr.msk.f32.gmra.mxu0 %vm375_vm0, %v994_v20  ;;  %1679 = vmatprep.subr.mxu1 %v8507_v0  ;;  %v1542_v20 = vld [vmem:[%s8543_s0 + $0xa0] sm:$0xff] }
 0x19c   :  { %1122 = vmatprep.mubr.f32.mxu0 %v8507_v0  ;;  %1680 = vmatpush1.msra.mxu1 %v1558_v37 }
 0x19d   :  { %1681 = vmatprep.subr.mxu1 %v8507_v0  ;;  %5709 = vmatprep.subr.mxu0 %v1551_v46 }
 0x19e   :  { %1682 = vmatpush1.msra.mxu1 %v1557_v38  ;;  %5710 = vmatpush3.msra.mxu0 %v1535_v47  ;;  %v1538_v38 = vld [vmem:[%s8543_s0 + $0x80] sm:$0xff] }
 0x19f   :  { %5635 = vmatmul.mubr.msk.f32.gmra.mxu0 %vm375_vm0, %v995_v21  ;;  %1683 = vmatprep.subr.mxu1 %v8507_v0  ;;  %v1526_v21 = vld [vmem:[%s8543_s0 + $0x20] sm:$0xff] }
 0x1a0   :  { %1128 = vmatprep.mubr.f32.mxu0 %v8507_v0  ;;  %1684 = vmatpush1.msra.mxu1 %v1556_v39 }
 0x1a1   :  { %1685 = vmatprep.subr.mxu1 %v8507_v0  ;;  %5711 = vmatprep.subr.mxu0 %v1550_v49 }
 0x1a2   :  { %1686 = vmatpush1.msra.mxu1 %v1555_v42  ;;  %5712 = vmatpush3.msra.mxu0 %v1534_v50  ;;  %v1570_v42 = vld [vmem:[%s8543_s0 + $0x180] sm:$0xff] }
 0x1a3   :  { %5636 = vmatmul.mubr.msk.f32.gmra.mxu0 %vm375_vm0, %v996_v22  ;;  %1687 = vmatprep.subr.mxu1 %v8507_v0  ;;  %v1574_v22 = vld [vmem:[%s8543_s0 + $0x1a0] sm:$0xff] }
 0x1a4   :  { %1134 = vmatprep.mubr.f32.mxu0 %v8507_v0  ;;  %1688 = vmatpush1.msra.mxu1 %v1554_v45 }
 0x1a5   :  { %1693 = vmatprep.subr.mxu1 %v8507_v0  ;;  %5713 = vmatprep.subr.mxu0 %v1549_v52 }
 0x1a6   :  { %1694 = vmatpush2.msra.mxu1 %v1583_v48  ;;  %5714 = vmatpush3.msra.mxu0 %v1533_v53 }
 0x1a7   :  { %5637 = vmatmul.mubr.msk.f32.gmra.mxu0 %vm375_vm0, %v997_v23  ;;  %1695 = vmatprep.subr.mxu1 %v8507_v0 }
 0x1a8   :  { %1140 = vmatprep.mubr.f32.mxu0 %v8507_v0  ;;  %1696 = vmatpush2.msra.mxu1 %v1582_v51 }
 0x1a9   :  { %1697 = vmatprep.subr.mxu1 %v8507_v0  ;;  %5715 = vmatprep.subr.mxu0 %v1548_v55 }
 0x1aa   :  { %1698 = vmatpush2.msra.mxu1 %v1581_v54  ;;  %5716 = vmatpush3.msra.mxu0 %v1532_v56 }
 0x1ab   :  { %5638 = vmatmul.mubr.msk.f32.gmra.mxu0 %vm375_vm0, %v998_v24  ;;  %1699 = vmatprep.subr.mxu1 %v8507_v0  ;;  %v1541_v24 = vld [vmem:[%s8543_s0 + $0x98] sm:$0xff] }
 0x1ac   :  { %1146 = vmatprep.mubr.f32.mxu0 %v8507_v0  ;;  %1700 = vmatpush2.msra.mxu1 %v1580_v57 }
 0x1ad   :  { %5717 = vmatprep.subr.mxu0 %v1547_v58  ;;  %1701 = vmatprep.subr.mxu1 %v8507_v0 }
 0x1ae   :  { %5718 = vmatpush3.msra.mxu0 %v1531_v59  ;;  %1702 = vmatpush2.msra.mxu1 %v1579_v60 }
 0x1af   :  { %5639 = vmatmul.mubr.msk.f32.gmra.mxu0 %vm375_vm0, %v999_v25  ;;  %5719 = vmatprep.subr.mxu0 %v1546_v61  ;;  %v1525_v25 = vld [vmem:[%s8543_s0 + $0x18] sm:$0xff]  ;;  %s6636_s0 = smov [#allocation4]  }
 0x1b0   :  { %1703 = vmatprep.subr.mxu1 %v8507_v0  ;;  %5720 = vmatpush3.msra.mxu0 %v1530_v62  ;;  %s440_s8 = sshll.u32 %s6636_s0, 4  ;;  %s441_s8 = int_to_ptr.vmem [resolvable:$true] %s440_s8 }
 0x1b1   :  { %1704 = vmatpush2.msra.mxu1 %v1578_v63  ;;  %5721 = vmatprep.subr.mxu0 %v1545_v3  ;;  %s6521_s23 = scalar_lea.vmem %s441_s8, 18432  ;;  %p6526_p4 = scmp.lt.s32.totalorder %s441_s8, %s441_s8 }
 0x1b2   :  { %1705 = vmatprep.subr.mxu1 %v8507_v0  ;;  %5722 = vmatpush3.msra.mxu0 %v1529_v5  ;;  %p6522_p3 = scmp.ne.s32.totalorder %s441_s8, %s6521_s23  ;;  %p6527_p5 = scmp.lt.s32.totalorder %s6521_s23, %s6521_s23 }
 0x1b3   :  { %1706 = vmatpush2.msra.mxu1 %v1577_v6  ;;  %5723 = vmatprep.subr.mxu0 %v1544_v8 }
 0x1b4   :  { %1707 = vmatprep.subr.mxu1 %v8507_v0  ;;  %5724 = vmatpush3.msra.mxu0 %v1528_v10  ;;  %p6528_p6 = por %p6527_p5, %p6526_p4 }
 0x1b5   :  { %1708 = vmatpush2.msra.mxu1 %v1576_v13  ;;  %5725 = vmatprep.subr.mxu0 %v1543_v15 }
 0x1b6   :  { %1709 = vmatprep.subr.mxu1 %v8507_v0  ;;  %5726 = vmatpush3.msra.mxu0 %v1527_v17  ;;  %p6529_p7 = pnand %p6528_p6, %p6522_p3 }
 0x1b7   :  { %1710 = vmatpush2.msra.mxu1 %v1575_v18  ;;  %5727 = vmatprep.subr.mxu0 %v1542_v20 }
 0x1b8   :  { %1711 = vmatprep.subr.mxu1 %v8507_v0  ;;  %5728 = vmatpush3.msra.mxu0 %v1526_v21 }
 0x1b9   :  { %1712 = vmatpush2.msra.mxu1 %v1574_v22  ;;  %5729 = vmatprep.subr.mxu0 %v1541_v24 }
 0x1ba   :  { %1713 = vmatprep.subr.mxu1 %v8507_v0  ;;  %5730 = vmatpush3.msra.mxu0 %v1525_v25 }
 0x1bb   :  { %1714 = vmatpush2.msra.mxu1 %v1573_v26  ;;  %5731 = vmatprep.subr.mxu0 %v1540_v28 }
 0x1bc   :  { %1715 = vmatprep.subr.mxu1 %v8507_v0  ;;  %5732 = vmatpush3.msra.mxu0 %v1524_v30 }
 0x1bd   :  { %1716 = vmatpush2.msra.mxu1 %v1572_v31  ;;  %5733 = vmatprep.subr.mxu0 %v1539_v33 }
 0x1be   :  { %1717 = vmatprep.subr.mxu1 %v8507_v0  ;;  %5734 = vmatpush3.msra.mxu0 %v1523_v35 }
 0x1bf   :  { %1718 = vmatpush2.msra.mxu1 %v1571_v36  ;;  %5735 = vmatprep.subr.mxu0 %v1538_v38 }
 0x1c0   :  { %1719 = vmatprep.subr.mxu1 %v8507_v0  ;;  %5736 = vmatpush3.msra.mxu0 %v1522_v40 }
 0x1c1   :  { %1720 = vmatpush2.msra.mxu1 %v1570_v42 }
 0x207   :  { %v7243_v4 = vpop.f32.mrf.mxu0 }
 0x208   :  { %v7252_v7 = vpop.f32.mrf.mxu1 }
 0x209   :  { %v7257_v9 = vpop.f32.mrf.mxu0 }
 0x20a   :  { %v7266_v14 = vpop.f32.mrf.mxu1 }
 0x20b   :  { %v7271_v16 = vpop.f32.mrf.mxu0 }
 0x20c   :  { %v7280_v19 = vpop.f32.mrf.mxu1 }
 0x20d   :  { %v7291_v23 = vpop.f32.mrf.mxu0 }
 0x20e   :  { %v7303_v27 = vpop.f32.mrf.mxu1 }
 0x20f   :  { %v7308_v29 = vpop.f32.mrf.mxu0 }
 0x210   :  { %8544 = vst [vmem:[#allocation76_spill] sm:$0xff] %v7308_v29  ;;  %v7317_v32 = vpop.f32.mrf.mxu1 }
 0x211   :  { %v7322_v34 = vpop.f32.mrf.mxu0 }
 0x212   :  { %8545 = vst [vmem:[#allocation77_spill] sm:$0xff] %v7322_v34  ;;  %v7331_v37 = vpop.f32.mrf.mxu1 }
 0x213   :  { %v7336_v39 = vpop.f32.mrf.mxu0 }
 0x214   :  { %8546 = vst [vmem:[#allocation78_spill] sm:$0xff] %v7336_v39  ;;  %v7342_v41 = vpop.f32.mrf.mxu1 }
 0x215   :  { %v7347_v43 = vpop.f32.mrf.mxu0 }
 0x216   :  { %8547 = vst [vmem:[#allocation79_spill] sm:$0xff] %v7347_v43  ;;  %v7350_v44 = vpop.f32.mrf.mxu1 }
 0x217   :  { %v7352_v45 = vpop.f32.mrf.mxu0 }
 0x218   :  { %8548 = vst [vmem:[#allocation80_spill] sm:$0xff] %v7352_v45  ;;  %v7354_v46 = vpop.f32.mrf.mxu1 }
 0x219   :  { %v7356_v47 = vpop.f32.mrf.mxu0 }
 0x21a   :  { %8549 = vst [vmem:[#allocation81_spill] sm:$0xff] %v7356_v47  ;;  %v7358_v48 = vpop.f32.mrf.mxu1 }
 0x21b   :  { %v7360_v49 = vpop.f32.mrf.mxu0 }
 0x21c   :  { %8550 = vst [vmem:[#allocation82_spill] sm:$0xff] %v7360_v49  ;;  %v945_v50 = vpop.f32.mrf.mxu1 }
 0x21d   :  { %v7362_v51 = vpop.f32.mrf.mxu0 }
 0x21e   :  { %8551 = vst [vmem:[#allocation83_spill] sm:$0xff] %v7362_v51  ;;  %v947_v52 = vpop.f32.mrf.mxu1 }
 0x21f   :  { %v7364_v53 = vpop.f32.mrf.mxu0 }
 0x220   :  { %8552 = vst [vmem:[#allocation84_spill] sm:$0xff] %v7364_v53  ;;  %v951_v54 = vpop.f32.mrf.mxu1 }
 0x221   :  { %v7366_v55 = vpop.f32.mrf.mxu0 }
 0x222   :  { %8553 = vst [vmem:[#allocation85_spill] sm:$0xff] %v7366_v55  ;;  %v953_v56 = vpop.f32.mrf.mxu1 }
 0x223   :  { %v7368_v57 = vpop.f32.mrf.mxu0 }
 0x224   :  { %8554 = vst [vmem:[#allocation86_spill] sm:$0xff] %v7368_v57  ;;  %v957_v58 = vpop.f32.mrf.mxu1 }
 0x225   :  { %v7370_v59 = vpop.f32.mrf.mxu0 }
 0x226   :  { %8555 = vst [vmem:[#allocation87_spill] sm:$0xff] %v7370_v59  ;;  %v959_v60 = vpop.f32.mrf.mxu1 }
 0x227   :  { %v695_v61 = vpop.f32.mrf.mxu0 }
 0x228   :  { %v963_v62 = vpop.f32.mrf.mxu1  ;;  %v946_v53 = vadd.f32 %v945_v50, %v695_v61 }
 0x229   :  { %v697_v63 = vpop.f32.mrf.mxu0  ;;  %v964_v51 = vadd.f32 %v963_v62, %v7252_v7 }
 0x22a   :  { %v965_v3 = vpop.f32.mrf.mxu1  ;;  %v948_v59 = vadd.f32 %v947_v52, %v697_v63 }
 0x22b   :  { %v701_v5 = vpop.f32.mrf.mxu0  ;;  %v966_v49 = vadd.f32 %v965_v3, %v7266_v14  ;;  %v8559_v3 = vld [vmem:[#allocation77_spill] sm:$0xff] }
 0x22c   :  { %v969_v6 = vpop.f32.mrf.mxu1  ;;  %v952_v47 = vadd.f32 %v951_v54, %v701_v5  ;;  %v8560_v5 = vld [vmem:[#allocation78_spill] sm:$0xff] }
 0x22d   :  { %v703_v8 = vpop.f32.mrf.mxu0  ;;  %v970_v43 = vadd.f32 %v969_v6, %v7280_v19 }
 0x22e   :  { %v971_v10 = vpop.f32.mrf.mxu1  ;;  %v954_v57 = vadd.f32 %v953_v56, %v703_v8 }
 0x22f   :  { %v707_v13 = vpop.f32.mrf.mxu0  ;;  %v972_v39 = vadd.f32 %v971_v10, %v7303_v27  ;;  %v8561_v10 = vld [vmem:[#allocation79_spill] sm:$0xff] }
 0x230   :  { %v975_v15 = vpop.f32.mrf.mxu1  ;;  %v958_v52 = vadd.f32 %v957_v58, %v707_v13 }
 0x231   :  { %v709_v17 = vpop.f32.mrf.mxu0  ;;  %v7385_v56 = vadd.f32 %v975_v15, %v7317_v32 }
 0x232   :  { %v977_v18 = vpop.f32.mrf.mxu1  ;;  %v960_v50 = vadd.f32 %v959_v60, %v709_v17 }
 0x233   :  { %v832_v20 = vpop.f32.mrf.mxu0  ;;  %v978_v14 = vadd.f32 %v977_v18, %v7331_v37 }
 0x234   :  { %v981_v21 = vpop.f32.mrf.mxu1  ;;  %v7391_v54 = vadd.f32 %v832_v20, %v7243_v4 }
 0x235   :  { %v834_v22 = vpop.f32.mrf.mxu0  ;;  %v7394_v19 = vadd.f32 %v981_v21, %v7342_v41 }
 0x236   :  { %v983_v24 = vpop.f32.mrf.mxu1 }
 0x237   :  { %v838_v25 = vpop.f32.mrf.mxu0  ;;  %v984_v32 = vadd.f32 %v983_v24, %v7350_v44 }
 0x238   :  { %v987_v26 = vpop.f32.mrf.mxu1 }
 0x239   :  { %v840_v28 = vpop.f32.mrf.mxu0  ;;  %v7408_v37 = vadd.f32 %v987_v26, %v7354_v46  ;;  %v8558_v46 = vld [vmem:[#allocation76_spill] sm:$0xff] }
 0x23a   :  { %v989_v30 = vpop.f32.mrf.mxu1  ;;  %v7419_v44 = vadd.f32 %v840_v28, %v7291_v23  ;;  %v8562_v28 = vld [vmem:[#allocation80_spill] sm:$0xff] }
 0x23b   :  { %v844_v31 = vpop.f32.mrf.mxu0 }
 0x23c   :  { %v1219_v33 = vpop.f32.mrf.mxu1  ;;  %v7425_v60 = vadd.f32 %v844_v31, %v8558_v46  ;;  %v8565_v46 = vld [vmem:[#allocation82_spill] sm:$0xff] }
 0x23d   :  { %v846_v35 = vpop.f32.mrf.mxu0  ;;  %v7396_v27 = vadd.f32 %v1219_v33, %v946_v53 }
 0x23e   :  { %v1221_v36 = vpop.f32.mrf.mxu1 }
 0x23f   :  { %v850_v38 = vpop.f32.mrf.mxu0  ;;  %v7380_v34 = vadd.f32 %v1221_v36, %v948_v59  ;;  %8557 = vst [vmem:[#allocation89_spill] sm:$0xff] %v7396_v27 }
 0x240   :  { %v1225_v40 = vpop.f32.mrf.mxu1  ;;  %v7435_v6 = vadd.f32 %v850_v38, %v8560_v5 }
 0x241   :  { %v852_v42 = vpop.f32.mrf.mxu0  ;;  %v7387_v61 = vadd.f32 %v1225_v40, %v952_v47  ;;  %v7405_v47 = vadd.f32 %v838_v25, %v7271_v16  ;;  %v1362_v41 = vmul.f32 %v7380_v34, %v7380_v34  ;;  %v7422_v16 = vadd.f32 %v989_v30, %v7358_v48 }
 0x242   :  { %v1227_v0 = vpop.f32.mrf.mxu1  ;;  %v1338_v8 = vsel %vm1337_vm5, %v7380_v34, 0.0  ;;  %v7442_v13 = vadd.f32 %v852_v42, %v8561_v10 }
 0x243   :  { %v856_v12 = vpop.f32.mrf.mxu0  ;;  %v7382_v29 = vadd.f32 %v1227_v0, %v954_v57  ;;  %v7401_v57 = vadd.f32 %v834_v22, %v7257_v9  ;;  %v1365_v62 = vmul.f32 %v7387_v61, %v7387_v61  ;;  %v1430_v20 = vsel %vm1337_vm5, %v1362_v41, 0.0 }
 0x244   :  { %v1231_v11 = vpop.f32.mrf.mxu1  ;;  %v1324_v25 = vadd.f32 %v7387_v61, %v7396_v27 }
 0x245   :  { %v7372_v2 = vpop.f32.mrf.mxu0  ;;  %v1366_v53 = vmul.f32 %v7382_v29, %v7382_v29  ;;  %v7414_v58 = vadd.f32 %v1231_v11, %v958_v52  ;;  %v1361_v11 = vmul.f32 %v7396_v27, %v7396_v27  ;;  %v1339_v15 = vsel %vm1337_vm5, %v7382_v29, 0.0  ;;  %v8563_v52 = vld [vmem:[#allocation81_spill] sm:$0xff] }
 0x246   :  { %8556 = vst [vmem:[#allocation88_spill] sm:$0xff] %v7372_v2  ;;  %v1233_v1 = vpop.f32.mrf.mxu1  ;;  %v1340_v31 = vadd.f32 %v1339_v15, %v1338_v8 }
 0x247   :  { %v7374_v55 = vpop.f32.mrf.mxu0  ;;  %v7416_v59 = vadd.f32 %v1233_v1, %v960_v50  ;;  %v7432_v1 = vadd.f32 %v846_v35, %v8559_v3  ;;  %v1431_v21 = vsel %vm1337_vm5, %v1366_v53, 0.0  ;;  %v1417_v26 = vadd.f32 %v1365_v62, %v1361_v11  ;;  %v8566_v11 = vld [vmem:[#allocation83_spill] sm:$0xff] }
 0x248   :  { %v1237_v45 = vpop.f32.mrf.mxu1  ;;  %v1432_v40 = vadd.f32 %v1431_v21, %v1430_v20  ;;  %v1325_v42 = vadd.f32 %v1324_v25, %v7414_v58  ;;  %v7479_v62 = vadd.f32 %v7374_v55, %v8565_v46 }
 0x249   :  { %v864_v2 = vpop.f32.mrf.mxu0  ;;  %v7446_v17 = vadd.f32 %v1237_v45, %v964_v51  ;;  %v1370_v22 = vmul.f32 %v7416_v59, %v7416_v59  ;;  %v7459_v45 = vadd.f32 %v856_v12, %v8562_v28  ;;  %v1341_v33 = vsel %vm1337_vm5, %v7416_v59, 0.0 }
 0x24a   :  { %v1239_v7 = vpop.f32.mrf.mxu1  ;;  %v7484_v3 = vadd.f32 %v864_v2, %v8566_v11 }
 0x24b   :  { %v7398_v0 = vpop.f32.mrf.mxu0  ;;  %v7437_v23 = vadd.f32 %v1239_v7, %v966_v49  ;;  %v1369_v49 = vmul.f32 %v7414_v58, %v7414_v58  ;;  %v1433_v53 = vsel %vm1337_vm5, %v1370_v22, 0.0  ;;  %v1326_v15 = vadd.f32 %v1325_v42, %v7446_v17  ;;  %v8567_v22 = vld [vmem:[#allocation84_spill] sm:$0xff] }
 0x24c   :  { %v1243_v4 = vpop.f32.mrf.mxu1  ;;  %v7498_v25 = vadd.f32 %v7398_v0, %v8567_v22 }
 0x24d   :  { %v870_v9 = vpop.f32.mrf.mxu0  ;;  %v1374_v35 = vmul.f32 %v7437_v23, %v7437_v23  ;;  %v7467_v36 = vadd.f32 %v1243_v4, %v970_v43  ;;  %v8564_v50 = vld [vmem:[#allocation88_spill] sm:$0xff]  ;;  %v1418_v41 = vadd.f32 %v1417_v26, %v1369_v49  ;;  %v1343_v5 = vsel %vm1337_vm5, %v7437_v23, 0.0 }
 0x24e   :  { %v1245_v63 = vpop.f32.mrf.mxu1  ;;  %v7472_v12 = vadd.f32 %v8564_v50, %v8563_v52  ;;  %v1434_v49 = vadd.f32 %v1433_v53, %v1432_v40 }
 0x24f   :  { %v874_v48 = vpop.f32.mrf.mxu0  ;;  %v7461_v51 = vadd.f32 %v1245_v63, %v972_v39  ;;  %v1373_v39 = vmul.f32 %v7446_v17, %v7446_v17  ;;  %v1342_v63 = vadd.f32 %v1341_v33, %v1340_v31  ;;  %v1435_v20 = vsel %vm1337_vm5, %v1374_v35, 0.0  ;;  %v8568_v33 = vld [vmem:[#allocation85_spill] sm:$0xff] }
 0x250   :  { %v1249_v18 = vpop.f32.mrf.mxu1  ;;  %v1377_v55 = vmul.f32 %v7467_v36, %v7467_v36  ;;  %v1327_v31 = vadd.f32 %v1326_v15, %v7467_v36  ;;  %v7505_v35 = vadd.f32 %v870_v9, %v8568_v33  ;;  %v1436_v40 = vadd.f32 %v1435_v20, %v1434_v49 }
 0x251   :  { %v7454_v24 = vpop.f32.mrf.mxu0  ;;  %v1378_v8 = vmul.f32 %v7461_v51, %v7461_v51  ;;  %v1419_v2 = vadd.f32 %v1418_v41, %v1373_v39  ;;  %v7501_v26 = vadd.f32 %v1249_v18, %v7385_v56  ;;  %v1345_v52 = vsel %vm1337_vm5, %v7461_v51, 0.0  ;;  %v8569_v39 = vld [vmem:[#allocation86_spill] sm:$0xff] }
 0x252   :  { %v1251_v30 = vpop.f32.mrf.mxu1  ;;  %v7516_v41 = vadd.f32 %v874_v48, %v8569_v39 }
 0x253   :  { %v1106_v38 = vpop.f32.mrf.mxu0  ;;  %v7481_v43 = vadd.f32 %v1251_v30, %v978_v14  ;;  %v1344_v30 = vadd.f32 %v1343_v5, %v1342_v63  ;;  %v1437_v0 = vsel %vm1337_vm5, %v1378_v8, 0.0  ;;  %v1420_v50 = vadd.f32 %v1419_v2, %v1377_v55 }
 0x254   :  { %v1255_v7 = vpop.f32.mrf.mxu1  ;;  %v1328_v63 = vadd.f32 %v1327_v31, %v7501_v26  ;;  %v1381_v11 = vmul.f32 %v7501_v26, %v7501_v26  ;;  %v1438_v5 = vadd.f32 %v1437_v0, %v1436_v40  ;;  %v7535_v15 = vadd.f32 %v1106_v38, %v7391_v54 }
 0x255   :  { %v1108_v4 = vpop.f32.mrf.mxu0  ;;  %v7513_v56 = vadd.f32 %v1255_v7, %v7394_v19  ;;  %v1347_v19 = vsel %vm1337_vm5, %v7481_v43, 0.0  ;;  %v1346_v48 = vadd.f32 %v1345_v52, %v1344_v30 }
 0x256   :  { %v1257_v10 = vpop.f32.mrf.mxu1  ;;  %8570 = vst [vmem:[#allocation76_spill] sm:$0xff] %v7535_v15  ;;  %v1421_v54 = vadd.f32 %v1420_v50, %v1381_v11 }
 0x257   :  { %v7494_v14 = vadd.f32 %v1257_v10, %v984_v32  ;;  %v1112_v21 = vpop.f32.mrf.mxu0  ;;  %v1382_v32 = vmul.f32 %v7481_v43, %v7481_v43  ;;  %v1329_v20 = vadd.f32 %v1328_v63, %v7513_v56  ;;  %v1385_v2 = vmul.f32 %v7513_v56, %v7513_v56 }
 0x258   :  { %v1261_v28 = vpop.f32.mrf.mxu1  ;;  %v7541_v49 = vadd.f32 %v1112_v21, %v7405_v47  ;;  %v7553_v47 = vadd.f32 %v1108_v4, %v7401_v57 }
 0x259   :  { %v1114_v42 = vpop.f32.mrf.mxu0  ;;  %v1386_v9 = vmul.f32 %v7494_v14, %v7494_v14  ;;  %v7529_v7 = vadd.f32 %v1261_v28, %v7408_v37  ;;  %v1439_v8 = vsel %vm1337_vm5, %v1382_v32, 0.0  ;;  %v1349_v55 = vsel %vm1337_vm5, %v7494_v14, 0.0 }
 0x25a   :  { %v1263_v18 = vpop.f32.mrf.mxu1  ;;  %v1348_v37 = vadd.f32 %v1347_v19, %v1346_v48  ;;  %v7547_v28 = vadd.f32 %v1114_v42, %v7419_v44  ;;  %v1440_v38 = vadd.f32 %v1439_v8, %v1438_v5  ;;  %v8571_v44 = vld [vmem:[#allocation87_spill] sm:$0xff]  ;;  %v1422_v57 = vadd.f32 %v1421_v54, %v1385_v2 }
 0x25b   :  { %v7521_v53 = vadd.f32 %v1263_v18, %v7422_v16  ;;  %v1118_v46 = vpop.f32.mrf.mxu0  ;;  %v1441_v22 = vsel %vm1337_vm5, %v1386_v9, 0.0  ;;  %v1330_v31 = vadd.f32 %v1329_v20, %v7529_v7  ;;  %v1389_v32 = vmul.f32 %v7529_v7, %v7529_v7 }
 0x25c   :  { %v1350_v21 = vadd.f32 %v1349_v55, %v1348_v37  ;;  %v7560_v42 = vadd.f32 %v7454_v24, %v8571_v44  ;;  %v1442_v0 = vadd.f32 %v1441_v22, %v1440_v38  ;;  %v1363_v18 = vmul.f32 %v7541_v49, %v7541_v49 }
 0x25d   :  { %v1390_v16 = vmul.f32 %v7521_v53, %v7521_v53  ;;  %v1120_v10 = vpop.f32.mrf.mxu0  ;;  %v1351_v33 = vsel %vm1337_vm5, %v7521_v53, 0.0  ;;  %v7565_v50 = vadd.f32 %v1118_v46, %v7425_v60  ;;  %v1364_v4 = vmul.f32 %v7547_v28, %v7547_v28 }
 0x25e   :  { %v1352_v39 = vadd.f32 %v1351_v33, %v1350_v21  ;;  %v7570_v9 = vadd.f32 %v1120_v10, %v7432_v1  ;;  %v1359_v24 = vmul.f32 %v7535_v15, %v7535_v15  ;;  %v1331_v11 = vrot.slane %v1330_v31, 4 }
 0x25f   :  { %v1124_v30 = vpop.f32.mrf.mxu0  ;;  %v1443_v40 = vsel %vm1337_vm5, %v1390_v16, 0.0  ;;  %v1360_v60 = vmul.f32 %v7553_v47, %v7553_v47  ;;  %v1298_v46 = vadd.f32 %v7541_v49, %v7535_v15  ;;  %v1423_v5 = vadd.f32 %v1422_v57, %v1389_v32 }
 0x260   :  { %v1444_v19 = vadd.f32 %v1443_v40, %v1442_v0  ;;  %v7575_v48 = vadd.f32 %v1124_v30, %v7435_v6  ;;  %v1391_v16 = vadd.f32 %v1363_v18, %v1359_v24  ;;  %v1311_v10 = vadd.f32 %v7547_v28, %v7553_v47 }
 0x261   :  { %v1126_v52 = vpop.f32.mrf.mxu0  ;;  %v1367_v20 = vmul.f32 %v7565_v50, %v7565_v50  ;;  %v1404_v55 = vadd.f32 %v1364_v4, %v1360_v60  ;;  %v1353_v37 = vrot.slane %v1352_v39, 4  ;;  %v1368_v2 = vmul.f32 %v7570_v9, %v7570_v9 }
 0x262   :  { %v7582_v8 = vadd.f32 %v1126_v52, %v7442_v13  ;;  %v1332_v30 = vadd.f32 %v1331_v11, %v1330_v31  ;;  %v1445_v54 = vrot.slane %v1444_v19, 4  ;;  %v1299_v38 = vadd.f32 %v1298_v46, %v7565_v50 }
 0x263   :  { %v1130_v63 = vpop.f32.mrf.mxu0  ;;  %v1371_v33 = vmul.f32 %v7575_v48, %v7575_v48  ;;  %v1424_v21 = vrot.slane %v1423_v5, 4  ;;  %v1354_v18 = vadd.f32 %v1353_v37, %v1352_v39  ;;  %v1405_v57 = vadd.f32 %v1404_v55, %v1368_v2 }
 0x264   :  { %v7589_v6 = vadd.f32 %v1130_v63, %v7459_v45  ;;  %v1312_v45 = vadd.f32 %v1311_v10, %v7570_v9  ;;  %v1372_v32 = vmul.f32 %v7582_v8, %v7582_v8  ;;  %v1300_v44 = vadd.f32 %v1299_v38, %v7575_v48 }
 0x265   :  { %v1132_v1 = vpop.f32.mrf.mxu0  ;;  %v1355_v2 = vrot.slane %v1354_v18, 2 }
 0x266   :  { %v7594_v22 = vadd.f32 %v1132_v1, %v7472_v12  ;;  %v1392_v12 = vadd.f32 %v1391_v16, %v1367_v20  ;;  %v1375_v31 = vmul.f32 %v7589_v6, %v7589_v6  ;;  %v1313_v4 = vadd.f32 %v1312_v45, %v7582_v8 }
 0x267   :  { %v1136_v13 = vpop.f32.mrf.mxu0  ;;  %v1301_v60 = vadd.f32 %v1300_v44, %v7589_v6  ;;  %v1406_v1 = vadd.f32 %v1405_v57, %v1372_v32  ;;  %v1425_v20 = vadd.f32 %v1424_v21, %v1423_v5  ;;  %v1333_v32 = vrot.slane %v1332_v30, 2 }
 0x268   :  { %v7603_v40 = vadd.f32 %v1136_v13, %v7479_v62  ;;  %v1376_v63 = vmul.f32 %v7594_v22, %v7594_v22  ;;  %v1446_v62 = vadd.f32 %v1445_v54, %v1444_v19  ;;  %v1393_v11 = vadd.f32 %v1392_v12, %v1371_v33 }
 0x269   :  { %v1138_v52 = vpop.f32.mrf.mxu0  ;;  %v1314_v16 = vadd.f32 %v1313_v4, %v7594_v22 }
 0x26a   :  { %v7609_v0 = vadd.f32 %v1138_v52, %v7484_v3  ;;  %v1379_v46 = vmul.f32 %v7603_v40, %v7603_v40  ;;  %v1394_v55 = vadd.f32 %v1393_v11, %v1375_v31  ;;  %v1302_v19 = vadd.f32 %v1301_v60, %v7603_v40 }
 0x26b   :  { %v1142_v24 = vpop.f32.mrf.mxu0  ;;  %v1407_v13 = vadd.f32 %v1406_v1, %v1376_v63  ;;  %v1356_v11 = vadd.f32 %v1355_v2, %v1354_v18 }
 0x26c   :  { %v1380_v3 = vmul.f32 %v7609_v0, %v7609_v0  ;;  %v7621_v39 = vadd.f32 %v1142_v24, %v7498_v25  ;;  %v1315_v54 = vadd.f32 %v1314_v16, %v7609_v0  ;;  %v1395_v45 = vadd.f32 %v1394_v55, %v1379_v46 }
 0x26d   :  { %v1144_v10 = vpop.f32.mrf.mxu0  ;;  %v1426_v24 = vrot.slane %v1425_v20, 2 }
 0x26e   :  { %v7625_v37 = vadd.f32 %v1144_v10, %v7505_v35  ;;  %v1383_v38 = vmul.f32 %v7621_v39, %v7621_v39  ;;  %v1303_v25 = vadd.f32 %v1302_v19, %v7621_v39  ;;  %v1447_v35 = vrot.slane %v1446_v62, 2 }
 0x26f   :  { %v1148_v33 = vpop.f32.mrf.mxu0  ;;  %v1408_v52 = vadd.f32 %v1407_v13, %v1380_v3  ;;  %v1334_v3 = vadd.f32 %v1333_v32, %v1332_v30 }
 0x270   :  { %v1384_v5 = vmul.f32 %v7625_v37, %v7625_v37  ;;  %v7634_v21 = vadd.f32 %v1148_v33, %v7516_v41  ;;  %v1316_v12 = vadd.f32 %v1315_v54, %v7625_v37  ;;  %v1396_v31 = vadd.f32 %v1395_v45, %v1383_v38 }
 0x271   :  { %v1150_v44 = vpop.f32.mrf.mxu0  ;;  %v1448_v10 = vadd.f32 %v1447_v35, %v1446_v62  ;;  %v1427_v38 = vadd.f32 %v1426_v24, %v1425_v20  ;;  %v1357_v33 = vrot.slane %v1356_v11, 1 }
 0x272   :  { %v1304_v57 = vadd.f32 %v1303_v25, %v7634_v21  ;;  %v1387_v4 = vmul.f32 %v7634_v21, %v7634_v21  ;;  %v7641_v63 = vadd.f32 %v1150_v44, %v7560_v42  ;;  %v1409_v60 = vadd.f32 %v1408_v52, %v1384_v5 }
 0x273   :  { %v6635_v42 = vmov 1966171168   ;;  %v8510_v25 = vlaneseq  ;;  %v1335_v44 = vrot.slane %v1334_v3, 1  ;;  %v1428_v62 = vrot.slane %v1427_v38, 1 }
 0x274   :  { %v1305_v41 = vrot.slane %v1304_v57, 4  ;;  %v1397_v46 = vadd.f32 %v1396_v31, %v1387_v4  ;;  %v1317_v1 = vadd.f32 %v1316_v12, %v7641_v63  ;;  %v1388_v16 = vmul.f32 %v7641_v63, %v7641_v63 }
 0x275   :  { %v1458_v45 = vunpack.c.l.s4 %v6635_v42  ;;  %v1449_v12 = vrot.slane %v1448_v10, 1  ;;  %v1358_v32 = vadd.f32 %v1357_v33, %v1356_v11  ;;  %v1429_v42 = vadd.f32 %v1428_v62, %v1427_v38 }
 0x276   :  { %v1306_v55 = vadd.f32 %v1305_v41, %v1304_v57  ;;  %v1398_v19 = vrot.slane %v1397_v46, 4  ;;  %v1318_v13 = vrot.slane %v1317_v1, 4  ;;  %v1410_v54 = vadd.f32 %v1409_v60, %v1388_v16 }
 0x277   :  { %v1459_v35 = vunpack.c.0.s8 %v1458_v45  ;;  %v7647_v57 = vshrl.u32 %v8510_v25, 7  ;;  %v1336_v16 = vadd.f32 %v1335_v44, %v1334_v3  ;;  %v8572_v44 = vlaneseq }
 0x278   :  { %v1307_v18 = vrot.slane %v1306_v55, 2  ;;  %v1399_v2 = vadd.f32 %v1398_v19, %v1397_v46  ;;  %v1319_v5 = vadd.f32 %v1318_v13, %v1317_v1  ;;  %v1411_v52 = vrot.slane %v1410_v54, 4 }
 0x279   :  { %v1450_v46 = vadd.f32 %v1449_v12, %v1448_v10  ;;  %vm1482_vm6 = vcmp.lt.s32.totalorder %v8572_v44, 496 }
 0x27a   :  { %v1308_v31 = vadd.f32 %v1307_v18, %v1306_v55  ;;  %v1400_v4 = vrot.slane %v1399_v2, 2  ;;  %v1320_v27 = vrot.slane %v1319_v5, 2  ;;  %v1412_v30 = vadd.f32 %v1411_v52, %v1410_v54 }
 0x27b   :  { %v7650_v55 = vsub.s32 %v1459_v35, %v7647_v57  ;;  %v1456_v54 = vcombine.low %v1336_v16, %v1358_v32  ;;  %v1491_v45 = vcombine.low %v1429_v42, %v1450_v46  ;;  %v1765_v35 = vld [vmem:[#allocation18 + $0x28] sm:$0xff] }
 0x27c   :  { %v1309_v20 = vrot.slane %v1308_v31, 1  ;;  %v1401_v24 = vadd.f32 %v1400_v4, %v1399_v2  ;;  %v1321_v60 = vadd.f32 %v1320_v27, %v1319_v5  ;;  %v1413_v41 = vrot.slane %v1412_v30, 2  ;;  %1800 = vmatprep.subr.mxu0 %v1765_v35 }
 0x27d   :  { %v1470_v27 = vrot.slane %v1456_v54, %v7650_v55  ;;  %v1505_v2 = vrot.slane %v1491_v45, %v7650_v55  ;;  %v7675_v35 = vsub.s32 1, %v7647_v57 }
 0x27e   :  { %v1402_v1 = vrot.slane %v1401_v24, 1  ;;  %v1322_v19 = vrot.slane %v1321_v60, 1  ;;  %v1414_v13 = vadd.f32 %v1413_v41, %v1412_v30  ;;  %v1310_v18 = vadd.f32 %v1309_v20, %v1308_v31  ;;  %v1764_v20 = vld [vmem:[#allocation18 + $0x20] sm:$0xff]  ;;  %v1767_v41 = vld [vmem:[#allocation18 + $0x38] sm:$0xff] }
 0x280   :  { %v1323_v11 = vadd.f32 %v1322_v19, %v1321_v60  ;;  %v1415_v33 = vrot.slane %v1414_v13, 1  ;;  %v1403_v52 = vadd.f32 %v1402_v1, %v1401_v24  ;;  %v1761_v24 = vld [vmem:[#allocation18 + $0x8] sm:$0xff]  ;;  %v1760_v60 = vld [vmem:[#allocation18] sm:$0xff] }
 0x282   :  { %v1416_v25 = vadd.f32 %v1415_v33, %v1414_v13  ;;  %v1455_v15 = vcombine.low %v1310_v18, %v1323_v11 }
 0x284   :  { %v1463_v3 = vrot.slane %v1455_v15, %v7650_v55  ;;  %v1490_v10 = vcombine.low %v1403_v52, %v1416_v25  ;;  %v7660_v25 = vld [vmem:[#allocation7 + $0x10] sm:$0xff] }
 0x286   :  { %v1471_v5 = vcombine.low %v1463_v3, %v1470_v27  ;;  %v1498_v38 = vrot.slane %v1490_v10, %v7650_v55 }
 0x288   :  { %v1478_v12 = vrot.slane %v1471_v5, %v7650_v55  ;;  %v1506_v31 = vcombine.low %v1498_v38, %v1505_v2  ;;  %v8573_v2 = vld [vmem:[#allocation72_spill] sm:$0xff] }
 0x28a   :  { %1484 = vst.msk [vmem:[#allocation10] ss:$8 sm:$0xf] %vm1482_vm6, %v1478_v12  ;;  %v1513_v4 = vrot.slane %v1506_v31, %v7650_v55  ;;  %v8574_v12 = vld [vmem:[#allocation73_spill] sm:$0xff] }
 0x28c   :  { %1516 = vst.msk [vmem:[#allocation10 + $0x1] ss:$8 sm:$0xf] %vm1482_vm6, %v1513_v4  ;;  %v1766_v4 = vld [vmem:[#allocation18 + $0x30] sm:$0xff] }
 0x293   :  { %v1519_v30 = vld [vmem:[#allocation10 + $0x8] sm:$0x3]  ;;  %v1521_v62 = vld [vmem:[#allocation10 + $0x18] sm:$0x3]  ;;  %v1518_v32 = vld [vmem:[#allocation10] sm:$0x3] }
 0x294   :  { %1651 = vmatprep.mubr.f32.mxu0 %v1519_v30  ;;  %5648 = vmatprep.mubr.msk.f32.mxu1 %vm1337_vm5, %v1521_v62  ;;  %v1520_v15 = vld [vmem:[#allocation10 + $0x10] sm:$0x3]  ;;  %v1763_v62 = vld [vmem:[#allocation18 + $0x18] sm:$0xff] }
 0x295   :  { %1652 = vmatmul.mubr.f32.vlgmr.msra.gmra.mxu0 %v1518_v32  ;;  %1722 = vmatmul.mubr.f32.vlgmr.msra.gmra.mxu1 %v1520_v15  ;;  %v1762_v32 = vld [vmem:[#allocation18 + $0x10] sm:$0xff]  ;;  %v7672_v15 = vsub.s32 0, %v7647_v57 }
 0x296   :  { %1836 = vmatprep.mubr.f32.mxu0 %v7660_v25  ;;  %1801 = vmatpush1.msra.mxu0 %v1764_v20 }
 0x297   :  { %1802 = vmatprep.subr.mxu0 %v1761_v24 }
 0x298   :  { %1803 = vmatpush1.msra.mxu0 %v1760_v60 }
 0x299   :  { %1871 = vmatprep.subr.mxu0 %v1767_v41 }
 0x355   :  { %v5737_v16 = vpop.f32.mrf.mxu0  ;;  %v1723_v46 = vpop.f32.mrf.mxu1 }
 0x357   :  { %v5738_v1 = vpop.f32.mrf.mxu0  ;;  %v1725_v19 = vpop.f32.mrf.mxu1 }
 0x358   :  { %v5739_v13 = vadd.f32 %v5738_v1, %v5737_v16 }
 0x35a   :  { %v1724_v42 = vadd.f32 %v5739_v13, %v1723_v46 }
 0x35c   :  { %v1728_v54 = vmul.f32 0.00055555557, %v1724_v42 }
 0x35e   :  { %v1729_v18 = vmul.f32 %v1728_v54, %v1728_v54 }
 0x360   :  { %v1731_v11 = vrot.slane %v1729_v18, 7 }
 0x362   :  { %v1733_v33 = vsub.f32 %v1728_v54, %v1731_v11 }
 0x364   :  { %v1734_v45 = vadd.f32 1e-05, %v1733_v33 }
 0x366   :  { %6041 = vrsqrt.f32 %v1734_v45 }
 0x373   :  { %v6042_v52 = vpop.eup %6041 }
 0x374   :  { %v1743_v27 = vrot.slane %v6042_v52, %v7650_v55 }
 0x376   :  { %v1744_v3 = vcombine.high %v1743_v27, %v1743_v27 }
 0x378   :  { %v1751_v10 = vrot.slane %v1744_v3, %v7650_v55 }
 0x37a   :  { %v1753_v5 = vmul.f32 %v1751_v10, %v8573_v2 }
 0x37c   :  { %v1754_v38 = vmul.f32 %v1753_v5, %v1728_v54  ;;  %1757 = vst.msk [vmem:[#allocation10] sm:$0x1] %vm1756_vm7, %v1753_v5 }
 0x37e   :  { %v1755_v31 = vsub.f32 %v8574_v12, %v1754_v38 }
 0x380   :  { %1758 = vst.msk [vmem:[#allocation10 + $0x1] sm:$0x1] %vm1756_vm7, %v1755_v31 }
 0x387   :  { %v1759_v30 = vld [vmem:[#allocation10] sm:$0x3] }
 0x388   :  { %5649 = vmatmul.mubr.msk.f32.vlgmr.msra.gmra.mxu0 %vm1768_vm8, %v1759_v30 }
 0x389   :  { %1872 = vmatpush1.msra.mxu0 %v1766_v4  ;;  %1907 = vmatprep.mubr.f32.mxu0 %v7660_v25 }
 0x38a   :  { %1873 = vmatprep.subr.mxu0 %v1763_v62 }
 0x38b   :  { %1874 = vmatpush1.msra.mxu0 %v1762_v32 }
 0x38c   :  { %5650 = vmatmul.mubr.msk.f32.vlgmr.msra.gmra.mxu0 %vm1768_vm8, %v1759_v30 }
 0x38d   :  { %2139 = vmatprep.mubr.f32.mxu0 %v7660_v25 }
 0x448   :  { %v1838_v20 = vpop.f32.mrf.mxu0 }
 0x449   :  { %v7678_v24 = vrot.slane %v1838_v20, %v7672_v15  ;;  %v7681_v60 = vrot.slane %v1838_v20, %v7675_v35 }
 0x44a   :  { %v1840_v41 = vpop.f32.mrf.mxu0 }
 0x44b   :  { %v7684_v16 = vrot.slane %v1840_v41, %v7672_v15  ;;  %v7687_v46 = vrot.slane %v1840_v41, %v7675_v35  ;;  %v1958_v1 = vmul.f32 %v7678_v24, %v7634_v21  ;;  %v1954_v57 = vmul.f32 %v7678_v24, %v7621_v39 }
 0x44c   :  { %v1909_v19 = vpop.f32.mrf.mxu0  ;;  %v1950_v13 = vmul.f32 %v7678_v24, %v7603_v40  ;;  %v1946_v42 = vmul.f32 %v7678_v24, %v7589_v6  ;;  %v7699_v54 = vmul.f32 %v7678_v24, %v7575_v48  ;;  %v7703_v18 = vmul.f32 %v7678_v24, %v7565_v50 }
 0x44d   :  { %v7706_v21 = vrot.slane %v1909_v19, %v7672_v15  ;;  %v7709_v39 = vrot.slane %v1909_v19, %v7675_v35  ;;  %v1959_v40 = vmul.f32 %v7684_v16, %v7641_v63  ;;  %v2006_v11 = vadd.f32 %v7681_v60, %v1958_v1 }
 0x44e   :  { %v1911_v6 = vpop.f32.mrf.mxu0  ;;  %v1955_v48 = vmul.f32 %v7684_v16, %v7625_v37  ;;  %v2002_v33 = vadd.f32 %v7681_v60, %v1954_v57  ;;  %v1951_v50 = vmul.f32 %v7684_v16, %v7609_v0  ;;  %v1998_v45 = vadd.f32 %v7681_v60, %v1950_v13 }
 0x44f   :  { %v7721_v52 = vrot.slane %v1911_v6, %v7672_v15  ;;  %v7724_v27 = vrot.slane %v1911_v6, %v7675_v35  ;;  %v2007_v63 = vadd.f32 %v7687_v46, %v1959_v40  ;;  %v1960_v3 = vmul.f32 %v7706_v21, %v7529_v7 }
 0x450   :  { %v2038_v10 = vmax.f32 %v2006_v11, 0.0  ;;  %v2003_v37 = vadd.f32 %v7687_v46, %v1955_v48  ;;  %v1956_v2 = vmul.f32 %v7706_v21, %v7513_v56  ;;  %v2034_v0 = vmax.f32 %v2002_v33, 0.0 }
 0x451   :  { %v1961_v5 = vmul.f32 %v7721_v52, %v7521_v53  ;;  %v2039_v38 = vmax.f32 %v2007_v63, 0.0  ;;  %v2008_v12 = vadd.f32 %v7709_v39, %v1960_v3  ;;  %v1957_v31 = vmul.f32 %v7721_v52, %v7494_v14 }
 0x452   :  { %v2035_v4 = vmax.f32 %v2003_v37, 0.0  ;;  %v2004_v30 = vadd.f32 %v7709_v39, %v1956_v2  ;;  %v1953_v7 = vmul.f32 %v7721_v52, %v7481_v43  ;;  %v1999_v62 = vadd.f32 %v7687_v46, %v1951_v50 }
 0x453   :  { %v2009_v56 = vadd.f32 %v7724_v27, %v1961_v5  ;;  %v2040_v32 = vmax.f32 %v2008_v12, 0.0  ;;  %v2005_v20 = vadd.f32 %v7724_v27, %v1957_v31  ;;  %v1952_v53 = vmul.f32 %v7706_v21, %v7501_v26 }
 0x454   :  { %v2036_v41 = vmax.f32 %v2004_v30, 0.0  ;;  %v2001_v1 = vadd.f32 %v7724_v27, %v1953_v7  ;;  %v2031_v14 = vmax.f32 %v1999_v62, 0.0  ;;  %v2030_v57 = vmax.f32 %v1998_v45, 0.0 }
 0x455   :  { %v2041_v19 = vmax.f32 %v2009_v56, 0.0  ;;  %v7746_v13 = vmax.f32 %v2038_v10, %v2040_v32  ;;  %v2037_v40 = vmax.f32 %v2005_v20, 0.0  ;;  %v2000_v43 = vadd.f32 %v7709_v39, %v1952_v53 }
 0x456   :  { %v7749_v11 = vmax.f32 %v2034_v0, %v2036_v41  ;;  %v2033_v6 = vmax.f32 %v2001_v1, 0.0  ;;  %v1947_v48 = vmul.f32 %v7684_v16, %v7594_v22  ;;  %v1949_v26 = vmul.f32 %v7721_v52, %v7461_v51 }
 0x457   :  { %v7755_v33 = vmax.f32 %v2039_v38, %v2041_v19  ;;  %v7757_v50 = vmax.f32 %v2035_v4, %v2037_v40  ;;  %v2032_v45 = vmax.f32 %v2000_v43, 0.0  ;;  %v1948_v63 = vmul.f32 %v7706_v21, %v7467_v36 }
 0x458   :  { %v7761_v3 = vmax.f32 %v2031_v14, %v2033_v6  ;;  %v1995_v10 = vadd.f32 %v7687_v46, %v1947_v48  ;;  %v1997_v37 = vadd.f32 %v7724_v27, %v1949_v26  ;;  %v1994_v2 = vadd.f32 %v7681_v60, %v1946_v42 }
 0x459   :  { %2091 = vmatprep.subr.mxu0 %v7755_v33  ;;  %v7767_v22 = vmax.f32 %v2030_v57, %v2032_v45  ;;  %v1996_v51 = vadd.f32 %v7709_v39, %v1948_v63  ;;  %v1943_v0 = vmul.f32 %v7684_v16, %v7582_v8  ;;  %v1945_v36 = vmul.f32 %v7721_v52, %v7437_v23 }
 0x45a   :  { %2092 = vmatpush1.msra.mxu0 %v7746_v13  ;;  %v2027_v5 = vmax.f32 %v1995_v10, 0.0  ;;  %v2029_v38 = vmax.f32 %v1997_v37, 0.0  ;;  %v2026_v12 = vmax.f32 %v1994_v2, 0.0  ;;  %v1944_v42 = vmul.f32 %v7706_v21, %v7446_v17 }
 0x45b   :  { %2093 = vmatprep.subr.mxu0 %v7757_v50  ;;  %v2028_v31 = vmax.f32 %v1996_v51, 0.0  ;;  %v1991_v4 = vadd.f32 %v7687_v46, %v1943_v0  ;;  %v1993_v30 = vadd.f32 %v7724_v27, %v1945_v36  ;;  %v1990_v8 = vadd.f32 %v7681_v60, %v7699_v54 }
 0x45c   :  { %2094 = vmatpush1.msra.mxu0 %v7749_v11  ;;  %v7783_v23 = vmax.f32 %v2027_v5, %v2029_v38  ;;  %v1992_v7 = vadd.f32 %v7709_v39, %v1944_v42  ;;  %v1939_v62 = vmul.f32 %v7684_v16, %v7570_v9  ;;  %v1941_v17 = vmul.f32 %v7721_v52, %v7416_v59  ;;  %v8575_v38 = vld [vmem:[#allocation76_spill] sm:$0xff] }
 0x45d   :  { %2095 = vmatprep.subr.mxu0 %v7761_v3  ;;  %v7791_v56 = vmax.f32 %v2026_v12, %v2028_v31  ;;  %v2023_v32 = vmax.f32 %v1991_v4, 0.0  ;;  %v2025_v20 = vmax.f32 %v1993_v30, 0.0  ;;  %v2022_v53 = vmax.f32 %v1990_v8, 0.0 }
 0x45e   :  { %2096 = vmatpush1.msra.mxu0 %v7767_v22  ;;  %v2024_v54 = vmax.f32 %v1992_v7, 0.0  ;;  %v1987_v41 = vadd.f32 %v7687_v46, %v1939_v62  ;;  %v1989_v1 = vadd.f32 %v7724_v27, %v1941_v17  ;;  %v1940_v9 = vmul.f32 %v7706_v21, %v7414_v58  ;;  %v2058_v17 = vld [vmem:[#allocation20] sm:$0xff] }
 0x45f   :  { %2097 = vmatprep.subr.mxu0 %v7783_v23  ;;  %v7799_v59 = vmax.f32 %v2023_v32, %v2025_v20  ;;  %v1986_v14 = vadd.f32 %v7681_v60, %v7703_v18  ;;  %v1935_v57 = vmul.f32 %v7684_v16, %v7547_v28  ;;  %v1937_v19 = vmul.f32 %v7721_v52, %v7382_v29 }
 0x460   :  { %2098 = vmatpush1.msra.mxu0 %v7791_v56  ;;  %v2048_v40 = vmax.f32 %v2022_v53, %v2024_v54  ;;  %v2019_v43 = vmax.f32 %v1987_v41, 0.0  ;;  %v2021_v6 = vmax.f32 %v1989_v1, 0.0  ;;  %v1988_v58 = vadd.f32 %v7709_v39, %v1940_v9 }
 0x461   :  { %2099 = vmatprep.subr.mxu0 %v7799_v59  ;;  %v2018_v48 = vmax.f32 %v1986_v14, 0.0  ;;  %v1983_v26 = vadd.f32 %v7687_v46, %v1935_v57  ;;  %v1985_v18 = vadd.f32 %v7724_v27, %v1937_v19  ;;  %v1934_v28 = vmul.f32 %v7678_v24, %v7541_v49 }
 0x462   :  { %2100 = vmatpush1.msra.mxu0 %v2048_v40  ;;  %v2047_v45 = vmax.f32 %v2019_v43, %v2021_v6  ;;  %v2020_v29 = vmax.f32 %v1988_v58, 0.0  ;;  %v1936_v63 = vmul.f32 %v7706_v21, %v7387_v61  ;;  %v1931_v10 = vmul.f32 %v7684_v16, %v7553_v47  ;;  %v8576_v47 = vld [vmem:[#allocation89_spill] sm:$0xff] }
 0x463   :  { %v2015_v37 = vmax.f32 %v1983_v26, 0.0  ;;  %v2017_v2 = vmax.f32 %v1985_v18, 0.0  ;;  %v1982_v51 = vadd.f32 %v7681_v60, %v1934_v28  ;;  %v1933_v0 = vmul.f32 %v7721_v52, %v7380_v34 }
 0x464   :  { %2101 = vmatprep.subr.mxu0 %v2047_v45  ;;  %v2046_v36 = vmax.f32 %v2018_v48, %v2020_v29  ;;  %v1984_v49 = vadd.f32 %v7709_v39, %v1936_v63  ;;  %v1979_v5 = vadd.f32 %v7687_v46, %v1931_v10  ;;  %v1930_v12 = vmul.f32 %v7678_v24, %v8575_v38 }
 0x465   :  { %v2045_v61 = vmax.f32 %v2015_v37, %v2017_v2  ;;  %v1981_v42 = vadd.f32 %v7724_v27, %v1933_v0  ;;  %v1932_v16 = vmul.f32 %v7706_v21, %v8576_v47  ;;  %v2014_v31 = vmax.f32 %v1982_v51, 0.0  ;;  %v2060_v21 = vld [vmem:[#allocation20 + $0x10] sm:$0xff] }
 0x466   :  { %2102 = vmatpush1.msra.mxu0 %v2046_v36  ;;  %v2016_v4 = vmax.f32 %v1984_v49, 0.0  ;;  %v1978_v34 = vadd.f32 %v7681_v60, %v1930_v12  ;;  %v2011_v52 = vmax.f32 %v1979_v5, 0.0  ;;  %v2059_v60 = vld [vmem:[#allocation20 + $0x8] sm:$0xff] }
 0x467   :  { %2103 = vmatprep.subr.mxu0 %v2045_v61  ;;  %v2013_v30 = vmax.f32 %v1981_v42, 0.0  ;;  %v1980_v8 = vadd.f32 %v7709_v39, %v1932_v16  ;;  %v2061_v39 = vld [vmem:[#allocation20 + $0x18] sm:$0x3f] }
 0x468   :  { %v2044_v46 = vmax.f32 %v2014_v31, %v2016_v4  ;;  %v2010_v62 = vmax.f32 %v1978_v34, 0.0 }
 0x469   :  { %v2043_v7 = vmax.f32 %v2011_v52, %v2013_v30  ;;  %v2012_v24 = vmax.f32 %v1980_v8, 0.0 }
 0x46a   :  { %2104 = vmatpush1.msra.mxu0 %v2044_v46 }
 0x46b   :  { %2105 = vmatprep.subr.mxu0 %v2043_v7  ;;  %v2042_v27 = vmax.f32 %v2010_v62, %v2012_v24 }
 0x46d   :  { %2106 = vmatpush1.msra.mxu0 %v2042_v27 }
 0x46e   :  { %5651 = vmatmul.mubr.msk.f32.vlgmr.msra.gmra.mxu0 %vm2062_vm9, %v2058_v17  ;;  %2196 = vmatprep.subr.mxu0 %v7755_v33  ;;  %v2166_v33 = vld [vmem:[#allocation21 + $0x10] sm:$0xff] }
 0x46f   :  { %2197 = vmatpush1.msra.mxu0 %v7746_v13  ;;  %2145 = vmatprep.mubr.f32.mxu0 %v7660_v25  ;;  %v2164_v13 = vld [vmem:[#allocation21] sm:$0xff] }
 0x470   :  { %2198 = vmatprep.subr.mxu0 %v7757_v50  ;;  %v2167_v50 = vld [vmem:[#allocation21 + $0x18] sm:$0x3f] }
 0x471   :  { %2199 = vmatpush1.msra.mxu0 %v7749_v11  ;;  %v2165_v11 = vld [vmem:[#allocation21 + $0x8] sm:$0xff] }
 0x472   :  { %5652 = vmatmul.mubr.msk.f32.gmra.mxu0 %vm2062_vm9, %v2059_v60  ;;  %2200 = vmatprep.subr.mxu0 %v7761_v3 }
 0x473   :  { %2201 = vmatpush1.msra.mxu0 %v7767_v22  ;;  %2151 = vmatprep.mubr.f32.mxu0 %v7660_v25 }
 0x474   :  { %2202 = vmatprep.subr.mxu0 %v7783_v23 }
 0x475   :  { %2203 = vmatpush1.msra.mxu0 %v7791_v56 }
 0x476   :  { %5653 = vmatmul.mubr.msk.f32.gmra.mxu0 %vm2062_vm9, %v2060_v21  ;;  %2204 = vmatprep.subr.mxu0 %v7799_v59 }
 0x477   :  { %2205 = vmatpush1.msra.mxu0 %v2048_v40  ;;  %2157 = vmatprep.mubr.f32.mxu0 %v7660_v25 }
 0x478   :  { %2206 = vmatprep.subr.mxu0 %v2047_v45 }
 0x479   :  { %2207 = vmatpush1.msra.mxu0 %v2046_v36 }
 0x47a   :  { %5654 = vmatmul.mubr.msk.f32.gmra.mxu0 %vm2062_vm9, %v2061_v39  ;;  %2208 = vmatprep.subr.mxu0 %v2045_v61 }
 0x47b   :  { %2209 = vmatpush1.msra.mxu0 %v2044_v46  ;;  %2244 = vmatprep.mubr.f32.mxu0 %v7660_v25 }
 0x47c   :  { %2210 = vmatprep.subr.mxu0 %v2043_v7 }
 0x47d   :  { %2211 = vmatpush1.msra.mxu0 %v2042_v27 }
 0x47e   :  { %5655 = vmatmul.mubr.msk.f32.vlgmr.msra.gmra.mxu0 %vm2062_vm9, %v2164_v13 }
 0x47f   :  { %2250 = vmatprep.mubr.f32.mxu0 %v7660_v25 }
 0x482   :  { %5656 = vmatmul.mubr.msk.f32.gmra.mxu0 %vm2062_vm9, %v2165_v11 }
 0x483   :  { %2256 = vmatprep.mubr.f32.mxu0 %v7660_v25 }
 0x486   :  { %5657 = vmatmul.mubr.msk.f32.gmra.mxu0 %vm2062_vm9, %v2166_v33 }
 0x487   :  { %2262 = vmatprep.mubr.f32.mxu0 %v7660_v25 }
 0x48a   :  { %5658 = vmatmul.mubr.msk.f32.gmra.mxu0 %vm2062_vm9, %v2167_v50 }
 0x48b   :  { %6532 = shalt.err (!%p6529_p7)  }
 0x48c   :  { %s8577_s25 = sld [smem:[#allocation93_spill]]  ;;  %vm2335_vm10 = vcmask 1046528   ;;  %vm2354_vm11 = vcmask 1045504   ;;  %vm2306_vm12 = vcmask 913408   ;;  %vm2314_vm13 = vcmask 1040384  }
 0x492   :  { %443 = dma.hbm_to_vmem [thread:$0]  %s8577_s25, 18432, %s441_s8, [#allocation11 + $0x2] }
 0x52e   :  { %v2141_v3 = vpop.f32.mrf.mxu0 }
 0x530   :  { %v2143_v22 = vpop.f32.mrf.mxu0 }
 0x532   :  { %v2147_v25 = vpop.f32.mrf.mxu0 }
 0x534   :  { %v2149_v23 = vpop.f32.mrf.mxu0 }
 0x536   :  { %v2153_v56 = vpop.f32.mrf.mxu0 }
 0x538   :  { %v2155_v32 = vpop.f32.mrf.mxu0 }
 0x53a   :  { %v2159_v20 = vpop.f32.mrf.mxu0 }
 0x53c   :  { %v2161_v53 = vpop.f32.mrf.mxu0 }
 0x53e   :  { %v2246_v54 = vpop.f32.mrf.mxu0 }
 0x53f   :  { %v2269_v41 = vmax.f32 %v2141_v3, %v2246_v54 }
 0x540   :  { %v2248_v1 = vpop.f32.mrf.mxu0 }
 0x541   :  { %2303 = vst [vmem:[#allocation7] sm:$0xff] %v2269_v41  ;;  %v2270_v9 = vmax.f32 %v2143_v22, %v2248_v1  ;;  %v2336_v57 = vrot.slane %v2269_v41, 1  ;;  %v2355_v40 = vrot.slane %v2269_v41, 2 }
 0x542   :  { %v2252_v59 = vpop.f32.mrf.mxu0 }
 0x543   :  { %2304 = vst.msk [vmem:[#allocation7 + $0x8] sm:$0xff] %vm1337_vm5, %v2270_v9  ;;  %v2271_v14 = vmax.f32 %v2147_v25, %v2252_v59  ;;  %v2339_v26 = vrot.slane %v2270_v9, 1  ;;  %v2358_v29 = vrot.slane %v2270_v9, 2 }
 0x544   :  { %v2254_v19 = vpop.f32.mrf.mxu0 }
 0x545   :  { %2305 = vst [vmem:[#allocation7 + $0x10] sm:$0x1f] %v2271_v14  ;;  %v2337_v43 = vrot.slane %v2271_v14, 1  ;;  %v2356_v6 = vrot.slane %v2271_v14, 2  ;;  %v2272_v58 = vmax.f32 %v2149_v23, %v2254_v19  ;;  %v2315_v0 = vrot.slane %v2271_v14, 7 }
 0x546   :  { %v2258_v48 = vpop.f32.mrf.mxu0 }
 0x547   :  { %v2338_v18 = vsel %vm2335_vm10, %v2336_v57, %v2337_v43  ;;  %2348 = vst [vmem:[#allocation7 + $0x50] sm:$0x1f] %v2337_v43  ;;  %v2357_v28 = vsel %vm2354_vm11, %v2355_v40, %v2356_v6  ;;  %2367 = vst [vmem:[#allocation7 + $0x90] sm:$0x1f] %v2356_v6  ;;  %v2340_v45 = vrot.slane %v2272_v58, 1  ;;  %v2359_v63 = vrot.slane %v2272_v58, 2 }
 0x548   :  { %2307 = vst.msk [vmem:[#allocation7 + $0x18] sm:$0x1f] %vm2306_vm12, %v2272_v58  ;;  %2346 = vst [vmem:[#allocation7 + $0x40] sm:$0xff] %v2338_v18  ;;  %v2273_v10 = vmax.f32 %v2153_v56, %v2258_v48  ;;  %v2260_v37 = vpop.f32.mrf.mxu0  ;;  %v2318_v38 = vrot.slane %v2272_v58, 7 }
 0x549   :  { %2365 = vst [vmem:[#allocation7 + $0x80] sm:$0xff] %v2357_v28  ;;  %v2341_v2 = vsel %vm2335_vm10, %v2339_v26, %v2340_v45  ;;  %2349 = vst.msk [vmem:[#allocation7 + $0x58] sm:$0x1f] %vm2306_vm12, %v2340_v45  ;;  %v2274_v51 = vmax.f32 %v2155_v32, %v2260_v37  ;;  %v2360_v36 = vsel %vm2354_vm11, %v2358_v29, %v2359_v63 }
 0x54a   :  { %2347 = vst.msk [vmem:[#allocation7 + $0x48] sm:$0xff] %vm1337_vm5, %v2341_v2  ;;  %v2316_v49 = vrot.slane %v2273_v10, 7  ;;  %2350 = vst [vmem:[#allocation7 + $0x60] sm:$0xff] %v2273_v10  ;;  %v2264_v5 = vpop.f32.mrf.mxu0  ;;  %v2369_v47 = vrot.slane %v2273_v10, 1 }
 0x54b   :  { %2368 = vst.msk [vmem:[#allocation7 + $0x98] sm:$0x1f] %vm2306_vm12, %v2359_v63  ;;  %v2319_v12 = vrot.slane %v2274_v51, 7  ;;  %v2275_v61 = vmax.f32 %v2159_v20, %v2264_v5  ;;  %v2372_v30 = vrot.slane %v2274_v51, 1 }
 0x54c   :  { %2366 = vst.msk [vmem:[#allocation7 + $0x88] sm:$0xff] %vm1337_vm5, %v2360_v36  ;;  %2351 = vst.msk [vmem:[#allocation7 + $0x68] sm:$0xff] %vm1337_vm5, %v2274_v51  ;;  %v2317_v42 = vsel %vm2314_vm13, %v2315_v0, %v2316_v49  ;;  %v2266_v16 = vpop.f32.mrf.mxu0 }
 0x54d   :  { %2329 = vst [vmem:[#allocation7 + $0x20] sm:$0xff] %v2317_v42  ;;  %v2320_v31 = vsel %vm2314_vm13, %v2318_v38, %v2319_v12  ;;  %v2321_v4 = vrot.slane %v2275_v61, 7  ;;  %2352 = vst [vmem:[#allocation7 + $0x70] sm:$0x1f] %v2275_v61  ;;  %v2370_v34 = vrot.slane %v2275_v61, 1  ;;  %v2276_v52 = vmax.f32 %v2161_v53, %v2266_v16 }
 0x54e   :  { %2330 = vst.msk [vmem:[#allocation7 + $0x28] sm:$0xff] %vm1337_vm5, %v2320_v31 }
 0x54f   :  { %v2322_v8 = vsel %vm2314_vm13, %v2316_v49, %v2321_v4  ;;  %v2371_v46 = vsel %vm2335_vm10, %v2369_v47, %v2370_v34  ;;  %2381 = vst [vmem:[#allocation7 + $0xb0] sm:$0x1f] %v2370_v34  ;;  %v2323_v7 = vrot.slane %v2276_v52, 7  ;;  %2353 = vst.msk [vmem:[#allocation7 + $0x78] sm:$0x1f] %vm2306_vm12, %v2276_v52  ;;  %v2373_v62 = vrot.slane %v2276_v52, 1 }
 0x550   :  { %2331 = vst [vmem:[#allocation7 + $0x30] sm:$0x1f] %v2322_v8  ;;  %2379 = vst [vmem:[#allocation7 + $0xa0] sm:$0xff] %v2371_v46 }
 0x551   :  { %v2324_v24 = vsel %vm2314_vm13, %v2319_v12, %v2323_v7  ;;  %v2374_v27 = vsel %vm2335_vm10, %v2372_v30, %v2373_v62  ;;  %2382 = vst.msk [vmem:[#allocation7 + $0xb8] sm:$0x1f] %vm2306_vm12, %v2373_v62 }
 0x552   :  { %2332 = vst.msk [vmem:[#allocation7 + $0x38] sm:$0x1f] %vm2306_vm12, %v2324_v24 }
 0x553   :  { %2380 = vst.msk [vmem:[#allocation7 + $0xa8] sm:$0xff] %vm1337_vm5, %v2374_v27 }
 0x554   :  { %6597 = dma.done.wait [#allocation11 + $0x1], 46080 }
 0x555   :  { %6598 = vsyncadd [#allocation11 + $0x1], 4294921216  ;;  %v8578_v17 = vmov 0.0   ;;  %v7897_v60 = vld [vmem:[#allocation30] sm:$0x1]  ;;  %v2598_v13 = vld [vmem:[#allocation3 + $0x5b8] sm:$0xff] }
 0x556   :  { %4195 = vst [vmem:[#allocation8] sm:$0xff] %v8578_v17  ;;  %4196 = vst.msk [vmem:[#allocation8 + $0x8] sm:$0xff] %vm2062_vm9, %v8578_v17  ;;  %v7899_v21 = vld [vmem:[#allocation32] sm:$0x1]  ;;  %v2595_v11 = vld [vmem:[#allocation3 + $0x5a0] sm:$0xff]  ;;  %2756 = vmatprep.subr.mxu0 %v2598_v13  ;;  %vm3396_vm14 = vcmask 785408  }
 0x557   :  { %4197 = vst [vmem:[#allocation8 + $0x10] sm:$0xff] %v8578_v17  ;;  %4198 = vst.msk [vmem:[#allocation8 + $0x18] sm:$0xff] %vm2062_vm9, %v8578_v17  ;;  %v2596_v39 = vld [vmem:[#allocation3 + $0x5a8] sm:$0xff]  ;;  %v2597_v33 = vld [vmem:[#allocation3 + $0x5b0] sm:$0xff]  ;;  %vm3495_vm15 = vcmp.lt.s32.totalorder %v8572_v44, 480  ;;  %vm3766_vm1 = vcmask 253952  }
 0x558   :  { %4199 = vst [vmem:[#allocation8 + $0x20] sm:$0xff] %v8578_v17  ;;  %4200 = vst.msk [vmem:[#allocation8 + $0x28] sm:$0xff] %vm2062_vm9, %v8578_v17  ;;  %2667 = vmatprep.subr.mxu1 %v2596_v39  ;;  %v2592_v50 = vld [vmem:[#allocation3 + $0x588] sm:$0xff]  ;;  %v2594_v3 = vld [vmem:[#allocation3 + $0x598] sm:$0xff]  ;;  %2757 = vmatpush1.msra.mxu0 %v2597_v33 }
 0x559   :  { %4201 = vst [vmem:[#allocation8 + $0x30] sm:$0xff] %v8578_v17  ;;  %4202 = vst.msk [vmem:[#allocation8 + $0x38] sm:$0xff] %vm2062_vm9, %v8578_v17  ;;  %2668 = vmatpush1.msra.mxu1 %v2595_v11  ;;  %v2591_v22 = vld [vmem:[#allocation3 + $0x580] sm:$0xff]  ;;  %v2593_v25 = vld [vmem:[#allocation3 + $0x590] sm:$0xff]  ;;  %2758 = vmatprep.subr.mxu0 %v2594_v3 }
 0x55a   :  { %4203 = vst [vmem:[#allocation8 + $0x40] sm:$0xff] %v8578_v17  ;;  %4204 = vst.msk [vmem:[#allocation8 + $0x48] sm:$0xff] %vm2062_vm9, %v8578_v17  ;;  %2669 = vmatprep.subr.mxu1 %v2592_v50  ;;  %v2588_v23 = vld [vmem:[#allocation3 + $0x568] sm:$0xff]  ;;  %v2590_v56 = vld [vmem:[#allocation3 + $0x578] sm:$0xff]  ;;  %2759 = vmatpush1.msra.mxu0 %v2593_v25 }
 0x55b   :  { %4205 = vst [vmem:[#allocation8 + $0x50] sm:$0xff] %v8578_v17  ;;  %4206 = vst.msk [vmem:[#allocation8 + $0x58] sm:$0xff] %vm2062_vm9, %v8578_v17  ;;  %2670 = vmatpush1.msra.mxu1 %v2591_v22  ;;  %v2587_v32 = vld [vmem:[#allocation3 + $0x560] sm:$0xff]  ;;  %v2589_v20 = vld [vmem:[#allocation3 + $0x570] sm:$0xff]  ;;  %2760 = vmatprep.subr.mxu0 %v2590_v56 }
 0x55c   :  { %v2584_v53 = vld [vmem:[#allocation3 + $0x548] sm:$0xff]  ;;  %2671 = vmatprep.subr.mxu1 %v2588_v23  ;;  %v2586_v54 = vld [vmem:[#allocation3 + $0x558] sm:$0xff]  ;;  %v2583_v41 = vld [vmem:[#allocation3 + $0x540] sm:$0xff]  ;;  %2761 = vmatpush1.msra.mxu0 %v2589_v20 }
 0x55d   :  { %2672 = vmatpush1.msra.mxu1 %v2587_v32  ;;  %v2585_v1 = vld [vmem:[#allocation3 + $0x550] sm:$0xff]  ;;  %v2580_v9 = vld [vmem:[#allocation3 + $0x528] sm:$0xff]  ;;  %v2582_v59 = vld [vmem:[#allocation3 + $0x538] sm:$0xff]  ;;  %2762 = vmatprep.subr.mxu0 %v2586_v54 }
 0x55e   :  { %2673 = vmatprep.subr.mxu1 %v2584_v53  ;;  %v2579_v14 = vld [vmem:[#allocation3 + $0x520] sm:$0xff]  ;;  %v2581_v57 = vld [vmem:[#allocation3 + $0x530] sm:$0xff]  ;;  %v2576_v19 = vld [vmem:[#allocation3 + $0x508] sm:$0xff]  ;;  %2763 = vmatpush1.msra.mxu0 %v2585_v1 }
 0x55f   :  { %2674 = vmatpush1.msra.mxu1 %v2583_v41  ;;  %v2578_v40 = vld [vmem:[#allocation3 + $0x518] sm:$0xff]  ;;  %v2575_v43 = vld [vmem:[#allocation3 + $0x500] sm:$0xff]  ;;  %2764 = vmatprep.subr.mxu0 %v2582_v59  ;;  %v2577_v6 = vld [vmem:[#allocation3 + $0x510] sm:$0xff] }
 0x560   :  { %2675 = vmatprep.subr.mxu1 %v2580_v9  ;;  %v2572_v58 = vld [vmem:[#allocation3 + $0x4e8] sm:$0xff]  ;;  %2765 = vmatpush1.msra.mxu0 %v2581_v57  ;;  %v2574_v48 = vld [vmem:[#allocation3 + $0x4f8] sm:$0xff]  ;;  %v2571_v26 = vld [vmem:[#allocation3 + $0x4e0] sm:$0xff] }
 0x561   :  { %2676 = vmatpush1.msra.mxu1 %v2579_v14  ;;  %2766 = vmatprep.subr.mxu0 %v2578_v40  ;;  %v2573_v18 = vld [vmem:[#allocation3 + $0x4f0] sm:$0xff]  ;;  %v2568_v28 = vld [vmem:[#allocation3 + $0x4c8] sm:$0xff]  ;;  %v2570_v45 = vld [vmem:[#allocation3 + $0x4d8] sm:$0xff] }
 0x562   :  { %2677 = vmatprep.subr.mxu1 %v2576_v19  ;;  %2767 = vmatpush1.msra.mxu0 %v2577_v6  ;;  %v2567_v29 = vld [vmem:[#allocation3 + $0x4c0] sm:$0xff]  ;;  %v2569_v63 = vld [vmem:[#allocation3 + $0x4d0] sm:$0xff]  ;;  %v2564_v10 = vld [vmem:[#allocation3 + $0x4a8] sm:$0xff] }
 0x563   :  { %2678 = vmatpush1.msra.mxu1 %v2575_v43  ;;  %2768 = vmatprep.subr.mxu0 %v2574_v48  ;;  %v2566_v37 = vld [vmem:[#allocation3 + $0x4b8] sm:$0xff]  ;;  %v2563_v2 = vld [vmem:[#allocation3 + $0x4a0] sm:$0xff]  ;;  %v2565_v51 = vld [vmem:[#allocation3 + $0x4b0] sm:$0xff] }
 0x564   :  { %2679 = vmatprep.subr.mxu1 %v2572_v58  ;;  %2769 = vmatpush1.msra.mxu0 %v2573_v18  ;;  %v2560_v0 = vld [vmem:[#allocation3 + $0x488] sm:$0xff]  ;;  %v2562_v36 = vld [vmem:[#allocation3 + $0x498] sm:$0xff]  ;;  %v2559_v49 = vld [vmem:[#allocation3 + $0x480] sm:$0xff] }
 0x565   :  { %2680 = vmatpush1.msra.mxu1 %v2571_v26  ;;  %2770 = vmatprep.subr.mxu0 %v2570_v45  ;;  %v2561_v5 = vld [vmem:[#allocation3 + $0x490] sm:$0xff]  ;;  %v2556_v38 = vld [vmem:[#allocation3 + $0x468] sm:$0xff]  ;;  %v2558_v12 = vld [vmem:[#allocation3 + $0x478] sm:$0xff] }
 0x566   :  { %2681 = vmatprep.subr.mxu1 %v2568_v28  ;;  %2771 = vmatpush1.msra.mxu0 %v2569_v63  ;;  %v2555_v61 = vld [vmem:[#allocation3 + $0x460] sm:$0xff]  ;;  %v2557_v42 = vld [vmem:[#allocation3 + $0x470] sm:$0xff]  ;;  %v2552_v47 = vld [vmem:[#allocation3 + $0x448] sm:$0xff] }
 0x567   :  { %2682 = vmatpush1.msra.mxu1 %v2567_v29  ;;  %2772 = vmatprep.subr.mxu0 %v2566_v37  ;;  %v2554_v16 = vld [vmem:[#allocation3 + $0x458] sm:$0xff]  ;;  %v2551_v31 = vld [vmem:[#allocation3 + $0x440] sm:$0xff]  ;;  %v2553_v4 = vld [vmem:[#allocation3 + $0x450] sm:$0xff] }
 0x568   :  { %2683 = vmatprep.subr.mxu1 %v2564_v10  ;;  %2773 = vmatpush1.msra.mxu0 %v2565_v51  ;;  %v2548_v34 = vld [vmem:[#allocation3 + $0x428] sm:$0xff]  ;;  %v2550_v52 = vld [vmem:[#allocation3 + $0x438] sm:$0xff]  ;;  %v2547_v30 = vld [vmem:[#allocation3 + $0x420] sm:$0xff] }
 0x569   :  { %2684 = vmatpush1.msra.mxu1 %v2563_v2  ;;  %2774 = vmatprep.subr.mxu0 %v2562_v36  ;;  %v2549_v8 = vld [vmem:[#allocation3 + $0x430] sm:$0xff]  ;;  %v2544_v46 = vld [vmem:[#allocation3 + $0x408] sm:$0xff]  ;;  %v2546_v7 = vld [vmem:[#allocation3 + $0x418] sm:$0xff] }
 0x56a   :  { %2685 = vmatprep.subr.mxu1 %v2560_v0  ;;  %2775 = vmatpush1.msra.mxu0 %v2561_v5  ;;  %v2543_v62 = vld [vmem:[#allocation3 + $0x400] sm:$0xff]  ;;  %v2545_v24 = vld [vmem:[#allocation3 + $0x410] sm:$0xff]  ;;  %v2540_v27 = vld [vmem:[#allocation3 + $0x3e8] sm:$0xff] }
 0x56b   :  { %2686 = vmatpush1.msra.mxu1 %v2559_v49  ;;  %2776 = vmatprep.subr.mxu0 %v2558_v12  ;;  %v2542_v39 = vld [vmem:[#allocation3 + $0x3f8] sm:$0xff]  ;;  %v2539_v13 = vld [vmem:[#allocation3 + $0x3e0] sm:$0xff]  ;;  %v2541_v11 = vld [vmem:[#allocation3 + $0x3f0] sm:$0xff] }
 0x56c   :  { %2687 = vmatprep.subr.mxu1 %v2556_v38  ;;  %2777 = vmatpush1.msra.mxu0 %v2557_v42  ;;  %v2536_v33 = vld [vmem:[#allocation3 + $0x3c8] sm:$0xff]  ;;  %v2538_v50 = vld [vmem:[#allocation3 + $0x3d8] sm:$0xff]  ;;  %v2535_v3 = vld [vmem:[#allocation3 + $0x3c0] sm:$0xff] }
 0x56d   :  { %2688 = vmatpush1.msra.mxu1 %v2555_v61  ;;  %2778 = vmatprep.subr.mxu0 %v2554_v16  ;;  %v2537_v22 = vld [vmem:[#allocation3 + $0x3d0] sm:$0xff]  ;;  %v2652_v25 = vld [vmem:[#allocation3 + $0x768] sm:$0xff]  ;;  %v2654_v23 = vld [vmem:[#allocation3 + $0x778] sm:$0xff] }
 0x56e   :  { %2689 = vmatprep.subr.mxu1 %v2552_v47  ;;  %2779 = vmatpush1.msra.mxu0 %v2553_v4  ;;  %v2651_v56 = vld [vmem:[#allocation3 + $0x760] sm:$0xff]  ;;  %v2653_v32 = vld [vmem:[#allocation3 + $0x770] sm:$0xff]  ;;  %v2648_v20 = vld [vmem:[#allocation3 + $0x748] sm:$0xff] }
 0x56f   :  { %2690 = vmatpush1.msra.mxu1 %v2551_v31  ;;  %2780 = vmatprep.subr.mxu0 %v2550_v52  ;;  %v2650_v53 = vld [vmem:[#allocation3 + $0x758] sm:$0xff]  ;;  %v2647_v54 = vld [vmem:[#allocation3 + $0x740] sm:$0xff]  ;;  %v2649_v41 = vld [vmem:[#allocation3 + $0x750] sm:$0xff] }
 0x570   :  { %2691 = vmatprep.subr.mxu1 %v2548_v34  ;;  %2781 = vmatpush1.msra.mxu0 %v2549_v8  ;;  %v2644_v1 = vld [vmem:[#allocation3 + $0x728] sm:$0xff]  ;;  %v2646_v9 = vld [vmem:[#allocation3 + $0x738] sm:$0xff]  ;;  %v2643_v59 = vld [vmem:[#allocation3 + $0x720] sm:$0xff] }
 0x571   :  { %2692 = vmatpush1.msra.mxu1 %v2547_v30  ;;  %2782 = vmatprep.subr.mxu0 %v2546_v7  ;;  %v2645_v14 = vld [vmem:[#allocation3 + $0x730] sm:$0xff]  ;;  %v2640_v57 = vld [vmem:[#allocation3 + $0x708] sm:$0xff]  ;;  %v2642_v19 = vld [vmem:[#allocation3 + $0x718] sm:$0xff] }
 0x572   :  { %2693 = vmatprep.subr.mxu1 %v2544_v46  ;;  %2783 = vmatpush1.msra.mxu0 %v2545_v24  ;;  %v2639_v40 = vld [vmem:[#allocation3 + $0x700] sm:$0xff]  ;;  %v2641_v43 = vld [vmem:[#allocation3 + $0x710] sm:$0xff]  ;;  %v2636_v6 = vld [vmem:[#allocation3 + $0x6e8] sm:$0xff] }
 0x573   :  { %2694 = vmatpush1.msra.mxu1 %v2543_v62  ;;  %2784 = vmatprep.subr.mxu0 %v2542_v39  ;;  %v2638_v58 = vld [vmem:[#allocation3 + $0x6f8] sm:$0xff]  ;;  %v2635_v48 = vld [vmem:[#allocation3 + $0x6e0] sm:$0xff]  ;;  %v2637_v26 = vld [vmem:[#allocation3 + $0x6f0] sm:$0xff] }
 0x574   :  { %2695 = vmatprep.subr.mxu1 %v2540_v27  ;;  %2785 = vmatpush1.msra.mxu0 %v2541_v11  ;;  %v2632_v18 = vld [vmem:[#allocation3 + $0x6c8] sm:$0xff]  ;;  %v2634_v28 = vld [vmem:[#allocation3 + $0x6d8] sm:$0xff]  ;;  %v2631_v45 = vld [vmem:[#allocation3 + $0x6c0] sm:$0xff] }
 0x575   :  { %2696 = vmatpush1.msra.mxu1 %v2539_v13  ;;  %2786 = vmatprep.subr.mxu0 %v2538_v50  ;;  %v2633_v29 = vld [vmem:[#allocation3 + $0x6d0] sm:$0xff]  ;;  %v2628_v63 = vld [vmem:[#allocation3 + $0x6a8] sm:$0xff]  ;;  %v2630_v10 = vld [vmem:[#allocation3 + $0x6b8] sm:$0xff] }
 0x576   :  { %2697 = vmatprep.subr.mxu1 %v2536_v33  ;;  %2787 = vmatpush1.msra.mxu0 %v2537_v22  ;;  %v2627_v37 = vld [vmem:[#allocation3 + $0x6a0] sm:$0xff]  ;;  %v2629_v2 = vld [vmem:[#allocation3 + $0x6b0] sm:$0xff]  ;;  %v2624_v51 = vld [vmem:[#allocation3 + $0x688] sm:$0xff] }
 0x577   :  { %2698 = vmatpush1.msra.mxu1 %v2535_v3  ;;  %2792 = vmatprep.subr.mxu0 %v2654_v23  ;;  %v2626_v0 = vld [vmem:[#allocation3 + $0x698] sm:$0xff]  ;;  %v2623_v36 = vld [vmem:[#allocation3 + $0x680] sm:$0xff]  ;;  %v2625_v49 = vld [vmem:[#allocation3 + $0x690] sm:$0xff] }
 0x578   :  { %2703 = vmatprep.subr.mxu1 %v2652_v25  ;;  %2793 = vmatpush2.msra.mxu0 %v2653_v32  ;;  %v2620_v5 = vld [vmem:[#allocation3 + $0x668] sm:$0xff]  ;;  %v2622_v38 = vld [vmem:[#allocation3 + $0x678] sm:$0xff]  ;;  %v2619_v12 = vld [vmem:[#allocation3 + $0x660] sm:$0xff] }
 0x579   :  { %2704 = vmatpush2.msra.mxu1 %v2651_v56  ;;  %2794 = vmatprep.subr.mxu0 %v2650_v53  ;;  %v2621_v61 = vld [vmem:[#allocation3 + $0x670] sm:$0xff]  ;;  %v2616_v42 = vld [vmem:[#allocation3 + $0x648] sm:$0xff]  ;;  %v2618_v47 = vld [vmem:[#allocation3 + $0x658] sm:$0xff] }
 0x57a   :  { %2705 = vmatprep.subr.mxu1 %v2648_v20  ;;  %2795 = vmatpush2.msra.mxu0 %v2649_v41  ;;  %v2615_v16 = vld [vmem:[#allocation3 + $0x640] sm:$0xff]  ;;  %v2617_v31 = vld [vmem:[#allocation3 + $0x650] sm:$0xff]  ;;  %v2612_v4 = vld [vmem:[#allocation3 + $0x628] sm:$0xff] }
 0x57b   :  { %2706 = vmatpush2.msra.mxu1 %v2647_v54  ;;  %2796 = vmatprep.subr.mxu0 %v2646_v9  ;;  %v2614_v34 = vld [vmem:[#allocation3 + $0x638] sm:$0xff]  ;;  %v2611_v52 = vld [vmem:[#allocation3 + $0x620] sm:$0xff]  ;;  %v2613_v30 = vld [vmem:[#allocation3 + $0x630] sm:$0xff] }
 0x57c   :  { %2707 = vmatprep.subr.mxu1 %v2644_v1  ;;  %2797 = vmatpush2.msra.mxu0 %v2645_v14  ;;  %v2608_v8 = vld [vmem:[#allocation3 + $0x608] sm:$0xff]  ;;  %v2610_v46 = vld [vmem:[#allocation3 + $0x618] sm:$0xff]  ;;  %v2607_v7 = vld [vmem:[#allocation3 + $0x600] sm:$0xff] }
 0x57d   :  { %2708 = vmatpush2.msra.mxu1 %v2643_v59  ;;  %2798 = vmatprep.subr.mxu0 %v2642_v19  ;;  %v2609_v62 = vld [vmem:[#allocation3 + $0x610] sm:$0xff]  ;;  %v2604_v24 = vld [vmem:[#allocation3 + $0x5e8] sm:$0xff]  ;;  %v2606_v27 = vld [vmem:[#allocation3 + $0x5f8] sm:$0xff] }
 0x57e   :  { %2709 = vmatprep.subr.mxu1 %v2640_v57  ;;  %2799 = vmatpush2.msra.mxu0 %v2641_v43  ;;  %v2603_v39 = vld [vmem:[#allocation3 + $0x5e0] sm:$0xff]  ;;  %v2605_v13 = vld [vmem:[#allocation3 + $0x5f0] sm:$0xff]  ;;  %v2600_v11 = vld [vmem:[#allocation3 + $0x5c8] sm:$0xff] }
 0x57f   :  { %2710 = vmatpush2.msra.mxu1 %v2639_v40  ;;  %2800 = vmatprep.subr.mxu0 %v2638_v58  ;;  %v2602_v33 = vld [vmem:[#allocation3 + $0x5d8] sm:$0xff]  ;;  %v2599_v50 = vld [vmem:[#allocation3 + $0x5c0] sm:$0xff]  ;;  %v2528_v3 = vld [vmem:[#allocation7 + $0x48] sm:$0xff] }
 0x580   :  { %2711 = vmatprep.subr.mxu1 %v2636_v6  ;;  %2801 = vmatpush2.msra.mxu0 %v2637_v26  ;;  %v2601_v22 = vld [vmem:[#allocation3 + $0x5d0] sm:$0xff]  ;;  %v2527_v25 = vld [vmem:[#allocation7 + $0x40] sm:$0xff]  ;;  %v2468_v23 = vld [vmem:[#allocation3 + $0x1e8] sm:$0xff] }
 0x581   :  { %2712 = vmatpush2.msra.mxu1 %v2635_v48  ;;  %2802 = vmatprep.subr.mxu0 %v2634_v28  ;;  %v2470_v56 = vld [vmem:[#allocation3 + $0x1f8] sm:$0xff]  ;;  %v2467_v32 = vld [vmem:[#allocation3 + $0x1e0] sm:$0xff]  ;;  %v2469_v20 = vld [vmem:[#allocation3 + $0x1f0] sm:$0xff] }
 0x582   :  { %2713 = vmatprep.subr.mxu1 %v2632_v18  ;;  %2803 = vmatpush2.msra.mxu0 %v2633_v29  ;;  %v2464_v53 = vld [vmem:[#allocation3 + $0x1c8] sm:$0xff]  ;;  %v2466_v54 = vld [vmem:[#allocation3 + $0x1d8] sm:$0xff]  ;;  %v2463_v41 = vld [vmem:[#allocation3 + $0x1c0] sm:$0xff] }
 0x583   :  { %2714 = vmatpush2.msra.mxu1 %v2631_v45  ;;  %2804 = vmatprep.subr.mxu0 %v2630_v10  ;;  %v2465_v1 = vld [vmem:[#allocation3 + $0x1d0] sm:$0xff]  ;;  %v2460_v9 = vld [vmem:[#allocation3 + $0x1a8] sm:$0xff]  ;;  %v2462_v59 = vld [vmem:[#allocation3 + $0x1b8] sm:$0xff] }
 0x584   :  { %2715 = vmatprep.subr.mxu1 %v2628_v63  ;;  %2805 = vmatpush2.msra.mxu0 %v2629_v2  ;;  %v2459_v14 = vld [vmem:[#allocation3 + $0x1a0] sm:$0xff]  ;;  %v2461_v57 = vld [vmem:[#allocation3 + $0x1b0] sm:$0xff]  ;;  %v2456_v19 = vld [vmem:[#allocation3 + $0x188] sm:$0xff] }
 0x585   :  { %2716 = vmatpush2.msra.mxu1 %v2627_v37  ;;  %2806 = vmatprep.subr.mxu0 %v2626_v0  ;;  %v2458_v40 = vld [vmem:[#allocation3 + $0x198] sm:$0xff]  ;;  %v2455_v43 = vld [vmem:[#allocation3 + $0x180] sm:$0xff]  ;;  %v2457_v6 = vld [vmem:[#allocation3 + $0x190] sm:$0xff] }
 0x586   :  { %2717 = vmatprep.subr.mxu1 %v2624_v51  ;;  %2807 = vmatpush2.msra.mxu0 %v2625_v49  ;;  %v2452_v58 = vld [vmem:[#allocation3 + $0x168] sm:$0xff]  ;;  %v2454_v48 = vld [vmem:[#allocation3 + $0x178] sm:$0xff]  ;;  %v2451_v26 = vld [vmem:[#allocation3 + $0x160] sm:$0xff] }
 0x587   :  { %2718 = vmatpush2.msra.mxu1 %v2623_v36  ;;  %2808 = vmatprep.subr.mxu0 %v2622_v38  ;;  %v2453_v18 = vld [vmem:[#allocation3 + $0x170] sm:$0xff]  ;;  %v2448_v28 = vld [vmem:[#allocation3 + $0x148] sm:$0xff]  ;;  %v2450_v45 = vld [vmem:[#allocation3 + $0x158] sm:$0xff] }
 0x588   :  { %2719 = vmatprep.subr.mxu1 %v2620_v5  ;;  %2809 = vmatpush2.msra.mxu0 %v2621_v61  ;;  %v2447_v29 = vld [vmem:[#allocation3 + $0x140] sm:$0xff]  ;;  %v2449_v63 = vld [vmem:[#allocation3 + $0x150] sm:$0xff]  ;;  %v2444_v10 = vld [vmem:[#allocation3 + $0x128] sm:$0xff] }
 0x589   :  { %2720 = vmatpush2.msra.mxu1 %v2619_v12  ;;  %2810 = vmatprep.subr.mxu0 %v2618_v47  ;;  %v2446_v37 = vld [vmem:[#allocation3 + $0x138] sm:$0xff]  ;;  %v2443_v2 = vld [vmem:[#allocation3 + $0x120] sm:$0xff]  ;;  %v2445_v51 = vld [vmem:[#allocation3 + $0x130] sm:$0xff] }
 0x58a   :  { %2721 = vmatprep.subr.mxu1 %v2616_v42  ;;  %2811 = vmatpush2.msra.mxu0 %v2617_v31  ;;  %v2440_v0 = vld [vmem:[#allocation3 + $0x108] sm:$0xff]  ;;  %v2442_v36 = vld [vmem:[#allocation3 + $0x118] sm:$0xff]  ;;  %v2439_v49 = vld [vmem:[#allocation3 + $0x100] sm:$0xff] }
 0x58b   :  { %2722 = vmatpush2.msra.mxu1 %v2615_v16  ;;  %2812 = vmatprep.subr.mxu0 %v2614_v34  ;;  %v2441_v5 = vld [vmem:[#allocation3 + $0x110] sm:$0xff]  ;;  %v2436_v38 = vld [vmem:[#allocation3 + $0xe8] sm:$0xff]  ;;  %v2438_v12 = vld [vmem:[#allocation3 + $0xf8] sm:$0xff] }
 0x58c   :  { %2723 = vmatprep.subr.mxu1 %v2612_v4  ;;  %2813 = vmatpush2.msra.mxu0 %v2613_v30  ;;  %v2435_v61 = vld [vmem:[#allocation3 + $0xe0] sm:$0xff]  ;;  %v2437_v42 = vld [vmem:[#allocation3 + $0xf0] sm:$0xff]  ;;  %v2432_v47 = vld [vmem:[#allocation3 + $0xc8] sm:$0xff] }
 0x58d   :  { %2724 = vmatpush2.msra.mxu1 %v2611_v52  ;;  %2814 = vmatprep.subr.mxu0 %v2610_v46  ;;  %v2434_v16 = vld [vmem:[#allocation3 + $0xd8] sm:$0xff]  ;;  %v2431_v31 = vld [vmem:[#allocation3 + $0xc0] sm:$0xff]  ;;  %v2433_v4 = vld [vmem:[#allocation3 + $0xd0] sm:$0xff] }
 0x58e   :  { %2725 = vmatprep.subr.mxu1 %v2608_v8  ;;  %2815 = vmatpush2.msra.mxu0 %v2609_v62  ;;  %v2428_v34 = vld [vmem:[#allocation3 + $0xa8] sm:$0xff]  ;;  %v2430_v52 = vld [vmem:[#allocation3 + $0xb8] sm:$0xff]  ;;  %v2427_v30 = vld [vmem:[#allocation3 + $0xa0] sm:$0xff] }
 0x58f   :  { %2726 = vmatpush2.msra.mxu1 %v2607_v7  ;;  %2816 = vmatprep.subr.mxu0 %v2606_v27  ;;  %v2429_v8 = vld [vmem:[#allocation3 + $0xb0] sm:$0xff]  ;;  %v2424_v46 = vld [vmem:[#allocation3 + $0x88] sm:$0xff]  ;;  %v2426_v7 = vld [vmem:[#allocation3 + $0x98] sm:$0xff] }
 0x590   :  { %2727 = vmatprep.subr.mxu1 %v2604_v24  ;;  %2817 = vmatpush2.msra.mxu0 %v2605_v13  ;;  %v2423_v62 = vld [vmem:[#allocation3 + $0x80] sm:$0xff]  ;;  %v2425_v24 = vld [vmem:[#allocation3 + $0x90] sm:$0xff]  ;;  %v2420_v27 = vld [vmem:[#allocation3 + $0x68] sm:$0xff] }
 0x591   :  { %2728 = vmatpush2.msra.mxu1 %v2603_v39  ;;  %2818 = vmatprep.subr.mxu0 %v2602_v33  ;;  %v2422_v39 = vld [vmem:[#allocation3 + $0x78] sm:$0xff]  ;;  %v2419_v13 = vld [vmem:[#allocation3 + $0x60] sm:$0xff]  ;;  %v2416_v33 = vld [vmem:[#allocation3 + $0x48] sm:$0xff] }
 0x592   :  { %2729 = vmatprep.subr.mxu1 %v2600_v11  ;;  %5659 = vmatprep.mubr.msk.f32.mxu1 %vm1337_vm5, %v2528_v3  ;;  %v2421_v11 = vld [vmem:[#allocation3 + $0x70] sm:$0xff] }
 0x593   :  { %2730 = vmatpush2.msra.mxu1 %v2599_v50  ;;  %2819 = vmatpush2.msra.mxu0 %v2601_v22  ;;  %v2418_v50 = vld [vmem:[#allocation3 + $0x58] sm:$0xff]  ;;  %v2417_v22 = vld [vmem:[#allocation3 + $0x50] sm:$0xff] }
 0x594   :  { %5663 = vmatprep.mubr.msk.f32.mxu0 %vm1337_vm5, %v2528_v3  ;;  %2732 = vmatmul.mubr.f32.vlgmr.msra.gmra.mxu1 %v2527_v25  ;;  %v2415_v3 = vld [vmem:[#allocation3 + $0x40] sm:$0xff] }
 0x595   :  { %2821 = vmatmul.mubr.f32.vlgmr.msra.gmra.mxu0 %v2527_v25  ;;  %2857 = vmatprep.subr.mxu1 %v2468_v23  ;;  %v2412_v25 = vld [vmem:[#allocation3 + $0x28] sm:$0xff]  ;;  %v2414_v23 = vld [vmem:[#allocation3 + $0x38] sm:$0xff] }
 0x596   :  { %2946 = vmatprep.subr.mxu0 %v2470_v56  ;;  %2858 = vmatpush1.msra.mxu1 %v2467_v32  ;;  %v2411_v56 = vld [vmem:[#allocation3 + $0x20] sm:$0xff]  ;;  %v2413_v32 = vld [vmem:[#allocation3 + $0x30] sm:$0xff] }
 0x597   :  { %2947 = vmatpush1.msra.mxu0 %v2469_v20  ;;  %2859 = vmatprep.subr.mxu1 %v2464_v53  ;;  %v2408_v20 = vld [vmem:[#allocation3 + $0x8] sm:$0xff]  ;;  %v2410_v53 = vld [vmem:[#allocation3 + $0x18] sm:$0xff] }
 0x598   :  { %2948 = vmatprep.subr.mxu0 %v2466_v54  ;;  %2860 = vmatpush1.msra.mxu1 %v2463_v41  ;;  %v2407_v54 = vld [vmem:[#allocation3] sm:$0xff]  ;;  %v2409_v41 = vld [vmem:[#allocation3 + $0x10] sm:$0xff] }
 0x599   :  { %2949 = vmatpush1.msra.mxu0 %v2465_v1  ;;  %2861 = vmatprep.subr.mxu1 %v2460_v9  ;;  %v2524_v1 = vld [vmem:[#allocation3 + $0x3a8] sm:$0xff]  ;;  %v2526_v9 = vld [vmem:[#allocation3 + $0x3b8] sm:$0xff] }
 0x59a   :  { %2950 = vmatprep.subr.mxu0 %v2462_v59  ;;  %2862 = vmatpush1.msra.mxu1 %v2459_v14  ;;  %v2523_v59 = vld [vmem:[#allocation3 + $0x3a0] sm:$0xff]  ;;  %v2525_v14 = vld [vmem:[#allocation3 + $0x3b0] sm:$0xff] }
 0x59b   :  { %2951 = vmatpush1.msra.mxu0 %v2461_v57  ;;  %2863 = vmatprep.subr.mxu1 %v2456_v19  ;;  %v2520_v57 = vld [vmem:[#allocation3 + $0x388] sm:$0xff]  ;;  %v2522_v19 = vld [vmem:[#allocation3 + $0x398] sm:$0xff] }
 0x59c   :  { %2952 = vmatprep.subr.mxu0 %v2458_v40  ;;  %2864 = vmatpush1.msra.mxu1 %v2455_v43  ;;  %v2519_v40 = vld [vmem:[#allocation3 + $0x380] sm:$0xff]  ;;  %v2521_v43 = vld [vmem:[#allocation3 + $0x390] sm:$0xff] }
 0x59d   :  { %2953 = vmatpush1.msra.mxu0 %v2457_v6  ;;  %2865 = vmatprep.subr.mxu1 %v2452_v58  ;;  %v2516_v6 = vld [vmem:[#allocation3 + $0x368] sm:$0xff]  ;;  %v2518_v58 = vld [vmem:[#allocation3 + $0x378] sm:$0xff] }
 0x59e   :  { %2954 = vmatprep.subr.mxu0 %v2454_v48  ;;  %2866 = vmatpush1.msra.mxu1 %v2451_v26  ;;  %v2515_v48 = vld [vmem:[#allocation3 + $0x360] sm:$0xff]  ;;  %v2517_v26 = vld [vmem:[#allocation3 + $0x370] sm:$0xff] }
 0x59f   :  { %2955 = vmatpush1.msra.mxu0 %v2453_v18  ;;  %2867 = vmatprep.subr.mxu1 %v2448_v28  ;;  %v2512_v18 = vld [vmem:[#allocation3 + $0x348] sm:$0xff]  ;;  %v2514_v28 = vld [vmem:[#allocation3 + $0x358] sm:$0xff] }
 0x5a0   :  { %2956 = vmatprep.subr.mxu0 %v2450_v45  ;;  %2868 = vmatpush1.msra.mxu1 %v2447_v29  ;;  %v2511_v45 = vld [vmem:[#allocation3 + $0x340] sm:$0xff]  ;;  %v2513_v29 = vld [vmem:[#allocation3 + $0x350] sm:$0xff] }
 0x5a1   :  { %2957 = vmatpush1.msra.mxu0 %v2449_v63  ;;  %2869 = vmatprep.subr.mxu1 %v2444_v10  ;;  %v2508_v63 = vld [vmem:[#allocation3 + $0x328] sm:$0xff]  ;;  %v2510_v10 = vld [vmem:[#allocation3 + $0x338] sm:$0xff] }
 0x5a2   :  { %2958 = vmatprep.subr.mxu0 %v2446_v37  ;;  %2870 = vmatpush1.msra.mxu1 %v2443_v2  ;;  %v2507_v37 = vld [vmem:[#allocation3 + $0x320] sm:$0xff]  ;;  %v2509_v2 = vld [vmem:[#allocation3 + $0x330] sm:$0xff] }
 0x5a3   :  { %2959 = vmatpush1.msra.mxu0 %v2445_v51  ;;  %2871 = vmatprep.subr.mxu1 %v2440_v0  ;;  %v2504_v51 = vld [vmem:[#allocation3 + $0x308] sm:$0xff]  ;;  %v2506_v0 = vld [vmem:[#allocation3 + $0x318] sm:$0xff] }
 0x5a4   :  { %2960 = vmatprep.subr.mxu0 %v2442_v36  ;;  %2872 = vmatpush1.msra.mxu1 %v2439_v49  ;;  %v2503_v36 = vld [vmem:[#allocation3 + $0x300] sm:$0xff]  ;;  %v2505_v49 = vld [vmem:[#allocation3 + $0x310] sm:$0xff] }
 0x5a5   :  { %2961 = vmatpush1.msra.mxu0 %v2441_v5  ;;  %2873 = vmatprep.subr.mxu1 %v2436_v38  ;;  %v2500_v5 = vld [vmem:[#allocation3 + $0x2e8] sm:$0xff]  ;;  %v2502_v38 = vld [vmem:[#allocation3 + $0x2f8] sm:$0xff] }
 0x5a6   :  { %2962 = vmatprep.subr.mxu0 %v2438_v12  ;;  %2874 = vmatpush1.msra.mxu1 %v2435_v61  ;;  %v2499_v12 = vld [vmem:[#allocation3 + $0x2e0] sm:$0xff]  ;;  %v2501_v61 = vld [vmem:[#allocation3 + $0x2f0] sm:$0xff] }
 0x5a7   :  { %2963 = vmatpush1.msra.mxu0 %v2437_v42  ;;  %2875 = vmatprep.subr.mxu1 %v2432_v47  ;;  %v2530_v42 = vld [vmem:[#allocation7 + $0x58] sm:$0xff]  ;;  %v2496_v47 = vld [vmem:[#allocation3 + $0x2c8] sm:$0xff] }
 0x5a8   :  { %2964 = vmatprep.subr.mxu0 %v2434_v16  ;;  %2876 = vmatpush1.msra.mxu1 %v2431_v31  ;;  %v2498_v16 = vld [vmem:[#allocation3 + $0x2d8] sm:$0xff]  ;;  %v2529_v31 = vld [vmem:[#allocation7 + $0x50] sm:$0xff] }
 0x5a9   :  { %2965 = vmatpush1.msra.mxu0 %v2433_v4  ;;  %2877 = vmatprep.subr.mxu1 %v2428_v34  ;;  %v2495_v4 = vld [vmem:[#allocation3 + $0x2c0] sm:$0xff]  ;;  %v2497_v34 = vld [vmem:[#allocation3 + $0x2d0] sm:$0xff] }
 0x5aa   :  { %2966 = vmatprep.subr.mxu0 %v2430_v52  ;;  %2878 = vmatpush1.msra.mxu1 %v2427_v30  ;;  %v2492_v52 = vld [vmem:[#allocation3 + $0x2a8] sm:$0xff]  ;;  %v2494_v30 = vld [vmem:[#allocation3 + $0x2b8] sm:$0xff] }
 0x5ab   :  { %2967 = vmatpush1.msra.mxu0 %v2429_v8  ;;  %2879 = vmatprep.subr.mxu1 %v2424_v46  ;;  %v2491_v8 = vld [vmem:[#allocation3 + $0x2a0] sm:$0xff]  ;;  %v2493_v46 = vld [vmem:[#allocation3 + $0x2b0] sm:$0xff] }
 0x5ac   :  { %2968 = vmatprep.subr.mxu0 %v2426_v7  ;;  %2880 = vmatpush1.msra.mxu1 %v2423_v62  ;;  %v2532_v7 = vld [vmem:[#allocation7 + $0x68] sm:$0xff] }
 0x5ad   :  { %2969 = vmatpush1.msra.mxu0 %v2425_v24  ;;  %2881 = vmatprep.subr.mxu1 %v2420_v27  ;;  %v2488_v62 = vld [vmem:[#allocation3 + $0x288] sm:$0xff]  ;;  %v2490_v24 = vld [vmem:[#allocation3 + $0x298] sm:$0xff]  ;;  %v2531_v27 = vld [vmem:[#allocation7 + $0x60] sm:$0xff] }
 0x5ae   :  { %2970 = vmatprep.subr.mxu0 %v2422_v39  ;;  %2882 = vmatpush1.msra.mxu1 %v2419_v13  ;;  %v2487_v39 = vld [vmem:[#allocation3 + $0x280] sm:$0xff]  ;;  %v2489_v13 = vld [vmem:[#allocation3 + $0x290] sm:$0xff] }
 0x5af   :  { %2971 = vmatpush1.msra.mxu0 %v2421_v11  ;;  %2883 = vmatprep.subr.mxu1 %v2416_v33  ;;  %v2484_v11 = vld [vmem:[#allocation3 + $0x268] sm:$0xff]  ;;  %v2486_v33 = vld [vmem:[#allocation3 + $0x278] sm:$0xff] }
 0x5b0   :  { %2972 = vmatprep.subr.mxu0 %v2418_v50  ;;  %2884 = vmatpush1.msra.mxu1 %v2415_v3  ;;  %v2483_v50 = vld [vmem:[#allocation3 + $0x260] sm:$0xff]  ;;  %v2485_v3 = vld [vmem:[#allocation3 + $0x270] sm:$0xff] }
 0x5b1   :  { %2973 = vmatpush1.msra.mxu0 %v2417_v22  ;;  %2885 = vmatprep.subr.mxu1 %v2412_v25  ;;  %v2534_v22 = vld [vmem:[#allocation7 + $0x78] sm:$0xff]  ;;  %v2480_v25 = vld [vmem:[#allocation3 + $0x248] sm:$0xff] }
 0x5b2   :  { %2974 = vmatprep.subr.mxu0 %v2414_v23  ;;  %2886 = vmatpush1.msra.mxu1 %v2411_v56  ;;  %v2482_v23 = vld [vmem:[#allocation3 + $0x258] sm:$0xff]  ;;  %v2533_v56 = vld [vmem:[#allocation7 + $0x70] sm:$0xff] }
 0x5b3   :  { %2975 = vmatpush1.msra.mxu0 %v2413_v32  ;;  %2887 = vmatprep.subr.mxu1 %v2408_v20  ;;  %v2479_v32 = vld [vmem:[#allocation3 + $0x240] sm:$0xff]  ;;  %v2481_v20 = vld [vmem:[#allocation3 + $0x250] sm:$0xff] }
 0x5b4   :  { %2976 = vmatprep.subr.mxu0 %v2410_v53  ;;  %2888 = vmatpush1.msra.mxu1 %v2407_v54  ;;  %v2476_v53 = vld [vmem:[#allocation3 + $0x228] sm:$0xff]  ;;  %v2478_v54 = vld [vmem:[#allocation3 + $0x238] sm:$0xff] }
 0x5b5   :  { %2977 = vmatpush1.msra.mxu0 %v2409_v41  ;;  %2893 = vmatprep.subr.mxu1 %v2524_v1  ;;  %v2475_v41 = vld [vmem:[#allocation3 + $0x220] sm:$0xff]  ;;  %v2477_v1 = vld [vmem:[#allocation3 + $0x230] sm:$0xff] }
 0x5b6   :  { %2982 = vmatprep.subr.mxu0 %v2526_v9  ;;  %2894 = vmatpush2.msra.mxu1 %v2523_v59  ;;  %v2472_v9 = vld [vmem:[#allocation3 + $0x208] sm:$0xff]  ;;  %v2474_v59 = vld [vmem:[#allocation3 + $0x218] sm:$0xff] }
 0x5b7   :  { %2983 = vmatpush2.msra.mxu0 %v2525_v14  ;;  %2895 = vmatprep.subr.mxu1 %v2520_v57  ;;  %v2471_v14 = vld [vmem:[#allocation3 + $0x200] sm:$0xff]  ;;  %v2400_v57 = vld [vmem:[#allocation7 + $0x8] sm:$0xff] }
 0x5b8   :  { %2984 = vmatprep.subr.mxu0 %v2522_v19  ;;  %2896 = vmatpush2.msra.mxu1 %v2519_v40  ;;  %v2473_v19 = vld [vmem:[#allocation3 + $0x210] sm:$0xff]  ;;  %v2399_v40 = vld [vmem:[#allocation7] sm:$0xff] }
 0x5b9   :  { %2985 = vmatpush2.msra.mxu0 %v2521_v43  ;;  %2897 = vmatprep.subr.mxu1 %v2516_v6  ;;  %v3104_v43 = vld [vmem:[#allocation3 + $0x968] sm:$0xff]  ;;  %v3106_v6 = vld [vmem:[#allocation3 + $0x978] sm:$0xff] }
 0x5ba   :  { %2986 = vmatprep.subr.mxu0 %v2518_v58  ;;  %2898 = vmatpush2.msra.mxu1 %v2515_v48  ;;  %v3103_v58 = vld [vmem:[#allocation3 + $0x960] sm:$0xff]  ;;  %v3105_v48 = vld [vmem:[#allocation3 + $0x970] sm:$0xff] }
 0x5bb   :  { %2987 = vmatpush2.msra.mxu0 %v2517_v26  ;;  %2899 = vmatprep.subr.mxu1 %v2512_v18  ;;  %v3100_v26 = vld [vmem:[#allocation3 + $0x948] sm:$0xff]  ;;  %v3102_v18 = vld [vmem:[#allocation3 + $0x958] sm:$0xff] }
 0x5bc   :  { %2988 = vmatprep.subr.mxu0 %v2514_v28  ;;  %2900 = vmatpush2.msra.mxu1 %v2511_v45  ;;  %v2402_v28 = vld [vmem:[#allocation7 + $0x18] sm:$0xff]  ;;  %v3099_v45 = vld [vmem:[#allocation3 + $0x940] sm:$0xff] }
 0x5bd   :  { %2989 = vmatpush2.msra.mxu0 %v2513_v29  ;;  %2901 = vmatprep.subr.mxu1 %v2508_v63  ;;  %v3101_v29 = vld [vmem:[#allocation3 + $0x950] sm:$0xff] }
 0x5be   :  { %2990 = vmatprep.subr.mxu0 %v2510_v10  ;;  %2902 = vmatpush2.msra.mxu1 %v2507_v37  ;;  %v2401_v63 = vld [vmem:[#allocation7 + $0x10] sm:$0xff]  ;;  %v3096_v10 = vld [vmem:[#allocation3 + $0x928] sm:$0xff]  ;;  %v3098_v37 = vld [vmem:[#allocation3 + $0x938] sm:$0xff] }
 0x5bf   :  { %2991 = vmatpush2.msra.mxu0 %v2509_v2  ;;  %2903 = vmatprep.subr.mxu1 %v2504_v51  ;;  %v3095_v2 = vld [vmem:[#allocation3 + $0x920] sm:$0xff]  ;;  %v3097_v51 = vld [vmem:[#allocation3 + $0x930] sm:$0xff] }
 0x5c0   :  { %2992 = vmatprep.subr.mxu0 %v2506_v0  ;;  %2904 = vmatpush2.msra.mxu1 %v2503_v36  ;;  %v3092_v0 = vld [vmem:[#allocation3 + $0x908] sm:$0xff]  ;;  %v3094_v36 = vld [vmem:[#allocation3 + $0x918] sm:$0xff] }
 0x5c1   :  { %2993 = vmatpush2.msra.mxu0 %v2505_v49  ;;  %2905 = vmatprep.subr.mxu1 %v2500_v5  ;;  %v2404_v49 = vld [vmem:[#allocation7 + $0x28] sm:$0xff]  ;;  %v3091_v5 = vld [vmem:[#allocation3 + $0x900] sm:$0xff] }
 0x5c2   :  { %2994 = vmatprep.subr.mxu0 %v2502_v38  ;;  %2906 = vmatpush2.msra.mxu1 %v2499_v12  ;;  %v3093_v38 = vld [vmem:[#allocation3 + $0x910] sm:$0xff]  ;;  %v2403_v12 = vld [vmem:[#allocation7 + $0x20] sm:$0xff] }
 0x5c3   :  { %2995 = vmatpush2.msra.mxu0 %v2501_v61  ;;  %5664 = vmatprep.mubr.msk.f32.mxu0 %vm1337_vm5, %v2530_v42  ;;  %v3088_v61 = vld [vmem:[#allocation3 + $0x8e8] sm:$0xff] }
 0x5c4   :  { %2907 = vmatprep.subr.mxu1 %v2496_v47  ;;  %2996 = vmatprep.subr.mxu0 %v2498_v16  ;;  %v3087_v47 = vld [vmem:[#allocation3 + $0x8e0] sm:$0xff]  ;;  %v3089_v16 = vld [vmem:[#allocation3 + $0x8f0] sm:$0xff] }
 0x5c5   :  { %5660 = vmatprep.mubr.msk.f32.mxu1 %vm1337_vm5, %v2530_v42  ;;  %2827 = vmatmul.mubr.f32.gmra.mxu0 %v2529_v31  ;;  %v3090_v42 = vld [vmem:[#allocation3 + $0x8f8] sm:$0xff] }
 0x5c6   :  { %2908 = vmatpush2.msra.mxu1 %v2495_v4  ;;  %2997 = vmatpush2.msra.mxu0 %v2497_v34  ;;  %v3086_v4 = vld [vmem:[#allocation3 + $0x8d8] sm:$0xff] }
 0x5c7   :  { %2738 = vmatmul.mubr.f32.gmra.mxu1 %v2529_v31  ;;  %2909 = vmatprep.subr.mxu1 %v2492_v52  ;;  %v3084_v31 = vld [vmem:[#allocation3 + $0x8c8] sm:$0xff]  ;;  %v2406_v34 = vld [vmem:[#allocation7 + $0x38] sm:$0xff]  ;;  %v3083_v52 = vld [vmem:[#allocation3 + $0x8c0] sm:$0xff] }
 0x5c8   :  { %2998 = vmatprep.subr.mxu0 %v2494_v30  ;;  %2910 = vmatpush2.msra.mxu1 %v2491_v8  ;;  %v3085_v30 = vld [vmem:[#allocation3 + $0x8d0] sm:$0xff] }
 0x5c9   :  { %2999 = vmatpush2.msra.mxu0 %v2493_v46  ;;  %5665 = vmatprep.mubr.msk.f32.mxu0 %vm1337_vm5, %v2532_v7  ;;  %v2405_v8 = vld [vmem:[#allocation7 + $0x30] sm:$0xff]  ;;  %v3080_v46 = vld [vmem:[#allocation3 + $0x8a8] sm:$0xff] }
 0x5ca   :  { %2911 = vmatprep.subr.mxu1 %v2488_v62  ;;  %3000 = vmatprep.subr.mxu0 %v2490_v24  ;;  %v3079_v62 = vld [vmem:[#allocation3 + $0x8a0] sm:$0xff]  ;;  %v3081_v24 = vld [vmem:[#allocation3 + $0x8b0] sm:$0xff] }
 0x5cb   :  { %5661 = vmatprep.mubr.msk.f32.mxu1 %vm1337_vm5, %v2532_v7  ;;  %2833 = vmatmul.mubr.f32.gmra.mxu0 %v2531_v27  ;;  %v3082_v7 = vld [vmem:[#allocation3 + $0x8b8] sm:$0xff] }
 0x5cc   :  { %2912 = vmatpush2.msra.mxu1 %v2487_v39  ;;  %3001 = vmatpush2.msra.mxu0 %v2489_v13  ;;  %v3078_v39 = vld [vmem:[#allocation3 + $0x898] sm:$0xff]  ;;  %v3075_v13 = vld [vmem:[#allocation3 + $0x880] sm:$0xff] }
 0x5cd   :  { %2744 = vmatmul.mubr.f32.gmra.mxu1 %v2531_v27  ;;  %2913 = vmatprep.subr.mxu1 %v2484_v11  ;;  %v3076_v27 = vld [vmem:[#allocation3 + $0x888] sm:$0xff]  ;;  %v3077_v11 = vld [vmem:[#allocation3 + $0x890] sm:$0xff] }
 0x5ce   :  { %3002 = vmatprep.subr.mxu0 %v2486_v33  ;;  %2914 = vmatpush2.msra.mxu1 %v2483_v50  ;;  %v3072_v33 = vld [vmem:[#allocation3 + $0x868] sm:$0xff]  ;;  %v3074_v50 = vld [vmem:[#allocation3 + $0x878] sm:$0xff] }
 0x5cf   :  { %3003 = vmatpush2.msra.mxu0 %v2485_v3  ;;  %5666 = vmatprep.mubr.msk.f32.mxu0 %vm1337_vm5, %v2534_v22  ;;  %v3071_v3 = vld [vmem:[#allocation3 + $0x860] sm:$0xff] }
 0x5d0   :  { %2915 = vmatprep.subr.mxu1 %v2480_v25  ;;  %3004 = vmatprep.subr.mxu0 %v2482_v23  ;;  %v3068_v25 = vld [vmem:[#allocation3 + $0x848] sm:$0xff]  ;;  %v3070_v23 = vld [vmem:[#allocation3 + $0x858] sm:$0xff] }
 0x5d1   :  { %5662 = vmatprep.mubr.msk.f32.mxu1 %vm1337_vm5, %v2534_v22  ;;  %2839 = vmatmul.mubr.f32.gmra.mxu0 %v2533_v56  ;;  %v3073_v22 = vld [vmem:[#allocation3 + $0x870] sm:$0xff] }
 0x5d2   :  { %2916 = vmatpush2.msra.mxu1 %v2479_v32  ;;  %3005 = vmatpush2.msra.mxu0 %v2481_v20  ;;  %v3069_v32 = vld [vmem:[#allocation3 + $0x850] sm:$0xff]  ;;  %v3064_v20 = vld [vmem:[#allocation3 + $0x828] sm:$0xff] }
 0x5d3   :  { %2750 = vmatmul.mubr.f32.gmra.mxu1 %v2533_v56  ;;  %2917 = vmatprep.subr.mxu1 %v2476_v53  ;;  %v3067_v56 = vld [vmem:[#allocation3 + $0x840] sm:$0xff]  ;;  %v3066_v53 = vld [vmem:[#allocation3 + $0x838] sm:$0xff] }
 0x5d4   :  { %3006 = vmatprep.subr.mxu0 %v2478_v54  ;;  %2918 = vmatpush2.msra.mxu1 %v2475_v41  ;;  %v3063_v54 = vld [vmem:[#allocation3 + $0x820] sm:$0xff]  ;;  %v3065_v41 = vld [vmem:[#allocation3 + $0x830] sm:$0xff] }
 0x5d5   :  { %3007 = vmatpush2.msra.mxu0 %v2477_v1  ;;  %2919 = vmatprep.subr.mxu1 %v2472_v9  ;;  %v3060_v1 = vld [vmem:[#allocation3 + $0x808] sm:$0xff]  ;;  %v3062_v9 = vld [vmem:[#allocation3 + $0x818] sm:$0xff] }
 0x5d6   :  { %3008 = vmatprep.subr.mxu0 %v2474_v59  ;;  %2920 = vmatpush2.msra.mxu1 %v2471_v14  ;;  %v3059_v59 = vld [vmem:[#allocation3 + $0x800] sm:$0xff]  ;;  %v3061_v14 = vld [vmem:[#allocation3 + $0x810] sm:$0xff] }
 0x5d7   :  { %5667 = vmatprep.mubr.msk.f32.mxu1 %vm1337_vm5, %v2400_v57  ;;  %3009 = vmatpush2.msra.mxu0 %v2473_v19  ;;  %v3058_v19 = vld [vmem:[#allocation3 + $0x7f8] sm:$0xff] }
 0x5d8   :  { %5671 = vmatprep.mubr.msk.f32.mxu0 %vm1337_vm5, %v2400_v57  ;;  %2922 = vmatmul.mubr.f32.vlgmr.msra.gmra.mxu1 %v2399_v40  ;;  %v3056_v57 = vld [vmem:[#allocation3 + $0x7e8] sm:$0xff] }
 0x5d9   :  { %3011 = vmatmul.mubr.f32.vlgmr.msra.gmra.mxu0 %v2399_v40  ;;  %3175 = vmatprep.subr.mxu1 %v3104_v43  ;;  %v3055_v40 = vld [vmem:[#allocation3 + $0x7e0] sm:$0xff]  ;;  %v3057_v43 = vld [vmem:[#allocation3 + $0x7f0] sm:$0xff] }
 0x5da   :  { %3264 = vmatprep.subr.mxu0 %v3106_v6  ;;  %3176 = vmatpush1.msra.mxu1 %v3103_v58  ;;  %v3052_v6 = vld [vmem:[#allocation3 + $0x7c8] sm:$0xff]  ;;  %v3054_v58 = vld [vmem:[#allocation3 + $0x7d8] sm:$0xff] }
 0x5db   :  { %3265 = vmatpush1.msra.mxu0 %v3105_v48  ;;  %3177 = vmatprep.subr.mxu1 %v3100_v26  ;;  %v3051_v48 = vld [vmem:[#allocation3 + $0x7c0] sm:$0xff]  ;;  %v3053_v26 = vld [vmem:[#allocation3 + $0x7d0] sm:$0xff] }
 0x5dc   :  { %3266 = vmatprep.subr.mxu0 %v3102_v18  ;;  %5668 = vmatprep.mubr.msk.f32.mxu1 %vm1337_vm5, %v2402_v28  ;;  %v3048_v18 = vld [vmem:[#allocation3 + $0x7a8] sm:$0xff] }
 0x5dd   :  { %5672 = vmatprep.mubr.msk.f32.mxu0 %vm1337_vm5, %v2402_v28  ;;  %3178 = vmatpush1.msra.mxu1 %v3099_v45  ;;  %v3050_v28 = vld [vmem:[#allocation3 + $0x7b8] sm:$0xff]  ;;  %v3047_v45 = vld [vmem:[#allocation3 + $0x7a0] sm:$0xff] }
 0x5de   :  { %3267 = vmatpush1.msra.mxu0 %v3101_v29  ;;  %2928 = vmatmul.mubr.f32.gmra.mxu1 %v2401_v63  ;;  %v3049_v29 = vld [vmem:[#allocation3 + $0x7b0] sm:$0xff] }
 0x5df   :  { %3017 = vmatmul.mubr.f32.gmra.mxu0 %v2401_v63  ;;  %3179 = vmatprep.subr.mxu1 %v3096_v10  ;;  %v3044_v63 = vld [vmem:[#allocation3 + $0x788] sm:$0xff]  ;;  %v3046_v10 = vld [vmem:[#allocation3 + $0x798] sm:$0xff] }
 0x5e0   :  { %3268 = vmatprep.subr.mxu0 %v3098_v37  ;;  %3180 = vmatpush1.msra.mxu1 %v3095_v2  ;;  %v3043_v37 = vld [vmem:[#allocation3 + $0x780] sm:$0xff]  ;;  %v3045_v2 = vld [vmem:[#allocation3 + $0x790] sm:$0xff] }
 0x5e1   :  { %3269 = vmatpush1.msra.mxu0 %v3097_v51  ;;  %3181 = vmatprep.subr.mxu1 %v3092_v0  ;;  %v3160_v51 = vld [vmem:[#allocation3 + $0xb28] sm:$0xff]  ;;  %v3162_v0 = vld [vmem:[#allocation3 + $0xb38] sm:$0xff] }
 0x5e2   :  { %3270 = vmatprep.subr.mxu0 %v3094_v36  ;;  %5669 = vmatprep.mubr.msk.f32.mxu1 %vm1337_vm5, %v2404_v49  ;;  %v3159_v36 = vld [vmem:[#allocation3 + $0xb20] sm:$0xff] }
 0x5e3   :  { %5673 = vmatprep.mubr.msk.f32.mxu0 %vm1337_vm5, %v2404_v49  ;;  %3182 = vmatpush1.msra.mxu1 %v3091_v5  ;;  %v3161_v49 = vld [vmem:[#allocation3 + $0xb30] sm:$0xff]  ;;  %v3156_v5 = vld [vmem:[#allocation3 + $0xb08] sm:$0xff] }
 0x5e4   :  { %3271 = vmatpush1.msra.mxu0 %v3093_v38  ;;  %2934 = vmatmul.mubr.f32.gmra.mxu1 %v2403_v12  ;;  %v3158_v38 = vld [vmem:[#allocation3 + $0xb18] sm:$0xff] }
 0x5e5   :  { %3023 = vmatmul.mubr.f32.gmra.mxu0 %v2403_v12  ;;  %3183 = vmatprep.subr.mxu1 %v3088_v61  ;;  %v3155_v12 = vld [vmem:[#allocation3 + $0xb00] sm:$0xff]  ;;  %v3157_v61 = vld [vmem:[#allocation3 + $0xb10] sm:$0xff] }
 0x5e6   :  { %3272 = vmatprep.subr.mxu0 %v3090_v42  ;;  %3184 = vmatpush1.msra.mxu1 %v3087_v47  ;;  %v3152_v42 = vld [vmem:[#allocation3 + $0xae8] sm:$0xff]  ;;  %v3154_v47 = vld [vmem:[#allocation3 + $0xaf8] sm:$0xff] }
 0x5e7   :  { %3273 = vmatpush1.msra.mxu0 %v3089_v16  ;;  %3185 = vmatprep.subr.mxu1 %v3084_v31  ;;  %v3151_v16 = vld [vmem:[#allocation3 + $0xae0] sm:$0xff]  ;;  %v3153_v31 = vld [vmem:[#allocation3 + $0xaf0] sm:$0xff] }
 0x5e8   :  { %3274 = vmatprep.subr.mxu0 %v3086_v4  ;;  %5670 = vmatprep.mubr.msk.f32.mxu1 %vm1337_vm5, %v2406_v34  ;;  %v3148_v4 = vld [vmem:[#allocation3 + $0xac8] sm:$0xff] }
 0x5e9   :  { %5674 = vmatprep.mubr.msk.f32.mxu0 %vm1337_vm5, %v2406_v34  ;;  %3186 = vmatpush1.msra.mxu1 %v3083_v52  ;;  %v3150_v34 = vld [vmem:[#allocation3 + $0xad8] sm:$0xff]  ;;  %v3147_v52 = vld [vmem:[#allocation3 + $0xac0] sm:$0xff] }
 0x5ea   :  { %3275 = vmatpush1.msra.mxu0 %v3085_v30  ;;  %2940 = vmatmul.mubr.f32.gmra.mxu1 %v2405_v8  ;;  %v3149_v30 = vld [vmem:[#allocation3 + $0xad0] sm:$0xff] }
 0x5eb   :  { %3029 = vmatmul.mubr.f32.gmra.mxu0 %v2405_v8  ;;  %3187 = vmatprep.subr.mxu1 %v3080_v46  ;;  %v3144_v8 = vld [vmem:[#allocation3 + $0xaa8] sm:$0xff]  ;;  %v3146_v46 = vld [vmem:[#allocation3 + $0xab8] sm:$0xff] }
 0x5ec   :  { %3276 = vmatprep.subr.mxu0 %v3082_v7  ;;  %3188 = vmatpush1.msra.mxu1 %v3079_v62  ;;  %v3143_v7 = vld [vmem:[#allocation3 + $0xaa0] sm:$0xff]  ;;  %v3145_v62 = vld [vmem:[#allocation3 + $0xab0] sm:$0xff] }
 0x5ed   :  { %3277 = vmatpush1.msra.mxu0 %v3081_v24  ;;  %3189 = vmatprep.subr.mxu1 %v3076_v27  ;;  %v3140_v24 = vld [vmem:[#allocation3 + $0xa88] sm:$0xff]  ;;  %v3142_v27 = vld [vmem:[#allocation3 + $0xa98] sm:$0xff] }
 0x5ee   :  { %3278 = vmatprep.subr.mxu0 %v3078_v39  ;;  %3190 = vmatpush1.msra.mxu1 %v3075_v13  ;;  %v3139_v39 = vld [vmem:[#allocation3 + $0xa80] sm:$0xff]  ;;  %v3141_v13 = vld [vmem:[#allocation3 + $0xa90] sm:$0xff] }
 0x5ef   :  { %3279 = vmatpush1.msra.mxu0 %v3077_v11  ;;  %3191 = vmatprep.subr.mxu1 %v3072_v33  ;;  %v3136_v11 = vld [vmem:[#allocation3 + $0xa68] sm:$0xff]  ;;  %v3138_v33 = vld [vmem:[#allocation3 + $0xa78] sm:$0xff] }
 0x5f0   :  { %3280 = vmatprep.subr.mxu0 %v3074_v50  ;;  %3192 = vmatpush1.msra.mxu1 %v3071_v3  ;;  %v3135_v50 = vld [vmem:[#allocation3 + $0xa60] sm:$0xff]  ;;  %v3137_v3 = vld [vmem:[#allocation3 + $0xa70] sm:$0xff] }
 0x5f1   :  { %3281 = vmatpush1.msra.mxu0 %v3073_v22  ;;  %3193 = vmatprep.subr.mxu1 %v3068_v25  ;;  %v3132_v22 = vld [vmem:[#allocation3 + $0xa48] sm:$0xff]  ;;  %v3134_v25 = vld [vmem:[#allocation3 + $0xa58] sm:$0xff] }
 0x5f2   :  { %3282 = vmatprep.subr.mxu0 %v3070_v23  ;;  %3194 = vmatpush1.msra.mxu1 %v3067_v56  ;;  %v3131_v23 = vld [vmem:[#allocation3 + $0xa40] sm:$0xff]  ;;  %v3133_v56 = vld [vmem:[#allocation3 + $0xa50] sm:$0xff] }
 0x5f3   :  { %3283 = vmatpush1.msra.mxu0 %v3069_v32  ;;  %3195 = vmatprep.subr.mxu1 %v3064_v20  ;;  %v3128_v32 = vld [vmem:[#allocation3 + $0xa28] sm:$0xff]  ;;  %v3130_v20 = vld [vmem:[#allocation3 + $0xa38] sm:$0xff] }
 0x5f4   :  { %3284 = vmatprep.subr.mxu0 %v3066_v53  ;;  %3196 = vmatpush1.msra.mxu1 %v3063_v54  ;;  %v3127_v53 = vld [vmem:[#allocation3 + $0xa20] sm:$0xff]  ;;  %v3129_v54 = vld [vmem:[#allocation3 + $0xa30] sm:$0xff] }
 0x5f5   :  { %3285 = vmatpush1.msra.mxu0 %v3065_v41  ;;  %3197 = vmatprep.subr.mxu1 %v3060_v1  ;;  %v3124_v41 = vld [vmem:[#allocation3 + $0xa08] sm:$0xff]  ;;  %v3126_v1 = vld [vmem:[#allocation3 + $0xa18] sm:$0xff] }
 0x5f6   :  { %3286 = vmatprep.subr.mxu0 %v3062_v9  ;;  %3198 = vmatpush1.msra.mxu1 %v3059_v59  ;;  %v3123_v9 = vld [vmem:[#allocation3 + $0xa00] sm:$0xff]  ;;  %v3125_v59 = vld [vmem:[#allocation3 + $0xa10] sm:$0xff] }
 0x5f7   :  { %3287 = vmatpush1.msra.mxu0 %v3061_v14  ;;  %3199 = vmatprep.subr.mxu1 %v3056_v57  ;;  %v3120_v14 = vld [vmem:[#allocation3 + $0x9e8] sm:$0xff]  ;;  %v3122_v57 = vld [vmem:[#allocation3 + $0x9f8] sm:$0xff] }
 0x5f8   :  { %3288 = vmatprep.subr.mxu0 %v3058_v19  ;;  %3200 = vmatpush1.msra.mxu1 %v3055_v40  ;;  %v3119_v19 = vld [vmem:[#allocation3 + $0x9e0] sm:$0xff]  ;;  %v3121_v40 = vld [vmem:[#allocation3 + $0x9f0] sm:$0xff] }
 0x5f9   :  { %3289 = vmatpush1.msra.mxu0 %v3057_v43  ;;  %3201 = vmatprep.subr.mxu1 %v3052_v6  ;;  %v3116_v43 = vld [vmem:[#allocation3 + $0x9c8] sm:$0xff]  ;;  %v3118_v6 = vld [vmem:[#allocation3 + $0x9d8] sm:$0xff] }
 0x5fa   :  { %3290 = vmatprep.subr.mxu0 %v3054_v58  ;;  %3202 = vmatpush1.msra.mxu1 %v3051_v48  ;;  %v3115_v58 = vld [vmem:[#allocation3 + $0x9c0] sm:$0xff]  ;;  %v3117_v48 = vld [vmem:[#allocation3 + $0x9d0] sm:$0xff] }
 0x5fb   :  { %3291 = vmatpush1.msra.mxu0 %v3053_v26  ;;  %3203 = vmatprep.subr.mxu1 %v3048_v18  ;;  %v3112_v26 = vld [vmem:[#allocation3 + $0x9a8] sm:$0xff]  ;;  %v3114_v18 = vld [vmem:[#allocation3 + $0x9b8] sm:$0xff] }
 0x5fc   :  { %3292 = vmatprep.subr.mxu0 %v3050_v28  ;;  %3204 = vmatpush1.msra.mxu1 %v3047_v45  ;;  %v3111_v28 = vld [vmem:[#allocation3 + $0x9a0] sm:$0xff]  ;;  %v3113_v45 = vld [vmem:[#allocation3 + $0x9b0] sm:$0xff] }
 0x5fd   :  { %3293 = vmatpush1.msra.mxu0 %v3049_v29  ;;  %3205 = vmatprep.subr.mxu1 %v3044_v63  ;;  %v3108_v29 = vld [vmem:[#allocation3 + $0x988] sm:$0xff]  ;;  %v3110_v63 = vld [vmem:[#allocation3 + $0x998] sm:$0xff] }
 0x5fe   :  { %3294 = vmatprep.subr.mxu0 %v3046_v10  ;;  %3206 = vmatpush1.msra.mxu1 %v3043_v37  ;;  %v3107_v10 = vld [vmem:[#allocation3 + $0x980] sm:$0xff]  ;;  %v3036_v37 = vld [vmem:[#allocation7 + $0x88] sm:$0xff] }
 0x5ff   :  { %3295 = vmatpush1.msra.mxu0 %v3045_v2  ;;  %3211 = vmatprep.subr.mxu1 %v3160_v51  ;;  %v3109_v2 = vld [vmem:[#allocation3 + $0x990] sm:$0xff]  ;;  %v3035_v51 = vld [vmem:[#allocation7 + $0x80] sm:$0xff] }
 0x600   :  { %3300 = vmatprep.subr.mxu0 %v3162_v0  ;;  %3212 = vmatpush2.msra.mxu1 %v3159_v36  ;;  %v3038_v0 = vld [vmem:[#allocation7 + $0x98] sm:$0xff]  ;;  %v3037_v36 = vld [vmem:[#allocation7 + $0x90] sm:$0xff] }
 0x601   :  { %3301 = vmatpush2.msra.mxu0 %v3161_v49  ;;  %3213 = vmatprep.subr.mxu1 %v3156_v5  ;;  %v3040_v49 = vld [vmem:[#allocation7 + $0xa8] sm:$0xff]  ;;  %v7921_v5 = vld [vmem:[#allocation8] sm:$0xff] }
 0x602   :  { %3302 = vmatprep.subr.mxu0 %v3158_v38  ;;  %3214 = vmatpush2.msra.mxu1 %v3155_v12  ;;  %v3039_v38 = vld [vmem:[#allocation7 + $0xa0] sm:$0xff]  ;;  %v3042_v12 = vld [vmem:[#allocation7 + $0xb8] sm:$0xff] }
 0x603   :  { %3303 = vmatpush2.msra.mxu0 %v3157_v61  ;;  %3215 = vmatprep.subr.mxu1 %v3152_v42  ;;  %v3041_v61 = vld [vmem:[#allocation7 + $0xb0] sm:$0xff]  ;;  %v3581_v42 = vld [vmem:[%s8488_s13 + $0x178] sm:$0xff] }
 0x604   :  { %3304 = vmatprep.subr.mxu0 %v3154_v47  ;;  %3216 = vmatpush2.msra.mxu1 %v3151_v16  ;;  %v3580_v47 = vld [vmem:[%s8488_s13 + $0x170] sm:$0xff]  ;;  %v3579_v16 = vld [vmem:[%s8488_s13 + $0x168] sm:$0xff] }
 0x605   :  { %3305 = vmatpush2.msra.mxu0 %v3153_v31  ;;  %3217 = vmatprep.subr.mxu1 %v3148_v4  ;;  %v3578_v31 = vld [vmem:[%s8488_s13 + $0x160] sm:$0xff]  ;;  %v3577_v4 = vld [vmem:[%s8488_s13 + $0x158] sm:$0xff] }
 0x606   :  { %3306 = vmatprep.subr.mxu0 %v3150_v34  ;;  %3218 = vmatpush2.msra.mxu1 %v3147_v52  ;;  %v3576_v34 = vld [vmem:[%s8488_s13 + $0x150] sm:$0xff]  ;;  %v3575_v52 = vld [vmem:[%s8488_s13 + $0x148] sm:$0xff] }
 0x607   :  { %3307 = vmatpush2.msra.mxu0 %v3149_v30  ;;  %3219 = vmatprep.subr.mxu1 %v3144_v8  ;;  %v3574_v30 = vld [vmem:[%s8488_s13 + $0x140] sm:$0xff]  ;;  %v3573_v8 = vld [vmem:[%s8488_s13 + $0x138] sm:$0xff] }
 0x608   :  { %3308 = vmatprep.subr.mxu0 %v3146_v46  ;;  %3220 = vmatpush2.msra.mxu1 %v3143_v7  ;;  %v3572_v46 = vld [vmem:[%s8488_s13 + $0x130] sm:$0xff]  ;;  %v3571_v7 = vld [vmem:[%s8488_s13 + $0x128] sm:$0xff] }
 0x609   :  { %3309 = vmatpush2.msra.mxu0 %v3145_v62  ;;  %3221 = vmatprep.subr.mxu1 %v3140_v24  ;;  %v3570_v62 = vld [vmem:[%s8488_s13 + $0x120] sm:$0xff]  ;;  %v3565_v24 = vld [vmem:[%s8488_s13 + $0xf8] sm:$0xff] }
 0x60a   :  { %3310 = vmatprep.subr.mxu0 %v3142_v27  ;;  %3222 = vmatpush2.msra.mxu1 %v3139_v39  ;;  %v3549_v27 = vld [vmem:[%s8488_s13 + $0x78] sm:$0xff] }
 0x60b   :  { %3311 = vmatpush2.msra.mxu0 %v3141_v13  ;;  %3223 = vmatprep.subr.mxu1 %v3136_v11  ;;  %v3569_v39 = vld [vmem:[%s8488_s13 + $0x118] sm:$0xff]  ;;  %v3564_v13 = vld [vmem:[%s8488_s13 + $0xf0] sm:$0xff] }
 0x60c   :  { %3312 = vmatprep.subr.mxu0 %v3138_v33  ;;  %3224 = vmatpush2.msra.mxu1 %v3135_v50  ;;  %v3548_v11 = vld [vmem:[%s8488_s13 + $0x70] sm:$0xff]  ;;  %v3563_v50 = vld [vmem:[%s8488_s13 + $0xe8] sm:$0xff] }
 0x60d   :  { %3313 = vmatpush2.msra.mxu0 %v3137_v3  ;;  %3225 = vmatprep.subr.mxu1 %v3132_v22  ;;  %v3568_v33 = vld [vmem:[%s8488_s13 + $0x110] sm:$0xff]  ;;  %v3547_v3 = vld [vmem:[%s8488_s13 + $0x68] sm:$0xff] }
 0x60e   :  { %3314 = vmatprep.subr.mxu0 %v3134_v25  ;;  %3226 = vmatpush2.msra.mxu1 %v3131_v23  ;;  %v3567_v22 = vld [vmem:[%s8488_s13 + $0x108] sm:$0xff]  ;;  %v3562_v25 = vld [vmem:[%s8488_s13 + $0xe0] sm:$0xff] }
 0x60f   :  { %3315 = vmatpush2.msra.mxu0 %v3133_v56  ;;  %3227 = vmatprep.subr.mxu1 %v3128_v32  ;;  %v3546_v23 = vld [vmem:[%s8488_s13 + $0x60] sm:$0xff]  ;;  %v3561_v32 = vld [vmem:[%s8488_s13 + $0xd8] sm:$0xff] }
 0x610   :  { %3316 = vmatprep.subr.mxu0 %v3130_v20  ;;  %3228 = vmatpush2.msra.mxu1 %v3127_v53  ;;  %v3566_v56 = vld [vmem:[%s8488_s13 + $0x100] sm:$0xff]  ;;  %v3545_v20 = vld [vmem:[%s8488_s13 + $0x58] sm:$0xff] }
 0x611   :  { %3317 = vmatpush2.msra.mxu0 %v3129_v54  ;;  %3229 = vmatprep.subr.mxu1 %v3124_v41  ;;  %v3593_v53 = vld [vmem:[%s8488_s13 + $0x1d8] sm:$0xff]  ;;  %v3560_v54 = vld [vmem:[%s8488_s13 + $0xd0] sm:$0xff] }
 0x612   :  { %3318 = vmatprep.subr.mxu0 %v3126_v1  ;;  %3230 = vmatpush2.msra.mxu1 %v3123_v9  ;;  %v3544_v41 = vld [vmem:[%s8488_s13 + $0x50] sm:$0xff]  ;;  %v3559_v9 = vld [vmem:[%s8488_s13 + $0xc8] sm:$0xff] }
 0x613   :  { %3319 = vmatpush2.msra.mxu0 %v3125_v59  ;;  %3231 = vmatprep.subr.mxu1 %v3120_v14  ;;  %v3592_v1 = vld [vmem:[%s8488_s13 + $0x1d0] sm:$0xff]  ;;  %v3543_v59 = vld [vmem:[%s8488_s13 + $0x48] sm:$0xff] }
 0x614   :  { %3320 = vmatprep.subr.mxu0 %v3122_v57  ;;  %3232 = vmatpush2.msra.mxu1 %v3119_v19  ;;  %v3591_v14 = vld [vmem:[%s8488_s13 + $0x1c8] sm:$0xff]  ;;  %v3558_v57 = vld [vmem:[%s8488_s13 + $0xc0] sm:$0xff] }
 0x615   :  { %3321 = vmatpush2.msra.mxu0 %v3121_v40  ;;  %3233 = vmatprep.subr.mxu1 %v3116_v43  ;;  %v3542_v19 = vld [vmem:[%s8488_s13 + $0x40] sm:$0xff]  ;;  %v3557_v43 = vld [vmem:[%s8488_s13 + $0xb8] sm:$0xff] }
 0x616   :  { %3322 = vmatprep.subr.mxu0 %v3118_v6  ;;  %3234 = vmatpush2.msra.mxu1 %v3115_v58  ;;  %v3590_v40 = vld [vmem:[%s8488_s13 + $0x1c0] sm:$0xff]  ;;  %v3541_v6 = vld [vmem:[%s8488_s13 + $0x38] sm:$0xff] }
 0x617   :  { %3323 = vmatpush2.msra.mxu0 %v3117_v48  ;;  %3235 = vmatprep.subr.mxu1 %v3112_v26  ;;  %v3589_v58 = vld [vmem:[%s8488_s13 + $0x1b8] sm:$0xff]  ;;  %v3556_v48 = vld [vmem:[%s8488_s13 + $0xb0] sm:$0xff] }
 0x618   :  { %3324 = vmatprep.subr.mxu0 %v3114_v18  ;;  %3236 = vmatpush2.msra.mxu1 %v3111_v28  ;;  %v3540_v26 = vld [vmem:[%s8488_s13 + $0x30] sm:$0xff]  ;;  %v3555_v28 = vld [vmem:[%s8488_s13 + $0xa8] sm:$0xff] }
 0x619   :  { %3325 = vmatpush2.msra.mxu0 %v3113_v45  ;;  %3237 = vmatprep.subr.mxu1 %v3108_v29  ;;  %v3588_v18 = vld [vmem:[%s8488_s13 + $0x1b0] sm:$0xff]  ;;  %v3539_v45 = vld [vmem:[%s8488_s13 + $0x28] sm:$0xff] }
 0x61a   :  { %3326 = vmatprep.subr.mxu0 %v3110_v63  ;;  %3238 = vmatpush2.msra.mxu1 %v3107_v10  ;;  %v3587_v29 = vld [vmem:[%s8488_s13 + $0x1a8] sm:$0xff]  ;;  %v3554_v63 = vld [vmem:[%s8488_s13 + $0xa0] sm:$0xff] }
 0x61b   :  { %5675 = vmatprep.mubr.msk.f32.mxu1 %vm1337_vm5, %v3036_v37  ;;  %3327 = vmatpush2.msra.mxu0 %v3109_v2  ;;  %v3538_v10 = vld [vmem:[%s8488_s13 + $0x20] sm:$0xff]  ;;  %v3553_v2 = vld [vmem:[%s8488_s13 + $0x98] sm:$0xff] }
 0x61c   :  { %5679 = vmatprep.mubr.msk.f32.mxu0 %vm1337_vm5, %v3036_v37  ;;  %3240 = vmatmul.mubr.f32.vlgmr.msra.gmra.mxu1 %v3035_v51  ;;  %v3586_v37 = vld [vmem:[%s8488_s13 + $0x1a0] sm:$0xff] }
 0x61d   :  { %3329 = vmatmul.mubr.f32.vlgmr.msra.gmra.mxu0 %v3035_v51  ;;  %5676 = vmatprep.mubr.msk.f32.mxu1 %vm1337_vm5, %v3038_v0  ;;  %v3537_v51 = vld [vmem:[%s8488_s13 + $0x18] sm:$0xff] }
 0x61e   :  { %5680 = vmatprep.mubr.msk.f32.mxu0 %vm1337_vm5, %v3038_v0  ;;  %3667 = vmatprep.subr.mxu0 %v7921_v5  ;;  %v3585_v0 = vld [vmem:[%s8488_s13 + $0x198] sm:$0xff] }
 0x61f   :  { %3668 = vmatpush1.msra.mxu0 %v3581_v42  ;;  %5740 = vmatprep.subr.mxu1 %v3565_v24  ;;  %v3583_v42 = vld [vmem:[%s8488_s13 + $0x188] sm:$0xff] }
 0x620   :  { %3246 = vmatmul.mubr.f32.gmra.mxu1 %v3037_v36  ;;  %3669 = vmatprep.subr.mxu0 %v7921_v5 }
 0x621   :  { %3335 = vmatmul.mubr.f32.gmra.mxu0 %v3037_v36  ;;  %5677 = vmatprep.mubr.msk.f32.mxu1 %vm1337_vm5, %v3040_v49  ;;  %v3552_v36 = vld [vmem:[%s8488_s13 + $0x90] sm:$0xff] }
 0x622   :  { %5681 = vmatprep.mubr.msk.f32.mxu0 %vm1337_vm5, %v3040_v49  ;;  %3670 = vmatpush1.msra.mxu0 %v3580_v47  ;;  %v3536_v49 = vld [vmem:[%s8488_s13 + $0x10] sm:$0xff]  ;;  %v3550_v47 = vld [vmem:[%s8488_s13 + $0x80] sm:$0xff] }
 0x623   :  { %3671 = vmatprep.subr.mxu0 %v7921_v5  ;;  %5741 = vmatpush3.msra.mxu1 %v3549_v27 }
 0x624   :  { %3252 = vmatmul.mubr.f32.gmra.mxu1 %v3039_v38  ;;  %3672 = vmatpush1.msra.mxu0 %v3579_v16  ;;  %v3534_v16 = vld [vmem:[%s8488_s13] sm:$0xff] }
 0x625   :  { %3341 = vmatmul.mubr.f32.gmra.mxu0 %v3039_v38  ;;  %5678 = vmatprep.mubr.msk.f32.mxu1 %vm1337_vm5, %v3042_v12  ;;  %v3584_v38 = vld [vmem:[%s8488_s13 + $0x190] sm:$0xff] }
 0x626   :  { %5682 = vmatprep.mubr.msk.f32.mxu0 %vm1337_vm5, %v3042_v12  ;;  %3673 = vmatprep.subr.mxu0 %v7921_v5  ;;  %v3551_v12 = vld [vmem:[%s8488_s13 + $0x88] sm:$0xff] }
 0x627   :  { %3674 = vmatpush1.msra.mxu0 %v3578_v31  ;;  %5742 = vmatprep.subr.mxu1 %v3564_v13  ;;  %v3582_v31 = vld [vmem:[%s8488_s13 + $0x180] sm:$0xff] }
 0x628   :  { %3258 = vmatmul.mubr.f32.gmra.mxu1 %v3041_v61  ;;  %3675 = vmatprep.subr.mxu0 %v7921_v5 }
 0x629   :  { %3347 = vmatmul.mubr.f32.gmra.mxu0 %v3041_v61  ;;  %5743 = vmatpush3.msra.mxu1 %v3548_v11  ;;  %v3535_v61 = vld [vmem:[%s8488_s13 + $0x8] sm:$0xff]  ;;  %s6637_s13 = smov [#allocation5]  }
 0x62a   :  { %3676 = vmatpush1.msra.mxu0 %v3577_v4  ;;  %5744 = vmatprep.subr.mxu1 %v3563_v50  ;;  %s2395_s6 = sshll.u32 %s6637_s13, 4  ;;  %s2396_s6 = int_to_ptr.vmem [resolvable:$true] %s2395_s6 }
 0x62b   :  { %3677 = vmatprep.subr.mxu0 %v7921_v5  ;;  %5745 = vmatpush3.msra.mxu1 %v3547_v3  ;;  %s6541_s24 = scalar_lea.vmem %s2396_s6, 4096  ;;  %p6546_p9 = scmp.lt.s32.totalorder %s2396_s6, %s2396_s6 }
 0x62c   :  { %3678 = vmatpush1.msra.mxu0 %v3576_v34  ;;  %5746 = vmatprep.subr.mxu1 %v3562_v25  ;;  %p6542_p8 = scmp.ne.s32.totalorder %s2396_s6, %s6541_s24  ;;  %p6547_p10 = scmp.lt.s32.totalorder %s6541_s24, %s6541_s24 }
 0x62d   :  { %3679 = vmatprep.subr.mxu0 %v7921_v5  ;;  %5747 = vmatpush3.msra.mxu1 %v3546_v23 }
 0x62e   :  { %3680 = vmatpush1.msra.mxu0 %v3575_v52  ;;  %5748 = vmatprep.subr.mxu1 %v3561_v32  ;;  %p6548_p11 = por %p6547_p10, %p6546_p9 }
 0x62f   :  { %3681 = vmatprep.subr.mxu0 %v7921_v5  ;;  %5749 = vmatpush3.msra.mxu1 %v3545_v20 }
 0x630   :  { %3682 = vmatpush1.msra.mxu0 %v3574_v30  ;;  %5750 = vmatprep.subr.mxu1 %v3560_v54  ;;  %p6549_p12 = pnand %p6548_p11, %p6542_p8 }
 0x631   :  { %3683 = vmatprep.subr.mxu0 %v7921_v5  ;;  %5751 = vmatpush3.msra.mxu1 %v3544_v41 }
 0x632   :  { %3684 = vmatpush1.msra.mxu0 %v3573_v8  ;;  %5752 = vmatprep.subr.mxu1 %v3559_v9 }
 0x633   :  { %3685 = vmatprep.subr.mxu0 %v7921_v5  ;;  %5753 = vmatpush3.msra.mxu1 %v3543_v59 }
 0x634   :  { %3686 = vmatpush1.msra.mxu0 %v3572_v46  ;;  %5754 = vmatprep.subr.mxu1 %v3558_v57 }
 0x635   :  { %3687 = vmatprep.subr.mxu0 %v7921_v5  ;;  %5755 = vmatpush3.msra.mxu1 %v3542_v19 }
 0x636   :  { %3688 = vmatpush1.msra.mxu0 %v3571_v7  ;;  %5756 = vmatprep.subr.mxu1 %v3557_v43 }
 0x637   :  { %3689 = vmatprep.subr.mxu0 %v7921_v5  ;;  %5757 = vmatpush3.msra.mxu1 %v3541_v6 }
 0x638   :  { %3690 = vmatpush1.msra.mxu0 %v3570_v62  ;;  %5758 = vmatprep.subr.mxu1 %v3556_v48 }
 0x639   :  { %3691 = vmatprep.subr.mxu0 %v7921_v5  ;;  %5759 = vmatpush3.msra.mxu1 %v3540_v26 }
 0x63a   :  { %3692 = vmatpush1.msra.mxu0 %v3569_v39  ;;  %5760 = vmatprep.subr.mxu1 %v3555_v28 }
 0x63b   :  { %3693 = vmatprep.subr.mxu0 %v7921_v5  ;;  %5761 = vmatpush3.msra.mxu1 %v3539_v45 }
 0x63c   :  { %3694 = vmatpush1.msra.mxu0 %v3568_v33  ;;  %5762 = vmatprep.subr.mxu1 %v3554_v63 }
 0x63d   :  { %3695 = vmatprep.subr.mxu0 %v7921_v5  ;;  %5763 = vmatpush3.msra.mxu1 %v3538_v10 }
 0x63e   :  { %3696 = vmatpush1.msra.mxu0 %v3567_v22  ;;  %5764 = vmatprep.subr.mxu1 %v3553_v2 }
 0x63f   :  { %3697 = vmatprep.subr.mxu0 %v7921_v5  ;;  %5765 = vmatpush3.msra.mxu1 %v3537_v51 }
 0x640   :  { %3698 = vmatpush1.msra.mxu0 %v3566_v56  ;;  %5766 = vmatprep.subr.mxu1 %v3552_v36 }
 0x641   :  { %3707 = vmatprep.subr.mxu0 %v7921_v5  ;;  %5767 = vmatpush3.msra.mxu1 %v3536_v49 }
 0x642   :  { %3708 = vmatpush2.msra.mxu0 %v3593_v53  ;;  %5768 = vmatprep.subr.mxu1 %v3551_v12 }
 0x643   :  { %3709 = vmatprep.subr.mxu0 %v7921_v5  ;;  %5769 = vmatpush3.msra.mxu1 %v3535_v61 }
 0x644   :  { %3710 = vmatpush2.msra.mxu0 %v3592_v1  ;;  %5770 = vmatprep.subr.mxu1 %v3550_v47 }
 0x645   :  { %3711 = vmatprep.subr.mxu0 %v7921_v5  ;;  %5771 = vmatpush3.msra.mxu1 %v3534_v16 }
 0x646   :  { %3712 = vmatpush2.msra.mxu0 %v3591_v14 }
 0x647   :  { %3713 = vmatprep.subr.mxu0 %v7921_v5 }
 0x648   :  { %3714 = vmatpush2.msra.mxu0 %v3590_v40 }
 0x649   :  { %3715 = vmatprep.subr.mxu0 %v7921_v5 }
 0x64a   :  { %3716 = vmatpush2.msra.mxu0 %v3589_v58 }
 0x64b   :  { %3717 = vmatprep.subr.mxu0 %v7921_v5 }
 0x64c   :  { %3718 = vmatpush2.msra.mxu0 %v3588_v18 }
 0x64d   :  { %3719 = vmatprep.subr.mxu0 %v7921_v5 }
 0x64e   :  { %3720 = vmatpush2.msra.mxu0 %v3587_v29 }
 0x64f   :  { %3721 = vmatprep.subr.mxu0 %v7921_v5 }
 0x650   :  { %3722 = vmatpush2.msra.mxu0 %v3586_v37 }
 0x651   :  { %3723 = vmatprep.subr.mxu0 %v7921_v5 }
 0x652   :  { %3724 = vmatpush2.msra.mxu0 %v3585_v0 }
 0x653   :  { %3725 = vmatprep.subr.mxu0 %v7921_v5 }
 0x654   :  { %3726 = vmatpush2.msra.mxu0 %v3584_v38  ;;  %v2733_v4 = vpop.f32.mrf.mxu1 }
 0x655   :  { %3727 = vmatprep.subr.mxu0 %v7921_v5  ;;  %v2822_v34 = vpop.f32.mrf.mxu0 }
 0x656   :  { %3728 = vmatpush2.msra.mxu0 %v3583_v42  ;;  %v2735_v52 = vpop.f32.mrf.mxu1 }
 0x657   :  { %3729 = vmatprep.subr.mxu0 %v7921_v5  ;;  %v2824_v30 = vpop.f32.mrf.mxu0 }
 0x658   :  { %3730 = vmatpush2.msra.mxu0 %v3582_v31 }
 0x685   :  { %v2828_v46 = vpop.f32.mrf.mxu0 }
 0x687   :  { %v2739_v8 = vpop.f32.mrf.mxu1  ;;  %v2830_v62 = vpop.f32.mrf.mxu0 }
 0x689   :  { %v2741_v7 = vpop.f32.mrf.mxu1 }
 0x68b   :  { %v2834_v27 = vpop.f32.mrf.mxu0 }
 0x68d   :  { %v2745_v24 = vpop.f32.mrf.mxu1  ;;  %v2836_v13 = vpop.f32.mrf.mxu0 }
 0x68f   :  { %v2747_v39 = vpop.f32.mrf.mxu1 }
 0x691   :  { %v2840_v33 = vpop.f32.mrf.mxu0 }
 0x693   :  { %v2751_v11 = vpop.f32.mrf.mxu1  ;;  %v2842_v3 = vpop.f32.mrf.mxu0 }
 0x695   :  { %v2753_v50 = vpop.f32.mrf.mxu1 }
 0x698   :  { %v2923_v22 = vpop.f32.mrf.mxu1 }
 0x699   :  { %v3012_v25 = vpop.f32.mrf.mxu0  ;;  %v2924_v40 = vadd.f32 %v2923_v22, %v2733_v4 }
 0x69a   :  { %v2925_v23 = vpop.f32.mrf.mxu1  ;;  %v3013_v6 = vadd.f32 %v3012_v25, %v2822_v34 }
 0x69b   :  { %v3014_v56 = vpop.f32.mrf.mxu0  ;;  %v2926_v48 = vadd.f32 %v2925_v23, %v2735_v52 }
 0x69c   :  { %v3015_v26 = vadd.f32 %v3014_v56, %v2824_v30 }
 0x69e   :  { %v2929_v32 = vpop.f32.mrf.mxu1 }
 0x69f   :  { %v3018_v20 = vpop.f32.mrf.mxu0  ;;  %v2930_v18 = vadd.f32 %v2929_v32, %v2739_v8 }
 0x6a0   :  { %v2931_v53 = vpop.f32.mrf.mxu1  ;;  %v3019_v29 = vadd.f32 %v3018_v20, %v2828_v46 }
 0x6a1   :  { %v3020_v54 = vpop.f32.mrf.mxu0  ;;  %v2932_v63 = vadd.f32 %v2931_v53, %v2741_v7 }
 0x6a2   :  { %v3021_v10 = vadd.f32 %v3020_v54, %v2830_v62 }
 0x6a4   :  { %v2935_v41 = vpop.f32.mrf.mxu1 }
 0x6a5   :  { %v3024_v1 = vpop.f32.mrf.mxu0  ;;  %v2936_v51 = vadd.f32 %v2935_v41, %v2745_v24 }
 0x6a6   :  { %v2937_v9 = vpop.f32.mrf.mxu1  ;;  %v3025_v0 = vadd.f32 %v3024_v1, %v2834_v27 }
 0x6a7   :  { %v3026_v59 = vpop.f32.mrf.mxu0  ;;  %v2938_v36 = vadd.f32 %v2937_v9, %v2747_v39 }
 0x6a8   :  { %v3027_v12 = vadd.f32 %v3026_v59, %v2836_v13 }
 0x6aa   :  { %v2941_v14 = vpop.f32.mrf.mxu1 }
 0x6ab   :  { %v3030_v57 = vpop.f32.mrf.mxu0  ;;  %v2942_v61 = vadd.f32 %v2941_v14, %v2751_v11 }
 0x6ac   :  { %v2943_v19 = vpop.f32.mrf.mxu1  ;;  %v3031_v42 = vadd.f32 %v3030_v57, %v2840_v33 }
 0x6ad   :  { %v3032_v43 = vpop.f32.mrf.mxu0  ;;  %v2944_v31 = vadd.f32 %v2943_v19, %v2753_v50 }
 0x6ae   :  { %v8143_v4 = vadd.f32 %v3032_v43, %v2842_v3 }
 0x6dc   :  { %v3241_v58 = vpop.f32.mrf.mxu1 }
 0x6dd   :  { %v8135_v28 = vadd.f32 %v3241_v58, %v2924_v40  ;;  %v3330_v45 = vpop.f32.mrf.mxu0 }
 0x6de   :  { %v8137_v37 = vadd.f32 %v3330_v45, %v3013_v6  ;;  %v3243_v2 = vpop.f32.mrf.mxu1 }
 0x6df   :  { %v8139_v49 = vadd.f32 %v3243_v2, %v2926_v48  ;;  %v3332_v38 = vpop.f32.mrf.mxu0  ;;  %v3410_v34 = vmul.f32 %v8135_v28, %v8135_v28 }
 0x6e0   :  { %v8141_v47 = vadd.f32 %v3332_v38, %v3015_v26  ;;  %v3247_v16 = vpop.f32.mrf.mxu1  ;;  %v3412_v8 = vmul.f32 %v8137_v37, %v8137_v37 }
 0x6e1   :  { %v8147_v52 = vadd.f32 %v3247_v16, %v2930_v18  ;;  %v3336_v30 = vpop.f32.mrf.mxu0  ;;  %v3411_v46 = vmul.f32 %v8139_v49, %v8139_v49 }
 0x6e2   :  { %v3413_v7 = vmul.f32 %v8141_v47, %v8141_v47  ;;  %v8155_v62 = vadd.f32 %v3336_v30, %v3019_v29  ;;  %v3249_v24 = vpop.f32.mrf.mxu1  ;;  %v3397_v27 = vsel %vm3396_vm14, %v8141_v47, 0.0 }
 0x6e3   :  { %v3369_v39 = vadd.f32 %v8147_v52, %v8135_v28  ;;  %v3414_v13 = vmul.f32 %v8147_v52, %v8147_v52  ;;  %v8163_v11 = vadd.f32 %v3249_v24, %v2932_v63  ;;  %v3338_v33 = vpop.f32.mrf.mxu0 }
 0x6e4   :  { %v3453_v50 = vsel %vm3396_vm14, %v3413_v7, 0.0  ;;  %v3387_v3 = vadd.f32 %v8155_v62, %v8137_v37  ;;  %v3416_v22 = vmul.f32 %v8155_v62, %v8155_v62  ;;  %v8170_v25 = vadd.f32 %v3338_v33, %v3021_v10  ;;  %v3253_v23 = vpop.f32.mrf.mxu1 }
 0x6e5   :  { %v3426_v56 = vadd.f32 %v3414_v13, %v3410_v34  ;;  %v3378_v32 = vadd.f32 %v8163_v11, %v8139_v49  ;;  %v3415_v20 = vmul.f32 %v8163_v11, %v8163_v11  ;;  %v8176_v53 = vadd.f32 %v3253_v23, %v2936_v51  ;;  %v3342_v54 = vpop.f32.mrf.mxu0 }
 0x6e6   :  { %v3444_v41 = vadd.f32 %v3416_v22, %v3412_v8  ;;  %v3398_v1 = vsel %vm3396_vm14, %v8170_v25, 0.0  ;;  %v3417_v9 = vmul.f32 %v8170_v25, %v8170_v25  ;;  %v8182_v59 = vadd.f32 %v3342_v54, %v3025_v0  ;;  %v3255_v14 = vpop.f32.mrf.mxu1 }
 0x6e7   :  { %v3435_v57 = vadd.f32 %v3415_v20, %v3411_v46  ;;  %v3399_v19 = vadd.f32 %v3398_v1, %v3397_v27  ;;  %v3370_v40 = vadd.f32 %v3369_v39, %v8176_v53  ;;  %v3418_v43 = vmul.f32 %v8176_v53, %v8176_v53  ;;  %v3344_v6 = vpop.f32.mrf.mxu0 }
 0x6e8   :  { %v3454_v58 = vsel %vm3396_vm14, %v3417_v9, 0.0  ;;  %v3388_v48 = vadd.f32 %v3387_v3, %v8182_v59  ;;  %v3420_v26 = vmul.f32 %v8182_v59, %v8182_v59  ;;  %v8191_v18 = vadd.f32 %v3255_v14, %v2938_v36  ;;  %v3259_v45 = vpop.f32.mrf.mxu1 }
 0x6e9   :  { %v3455_v29 = vadd.f32 %v3454_v58, %v3453_v50  ;;  %v3427_v63 = vadd.f32 %v3426_v56, %v3418_v43  ;;  %v8193_v10 = vadd.f32 %v3344_v6, %v3027_v12  ;;  %v8195_v2 = vadd.f32 %v3259_v45, %v2942_v61  ;;  %v3348_v51 = vpop.f32.mrf.mxu0 }
 0x6ea   :  { %v3445_v0 = vadd.f32 %v3444_v41, %v3420_v26  ;;  %v3379_v38 = vadd.f32 %v3378_v32, %v8191_v18  ;;  %v3419_v16 = vmul.f32 %v8191_v18, %v8191_v18  ;;  %v8200_v34 = vadd.f32 %v3348_v51, %v3031_v42  ;;  %v3261_v30 = vpop.f32.mrf.mxu1 }
 0x6eb   :  { %v3400_v36 = vsel %vm3396_vm14, %v8193_v10, 0.0  ;;  %v3421_v8 = vmul.f32 %v8193_v10, %v8193_v10  ;;  %v3371_v12 = vadd.f32 %v3370_v40, %v8195_v2  ;;  %v3422_v61 = vmul.f32 %v8195_v2, %v8195_v2  ;;  %v3350_v46 = vpop.f32.mrf.mxu0 }
 0x6ec   :  { %v3436_v7 = vadd.f32 %v3435_v57, %v3419_v16  ;;  %v3401_v24 = vadd.f32 %v3400_v36, %v3399_v19  ;;  %v3389_v27 = vadd.f32 %v3388_v48, %v8200_v34  ;;  %v3424_v42 = vmul.f32 %v8200_v34, %v8200_v34 }
 0x6ed   :  { %v3456_v39 = vsel %vm3396_vm14, %v3421_v8, 0.0  ;;  %v3372_v13 = vrot.slane %v3371_v12, 4  ;;  %v3428_v33 = vadd.f32 %v3427_v63, %v3422_v61  ;;  %v8213_v50 = vadd.f32 %v3261_v30, %v2944_v31 }
 0x6ee   :  { %v3457_v3 = vadd.f32 %v3456_v39, %v3455_v29  ;;  %v3390_v22 = vrot.slane %v3389_v27, 4  ;;  %v3446_v23 = vadd.f32 %v3445_v0, %v3424_v42  ;;  %v8216_v56 = vadd.f32 %v3350_v46, %v8143_v4 }
 0x6ef   :  { %v3373_v32 = vadd.f32 %v3372_v13, %v3371_v12  ;;  %v3429_v20 = vrot.slane %v3428_v33, 4  ;;  %v3380_v54 = vadd.f32 %v3379_v38, %v8213_v50  ;;  %v3423_v41 = vmul.f32 %v8213_v50, %v8213_v50 }
 0x6f0   :  { %v3391_v1 = vadd.f32 %v3390_v22, %v3389_v27  ;;  %v3447_v9 = vrot.slane %v3446_v23, 4  ;;  %v3402_v14 = vsel %vm3396_vm14, %v8216_v56, 0.0  ;;  %v3425_v31 = vmul.f32 %v8216_v56, %v8216_v56 }
 0x6f1   :  { %v3374_v57 = vrot.slane %v3373_v32, 2  ;;  %v3430_v19 = vadd.f32 %v3429_v20, %v3428_v33  ;;  %v3381_v40 = vrot.slane %v3380_v54, 4  ;;  %v3437_v4 = vadd.f32 %v3436_v7, %v3423_v41 }
 0x6f2   :  { %v3392_v43 = vrot.slane %v3391_v1, 2  ;;  %v3448_v6 = vadd.f32 %v3447_v9, %v3446_v23  ;;  %v3403_v58 = vadd.f32 %v3402_v14, %v3401_v24  ;;  %v3458_v48 = vsel %vm3396_vm14, %v3425_v31, 0.0 }
 0x6f3   :  { %v3375_v26 = vadd.f32 %v3374_v57, %v3373_v32  ;;  %v3431_v45 = vrot.slane %v3430_v19, 2  ;;  %v3382_v29 = vadd.f32 %v3381_v40, %v3380_v54  ;;  %v3438_v63 = vrot.slane %v3437_v4, 4 }
 0x6f4   :  { %v3449_v51 = vrot.slane %v3448_v6, 2  ;;  %v3404_v0 = vrot.slane %v3403_v58, 4  ;;  %v3459_v38 = vadd.f32 %v3458_v48, %v3457_v3  ;;  %v3393_v8 = vadd.f32 %v3392_v43, %v3391_v1 }
 0x6f5   :  { %v3432_v16 = vadd.f32 %v3431_v45, %v3430_v19  ;;  %v3383_v30 = vrot.slane %v3382_v29, 2  ;;  %v3439_v36 = vadd.f32 %v3438_v63, %v3437_v4  ;;  %v3376_v46 = vrot.slane %v3375_v26, 1 }
 0x6f6   :  { %v3405_v12 = vadd.f32 %v3404_v0, %v3403_v58  ;;  %v3460_v61 = vrot.slane %v3459_v38, 4  ;;  %v3450_v42 = vadd.f32 %v3449_v51, %v3448_v6  ;;  %v3394_v23 = vrot.slane %v3393_v8, 1 }
 0x6f7   :  { %v3384_v7 = vadd.f32 %v3383_v30, %v3382_v29  ;;  %v3440_v27 = vrot.slane %v3439_v36, 2  ;;  %v3433_v13 = vrot.slane %v3432_v16, 1  ;;  %v3377_v54 = vadd.f32 %v3376_v46, %v3375_v26 }
 0x6f8   :  { %v3406_v24 = vrot.slane %v3405_v12, 2  ;;  %v3461_v39 = vadd.f32 %v3460_v61, %v3459_v38  ;;  %v3451_v9 = vrot.slane %v3450_v42, 1  ;;  %v3395_v40 = vadd.f32 %v3394_v23, %v3393_v8  ;;  %v3785_v23 = vld [vmem:[#allocation26 + $0x78] sm:$0xff] }
 0x6f9   :  { %v3385_v33 = vrot.slane %v3384_v7, 1  ;;  %v3441_v22 = vadd.f32 %v3440_v27, %v3439_v36  ;;  %v3434_v31 = vadd.f32 %v3433_v13, %v3432_v16  ;;  %v3782_v27 = vld [vmem:[#allocation26 + $0x60] sm:$0xff] }
 0x6fa   :  { %v3407_v32 = vadd.f32 %v3406_v24, %v3405_v12  ;;  %v3462_v20 = vrot.slane %v3461_v39, 2  ;;  %v3452_v58 = vadd.f32 %v3451_v9, %v3450_v42  ;;  %v3779_v42 = vld [vmem:[#allocation26 + $0x48] sm:$0xff]  ;;  %v3778_v24 = vld [vmem:[#allocation26 + $0x40] sm:$0xff] }
 0x6fb   :  { %v3386_v3 = vadd.f32 %v3385_v33, %v3384_v7  ;;  %v3442_v41 = vrot.slane %v3441_v22, 1  ;;  %v3783_v7 = vld [vmem:[#allocation26 + $0x68] sm:$0xff]  ;;  %v3774_v13 = vld [vmem:[#allocation26 + $0x20] sm:$0xff] }
 0x6fc   :  { %v3408_v14 = vrot.slane %v3407_v32, 1  ;;  %v3463_v1 = vadd.f32 %v3462_v20, %v3461_v39  ;;  %3813 = vmatprep.subr.mxu1 %v3783_v7  ;;  %v3775_v39 = vld [vmem:[#allocation26 + $0x28] sm:$0xff] }
 0x6fd   :  { %v3443_v57 = vadd.f32 %v3442_v41, %v3441_v22  ;;  %v3470_v19 = vcombine.low %v3377_v54, %v3386_v3  ;;  %v3771_v33 = vld [vmem:[#allocation26 + $0x8] sm:$0xff]  ;;  %v3770_v22 = vld [vmem:[#allocation26] sm:$0xff] }
 0x6fe   :  { %v3409_v4 = vadd.f32 %v3408_v14, %v3407_v32  ;;  %v3464_v43 = vrot.slane %v3463_v1, 1 }
 0x6ff   :  { %v3503_v6 = vcombine.low %v3434_v31, %v3443_v57  ;;  %v3478_v48 = vrot.slane %v3470_v19, %v7650_v55 }
 0x700   :  { %v3465_v45 = vadd.f32 %v3464_v43, %v3463_v1  ;;  %v3471_v29 = vcombine.low %v3395_v40, %v3409_v4 }
 0x701   :  { %v3511_v63 = vrot.slane %v3503_v6, %v7650_v55 }
 0x702   :  { %v3485_v26 = vrot.slane %v3471_v29, %v7650_v55  ;;  %v3504_v51 = vcombine.low %v3452_v58, %v3465_v45  ;;  %v8579_v58 = vld [vmem:[#allocation74_spill] sm:$0xff]  ;;  %v8580_v29 = vld [vmem:[#allocation75_spill] sm:$0xff] }
 0x704   :  { %v3486_v0 = vcombine.low %v3478_v48, %v3485_v26  ;;  %v3518_v38 = vrot.slane %v3504_v51, %v7650_v55  ;;  %v3784_v26 = vld [vmem:[#allocation26 + $0x70] sm:$0xff] }
 0x706   :  { %v3493_v16 = vrot.slane %v3486_v0, %v7650_v55  ;;  %v3519_v30 = vcombine.low %v3511_v63, %v3518_v38  ;;  %v3781_v0 = vld [vmem:[#allocation26 + $0x58] sm:$0xff]  ;;  %v3780_v38 = vld [vmem:[#allocation26 + $0x50] sm:$0xff] }
 0x708   :  { %3497 = vst.msk [vmem:[#allocation10] ss:$8 sm:$0xf] %vm3495_vm15, %v3493_v16  ;;  %v3526_v36 = vrot.slane %v3519_v30, %v7650_v55  ;;  %v3777_v16 = vld [vmem:[#allocation26 + $0x38] sm:$0xff]  ;;  %v3776_v30 = vld [vmem:[#allocation26 + $0x30] sm:$0xff] }
 0x70a   :  { %3528 = vst.msk [vmem:[#allocation10 + $0x1] ss:$8 sm:$0xf] %vm3495_vm15, %v3526_v36  ;;  %v3773_v36 = vld [vmem:[#allocation26 + $0x18] sm:$0xff] }
 0x711   :  { %v3531_v8 = vld [vmem:[#allocation10 + $0x8] sm:$0x3]  ;;  %v3533_v12 = vld [vmem:[#allocation10 + $0x18] sm:$0x3]  ;;  %v3530_v61 = vld [vmem:[#allocation10] sm:$0x3] }
 0x712   :  { %3661 = vmatprep.mubr.f32.mxu1 %v3531_v8  ;;  %5683 = vmatprep.mubr.msk.f32.mxu0 %vm3396_vm14, %v3533_v12  ;;  %v3532_v46 = vld [vmem:[#allocation10 + $0x10] sm:$0x3]  ;;  %v3772_v8 = vld [vmem:[#allocation26 + $0x10] sm:$0xff] }
 0x713   :  { %3662 = vmatmul.mubr.f32.vlgmr.msra.gmra.mxu1 %v3530_v61  ;;  %3732 = vmatmul.mubr.f32.vlgmr.msra.gmra.mxu0 %v3532_v46 }
 0x714   :  { %3853 = vmatprep.mubr.f32.mxu1 %v7921_v5  ;;  %3814 = vmatpush1.msra.mxu1 %v3782_v27 }
 0x715   :  { %3815 = vmatprep.subr.mxu1 %v3779_v42 }
 0x716   :  { %3816 = vmatpush1.msra.mxu1 %v3778_v24 }
 0x717   :  { %3817 = vmatprep.subr.mxu1 %v3775_v39 }
 0x718   :  { %3818 = vmatpush1.msra.mxu1 %v3774_v13 }
 0x719   :  { %3819 = vmatprep.subr.mxu1 %v3771_v33 }
 0x71a   :  { %3820 = vmatpush1.msra.mxu1 %v3770_v22 }
 0x71b   :  { %3884 = vmatprep.subr.mxu1 %v3785_v23 }
 0x7d3   :  { %v5772_v32 = vpop.f32.mrf.mxu1  ;;  %v3733_v20 = vpop.f32.mrf.mxu0 }
 0x7d5   :  { %v5773_v54 = vpop.f32.mrf.mxu1  ;;  %v3735_v3 = vpop.f32.mrf.mxu0 }
 0x7d6   :  { %v5774_v41 = vadd.f32 %v5773_v54, %v5772_v32 }
 0x7d8   :  { %v3734_v9 = vadd.f32 %v5774_v41, %v3733_v20 }
 0x7da   :  { %v3738_v14 = vmul.f32 0.00295858, %v3734_v9 }
 0x7dc   :  { %v3739_v1 = vmul.f32 %v3738_v14, %v3738_v14 }
 0x7de   :  { %v3741_v31 = vrot.slane %v3739_v1, 7 }
 0x7e0   :  { %v3743_v57 = vsub.f32 %v3738_v14, %v3741_v31 }
 0x7e2   :  { %v3744_v19 = vadd.f32 1e-05, %v3743_v57 }
 0x7e4   :  { %6044 = vrsqrt.f32 %v3744_v19 }
 0x7f1   :  { %v6045_v40 = vpop.eup %6044 }
 0x7f2   :  { %v3753_v4 = vrot.slane %v6045_v40, %v7650_v55 }
 0x7f4   :  { %v3754_v43 = vcombine.high %v3753_v4, %v3753_v4 }
 0x7f6   :  { %v3761_v6 = vrot.slane %v3754_v43, %v7650_v55 }
 0x7f8   :  { %v3763_v48 = vmul.f32 %v3761_v6, %v8579_v58 }
 0x7fa   :  { %v3764_v45 = vmul.f32 %v3763_v48, %v3738_v14  ;;  %3767 = vst.msk [vmem:[#allocation10] sm:$0x1] %vm3766_vm1, %v3763_v48 }
 0x7fc   :  { %v3765_v63 = vsub.f32 %v8580_v29, %v3764_v45 }
 0x7fe   :  { %3768 = vst.msk [vmem:[#allocation10 + $0x1] sm:$0x1] %vm3766_vm1, %v3765_v63 }
 0x805   :  { %v3769_v51 = vld [vmem:[#allocation10] sm:$0x3] }
 0x806   :  { %5684 = vmatmul.mubr.msk.f32.vlgmr.msra.gmra.mxu1 %vm375_vm0, %v3769_v51 }
 0x807   :  { %3885 = vmatpush1.msra.mxu1 %v3784_v26  ;;  %3924 = vmatprep.mubr.f32.mxu1 %v7921_v5 }
 0x808   :  { %3886 = vmatprep.subr.mxu1 %v3781_v0 }
 0x809   :  { %3887 = vmatpush1.msra.mxu1 %v3780_v38 }
 0x80a   :  { %3888 = vmatprep.subr.mxu1 %v3777_v16 }
 0x80b   :  { %3889 = vmatpush1.msra.mxu1 %v3776_v30 }
 0x80c   :  { %3890 = vmatprep.subr.mxu1 %v3773_v36 }
 0x80d   :  { %3891 = vmatpush1.msra.mxu1 %v3772_v8 }
 0x80e   :  { %5685 = vmatmul.mubr.msk.f32.vlgmr.msra.gmra.mxu1 %vm375_vm0, %v3769_v51 }
 0x80f   :  { %4091 = vmatprep.mubr.f32.mxu1 %v7921_v5 }
 0x8c6   :  { %v3855_v12 = vpop.f32.mrf.mxu1 }
 0x8c7   :  { %v3934_v7 = vrot.slane %v3855_v12, %v7672_v15  ;;  %v3966_v22 = vrot.slane %v3855_v12, %v7675_v35 }
 0x8c8   :  { %v3857_v61 = vpop.f32.mrf.mxu1 }
 0x8c9   :  { %v3938_v46 = vrot.slane %v3857_v61, %v7672_v15  ;;  %v3947_v39 = vmul.f32 %v3934_v7, %v8135_v28  ;;  %v3951_v13 = vmul.f32 %v3934_v7, %v8147_v52  ;;  %v3959_v33 = vmul.f32 %v3934_v7, %v8195_v2 }
 0x8ca   :  { %v3970_v32 = vrot.slane %v3857_v61, %v7675_v35  ;;  %v3955_v41 = vmul.f32 %v3934_v7, %v8176_v53 }
 0x8cb   :  { %v3960_v24 = vmul.f32 %v3938_v46, %v8213_v50  ;;  %v3956_v28 = vmul.f32 %v3938_v46, %v8191_v18  ;;  %v3952_v52 = vmul.f32 %v3938_v46, %v8163_v11  ;;  %v3991_v57 = vadd.f32 %v3966_v22, %v3959_v33 }
 0x8cc   :  { %v3948_v11 = vmul.f32 %v3938_v46, %v8139_v49  ;;  %v3987_v6 = vadd.f32 %v3966_v22, %v3955_v41  ;;  %v3983_v63 = vadd.f32 %v3966_v22, %v3951_v13  ;;  %v3979_v16 = vadd.f32 %v3966_v22, %v3947_v39  ;;  %v4019_v22 = vld [vmem:[#allocation27] sm:$0xff]  ;;  %v4105_v41 = vld [vmem:[#allocation29 + $0x8] sm:$0xf] }
 0x8cd   :  { %v3992_v1 = vadd.f32 %v3970_v32, %v3960_v24  ;;  %v4007_v26 = vmax.f32 %v3991_v57, 0.0 }
 0x8ce   :  { %v3926_v27 = vpop.f32.mrf.mxu1  ;;  %v3980_v49 = vadd.f32 %v3970_v32, %v3948_v11  ;;  %v4003_v36 = vmax.f32 %v3987_v6, 0.0 }
 0x8cf   :  { %v3942_v42 = vrot.slane %v3926_v27, %v7672_v15  ;;  %v3974_v3 = vrot.slane %v3926_v27, %v7675_v35  ;;  %v4008_v45 = vmax.f32 %v3992_v1, 0.0  ;;  %v3999_v27 = vmax.f32 %v3983_v63, 0.0 }
 0x8d0   :  { %v3928_v23 = vpop.f32.mrf.mxu1  ;;  %v3996_v13 = vmax.f32 %v3980_v49, 0.0 }
 0x8d1   :  { %v3957_v20 = vmul.f32 %v3942_v42, %v8182_v59  ;;  %v3961_v54 = vmul.f32 %v3942_v42, %v8200_v34  ;;  %v3946_v50 = vrot.slane %v3928_v23, %v7672_v15  ;;  %v3953_v2 = vmul.f32 %v3942_v42, %v8155_v62 }
 0x8d2   :  { %v3978_v14 = vrot.slane %v3928_v23, %v7675_v35  ;;  %v3949_v19 = vmul.f32 %v3942_v42, %v8137_v37  ;;  %v3988_v62 = vadd.f32 %v3970_v32, %v3956_v28  ;;  %v3995_v23 = vmax.f32 %v3979_v16, 0.0 }
 0x8d3   :  { %v3993_v9 = vadd.f32 %v3974_v3, %v3961_v54  ;;  %v3962_v59 = vmul.f32 %v3946_v50, %v8216_v56  ;;  %v3958_v34 = vmul.f32 %v3946_v50, %v8193_v10  ;;  %v3954_v31 = vmul.f32 %v3946_v50, %v8170_v25  ;;  %v4104_v54 = vld [vmem:[#allocation29] sm:$0xff] }
 0x8d4   :  { %v3950_v53 = vmul.f32 %v3946_v50, %v8141_v47  ;;  %v3989_v18 = vadd.f32 %v3974_v3, %v3957_v20  ;;  %v3985_v58 = vadd.f32 %v3974_v3, %v3953_v2  ;;  %v3984_v56 = vadd.f32 %v3970_v32, %v3952_v52  ;;  %v4020_v20 = vld [vmem:[#allocation27 + $0x8] sm:$0xf] }
 0x8d5   :  { %v3994_v40 = vadd.f32 %v3978_v14, %v3962_v59  ;;  %v3990_v4 = vadd.f32 %v3978_v14, %v3958_v34  ;;  %v3986_v43 = vadd.f32 %v3978_v14, %v3954_v31  ;;  %v4009_v48 = vmax.f32 %v3993_v9, 0.0 }
 0x8d6   :  { %v3982_v25 = vadd.f32 %v3978_v14, %v3950_v53  ;;  %v3981_v47 = vadd.f32 %v3974_v3, %v3949_v19  ;;  %v4005_v51 = vmax.f32 %v3989_v18, 0.0  ;;  %v4004_v0 = vmax.f32 %v3988_v62, 0.0  ;;  %v6047_v3 = vld [vmem:[#allocation8] sm:$0xff] }
 0x8d7   :  { %v4010_v10 = vmax.f32 %v3994_v40, 0.0  ;;  %v4006_v29 = vmax.f32 %v3990_v4, 0.0  ;;  %v4002_v38 = vmax.f32 %v3986_v43, 0.0  ;;  %v4017_v30 = vmax.f32 %v4007_v26, %v4009_v48 }
 0x8d8   :  { %v4001_v8 = vmax.f32 %v3985_v58, 0.0  ;;  %v4000_v61 = vmax.f32 %v3984_v56, 0.0  ;;  %v3998_v46 = vmax.f32 %v3982_v25, 0.0  ;;  %v4015_v7 = vmax.f32 %v4003_v36, %v4005_v51 }
 0x8d9   :  { %v4018_v37 = vmax.f32 %v4008_v45, %v4010_v10  ;;  %v4016_v12 = vmax.f32 %v4004_v0, %v4006_v29  ;;  %v3997_v42 = vmax.f32 %v3981_v47, 0.0 }
 0x8da   :  { %v4014_v24 = vmax.f32 %v4000_v61, %v4002_v38  ;;  %v4013_v33 = vmax.f32 %v3999_v27, %v4001_v8  ;;  %v4012_v32 = vmax.f32 %v3996_v13, %v3998_v46 }
 0x8db   :  { %4051 = vmatprep.subr.mxu1 %v4018_v37  ;;  %v4011_v39 = vmax.f32 %v3995_v23, %v3997_v42 }
 0x8dc   :  { %4052 = vmatpush1.msra.mxu1 %v4017_v30 }
 0x8dd   :  { %4053 = vmatprep.subr.mxu1 %v4016_v12 }
 0x8de   :  { %4054 = vmatpush1.msra.mxu1 %v4015_v7 }
 0x8df   :  { %4055 = vmatprep.subr.mxu1 %v4014_v24 }
 0x8e0   :  { %4056 = vmatpush1.msra.mxu1 %v4013_v33 }
 0x8e1   :  { %4057 = vmatprep.subr.mxu1 %v4012_v32 }
 0x8e2   :  { %4058 = vmatpush1.msra.mxu1 %v4011_v39 }
 0x8e3   :  { %5686 = vmatmul.mubr.msk.f32.vlgmr.msra.gmra.mxu1 %vm375_vm0, %v4019_v22  ;;  %4136 = vmatprep.subr.mxu1 %v4018_v37 }
 0x8e4   :  { %4137 = vmatpush1.msra.mxu1 %v4017_v30  ;;  %4097 = vmatprep.mubr.f32.mxu1 %v7921_v5 }
 0x8e5   :  { %4138 = vmatprep.subr.mxu1 %v4016_v12 }
 0x8e6   :  { %4139 = vmatpush1.msra.mxu1 %v4015_v7 }
 0x8e7   :  { %5687 = vmatmul.mubr.msk.f32.gmra.mxu1 %vm375_vm0, %v4020_v20  ;;  %4140 = vmatprep.subr.mxu1 %v4014_v24 }
 0x8e8   :  { %4141 = vmatpush1.msra.mxu1 %v4013_v33  ;;  %4176 = vmatprep.mubr.f32.mxu1 %v7921_v5 }
 0x8e9   :  { %4142 = vmatprep.subr.mxu1 %v4012_v32 }
 0x8ea   :  { %4143 = vmatpush1.msra.mxu1 %v4011_v39 }
 0x8eb   :  { %5688 = vmatmul.mubr.msk.f32.vlgmr.msra.gmra.mxu1 %vm375_vm0, %v4104_v54 }
 0x8ec   :  { %4182 = vmatprep.mubr.f32.mxu1 %v6047_v3 }
 0x8ef   :  { %5689 = vmatmul.mubr.msk.f32.gmra.mxu1 %vm375_vm0, %v4105_v41 }
 0x8f0   :  { %6552 = shalt.err (!%p6549_p12)  }
 0x8f1   :  { %s8581_s17 = sld [smem:[#allocation94_spill]]  ;;  %vm4208_vm0 = vcmask 519168   ;;  %vm4214_vm2 = vcmask 1041408  }
 0x8f7   :  { %2398 = dma.hbm_to_vmem [thread:$0]  %s8581_s17, 4096, %s2396_s6, [#allocation11 + $0x3] }
 0x9a3   :  { %v4093_v5 = vpop.f32.mrf.mxu1 }
 0x9a5   :  { %v4095_v50 = vpop.f32.mrf.mxu1 }
 0x9a7   :  { %v4099_v28 = vpop.f32.mrf.mxu1 }
 0x9a9   :  { %v4101_v52 = vpop.f32.mrf.mxu1 }
 0x9ab   :  { %v4178_v2 = vpop.f32.mrf.mxu1 }
 0x9ac   :  { %v4189_v9 = vmax.f32 %v4093_v5, %v4178_v2 }
 0x9ad   :  { %v4180_v14 = vpop.f32.mrf.mxu1 }
 0x9ae   :  { %4207 = vst [vmem:[#allocation8] sm:$0xf] %v4189_v9  ;;  %v4225_v1 = vrot.slane %v4189_v9, 1  ;;  %v4241_v59 = vrot.slane %v4189_v9, 2  ;;  %v4190_v34 = vmax.f32 %v4095_v50, %v4180_v14  ;;  %v4215_v18 = vrot.slane %v4189_v9, 6 }
 0x9af   :  { %v4184_v31 = vpop.f32.mrf.mxu1  ;;  %v4231_v62 = vrot.slane %v4189_v9, 7 }
 0x9b0   :  { %4229 = vst [vmem:[#allocation8 + $0x20] sm:$0xf] %v4225_v1  ;;  %4245 = vst [vmem:[#allocation8 + $0x40] sm:$0xf] %v4241_v59  ;;  %v4226_v53 = vrot.slane %v4190_v34, 1  ;;  %v4242_v57 = vrot.slane %v4190_v34, 2  ;;  %v4191_v19 = vmax.f32 %v4099_v28, %v4184_v31 }
 0x9b1   :  { %4209 = vst.msk [vmem:[#allocation8 + $0x8] sm:$0xf] %vm4208_vm0, %v4190_v34  ;;  %v4186_v11 = vpop.f32.mrf.mxu1  ;;  %v4218_v6 = vrot.slane %v4190_v34, 6  ;;  %v4234_v58 = vrot.slane %v4190_v34, 7 }
 0x9b2   :  { %4230 = vst.msk [vmem:[#allocation8 + $0x28] sm:$0xf] %vm4208_vm0, %v4226_v53  ;;  %4246 = vst.msk [vmem:[#allocation8 + $0x48] sm:$0xf] %vm4208_vm0, %v4242_v57  ;;  %v4216_v40 = vrot.slane %v4191_v19, 6  ;;  %v4232_v4 = vrot.slane %v4191_v19, 7  ;;  %v4192_v43 = vmax.f32 %v4101_v52, %v4186_v11 }
 0x9b3   :  { %4247 = vst [vmem:[#allocation8 + $0x50] sm:$0xf] %v4191_v19 }
 0x9b4   :  { %v4217_v48 = vsel %vm4214_vm2, %v4215_v18, %v4216_v40  ;;  %v4233_v56 = vsel %vm2314_vm13, %v4231_v62, %v4232_v4  ;;  %v4219_v45 = vrot.slane %v4192_v43, 6  ;;  %v4235_v10 = vrot.slane %v4192_v43, 7  ;;  %4248 = vst.msk [vmem:[#allocation8 + $0x58] sm:$0xf] %vm4208_vm0, %v4192_v43 }
 0x9b5   :  { %4223 = vst [vmem:[#allocation8 + $0x10] sm:$0xf] %v4217_v48  ;;  %4239 = vst [vmem:[#allocation8 + $0x30] sm:$0xf] %v4233_v56 }
 0x9b6   :  { %v4220_v29 = vsel %vm4214_vm2, %v4218_v6, %v4219_v45  ;;  %v4236_v25 = vsel %vm2314_vm13, %v4234_v58, %v4235_v10 }
 0x9b7   :  { %4224 = vst.msk [vmem:[#allocation8 + $0x18] sm:$0xf] %vm4208_vm0, %v4220_v29  ;;  %4240 = vst.msk [vmem:[#allocation8 + $0x38] sm:$0xf] %vm4208_vm0, %v4236_v25 }
 0x9b8   :  { %6599 = dma.done.wait [#allocation11 + $0x2], 18432 }
 0x9b9   :  { %6600 = vsyncadd [#allocation11 + $0x2], 4294948864  ;;  %5144 = vst [vmem:[#allocation9] sm:$0xff] %v8578_v17  ;;  %v8290_v63 = vld [vmem:[#allocation38] sm:$0x1]  ;;  %v4340_v26 = vld [vmem:[#allocation4 + $0x278] sm:$0xff] }
 0x9ba   :  { %5145 = vst [vmem:[#allocation9 + $0x8] sm:$0xff] %v8578_v17  ;;  %5146 = vst [vmem:[#allocation9 + $0x10] sm:$0xff] %v8578_v17  ;;  %v8292_v47 = vld [vmem:[#allocation39] sm:$0x1]  ;;  %4363 = vmatprep.subr.mxu1 %v4340_v26  ;;  %v4288_v51 = vld [vmem:[#allocation4 + $0xf8] sm:$0xff]  ;;  %vm4712_vm3 = vcmp.lt.s32.totalorder %v8572_v44, 256 }
 0x9bb   :  { %5147 = vst [vmem:[#allocation9 + $0x18] sm:$0xff] %v8578_v17  ;;  %v4339_v37 = vld [vmem:[#allocation4 + $0x270] sm:$0xff]  ;;  %4446 = vmatprep.subr.mxu0 %v4288_v51  ;;  %v4338_v38 = vld [vmem:[#allocation4 + $0x268] sm:$0xff]  ;;  %v4337_v16 = vld [vmem:[#allocation4 + $0x260] sm:$0xff]  ;;  %vm4869_vm4 = vcmask 516096   ;;  %vm6638_vm5 = vmmov 0  }
 0x9bc   :  { %v4287_v0 = vld [vmem:[#allocation4 + $0xf0] sm:$0xff]  ;;  %4364 = vmatpush1.msra.mxu1 %v4339_v37  ;;  %v4286_v49 = vld [vmem:[#allocation4 + $0xe8] sm:$0xff]  ;;  %v4285_v30 = vld [vmem:[#allocation4 + $0xe0] sm:$0xff] }
 0x9bd   :  { %4447 = vmatpush1.msra.mxu0 %v4287_v0  ;;  %4365 = vmatprep.subr.mxu1 %v4338_v38  ;;  %v4336_v36 = vld [vmem:[#allocation4 + $0x258] sm:$0xff]  ;;  %v4335_v12 = vld [vmem:[#allocation4 + $0x250] sm:$0xff]  ;;  %v4334_v46 = vld [vmem:[#allocation4 + $0x248] sm:$0xff] }
 0x9be   :  { %v4284_v8 = vld [vmem:[#allocation4 + $0xd8] sm:$0xff]  ;;  %4448 = vmatprep.subr.mxu0 %v4286_v49  ;;  %4366 = vmatpush1.msra.mxu1 %v4337_v16  ;;  %v4283_v61 = vld [vmem:[#allocation4 + $0xd0] sm:$0xff]  ;;  %v4282_v7 = vld [vmem:[#allocation4 + $0xc8] sm:$0xff] }
 0x9bf   :  { %4449 = vmatpush1.msra.mxu0 %v4285_v30  ;;  %4367 = vmatprep.subr.mxu1 %v4336_v36  ;;  %v4333_v27 = vld [vmem:[#allocation4 + $0x240] sm:$0xff]  ;;  %v4332_v24 = vld [vmem:[#allocation4 + $0x238] sm:$0xff]  ;;  %v4331_v33 = vld [vmem:[#allocation4 + $0x230] sm:$0xff] }
 0x9c0   :  { %4450 = vmatprep.subr.mxu0 %v4284_v8  ;;  %4368 = vmatpush1.msra.mxu1 %v4335_v12  ;;  %v4281_v42 = vld [vmem:[#allocation4 + $0xc0] sm:$0xff]  ;;  %v4280_v13 = vld [vmem:[#allocation4 + $0xb8] sm:$0xff]  ;;  %v4279_v23 = vld [vmem:[#allocation4 + $0xb0] sm:$0xff] }
 0x9c1   :  { %4451 = vmatpush1.msra.mxu0 %v4283_v61  ;;  %4369 = vmatprep.subr.mxu1 %v4334_v46  ;;  %v4330_v32 = vld [vmem:[#allocation4 + $0x228] sm:$0xff]  ;;  %v4329_v22 = vld [vmem:[#allocation4 + $0x220] sm:$0xff]  ;;  %v4328_v54 = vld [vmem:[#allocation4 + $0x218] sm:$0xff] }
 0x9c2   :  { %4452 = vmatprep.subr.mxu0 %v4282_v7  ;;  %4370 = vmatpush1.msra.mxu1 %v4333_v27  ;;  %v4278_v39 = vld [vmem:[#allocation4 + $0xa8] sm:$0xff]  ;;  %v4277_v20 = vld [vmem:[#allocation4 + $0xa0] sm:$0xff]  ;;  %v4276_v3 = vld [vmem:[#allocation4 + $0x98] sm:$0xff] }
 0x9c3   :  { %4453 = vmatpush1.msra.mxu0 %v4281_v42  ;;  %4371 = vmatprep.subr.mxu1 %v4332_v24  ;;  %v4327_v41 = vld [vmem:[#allocation4 + $0x210] sm:$0xff]  ;;  %v4326_v50 = vld [vmem:[#allocation4 + $0x208] sm:$0xff]  ;;  %v4325_v52 = vld [vmem:[#allocation4 + $0x200] sm:$0xff] }
 0x9c4   :  { %4454 = vmatprep.subr.mxu0 %v4280_v13  ;;  %4372 = vmatpush1.msra.mxu1 %v4331_v33  ;;  %v4275_v5 = vld [vmem:[#allocation4 + $0x90] sm:$0xff]  ;;  %v4274_v28 = vld [vmem:[#allocation4 + $0x88] sm:$0xff]  ;;  %v4273_v2 = vld [vmem:[#allocation4 + $0x80] sm:$0xff] }
 0x9c5   :  { %4455 = vmatpush1.msra.mxu0 %v4279_v23  ;;  %4373 = vmatprep.subr.mxu1 %v4330_v32  ;;  %v4324_v9 = vld [vmem:[#allocation4 + $0x1f8] sm:$0xff]  ;;  %v4323_v1 = vld [vmem:[#allocation4 + $0x1f0] sm:$0xff]  ;;  %v4322_v34 = vld [vmem:[#allocation4 + $0x1e8] sm:$0xff] }
 0x9c6   :  { %4456 = vmatprep.subr.mxu0 %v4278_v39  ;;  %4374 = vmatpush1.msra.mxu1 %v4329_v22  ;;  %v4272_v14 = vld [vmem:[#allocation4 + $0x78] sm:$0xff]  ;;  %v4271_v59 = vld [vmem:[#allocation4 + $0x70] sm:$0xff]  ;;  %v4270_v31 = vld [vmem:[#allocation4 + $0x68] sm:$0xff] }
 0x9c7   :  { %4457 = vmatpush1.msra.mxu0 %v4277_v20  ;;  %4375 = vmatprep.subr.mxu1 %v4328_v54  ;;  %v4321_v53 = vld [vmem:[#allocation4 + $0x1e0] sm:$0xff]  ;;  %v4320_v19 = vld [vmem:[#allocation4 + $0x1d8] sm:$0xff]  ;;  %v4319_v11 = vld [vmem:[#allocation4 + $0x1d0] sm:$0xff] }
 0x9c8   :  { %4458 = vmatprep.subr.mxu0 %v4276_v3  ;;  %4376 = vmatpush1.msra.mxu1 %v4327_v41  ;;  %v4269_v57 = vld [vmem:[#allocation4 + $0x60] sm:$0xff]  ;;  %v4268_v18 = vld [vmem:[#allocation4 + $0x58] sm:$0xff]  ;;  %v4267_v40 = vld [vmem:[#allocation4 + $0x50] sm:$0xff] }
 0x9c9   :  { %4459 = vmatpush1.msra.mxu0 %v4275_v5  ;;  %4377 = vmatprep.subr.mxu1 %v4326_v50  ;;  %v4318_v62 = vld [vmem:[#allocation4 + $0x1c8] sm:$0xff]  ;;  %v4317_v43 = vld [vmem:[#allocation4 + $0x1c0] sm:$0xff]  ;;  %v4316_v58 = vld [vmem:[#allocation4 + $0x1b8] sm:$0xff] }
 0x9ca   :  { %4460 = vmatprep.subr.mxu0 %v4274_v28  ;;  %4378 = vmatpush1.msra.mxu1 %v4325_v52  ;;  %v4266_v4 = vld [vmem:[#allocation4 + $0x48] sm:$0xff]  ;;  %v4265_v6 = vld [vmem:[#allocation4 + $0x40] sm:$0xff]  ;;  %v4264_v48 = vld [vmem:[#allocation4 + $0x38] sm:$0xff] }
 0x9cb   :  { %4461 = vmatpush1.msra.mxu0 %v4273_v2  ;;  %4379 = vmatprep.subr.mxu1 %v4324_v9  ;;  %v4315_v56 = vld [vmem:[#allocation4 + $0x1b0] sm:$0xff]  ;;  %v4314_v10 = vld [vmem:[#allocation4 + $0x1a8] sm:$0xff]  ;;  %v4313_v25 = vld [vmem:[#allocation4 + $0x1a0] sm:$0xff] }
 0x9cc   :  { %4462 = vmatprep.subr.mxu0 %v4272_v14  ;;  %4380 = vmatpush1.msra.mxu1 %v4323_v1  ;;  %v4263_v45 = vld [vmem:[#allocation4 + $0x30] sm:$0xff]  ;;  %v4262_v29 = vld [vmem:[#allocation4 + $0x28] sm:$0xff]  ;;  %v4261_v26 = vld [vmem:[#allocation4 + $0x20] sm:$0xff] }
 0x9cd   :  { %4463 = vmatpush1.msra.mxu0 %v4271_v59  ;;  %4381 = vmatprep.subr.mxu1 %v4322_v34  ;;  %v4312_v51 = vld [vmem:[#allocation4 + $0x198] sm:$0xff]  ;;  %v4311_v0 = vld [vmem:[#allocation4 + $0x190] sm:$0xff]  ;;  %v4310_v49 = vld [vmem:[#allocation4 + $0x188] sm:$0xff] }
 0x9ce   :  { %4464 = vmatprep.subr.mxu0 %v4270_v31  ;;  %4382 = vmatpush1.msra.mxu1 %v4321_v53  ;;  %v4260_v37 = vld [vmem:[#allocation4 + $0x18] sm:$0xff]  ;;  %v4259_v38 = vld [vmem:[#allocation4 + $0x10] sm:$0xff]  ;;  %v4258_v16 = vld [vmem:[#allocation4 + $0x8] sm:$0xff] }
 0x9cf   :  { %4465 = vmatpush1.msra.mxu0 %v4269_v57  ;;  %4383 = vmatprep.subr.mxu1 %v4320_v19  ;;  %v4309_v30 = vld [vmem:[#allocation4 + $0x180] sm:$0xff]  ;;  %v4356_v8 = vld [vmem:[#allocation4 + $0x2f8] sm:$0xff]  ;;  %v4355_v61 = vld [vmem:[#allocation4 + $0x2f0] sm:$0xff] }
 0x9d0   :  { %4466 = vmatprep.subr.mxu0 %v4268_v18  ;;  %4384 = vmatpush1.msra.mxu1 %v4319_v11  ;;  %v4257_v36 = vld [vmem:[#allocation4] sm:$0xff]  ;;  %v4304_v12 = vld [vmem:[#allocation4 + $0x178] sm:$0xff]  ;;  %v4303_v46 = vld [vmem:[#allocation4 + $0x170] sm:$0xff] }
 0x9d1   :  { %4467 = vmatpush1.msra.mxu0 %v4267_v40  ;;  %4385 = vmatprep.subr.mxu1 %v4318_v62  ;;  %v4354_v7 = vld [vmem:[#allocation4 + $0x2e8] sm:$0xff]  ;;  %v4353_v42 = vld [vmem:[#allocation4 + $0x2e0] sm:$0xff]  ;;  %v4352_v13 = vld [vmem:[#allocation4 + $0x2d8] sm:$0xff] }
 0x9d2   :  { %4468 = vmatprep.subr.mxu0 %v4266_v4  ;;  %4386 = vmatpush1.msra.mxu1 %v4317_v43  ;;  %v4302_v27 = vld [vmem:[#allocation4 + $0x168] sm:$0xff]  ;;  %v4301_v24 = vld [vmem:[#allocation4 + $0x160] sm:$0xff]  ;;  %v4300_v33 = vld [vmem:[#allocation4 + $0x158] sm:$0xff] }
 0x9d3   :  { %4469 = vmatpush1.msra.mxu0 %v4265_v6  ;;  %4387 = vmatprep.subr.mxu1 %v4316_v58  ;;  %v4351_v23 = vld [vmem:[#allocation4 + $0x2d0] sm:$0xff]  ;;  %v4350_v39 = vld [vmem:[#allocation4 + $0x2c8] sm:$0xff]  ;;  %v4349_v20 = vld [vmem:[#allocation4 + $0x2c0] sm:$0xff] }
 0x9d4   :  { %4470 = vmatprep.subr.mxu0 %v4264_v48  ;;  %4388 = vmatpush1.msra.mxu1 %v4315_v56  ;;  %v4299_v32 = vld [vmem:[#allocation4 + $0x150] sm:$0xff]  ;;  %v4298_v22 = vld [vmem:[#allocation4 + $0x148] sm:$0xff]  ;;  %v4297_v54 = vld [vmem:[#allocation4 + $0x140] sm:$0xff] }
 0x9d5   :  { %4471 = vmatpush1.msra.mxu0 %v4263_v45  ;;  %4389 = vmatprep.subr.mxu1 %v4314_v10  ;;  %v4348_v3 = vld [vmem:[#allocation4 + $0x2b8] sm:$0xff]  ;;  %v4347_v5 = vld [vmem:[#allocation4 + $0x2b0] sm:$0xff]  ;;  %v4346_v28 = vld [vmem:[#allocation4 + $0x2a8] sm:$0xff] }
 0x9d6   :  { %4472 = vmatprep.subr.mxu0 %v4262_v29  ;;  %4390 = vmatpush1.msra.mxu1 %v4313_v25  ;;  %v4296_v41 = vld [vmem:[#allocation4 + $0x138] sm:$0xff]  ;;  %v4295_v50 = vld [vmem:[#allocation4 + $0x130] sm:$0xff]  ;;  %v4294_v52 = vld [vmem:[#allocation4 + $0x128] sm:$0xff] }
 0x9d7   :  { %4473 = vmatpush1.msra.mxu0 %v4261_v26  ;;  %4391 = vmatprep.subr.mxu1 %v4312_v51  ;;  %v4345_v2 = vld [vmem:[#allocation4 + $0x2a0] sm:$0xff]  ;;  %v4344_v14 = vld [vmem:[#allocation4 + $0x298] sm:$0xff]  ;;  %v4343_v59 = vld [vmem:[#allocation4 + $0x290] sm:$0xff] }
 0x9d8   :  { %4474 = vmatprep.subr.mxu0 %v4260_v37  ;;  %4392 = vmatpush1.msra.mxu1 %v4311_v0  ;;  %v4293_v9 = vld [vmem:[#allocation4 + $0x120] sm:$0xff]  ;;  %v4292_v1 = vld [vmem:[#allocation4 + $0x118] sm:$0xff]  ;;  %v4291_v34 = vld [vmem:[#allocation4 + $0x110] sm:$0xff] }
 0x9d9   :  { %4475 = vmatpush1.msra.mxu0 %v4259_v38  ;;  %4393 = vmatprep.subr.mxu1 %v4310_v49  ;;  %v4342_v31 = vld [vmem:[#allocation4 + $0x288] sm:$0xff]  ;;  %v4341_v57 = vld [vmem:[#allocation4 + $0x280] sm:$0xff]  ;;  %v4558_v4 = vld [vmem:[#allocation4 + $0x3f8] sm:$0xff] }
 0x9da   :  { %4476 = vmatprep.subr.mxu0 %v4258_v16  ;;  %4394 = vmatpush1.msra.mxu1 %v4309_v30  ;;  %v4290_v53 = vld [vmem:[#allocation4 + $0x108] sm:$0xff]  ;;  %v4289_v18 = vld [vmem:[#allocation4 + $0x100] sm:$0xff]  ;;  %v4557_v43 = vld [vmem:[#allocation4 + $0x3f0] sm:$0xff] }
 0x9db   :  { %4477 = vmatpush1.msra.mxu0 %v4257_v36  ;;  %4411 = vmatprep.subr.mxu1 %v4356_v8  ;;  %v4306_v19 = vld [vmem:[#allocation8 + $0x28] sm:$0xff]  ;;  %v4305_v40 = vld [vmem:[#allocation8 + $0x20] sm:$0xff]  ;;  %v4308_v6 = vld [vmem:[#allocation8 + $0x38] sm:$0xff] }
 0x9dc   :  { %4494 = vmatprep.subr.mxu0 %v4304_v12  ;;  %4412 = vmatpush2.msra.mxu1 %v4355_v61  ;;  %v4254_v11 = vld [vmem:[#allocation8 + $0x8] sm:$0xff]  ;;  %v4253_v62 = vld [vmem:[#allocation8] sm:$0xff]  ;;  %v4256_v48 = vld [vmem:[#allocation8 + $0x18] sm:$0xff] }
 0x9dd   :  { %4495 = vmatpush2.msra.mxu0 %v4303_v46  ;;  %4413 = vmatprep.subr.mxu1 %v4354_v7  ;;  %v4556_v58 = vld [vmem:[#allocation4 + $0x3e8] sm:$0xff]  ;;  %v4555_v56 = vld [vmem:[#allocation4 + $0x3e0] sm:$0xff]  ;;  %v4554_v45 = vld [vmem:[#allocation4 + $0x3d8] sm:$0xff] }
 0x9de   :  { %4496 = vmatprep.subr.mxu0 %v4302_v27  ;;  %4414 = vmatpush2.msra.mxu1 %v4353_v42  ;;  %v4307_v10 = vld [vmem:[#allocation8 + $0x30] sm:$0xff]  ;;  %v4552_v26 = vld [vmem:[#allocation4 + $0x3c8] sm:$0xff]  ;;  %v4551_v37 = vld [vmem:[#allocation4 + $0x3c0] sm:$0xff] }
 0x9df   :  { %4497 = vmatpush2.msra.mxu0 %v4301_v24  ;;  %4415 = vmatprep.subr.mxu1 %v4352_v13  ;;  %v4553_v29 = vld [vmem:[#allocation4 + $0x3d0] sm:$0xff]  ;;  %v4524_v51 = vld [vmem:[#allocation8 + $0x48] sm:$0xff]  ;;  %v4550_v0 = vld [vmem:[#allocation4 + $0x3b8] sm:$0xff] }
 0x9e0   :  { %4498 = vmatprep.subr.mxu0 %v4300_v33  ;;  %4416 = vmatpush2.msra.mxu1 %v4351_v23  ;;  %v4255_v25 = vld [vmem:[#allocation8 + $0x10] sm:$0xff]  ;;  %v4548_v49 = vld [vmem:[#allocation4 + $0x3a8] sm:$0xff]  ;;  %v4547_v16 = vld [vmem:[#allocation4 + $0x3a0] sm:$0xff] }
 0x9e1   :  { %4499 = vmatpush2.msra.mxu0 %v4299_v32  ;;  %4417 = vmatprep.subr.mxu1 %v4350_v39  ;;  %v4549_v38 = vld [vmem:[#allocation4 + $0x3b0] sm:$0xff]  ;;  %v4546_v30 = vld [vmem:[#allocation4 + $0x398] sm:$0xff]  ;;  %v4544_v8 = vld [vmem:[#allocation4 + $0x388] sm:$0xff] }
 0x9e2   :  { %4500 = vmatprep.subr.mxu0 %v4298_v22  ;;  %4418 = vmatpush2.msra.mxu1 %v4349_v20  ;;  %v4545_v36 = vld [vmem:[#allocation4 + $0x390] sm:$0xff]  ;;  %v4543_v12 = vld [vmem:[#allocation4 + $0x380] sm:$0xff]  ;;  %v4542_v61 = vld [vmem:[#allocation4 + $0x378] sm:$0xff] }
 0x9e3   :  { %4501 = vmatpush2.msra.mxu0 %v4297_v54  ;;  %4419 = vmatprep.subr.mxu1 %v4348_v3  ;;  %v4541_v46 = vld [vmem:[#allocation4 + $0x370] sm:$0xff]  ;;  %v4540_v7 = vld [vmem:[#allocation4 + $0x368] sm:$0xff]  ;;  %v4539_v27 = vld [vmem:[#allocation4 + $0x360] sm:$0xff] }
 0x9e4   :  { %4502 = vmatprep.subr.mxu0 %v4296_v41  ;;  %4420 = vmatpush2.msra.mxu1 %v4347_v5  ;;  %v4538_v42 = vld [vmem:[#allocation4 + $0x358] sm:$0xff]  ;;  %v4537_v24 = vld [vmem:[#allocation4 + $0x350] sm:$0xff]  ;;  %v4536_v13 = vld [vmem:[#allocation4 + $0x348] sm:$0xff] }
 0x9e5   :  { %4503 = vmatpush2.msra.mxu0 %v4295_v50  ;;  %4421 = vmatprep.subr.mxu1 %v4346_v28  ;;  %v4535_v33 = vld [vmem:[#allocation4 + $0x340] sm:$0xff]  ;;  %v4534_v23 = vld [vmem:[#allocation4 + $0x338] sm:$0xff]  ;;  %v4533_v32 = vld [vmem:[#allocation4 + $0x330] sm:$0xff] }
 0x9e6   :  { %4504 = vmatprep.subr.mxu0 %v4294_v52  ;;  %4422 = vmatpush2.msra.mxu1 %v4345_v2  ;;  %v4532_v39 = vld [vmem:[#allocation4 + $0x328] sm:$0xff]  ;;  %v4531_v22 = vld [vmem:[#allocation4 + $0x320] sm:$0xff]  ;;  %v4530_v20 = vld [vmem:[#allocation4 + $0x318] sm:$0xff] }
 0x9e7   :  { %4505 = vmatpush2.msra.mxu0 %v4293_v9  ;;  %4423 = vmatprep.subr.mxu1 %v4344_v14  ;;  %v4529_v54 = vld [vmem:[#allocation4 + $0x310] sm:$0xff]  ;;  %v4528_v3 = vld [vmem:[#allocation4 + $0x308] sm:$0xff]  ;;  %v4527_v41 = vld [vmem:[#allocation4 + $0x300] sm:$0xff] }
 0x9e8   :  { %4506 = vmatprep.subr.mxu0 %v4292_v1  ;;  %4424 = vmatpush2.msra.mxu1 %v4343_v59  ;;  %v4574_v5 = vld [vmem:[#allocation4 + $0x478] sm:$0xff]  ;;  %v4573_v50 = vld [vmem:[#allocation4 + $0x470] sm:$0xff]  ;;  %v4572_v28 = vld [vmem:[#allocation4 + $0x468] sm:$0xff] }
 0x9e9   :  { %4507 = vmatpush2.msra.mxu0 %v4291_v34  ;;  %4425 = vmatprep.subr.mxu1 %v4342_v31  ;;  %v4571_v52 = vld [vmem:[#allocation4 + $0x460] sm:$0xff]  ;;  %v4570_v2 = vld [vmem:[#allocation4 + $0x458] sm:$0xff]  ;;  %v4569_v9 = vld [vmem:[#allocation4 + $0x450] sm:$0xff] }
 0x9ea   :  { %4508 = vmatprep.subr.mxu0 %v4290_v53  ;;  %4426 = vmatpush2.msra.mxu1 %v4341_v57  ;;  %v4568_v14 = vld [vmem:[#allocation4 + $0x448] sm:$0xff]  ;;  %v4567_v1 = vld [vmem:[#allocation4 + $0x440] sm:$0xff]  ;;  %v4566_v59 = vld [vmem:[#allocation4 + $0x438] sm:$0xff] }
 0x9eb   :  { %5690 = vmatprep.mubr.msk.f32.mxu1 %vm2062_vm9, %v4306_v19  ;;  %4509 = vmatpush2.msra.mxu0 %v4289_v18  ;;  %v4565_v34 = vld [vmem:[#allocation4 + $0x430] sm:$0xff]  ;;  %v4564_v31 = vld [vmem:[#allocation4 + $0x428] sm:$0xff]  ;;  %v4563_v53 = vld [vmem:[#allocation4 + $0x420] sm:$0xff] }
 0x9ec   :  { %5692 = vmatprep.mubr.msk.f32.mxu0 %vm2062_vm9, %v4254_v11  ;;  %4428 = vmatmul.mubr.f32.vlgmr.msra.gmra.mxu1 %v4305_v40  ;;  %v4562_v57 = vld [vmem:[#allocation4 + $0x418] sm:$0xff]  ;;  %v4561_v19 = vld [vmem:[#allocation4 + $0x410] sm:$0xff]  ;;  %v4560_v18 = vld [vmem:[#allocation4 + $0x408] sm:$0xff] }
 0x9ed   :  { %4511 = vmatmul.mubr.f32.vlgmr.msra.gmra.mxu0 %v4253_v62  ;;  %4581 = vmatprep.subr.mxu1 %v4558_v4  ;;  %v4559_v11 = vld [vmem:[#allocation4 + $0x400] sm:$0xff]  ;;  %v4526_v62 = vld [vmem:[#allocation8 + $0x58] sm:$0xff]  ;;  %v4525_v4 = vld [vmem:[#allocation8 + $0x50] sm:$0xff] }
 0x9ee   :  { %4582 = vmatpush1.msra.mxu1 %v4557_v43  ;;  %5691 = vmatprep.mubr.msk.f32.mxu1 %vm2062_vm9, %v4308_v6  ;;  %v4523_v40 = vld [vmem:[#allocation8 + $0x40] sm:$0xff]  ;;  %v4769_v43 = vld [vmem:[%s8494_s19 + $0xf8] sm:$0xff]  ;;  %v4885_v44 = vld [vmem:[#allocation33 + $0x60] sm:$0xff] }
 0x9ef   :  { %4583 = vmatprep.subr.mxu1 %v4556_v58  ;;  %5693 = vmatprep.mubr.msk.f32.mxu0 %vm2062_vm9, %v4256_v48  ;;  %v4753_v6 = vld [vmem:[%s8494_s19 + $0x78] sm:$0xff]  ;;  %v4768_v58 = vld [vmem:[%s8494_s19 + $0xf0] sm:$0xff] }
 0x9f0   :  { %4584 = vmatpush1.msra.mxu1 %v4555_v56  ;;  %5775 = vmatprep.subr.mxu0 %v4769_v43  ;;  %v4752_v48 = vld [vmem:[%s8494_s19 + $0x70] sm:$0xff]  ;;  %v4767_v56 = vld [vmem:[%s8494_s19 + $0xe8] sm:$0xff] }
 0x9f1   :  { %4585 = vmatprep.subr.mxu1 %v4554_v45  ;;  %4434 = vmatmul.mubr.f32.gmra.mxu1 %v4307_v10  ;;  %v4751_v45 = vld [vmem:[%s8494_s19 + $0x68] sm:$0xff]  ;;  %v4766_v10 = vld [vmem:[%s8494_s19 + $0xe0] sm:$0xff] }
 0x9f2   :  { %4586 = vmatpush1.msra.mxu1 %v4553_v29  ;;  %4517 = vmatmul.mubr.f32.gmra.mxu0 %v4255_v25  ;;  %v4750_v29 = vld [vmem:[%s8494_s19 + $0x60] sm:$0xff]  ;;  %v4765_v25 = vld [vmem:[%s8494_s19 + $0xd8] sm:$0xff] }
 0x9f3   :  { %4587 = vmatprep.subr.mxu1 %v4552_v26  ;;  %5694 = vmatprep.mubr.msk.f32.mxu1 %vm2062_vm9, %v4524_v51  ;;  %v4749_v26 = vld [vmem:[%s8494_s19 + $0x58] sm:$0xff]  ;;  %v4764_v51 = vld [vmem:[%s8494_s19 + $0xd0] sm:$0xff] }
 0x9f4   :  { %4588 = vmatpush1.msra.mxu1 %v4551_v37  ;;  %5776 = vmatpush3.msra.mxu0 %v4753_v6  ;;  %v4748_v37 = vld [vmem:[%s8494_s19 + $0x50] sm:$0xff] }
 0x9f5   :  { %4589 = vmatprep.subr.mxu1 %v4550_v0  ;;  %5777 = vmatprep.subr.mxu0 %v4768_v58  ;;  %v4763_v0 = vld [vmem:[%s8494_s19 + $0xc8] sm:$0xff] }
 0x9f6   :  { %4590 = vmatpush1.msra.mxu1 %v4549_v38  ;;  %5778 = vmatpush3.msra.mxu0 %v4752_v48  ;;  %v4747_v38 = vld [vmem:[%s8494_s19 + $0x48] sm:$0xff] }
 0x9f7   :  { %4591 = vmatprep.subr.mxu1 %v4548_v49  ;;  %5779 = vmatprep.subr.mxu0 %v4767_v56  ;;  %v4762_v49 = vld [vmem:[%s8494_s19 + $0xc0] sm:$0xff] }
 0x9f8   :  { %4592 = vmatpush1.msra.mxu1 %v4547_v16  ;;  %5780 = vmatpush3.msra.mxu0 %v4751_v45  ;;  %v4746_v16 = vld [vmem:[%s8494_s19 + $0x40] sm:$0xff] }
 0x9f9   :  { %4593 = vmatprep.subr.mxu1 %v4546_v30  ;;  %5781 = vmatprep.subr.mxu0 %v4766_v10  ;;  %v4761_v30 = vld [vmem:[%s8494_s19 + $0xb8] sm:$0xff] }
 0x9fa   :  { %4594 = vmatpush1.msra.mxu1 %v4545_v36  ;;  %5782 = vmatpush3.msra.mxu0 %v4750_v29  ;;  %v4745_v36 = vld [vmem:[%s8494_s19 + $0x38] sm:$0xff] }
 0x9fb   :  { %4595 = vmatprep.subr.mxu1 %v4544_v8  ;;  %5783 = vmatprep.subr.mxu0 %v4765_v25  ;;  %v4760_v8 = vld [vmem:[%s8494_s19 + $0xb0] sm:$0xff] }
 0x9fc   :  { %4596 = vmatpush1.msra.mxu1 %v4543_v12  ;;  %5784 = vmatpush3.msra.mxu0 %v4749_v26  ;;  %v4744_v12 = vld [vmem:[%s8494_s19 + $0x30] sm:$0xff] }
 0x9fd   :  { %4597 = vmatprep.subr.mxu1 %v4542_v61  ;;  %5785 = vmatprep.subr.mxu0 %v4764_v51  ;;  %v4759_v61 = vld [vmem:[%s8494_s19 + $0xa8] sm:$0xff] }
 0x9fe   :  { %4598 = vmatpush1.msra.mxu1 %v4541_v46  ;;  %5786 = vmatpush3.msra.mxu0 %v4748_v37  ;;  %v4743_v46 = vld [vmem:[%s8494_s19 + $0x28] sm:$0xff] }
 0x9ff   :  { %4599 = vmatprep.subr.mxu1 %v4540_v7  ;;  %5787 = vmatprep.subr.mxu0 %v4763_v0  ;;  %v4758_v7 = vld [vmem:[%s8494_s19 + $0xa0] sm:$0xff] }
 0xa00   :  { %4600 = vmatpush1.msra.mxu1 %v4539_v27  ;;  %5788 = vmatpush3.msra.mxu0 %v4747_v38  ;;  %v4742_v27 = vld [vmem:[%s8494_s19 + $0x20] sm:$0xff] }
 0xa01   :  { %4601 = vmatprep.subr.mxu1 %v4538_v42  ;;  %5789 = vmatprep.subr.mxu0 %v4762_v49  ;;  %v4757_v42 = vld [vmem:[%s8494_s19 + $0x98] sm:$0xff] }
 0xa02   :  { %4602 = vmatpush1.msra.mxu1 %v4537_v24  ;;  %5790 = vmatpush3.msra.mxu0 %v4746_v16  ;;  %v4741_v24 = vld [vmem:[%s8494_s19 + $0x18] sm:$0xff] }
 0xa03   :  { %4603 = vmatprep.subr.mxu1 %v4536_v13  ;;  %5791 = vmatprep.subr.mxu0 %v4761_v30  ;;  %v4756_v13 = vld [vmem:[%s8494_s19 + $0x90] sm:$0xff] }
 0xa04   :  { %4604 = vmatpush1.msra.mxu1 %v4535_v33  ;;  %5792 = vmatpush3.msra.mxu0 %v4745_v36  ;;  %v4740_v33 = vld [vmem:[%s8494_s19 + $0x10] sm:$0xff] }
 0xa05   :  { %4605 = vmatprep.subr.mxu1 %v4534_v23  ;;  %5793 = vmatprep.subr.mxu0 %v4760_v8  ;;  %v4755_v23 = vld [vmem:[%s8494_s19 + $0x88] sm:$0xff] }
 0xa06   :  { %4606 = vmatpush1.msra.mxu1 %v4533_v32  ;;  %5794 = vmatpush3.msra.mxu0 %v4744_v12  ;;  %v4739_v32 = vld [vmem:[%s8494_s19 + $0x8] sm:$0xff] }
 0xa07   :  { %4607 = vmatprep.subr.mxu1 %v4532_v39  ;;  %5795 = vmatprep.subr.mxu0 %v4759_v61  ;;  %v4754_v39 = vld [vmem:[%s8494_s19 + $0x80] sm:$0xff] }
 0xa08   :  { %4608 = vmatpush1.msra.mxu1 %v4531_v22  ;;  %5796 = vmatpush3.msra.mxu0 %v4743_v46  ;;  %v4738_v22 = vld [vmem:[%s8494_s19] sm:$0xff] }
 0xa09   :  { %4609 = vmatprep.subr.mxu1 %v4530_v20  ;;  %5797 = vmatprep.subr.mxu0 %v4758_v7 }
 0xa0a   :  { %4610 = vmatpush1.msra.mxu1 %v4529_v54  ;;  %5798 = vmatpush3.msra.mxu0 %v4742_v27 }
 0xa0b   :  { %4611 = vmatprep.subr.mxu1 %v4528_v3  ;;  %5799 = vmatprep.subr.mxu0 %v4757_v42 }
 0xa0c   :  { %4612 = vmatpush1.msra.mxu1 %v4527_v41  ;;  %5800 = vmatpush3.msra.mxu0 %v4741_v24 }
 0xa0d   :  { %4629 = vmatprep.subr.mxu1 %v4574_v5  ;;  %5801 = vmatprep.subr.mxu0 %v4756_v13 }
 0xa0e   :  { %4630 = vmatpush2.msra.mxu1 %v4573_v50  ;;  %5802 = vmatpush3.msra.mxu0 %v4740_v33 }
 0xa0f   :  { %4631 = vmatprep.subr.mxu1 %v4572_v28  ;;  %5803 = vmatprep.subr.mxu0 %v4755_v23 }
 0xa10   :  { %4632 = vmatpush2.msra.mxu1 %v4571_v52  ;;  %5804 = vmatpush3.msra.mxu0 %v4739_v32 }
 0xa11   :  { %4633 = vmatprep.subr.mxu1 %v4570_v2  ;;  %5805 = vmatprep.subr.mxu0 %v4754_v39 }
 0xa12   :  { %4634 = vmatpush2.msra.mxu1 %v4569_v9  ;;  %5806 = vmatpush3.msra.mxu0 %v4738_v22 }
 0xa13   :  { %4635 = vmatprep.subr.mxu1 %v4568_v14 }
 0xa14   :  { %4636 = vmatpush2.msra.mxu1 %v4567_v1 }
 0xa15   :  { %4637 = vmatprep.subr.mxu1 %v4566_v59 }
 0xa16   :  { %4638 = vmatpush2.msra.mxu1 %v4565_v34 }
 0xa17   :  { %4639 = vmatprep.subr.mxu1 %v4564_v31 }
 0xa18   :  { %4640 = vmatpush2.msra.mxu1 %v4563_v53 }
 0xa19   :  { %4641 = vmatprep.subr.mxu1 %v4562_v57 }
 0xa1a   :  { %4642 = vmatpush2.msra.mxu1 %v4561_v19 }
 0xa1b   :  { %4643 = vmatprep.subr.mxu1 %v4560_v18 }
 0xa1c   :  { %4644 = vmatpush2.msra.mxu1 %v4559_v11 }
 0xa1d   :  { %4646 = vmatmul.mubr.f32.vlgmr.msra.gmra.mxu1 %v4523_v40  ;;  %5879 = vmatprep.subr.mxu1 %v8578_v17 }
 0xa1e   :  { %5695 = vmatprep.mubr.msk.f32.mxu1 %vm2062_vm9, %v4526_v62 }
 0xa21   :  { %4652 = vmatmul.mubr.f32.gmra.mxu1 %v4525_v4 }
 0xa22   :  { %5883 = vmatprep.mubr.msk.f32.mxu1 %vm6638_vm5, %v8578_v17 }
 0xaac   :  { %v4429_v20 = vpop.f32.mrf.mxu1 }
 0xaad   :  { %v4512_v54 = vpop.f32.mrf.mxu0 }
 0xaae   :  { %v4431_v3 = vpop.f32.mrf.mxu1  ;;  %v4513_v2 = vadd.f32 %v4512_v54, %v4429_v20 }
 0xaaf   :  { %v4514_v5 = vpop.f32.mrf.mxu0 }
 0xab0   :  { %v4515_v9 = vadd.f32 %v4514_v5, %v4431_v3 }
 0xab1   :  { %v4435_v41 = vpop.f32.mrf.mxu1 }
 0xab2   :  { %v4518_v50 = vpop.f32.mrf.mxu0 }
 0xab3   :  { %v4437_v28 = vpop.f32.mrf.mxu1  ;;  %v4519_v59 = vadd.f32 %v4518_v50, %v4435_v41  ;;  %v4888_v50 = vld [vmem:[#allocation33 + $0x78] sm:$0xff] }
 0xab4   :  { %v4520_v14 = vpop.f32.mrf.mxu0  ;;  %4908 = vmatprep.subr.mxu0 %v4888_v50 }
 0xab5   :  { %v4521_v57 = vadd.f32 %v4520_v14, %v4437_v28  ;;  %v4887_v28 = vld [vmem:[#allocation33 + $0x70] sm:$0xff]  ;;  %v4882_v14 = vld [vmem:[#allocation33 + $0x48] sm:$0xff] }
 0xadd   :  { %v4647_v52 = vpop.f32.mrf.mxu1 }
 0xade   :  { %v8397_v34 = vadd.f32 %v4647_v52, %v4513_v2  ;;  %v4886_v52 = vld [vmem:[#allocation33 + $0x68] sm:$0xff]  ;;  %v4884_v2 = vld [vmem:[#allocation33 + $0x58] sm:$0xff] }
 0xadf   :  { %v4649_v1 = vpop.f32.mrf.mxu1 }
 0xae0   :  { %v8399_v31 = vadd.f32 %v4649_v1, %v4515_v9  ;;  %v4676_v11 = vmul.f32 %v8397_v34, %v8397_v34  ;;  %v4883_v9 = vld [vmem:[#allocation33 + $0x50] sm:$0xff]  ;;  %v4881_v1 = vld [vmem:[#allocation33 + $0x40] sm:$0xff] }
 0xae1   :  { %v4653_v53 = vpop.f32.mrf.mxu1 }
 0xae2   :  { %v8401_v19 = vadd.f32 %v4653_v53, %v4519_v59  ;;  %v4677_v43 = vmul.f32 %v8399_v31, %v8399_v31  ;;  %v4880_v59 = vld [vmem:[#allocation33 + $0x38] sm:$0xff]  ;;  %v4879_v53 = vld [vmem:[#allocation33 + $0x30] sm:$0xff] }
 0xae3   :  { %v4655_v18 = vpop.f32.mrf.mxu1 }
 0xae4   :  { %v4662_v40 = vadd.f32 %v8401_v19, %v8397_v34  ;;  %v4678_v62 = vmul.f32 %v8401_v19, %v8401_v19  ;;  %v8409_v4 = vadd.f32 %v4655_v18, %v4521_v57  ;;  %v4878_v57 = vld [vmem:[#allocation33 + $0x28] sm:$0xff]  ;;  %v4877_v18 = vld [vmem:[#allocation33 + $0x20] sm:$0xff] }
 0xae6   :  { %v4663_v6 = vrot.slane %v4662_v40, 4  ;;  %v4680_v58 = vadd.f32 %v4678_v62, %v4676_v11  ;;  %v4669_v48 = vadd.f32 %v8409_v4, %v8399_v31  ;;  %v4679_v56 = vmul.f32 %v8409_v4, %v8409_v4  ;;  %v4876_v11 = vld [vmem:[#allocation33 + $0x18] sm:$0xff]  ;;  %v4874_v62 = vld [vmem:[#allocation33 + $0x8] sm:$0xff] }
 0xae8   :  { %v4664_v45 = vadd.f32 %v4663_v6, %v4662_v40  ;;  %v4681_v10 = vrot.slane %v4680_v58, 4  ;;  %v4670_v29 = vrot.slane %v4669_v48, 4  ;;  %v4687_v25 = vadd.f32 %v4679_v56, %v4677_v43  ;;  %v4875_v40 = vld [vmem:[#allocation33 + $0x10] sm:$0xff]  ;;  %v4873_v43 = vld [vmem:[#allocation33] sm:$0xff] }
 0xaea   :  { %v4665_v26 = vrot.slane %v4664_v45, 2  ;;  %v4682_v51 = vadd.f32 %v4681_v10, %v4680_v58  ;;  %v4671_v37 = vadd.f32 %v4670_v29, %v4669_v48  ;;  %v4688_v0 = vrot.slane %v4687_v25, 4 }
 0xaec   :  { %v4666_v38 = vadd.f32 %v4665_v26, %v4664_v45  ;;  %v4683_v49 = vrot.slane %v4682_v51, 2  ;;  %v4672_v16 = vrot.slane %v4671_v37, 2  ;;  %v4689_v30 = vadd.f32 %v4688_v0, %v4687_v25 }
 0xaee   :  { %v4667_v36 = vrot.slane %v4666_v38, 1  ;;  %v4684_v8 = vadd.f32 %v4683_v49, %v4682_v51  ;;  %v4673_v12 = vadd.f32 %v4672_v16, %v4671_v37  ;;  %v4690_v61 = vrot.slane %v4689_v30, 2 }
 0xaf0   :  { %v4685_v46 = vrot.slane %v4684_v8, 1  ;;  %v4674_v7 = vrot.slane %v4673_v12, 1  ;;  %v4691_v27 = vadd.f32 %v4690_v61, %v4689_v30  ;;  %v4668_v42 = vadd.f32 %v4667_v36, %v4666_v38 }
 0xaf2   :  { %v4675_v24 = vadd.f32 %v4674_v7, %v4673_v12  ;;  %v4692_v13 = vrot.slane %v4691_v27, 1  ;;  %v4686_v33 = vadd.f32 %v4685_v46, %v4684_v8 }
 0xaf4   :  { %v4693_v23 = vadd.f32 %v4692_v13, %v4691_v27  ;;  %v4696_v32 = vcombine.low %v4668_v42, %v4675_v24 }
 0xaf6   :  { %v4703_v39 = vrot.slane %v4696_v32, %v7650_v55  ;;  %v4718_v22 = vcombine.low %v4686_v33, %v4693_v23 }
 0xaf8   :  { %v4710_v20 = vrot.slane %v4703_v39, %v7650_v55  ;;  %v4725_v54 = vrot.slane %v4718_v22, %v7650_v55 }
 0xafa   :  { %4714 = vst.msk [vmem:[#allocation10] ss:$8 sm:$0x3] %vm4712_vm3, %v4710_v20  ;;  %v4732_v3 = vrot.slane %v4725_v54, %v7650_v55  ;;  %v4993_v20 = vld [vmem:[#allocation35] sm:$0xf] }
 0xafb   :  { %v5067_v54 = vld [vmem:[#allocation36] sm:$0xf] }
 0xafc   :  { %4734 = vst.msk [vmem:[#allocation10 + $0x1] ss:$8 sm:$0x3] %vm4712_vm3, %v4732_v3  ;;  %v6050_v3 = vld [vmem:[#allocation9] sm:$0xff] }
 0xb03   :  { %v4737_v41 = vld [vmem:[#allocation10 + $0x8] sm:$0x3]  ;;  %v4736_v5 = vld [vmem:[#allocation10] sm:$0x3] }
 0xb04   :  { %4834 = vmatprep.mubr.f32.mxu0 %v4737_v41 }
 0xb05   :  { %4835 = vmatmul.mubr.f32.vlgmr.msra.gmra.mxu0 %v4736_v5 }
 0xb06   :  { %4956 = vmatprep.mubr.f32.mxu0 %v8578_v17  ;;  %4909 = vmatpush1.msra.mxu0 %v4887_v28 }
 0xb07   :  { %4910 = vmatprep.subr.mxu0 %v4886_v52 }
 0xb08   :  { %4911 = vmatpush1.msra.mxu0 %v4885_v44 }
 0xb09   :  { %4912 = vmatprep.subr.mxu0 %v4884_v2 }
 0xb0a   :  { %4913 = vmatpush1.msra.mxu0 %v4883_v9 }
 0xb0b   :  { %4914 = vmatprep.subr.mxu0 %v4882_v14 }
 0xb0c   :  { %4915 = vmatpush1.msra.mxu0 %v4881_v1 }
 0xb0d   :  { %4916 = vmatprep.subr.mxu0 %v4880_v59 }
 0xb0e   :  { %4917 = vmatpush1.msra.mxu0 %v4879_v53 }
 0xb0f   :  { %4918 = vmatprep.subr.mxu0 %v4878_v57 }
 0xb10   :  { %4919 = vmatpush1.msra.mxu0 %v4877_v18 }
 0xb11   :  { %4920 = vmatprep.subr.mxu0 %v4876_v11 }
 0xb12   :  { %4921 = vmatpush1.msra.mxu0 %v4875_v40 }
 0xb13   :  { %4922 = vmatprep.subr.mxu0 %v4874_v62 }
 0xb14   :  { %4923 = vmatpush1.msra.mxu0 %v4873_v43 }
 0xb15   :  { %5872 = vmatprep.subr.mxu0 %v8578_v17 }
 0xbc5   :  { %v5807_v6 = vpop.f32.mrf.mxu0 }
 0xbc7   :  { %v5808_v58 = vpop.f32.mrf.mxu0 }
 0xbc8   :  { %v5809_v48 = vadd.f32 %v5808_v58, %v5807_v6 }
 0xbca   :  { %v4841_v56 = vmul.f32 0.03125, %v5809_v48 }
 0xbcc   :  { %v4842_v45 = vmul.f32 %v4841_v56, %v4841_v56 }
 0xbce   :  { %v4844_v10 = vrot.slane %v4842_v45, 7 }
 0xbd0   :  { %v4846_v29 = vsub.f32 %v4841_v56, %v4844_v10 }
 0xbd2   :  { %v4847_v25 = vadd.f32 1e-05, %v4846_v29 }
 0xbd4   :  { %6048 = vrsqrt.f32 %v4847_v25 }
 0xbe1   :  { %v6049_v26 = vpop.eup %6048 }
 0xbe2   :  { %v4856_v51 = vrot.slane %v6049_v26, %v7650_v55 }
 0xbe4   :  { %v4857_v37 = vcombine.high %v4856_v51, %v4856_v51 }
 0xbe6   :  { %v4864_v0 = vrot.slane %v4857_v37, %v7650_v55 }
 0xbe8   :  { %v4866_v38 = vmul.f32 %v4864_v0, %v7897_v60 }
 0xbea   :  { %v4867_v49 = vmul.f32 %v4866_v38, %v4841_v56  ;;  %4870 = vst.msk [vmem:[#allocation10] sm:$0x1] %vm4869_vm4, %v4866_v38 }
 0xbec   :  { %v4868_v16 = vsub.f32 %v7899_v21, %v4867_v49 }
 0xbee   :  { %4871 = vst.msk [vmem:[#allocation10 + $0x1] sm:$0x1] %vm4869_vm4, %v4868_v16 }
 0xbf5   :  { %v4872_v30 = vld [vmem:[#allocation10] sm:$0x3] }
 0xbf6   :  { %5696 = vmatmul.mubr.msk.f32.vlgmr.msra.gmra.mxu0 %vm2062_vm9, %v4872_v30 }
 0xbf7   :  { %5876 = vmatprep.mubr.msk.f32.mxu0 %vm6638_vm5, %v8578_v17 }
 0xcb6   :  { %v4958_v36 = vpop.f32.mrf.mxu0 }
 0xcb7   :  { %v4966_v55 = vrot.slane %v4958_v36, %v7672_v15  ;;  %v4978_v21 = vrot.slane %v4958_v36, %v7675_v35 }
 0xcb8   :  { %v4960_v8 = vpop.f32.mrf.mxu0 }
 0xcb9   :  { %v4971_v60 = vmul.f32 %v4966_v55, %v8397_v34  ;;  %v4973_v12 = vmul.f32 %v4966_v55, %v8401_v19  ;;  %v4970_v61 = vrot.slane %v4960_v8, %v7672_v15  ;;  %v4982_v42 = vrot.slane %v4960_v8, %v7675_v35 }
 0xcbb   :  { %v4985_v46 = vadd.f32 %v4978_v21, %v4973_v12  ;;  %v4972_v7 = vmul.f32 %v4970_v61, %v8399_v31  ;;  %v4974_v27 = vmul.f32 %v4970_v61, %v8409_v4  ;;  %v4983_v24 = vadd.f32 %v4978_v21, %v4971_v60 }
 0xcbd   :  { %v4984_v13 = vadd.f32 %v4982_v42, %v4972_v7  ;;  %v4986_v33 = vadd.f32 %v4982_v42, %v4974_v27  ;;  %v4989_v23 = vmax.f32 %v4985_v46, 0.0  ;;  %v4987_v34 = vmax.f32 %v4983_v24, 0.0 }
 0xcbf   :  { %v4988_v32 = vmax.f32 %v4984_v13, 0.0  ;;  %v4990_v39 = vmax.f32 %v4986_v33, 0.0 }
 0xcc1   :  { %v4992_v22 = vmax.f32 %v4989_v23, %v4990_v39  ;;  %v4991_v19 = vmax.f32 %v4987_v34, %v4988_v32 }
 0xcc3   :  { %5873 = vmatpush3.msra.mxu0 %v4992_v22  ;;  %5880 = vmatpush3.msra.mxu1 %v4992_v22 }
 0xcc4   :  { %5874 = vmatprep.subr.mxu0 %v6050_v3  ;;  %5881 = vmatprep.subr.mxu1 %v6050_v3 }
 0xcc5   :  { %5875 = vmatpush3.msra.mxu0 %v4991_v19  ;;  %5882 = vmatpush3.msra.mxu1 %v4991_v19 }
 0xcc6   :  { %5877 = vmatmul.mubr.msk.f32.vlgmr.msra.gmra.mxu0 %vm1768_vm8, %v4993_v20  ;;  %5884 = vmatmul.mubr.msk.f32.vlgmr.msra.gmra.mxu1 %vm1768_vm8, %v5067_v54 }
 0xd86   :  { %v5063_v35 = vpop.f32.mrf.mxu0  ;;  %v5137_v31 = vpop.f32.mrf.mxu1 }
 0xd87   :  { %v5141_v4 = vmax.f32 %v5063_v35, %v5137_v31 }
 0xd88   :  { %v5878_v41 = vpop.f32.mrf.mxu0  ;;  %v5885_v5 = vpop.f32.mrf.mxu1 }
 0xd89   :  { %5148 = vst [vmem:[#allocation9] sm:$0x1] %v5141_v4  ;;  %5149 = vst [vmem:[#allocation9 + $0x6] sm:$0x4] %v5141_v4 }
 0xd8a   :  { %5150 = vst [vmem:[#allocation9 + $0xf] sm:$0x2] %v5141_v4  ;;  %5151 = vst [vmem:[#allocation9 + $0x15] sm:$0x8] %v5141_v4 }
 0xd8b   :  { %6601 = dma.done.wait [#allocation11 + $0x3], 4096 }
 0xd8c   :  { %6602 = vsyncadd [#allocation11 + $0x3], 4294963200  ;;  %v5190_v50 = vld [vmem:[#allocation5 + $0xf8] sm:$0xff]  ;;  %v5189_v52 = vld [vmem:[#allocation5 + $0xf0] sm:$0xff]  ;;  %s6639_s19 = smov [#allocation45]  }
 0xd8d   :  { %v5172_v28 = vld [vmem:[#allocation5 + $0x78] sm:$0xff]  ;;  %5886 = vmatprep.subr.mxu0 %v5190_v50  ;;  %v5171_v44 = vld [vmem:[#allocation5 + $0x70] sm:$0xff]  ;;  %v5188_v2 = vld [vmem:[#allocation5 + $0xe8] sm:$0xff]  ;;  %s5554_s18 = sshll.u32 %s6639_s19, 4  ;;  %s5555_s18 = int_to_ptr.vmem [resolvable:$true] %s5554_s18 }
 0xd8e   :  { %5921 = vmatprep.subr.mxu1 %v5172_v28  ;;  %5887 = vmatpush3.msra.mxu0 %v5190_v50  ;;  %v5170_v9 = vld [vmem:[#allocation5 + $0x68] sm:$0xff]  ;;  %v5187_v14 = vld [vmem:[#allocation5 + $0xe0] sm:$0xff]  ;;  %v5186_v59 = vld [vmem:[#allocation5 + $0xd8] sm:$0xff]  ;;  %s6553_s5 = scalar_lea.vmem %s5555_s18, 32  ;;  %p6558_p0 = scmp.lt.s32.totalorder %s5555_s18, %s5555_s18 }
 0xd8f   :  { %5922 = vmatpush3.msra.mxu1 %v5172_v28  ;;  %5888 = vmatprep.subr.mxu0 %v5189_v52  ;;  %v5169_v1 = vld [vmem:[#allocation5 + $0x60] sm:$0xff]  ;;  %v5168_v53 = vld [vmem:[#allocation5 + $0x58] sm:$0xff]  ;;  %v5185_v57 = vld [vmem:[#allocation5 + $0xd0] sm:$0xff]  ;;  %p6554_p13 = scmp.ne.s32.totalorder %s5555_s18, %s6553_s5  ;;  %p6559_p1 = scmp.lt.s32.totalorder %s6553_s5, %s6553_s5 }
 0xd90   :  { %5923 = vmatprep.subr.mxu1 %v5171_v44  ;;  %5889 = vmatpush3.msra.mxu0 %v5189_v52  ;;  %v5167_v18 = vld [vmem:[#allocation5 + $0x50] sm:$0xff]  ;;  %v5184_v11 = vld [vmem:[#allocation5 + $0xc8] sm:$0xff]  ;;  %v5183_v62 = vld [vmem:[#allocation5 + $0xc0] sm:$0xff] }
 0xd91   :  { %5924 = vmatpush3.msra.mxu1 %v5171_v44  ;;  %5890 = vmatprep.subr.mxu0 %v5188_v2  ;;  %v5166_v40 = vld [vmem:[#allocation5 + $0x48] sm:$0xff]  ;;  %v5165_v43 = vld [vmem:[#allocation5 + $0x40] sm:$0xff]  ;;  %v5182_v6 = vld [vmem:[#allocation5 + $0xb8] sm:$0xff]  ;;  %p6560_p2 = por %p6559_p1, %p6558_p0 }
 0xd92   :  { %5925 = vmatprep.subr.mxu1 %v5170_v9  ;;  %5891 = vmatpush3.msra.mxu0 %v5188_v2  ;;  %v5164_v58 = vld [vmem:[#allocation5 + $0x38] sm:$0xff]  ;;  %v5181_v48 = vld [vmem:[#allocation5 + $0xb0] sm:$0xff]  ;;  %v5180_v45 = vld [vmem:[#allocation5 + $0xa8] sm:$0xff] }
 0xd93   :  { %5926 = vmatpush3.msra.mxu1 %v5170_v9  ;;  %5892 = vmatprep.subr.mxu0 %v5187_v14  ;;  %v5163_v56 = vld [vmem:[#allocation5 + $0x30] sm:$0xff]  ;;  %v5162_v10 = vld [vmem:[#allocation5 + $0x28] sm:$0xff]  ;;  %v5179_v29 = vld [vmem:[#allocation5 + $0xa0] sm:$0xff]  ;;  %p6561_p3 = pnand %p6560_p2, %p6554_p13 }
 0xd94   :  { %5927 = vmatprep.subr.mxu1 %v5169_v1  ;;  %5893 = vmatpush3.msra.mxu0 %v5187_v14  ;;  %v5161_v25 = vld [vmem:[#allocation5 + $0x20] sm:$0xff]  ;;  %v5178_v26 = vld [vmem:[#allocation5 + $0x98] sm:$0xff]  ;;  %v5177_v37 = vld [vmem:[#allocation5 + $0x90] sm:$0xff] }
 0xd95   :  { %5928 = vmatpush3.msra.mxu1 %v5169_v1  ;;  %5894 = vmatprep.subr.mxu0 %v5186_v59  ;;  %v5160_v51 = vld [vmem:[#allocation5 + $0x18] sm:$0xff]  ;;  %v5159_v0 = vld [vmem:[#allocation5 + $0x10] sm:$0xff]  ;;  %v5176_v38 = vld [vmem:[#allocation5 + $0x88] sm:$0xff] }
 0xd96   :  { %5929 = vmatprep.subr.mxu1 %v5168_v53  ;;  %5895 = vmatpush3.msra.mxu0 %v5186_v59  ;;  %v5158_v49 = vld [vmem:[#allocation5 + $0x8] sm:$0xff]  ;;  %v5175_v16 = vld [vmem:[#allocation5 + $0x80] sm:$0xff]  ;;  %v5173_v36 = vld [vmem:[#allocation9 + $0x10] sm:$0xff] }
 0xd97   :  { %5930 = vmatpush3.msra.mxu1 %v5168_v53  ;;  %5896 = vmatprep.subr.mxu0 %v5185_v57  ;;  %v5157_v30 = vld [vmem:[#allocation5] sm:$0xff]  ;;  %v5174_v8 = vld [vmem:[#allocation9 + $0x18] sm:$0xff]  ;;  %v5156_v60 = vld [vmem:[#allocation9 + $0x8] sm:$0xff] }
 0xd98   :  { %5931 = vmatprep.subr.mxu1 %v5167_v18  ;;  %5897 = vmatpush3.msra.mxu0 %v5185_v57  ;;  %v5155_v55 = vld [vmem:[#allocation9] sm:$0xff]  ;;  %v5341_v42 = vld [vmem:[#allocation41] sm:$0x3]  ;;  %v5468_v13 = vld [vmem:[#allocation42 + $0x70] sm:$0xff] }
 0xd99   :  { %5932 = vmatpush3.msra.mxu1 %v5167_v18  ;;  %5898 = vmatprep.subr.mxu0 %v5184_v11  ;;  %v5469_v24 = vld [vmem:[#allocation42 + $0x78] sm:$0xff]  ;;  %v5467_v33 = vld [vmem:[#allocation42 + $0x68] sm:$0xff]  ;;  %v5466_v23 = vld [vmem:[#allocation42 + $0x60] sm:$0xff] }
 0xd9a   :  { %5933 = vmatprep.subr.mxu1 %v5166_v40  ;;  %5899 = vmatpush3.msra.mxu0 %v5184_v11  ;;  %v5465_v32 = vld [vmem:[#allocation42 + $0x58] sm:$0xff]  ;;  %v5464_v39 = vld [vmem:[#allocation42 + $0x50] sm:$0xff]  ;;  %v5463_v34 = vld [vmem:[#allocation42 + $0x48] sm:$0xff] }
 0xd9b   :  { %5934 = vmatpush3.msra.mxu1 %v5166_v40  ;;  %5900 = vmatprep.subr.mxu0 %v5183_v62  ;;  %v5462_v22 = vld [vmem:[#allocation42 + $0x40] sm:$0xff]  ;;  %v5461_v19 = vld [vmem:[#allocation42 + $0x38] sm:$0xff]  ;;  %v5460_v20 = vld [vmem:[#allocation42 + $0x30] sm:$0xff] }
 0xd9c   :  { %5935 = vmatprep.subr.mxu1 %v5165_v43  ;;  %5901 = vmatpush3.msra.mxu0 %v5183_v62  ;;  %v5459_v54 = vld [vmem:[#allocation42 + $0x28] sm:$0xff]  ;;  %v5458_v3 = vld [vmem:[#allocation42 + $0x20] sm:$0xff]  ;;  %v5457_v35 = vld [vmem:[#allocation42 + $0x18] sm:$0xff] }
 0xd9d   :  { %5936 = vmatpush3.msra.mxu1 %v5165_v43  ;;  %5902 = vmatprep.subr.mxu0 %v5182_v6  ;;  %v5456_v31 = vld [vmem:[#allocation42 + $0x10] sm:$0xff]  ;;  %v5455_v4 = vld [vmem:[#allocation42 + $0x8] sm:$0xff]  ;;  %v5454_v41 = vld [vmem:[#allocation42] sm:$0xff] }
 0xd9e   :  { %5937 = vmatprep.subr.mxu1 %v5164_v58  ;;  %5903 = vmatpush3.msra.mxu0 %v5182_v6 }
 0xd9f   :  { %5938 = vmatpush3.msra.mxu1 %v5164_v58  ;;  %5904 = vmatprep.subr.mxu0 %v5181_v48 }
 0xda0   :  { %5939 = vmatprep.subr.mxu1 %v5163_v56  ;;  %5905 = vmatpush3.msra.mxu0 %v5181_v48 }
 0xda1   :  { %5940 = vmatpush3.msra.mxu1 %v5163_v56  ;;  %5906 = vmatprep.subr.mxu0 %v5180_v45 }
 0xda2   :  { %5941 = vmatprep.subr.mxu1 %v5162_v10  ;;  %5907 = vmatpush3.msra.mxu0 %v5180_v45 }
 0xda3   :  { %5942 = vmatpush3.msra.mxu1 %v5162_v10  ;;  %5908 = vmatprep.subr.mxu0 %v5179_v29 }
 0xda4   :  { %5943 = vmatprep.subr.mxu1 %v5161_v25  ;;  %5909 = vmatpush3.msra.mxu0 %v5179_v29 }
 0xda5   :  { %5944 = vmatpush3.msra.mxu1 %v5161_v25  ;;  %5910 = vmatprep.subr.mxu0 %v5178_v26 }
 0xda6   :  { %5945 = vmatprep.subr.mxu1 %v5160_v51  ;;  %5911 = vmatpush3.msra.mxu0 %v5178_v26 }
 0xda7   :  { %5946 = vmatpush3.msra.mxu1 %v5160_v51  ;;  %5912 = vmatprep.subr.mxu0 %v5177_v37 }
 0xda8   :  { %5947 = vmatprep.subr.mxu1 %v5159_v0  ;;  %5913 = vmatpush3.msra.mxu0 %v5177_v37 }
 0xda9   :  { %5948 = vmatpush3.msra.mxu1 %v5159_v0  ;;  %5914 = vmatprep.subr.mxu0 %v5176_v38 }
 0xdaa   :  { %5949 = vmatprep.subr.mxu1 %v5158_v49  ;;  %5915 = vmatpush3.msra.mxu0 %v5176_v38  ;;  %v5700_v38 = vld [vmem:[#allocation44] ss:$0 sm:$0xff] }
 0xdab   :  { %5950 = vmatpush3.msra.mxu1 %v5158_v49  ;;  %5916 = vmatprep.subr.mxu0 %v5175_v16 }
 0xdac   :  { %5951 = vmatprep.subr.mxu1 %v5157_v30  ;;  %5917 = vmatpush3.msra.mxu0 %v5175_v16 }
 0xdad   :  { %5918 = vmatprep.mubr.f32.mxu0 %v5173_v36  ;;  %5952 = vmatpush3.msra.mxu1 %v5157_v30 }
 0xdae   :  { %5953 = vmatprep.mubr.f32.mxu1 %v5155_v55  ;;  %5919 = vmatmul.mubr.f32.vlgmr.msra.gmra.mxu0 %v5174_v8 }
 0xdaf   :  { %5954 = vmatmul.mubr.f32.vlgmr.msra.gmra.mxu1 %v5156_v60  ;;  %5956 = vmatprep.subr.mxu0 %v8578_v17 }
 0xdb0   :  { %5960 = vmatprep.mubr.msk.f32.mxu0 %vm6638_vm5, %v8578_v17  ;;  %5963 = vmatprep.subr.mxu1 %v8578_v17 }
 0xdb1   :  { %5995 = vmatprep.mubr.msk.f32.mxu1 %vm6638_vm5, %v8578_v17  ;;  %5964 = vmatpush3.msra.mxu1 %v5469_v24 }
 0xdb2   :  { %5965 = vmatprep.subr.mxu1 %v8578_v17 }
 0xdb3   :  { %5966 = vmatpush3.msra.mxu1 %v5468_v13 }
 0xdb4   :  { %5967 = vmatprep.subr.mxu1 %v8578_v17 }
 0xdb5   :  { %5968 = vmatpush3.msra.mxu1 %v5467_v33 }
 0xdb6   :  { %5969 = vmatprep.subr.mxu1 %v8578_v17 }
 0xdb7   :  { %5970 = vmatpush3.msra.mxu1 %v5466_v23 }
 0xdb8   :  { %5971 = vmatprep.subr.mxu1 %v8578_v17 }
 0xdb9   :  { %5972 = vmatpush3.msra.mxu1 %v5465_v32 }
 0xdba   :  { %5973 = vmatprep.subr.mxu1 %v8578_v17 }
 0xdbb   :  { %5974 = vmatpush3.msra.mxu1 %v5464_v39 }
 0xdbc   :  { %5975 = vmatprep.subr.mxu1 %v8578_v17 }
 0xdbd   :  { %5976 = vmatpush3.msra.mxu1 %v5463_v34 }
 0xdbe   :  { %5977 = vmatprep.subr.mxu1 %v8578_v17 }
 0xdbf   :  { %5978 = vmatpush3.msra.mxu1 %v5462_v22 }
 0xdc0   :  { %5979 = vmatprep.subr.mxu1 %v8578_v17 }
 0xdc1   :  { %5980 = vmatpush3.msra.mxu1 %v5461_v19 }
 0xdc2   :  { %5981 = vmatprep.subr.mxu1 %v8578_v17 }
 0xdc3   :  { %5982 = vmatpush3.msra.mxu1 %v5460_v20 }
 0xdc4   :  { %5983 = vmatprep.subr.mxu1 %v8578_v17 }
 0xdc5   :  { %5984 = vmatpush3.msra.mxu1 %v5459_v54 }
 0xdc6   :  { %5985 = vmatprep.subr.mxu1 %v8578_v17 }
 0xdc7   :  { %5986 = vmatpush3.msra.mxu1 %v5458_v3 }
 0xdc8   :  { %5987 = vmatprep.subr.mxu1 %v8578_v17 }
 0xdc9   :  { %5988 = vmatpush3.msra.mxu1 %v5457_v35 }
 0xdca   :  { %5989 = vmatprep.subr.mxu1 %v8578_v17 }
 0xdcb   :  { %5990 = vmatpush3.msra.mxu1 %v5456_v31 }
 0xdcc   :  { %5991 = vmatprep.subr.mxu1 %v8578_v17 }
 0xdcd   :  { %5992 = vmatpush3.msra.mxu1 %v5455_v4 }
 0xdce   :  { %5993 = vmatprep.subr.mxu1 %v8578_v17 }
 0xdcf   :  { %5994 = vmatpush3.msra.mxu1 %v5454_v41 }
 0xe6e   :  { %v5920_v12 = vpop.f32.mrf.mxu0 }
 0xe6f   :  { %v5955_v21 = vpop.f32.mrf.mxu1 }
 0xe70   :  { %v5338_v61 = vadd.f32 %v5955_v21, %v5920_v12  ;;  %v5257_v46 = vpop.f32.mrf.mxu0 }
 0xe71   :  { %v5332_v7 = vpop.f32.mrf.mxu1 }
 0xe72   :  { %v5333_v27 = vadd.f32 %v5332_v7, %v5257_v46  ;;  %5957 = vmatpush3.msra.mxu0 %v5338_v61 }
 0xe73   :  { %5958 = vmatprep.subr.mxu0 %v8578_v17 }
 0xe74   :  { %5959 = vmatpush3.msra.mxu0 %v5333_v27 }
 0xe75   :  { %5961 = vmatmul.mubr.msk.f32.vlgmr.msra.gmra.mxu0 %vm1768_vm8, %v5341_v42 }
 0xf35   :  { %v5411_v5 = vpop.f32.mrf.mxu0 }
 0xf36   :  { %v5415_v50 = vsel %vm4214_vm2, %v5411_v5, 0.0 }
 0xf37   :  { %v5416_v28 = vrot.slane %v5415_v50, 4  ;;  %v5962_v52 = vpop.f32.mrf.mxu0 }
 0xf39   :  { %v5417_v44 = vadd.f32 %v5416_v28, %v5415_v50 }
 0xf3b   :  { %v5418_v2 = vrot.slane %v5417_v44, 2 }
 0xf3d   :  { %v5419_v9 = vadd.f32 %v5418_v2, %v5417_v44 }
 0xf3f   :  { %v5420_v14 = vrot.slane %v5419_v9, 1 }
 0xf41   :  { %v5421_v1 = vadd.f32 %v5420_v14, %v5419_v9 }
 0xf43   :  { %v5423_v59 = vmul.f32 0.5, %v5421_v1 }
 0xf45   :  { %v5424_v53 = vsub.f32 %v5411_v5, %v5423_v59 }
 0xf47   :  { %v5425_v57 = vmul.f32 %v5424_v53, %v5424_v53 }
 0xf49   :  { %v5426_v18 = vsel %vm4214_vm2, %v5425_v57, 0.0 }
 0xf4a   :  { %v5427_v11 = vrot.slane %v5426_v18, 4 }
 0xf4c   :  { %v5428_v40 = vadd.f32 %v5427_v11, %v5426_v18 }
 0xf4e   :  { %v5429_v17 = vrot.slane %v5428_v40, 2 }
 0xf50   :  { %v5430_v62 = vadd.f32 %v5429_v17, %v5428_v40 }
 0xf52   :  { %v5431_v43 = vrot.slane %v5430_v62, 1 }
 0xf54   :  { %v5432_v6 = vadd.f32 %v5431_v43, %v5430_v62 }
 0xf56   :  { %v5433_v58 = vmul.f32 0.5, %v5432_v6 }
 0xf58   :  { %v5434_v48 = vadd.f32 1e-05, %v5433_v58 }
 0xf5a   :  { %6051 = vrsqrt.f32 %v5434_v48 }
 0xf67   :  { %v6052_v56 = vpop.eup %6051 }
 0xf68   :  { %v5436_v45 = vmul.f32 %v6052_v56, %v8290_v63 }
 0xf6a   :  { %v5437_v10 = vmul.f32 %v5436_v45, %v5423_v59  ;;  %v5443_v29 = vrot.slane %v5436_v45, %v7672_v15 }
 0xf6c   :  { %v5438_v25 = vsub.f32 %v8292_v47, %v5437_v10  ;;  %v5445_v26 = vmul.f32 %v5443_v29, %v5411_v5 }
 0xf6e   :  { %v5450_v51 = vrot.slane %v5438_v25, %v7672_v15 }
 0xf70   :  { %v5452_v37 = vadd.f32 %v5450_v51, %v5445_v26 }
 0xf72   :  { %v5453_v0 = vmax.f32 %v5452_v37, 0.0 }
 0xf74   :  { %5996 = vmatmul.mubr.f32.vlgmr.msra.gmra.mxu1 %v5453_v0 }
0x1034   :  { %v5543_v49 = vpop.f32.mrf.mxu1 }
0x1035   :  { %v5544_v16 = vadd.f32 %v5700_v38, %v5543_v49 }
0x1036   :  { %v5997_v30 = vpop.f32.mrf.mxu1 }
0x1037   :  { %5547 = vst [vmem:[#allocation45] sm:$0x3] %v5544_v16 }
0x1038   :  { %6564 = shalt.err (!%p6561_p3)
}
0x1039   :  { %s8582_s7 = sld [smem:[#allocation103_spill]] }
0x103f   :  { %5557 = dma.vmem_to_hbm [thread:$0]  %s5555_s18, 32, %s8582_s7, [#allocation14]  }
0x1040   :  { %6603 = dma.done.wait [#allocation14], 32  }
0x1041   :  { %6604 = vsyncadd [#allocation14], 4294967264 }
0x1042   :  { %5561 = vsyncpa [#allocation13], 1 }
0x1043   :  { %5562 = vsyncpa [#allocation16], 1 }
0x1044   :  { %5563 = vsyncpa [#allocation19], 1 }
0x1045   :  { %5564 = vsyncpa [#allocation22], 1 }
0x1046   :  { %5565 = vsyncpa [#allocation25], 1 }
0x1047   :  { %5566 = vsyncpa [#allocation28], 1 }
0x1048   :  { %5567 = vsyncpa [#allocation31], 1 }
0x1049   :  { %5568 = vsyncpa [#allocation34], 1 }
0x104a   :  { %5569 = vsyncpa [#allocation37], 1 }
0x104b   :  { %5570 = vsyncpa [#allocation40], 1 }
0x104c   :  { %5571 = vsyncpa [#allocation43], 1 }
0x104d   :  { %5572 = vsyncpa [#allocation14], 1 }
0x104e   :  { %5573 = vsyncmov [#allocation11] }
0x1051   :  { %s5574_s20 = vpop.sfrf %5573 }
0x1052   :  { %p5701_p4 = scmp.ne.s32.totalorder %s5574_s20, 0 }
0x1054   :  { %5578 = shalt.err (%p5701_p4)  }
0x1055   :  { %5580 = vsyncmov [#allocation11 + $0x1] }
0x1058   :  { %s5581_s12 = vpop.sfrf %5580 }
0x1059   :  { %p5702_p5 = scmp.ne.s32.totalorder %s5581_s12, 0 }
0x105b   :  { %5585 = shalt.err (%p5702_p5)  }
0x105c   :  { %5587 = vsyncmov [#allocation11 + $0x2] }
0x105f   :  { %s5588_s1 = vpop.sfrf %5587 }
0x1060   :  { %p5703_p6 = scmp.ne.s32.totalorder %s5588_s1, 0 }
0x1062   :  { %5592 = shalt.err (%p5703_p6)  }
0x1063   :  { %5594 = vsyncmov [#allocation11 + $0x3] }
0x1066   :  { %s5595_s21 = vpop.sfrf %5594 }
0x1067   :  { %p5704_p7 = scmp.ne.s32.totalorder %s5595_s21, 0 }
0x1069   :  { %5599 = shalt.err (%p5704_p7)  }

</bundles_post_ra>
